<compile_context>
chip_gen: v7x
topology: tpu7x:2x2x1
jax: 0.10.0
libtpu: 0.0.40
codegen_flags: <defaults>
</compile_context>

<pallas_src>
import numpy as np
import jax
import jax.numpy as jnp
from jax.experimental import pallas as pl
from jax.experimental.pallas import tpu as pltpu

# ----------------------------- synthetic config -----------------------------
B             = 2          # batch
AUDIO_LEN     = 128        # raw waveform length
CONV_DIMS     = (16, 32)   # wav2vec2 feature-extractor channels
CONV_KERNELS  = (8, 4)
CONV_STRIDES  = (4, 2)
W2V_HIDDEN    = 32         # wav2vec2 encoder hidden size
W2V_HEADS     = 4
W2V_FFN       = 64
W2V_LAYERS    = 2
D_MODEL       = 32         # t5 d_model (reduction layer: W2V_HIDDEN -> D_MODEL)
T5_HEADS      = 4
D_KV          = 8          # per-head dim; INNER = T5_HEADS * D_KV == D_MODEL
D_FF          = 64
T5_ENC_LAYERS = 2
T5_DEC_LAYERS = 2
VOCAB         = 64
LOGIT_PAD     = 128        # vocab padded to 128 lanes for a dense logits store
DEC_LEN       = 8
REL_BUCKETS   = 8
REL_MAXDIST   = 16
NEG_INF       = -1e9
INNER         = T5_HEADS * D_KV

# The PyTorch reference passes no encoder attention_mask to T5 (HF then
# defaults to all-ones).  We propagate the audio feature mask into T5 encoder
# self-attention and decoder cross-attention; flip to False to reproduce the
# literal HF-default behaviour.
T5_USE_AUDIO_PADDING_MASK = True

# derived feature-extractor geometry
L0_FEAT = (AUDIO_LEN - CONV_KERNELS[0]) // CONV_STRIDES[0] + 1   # 31
S_FEAT  = (L0_FEAT - CONV_KERNELS[1]) // CONV_STRIDES[1] + 1     # 14

# the wide-attention trick below relies on identical head geometry everywhere
assert W2V_HEADS == T5_HEADS and W2V_HIDDEN // W2V_HEADS == D_KV
assert INNER == D_MODEL == W2V_HIDDEN

# conv1 stride handled via a phase (row de-interleave) layout so the fused
# kernel only needs contiguous static slices (no strided loads):
_S1 = CONV_STRIDES[1]
_PHASE_SIZES = [len(range(ph, L0_FEAT, _S1)) for ph in range(_S1)]
_PHASE_OFFSETS = [0]
for _n in _PHASE_SIZES[:-1]:
    _PHASE_OFFSETS.append(_PHASE_OFFSETS[-1] + _n)
_ROW_ORDER = np.concatenate([np.arange(ph, L0_FEAT, _S1) for ph in range(_S1)])
# conv0 patch gather indices (built once; positions permuted to phase order)
_CONV0_GATHER_IDX = (_ROW_ORDER[:, None] * CONV_STRIDES[0]
                     + np.arange(CONV_KERNELS[0])[None, :])       # (L0, K0)

VMEM_SPEC = pl.BlockSpec(memory_space=pltpu.MemorySpace.VMEM)


# ======================= parameter slab layouts (static) =====================
class _VecLayout:
    """One row per 1-D parameter, padded to 128 lanes."""
    def __init__(self):
        self.rows = 0
        self.index = {}            # name -> (row, true_width)

    def add(self, name, width):
        self.index[name] = (self.rows, width)
        self.rows += 1


class _SlabLayout:
    """Row-stacked matrices sharing one column width."""
    def __init__(self):
        self.rows = 0
        self.index = {}            # name -> (row, n_rows)

    def add(self, name, nrows):
        self.index[name] = (self.rows, nrows)
        self.rows += nrows


_VEC = _VecLayout()
_VEC.add("gn_g", CONV_DIMS[0]);      _VEC.add("gn_b", CONV_DIMS[0])
_VEC.add("feat_ln_g", CONV_DIMS[1]); _VEC.add("feat_ln_b", CONV_DIMS[1])
_VEC.add("proj_b", W2V_HIDDEN)
_VEC.add("enc_ln_g", W2V_HIDDEN);    _VEC.add("enc_ln_b", W2V_HIDDEN)
_VEC.add("red_b", D_MODEL)
for _l in range(W2V_LAYERS):
    for _nm in ("q_b", "k_b", "v_b", "o_b", "ln1_g", "ln1_b",
                "wo_b", "ln2_g", "ln2_b"):
        _VEC.add(f"w2v_{_nm}{_l}", W2V_HIDDEN)
    _VEC.add(f"w2v_wi_b{_l}", W2V_FFN)
for _l in range(T5_ENC_LAYERS):
    _VEC.add(f"t5e_ln1_{_l}", D_MODEL); _VEC.add(f"t5e_ln2_{_l}", D_MODEL)
_VEC.add("t5e_fln", D_MODEL)
for _l in range(T5_DEC_LAYERS):
    _VEC.add(f"t5d_ln1_{_l}", D_MODEL); _VEC.add(f"t5d_ln2_{_l}", D_MODEL)
    _VEC.add(f"t5d_ln3_{_l}", D_MODEL)
_VEC.add("t5d_fln", D_MODEL)

_W32 = _SlabLayout()                                   # all matrices with 32 cols
_W32.add("conv1_w", CONV_KERNELS[1] * CONV_DIMS[0])
_W32.add("proj_w", CONV_DIMS[1])
for _l in range(W2V_LAYERS):
    for _nm in ("q_w", "k_w", "v_w", "o_w"):
        _W32.add(f"w2v_{_nm}{_l}", W2V_HIDDEN)
    _W32.add(f"w2v_wo_w{_l}", W2V_FFN)
_W32.add("red_w", W2V_HIDDEN)
for _l in range(T5_ENC_LAYERS):
    _W32.add(f"t5e_q_w{_l}", D_MODEL); _W32.add(f"t5e_k_w{_l}", D_MODEL)
    _W32.add(f"t5e_v_w{_l}", D_MODEL); _W32.add(f"t5e_o_w{_l}", INNER)
    _W32.add(f"t5e_wo_w{_l}", D_FF)
for _l in range(T5_DEC_LAYERS):
    _W32.add(f"t5d_sq_w{_l}", D_MODEL); _W32.add(f"t5d_sk_w{_l}", D_MODEL)
    _W32.add(f"t5d_sv_w{_l}", D_MODEL); _W32.add(f"t5d_so_w{_l}", INNER)
    _W32.add(f"t5d_cq_w{_l}", D_MODEL); _W32.add(f"t5d_ck_w{_l}", D_MODEL)
    _W32.add(f"t5d_cv_w{_l}", D_MODEL); _W32.add(f"t5d_co_w{_l}", INNER)
    _W32.add(f"t5d_wo_w{_l}", D_FF)
_W32.add("shared_pad", LOGIT_PAD)                       # tied embedding, vocab-padded
_W32.add("hmask_S", T5_HEADS * B * S_FEAT)              # head-block masks (derived)
_W32.add("hmask_L", T5_HEADS * B * DEC_LEN)

_W64 = _SlabLayout()                                   # all matrices with 64 cols
for _l in range(W2V_LAYERS):
    _W64.add(f"w2v_wi_w{_l}", W2V_HIDDEN)
for _l in range(T5_ENC_LAYERS):
    _W64.add(f"t5e_wi_w{_l}", D_MODEL)
for _l in range(T5_DEC_LAYERS):
    _W64.add(f"t5d_wi_w{_l}", D_MODEL)

_DERIVED_W32 = ("shared_pad", "hmask_S", "hmask_L")


# ============================ in-kernel helpers ==============================
def _gelu(x):
    # TODO(synk): HF wav2vec2 uses exact erf-GELU; tanh approximation is used
    # here (erf has no guaranteed Mosaic lowering) -> tiny numerical drift.
    return jax.nn.gelu(x, approximate=True)


def _layernorm(x, g, b, eps=1e-5):
    mu = jnp.mean(x, axis=-1, keepdims=True)
    var = jnp.mean((x - mu) ** 2, axis=-1, keepdims=True)
    return (x - mu) * jax.lax.rsqrt(var + eps) * g + b


def _rmsnorm(x, g, eps=1e-6):
    var = jnp.mean(x * x, axis=-1, keepdims=True)
    return x * jax.lax.rsqrt(var + eps) * g


def _wide_attention(q, k, v, o_w, bias, hmask, nh):
    """Batch- and head-folded multi-head attention.

    q: (B*Sq, INNER)   k, v: (B*Sk, INNER)   o_w: (INNER, D_out)
    bias:  (B*Sq, nh*B*Sk) additive; already contains rel-pos bias, key-padding
           masks, causal mask, and -inf on cross-batch blocks.
    hmask: (nh*B*Sk, INNER) with hmask[c, j] = 1 iff row-block head(c) == head(j).

    K/V are tiled along sublanes and masked per head block, so scores, context,
    the per-(row, head) softmax denominator, and the output projection are each
    a single matmul (4 total) instead of per-(batch, head) loops.
    """
    k_exp = jnp.concatenate([k] * nh, axis=0) * hmask            # (nh*B*Sk, INNER)
    v_exp = jnp.concatenate([v] * nh, axis=0) * hmask
    s = jax.lax.dot_general(q, k_exp, (((1,), (1,)), ((), ())),
                            preferred_element_type=jnp.float32)  # (B*Sq, nh*B*Sk)
    s = s + bias
    # A single global row max is used for numerical stability; the per-head
    # normalisation below is still exact (the exp(-m) factor cancels).  At the
    # toy weight scales here no head block can underflow to zero.
    m = jnp.max(s, axis=-1, keepdims=True)
    p = jnp.exp(s - m)
    denom = jnp.dot(p, hmask, preferred_element_type=jnp.float32)   # per-head sums
    ctx = jnp.dot(p, v_exp, preferred_element_type=jnp.float32)     # (B*Sq, INNER)
    ctx = ctx * pl.reciprocal(jnp.maximum(denom, 1e-20), approx=True)
    return jnp.dot(ctx, o_w, preferred_element_type=jnp.float32)


# =========================== the single fused kernel =========================
def _model_kernel(patches0_ref, feat_mask_ref, w2v_bias_ref, t5e_bias_ref,
                  dec_emb_ref, dec_self_bias_ref, cross_bias_ref,
                  labels_ref, valid_ref,
                  conv0_w_ref, vecs_ref, w32_ref, w64_ref,
                  logits_ref, loss_ref):
    f32 = jnp.float32
    C0, C1 = CONV_DIMS
    K1 = CONV_KERNELS[1]
    S, Ld = S_FEAT, DEC_LEN

    vecs = vecs_ref[...]                                   # (n_vec, 128)

    def vrow(name):
        r, w = _VEC.index[name]
        return vecs[r:r + 1, :w]

    def m32(name):
        r, n = _W32.index[name]
        return w32_ref[r:r + n, :]

    def m64(name):
        r, n = _W64.index[name]
        return w64_ref[r:r + n, :]

    # ----------------- wav2vec2 conv feature extractor -----------------
    h0 = jnp.dot(patches0_ref[...], conv0_w_ref[...],
                 preferred_element_type=f32)               # (B*L0, C0)
    gn_g, gn_b = vrow("gn_g"), vrow("gn_b")
    rows = []
    for b in range(B):
        hb = h0[b * L0_FEAT:(b + 1) * L0_FEAT, :]
        # GroupNorm(num_groups == channels): per-(batch, channel) stats over
        # time; padded frames included, matching HF.
        mu = jnp.mean(hb, axis=0, keepdims=True)
        var = jnp.mean((hb - mu) ** 2, axis=0, keepdims=True)
        hb = _gelu((hb - mu) * jax.lax.rsqrt(var + 1e-5) * gn_g + gn_b)
        # conv1 stride-2 via the phase row layout: 4 contiguous tap slices
        # lane-concatenated into an im2col block.
        taps = []
        for j in range(K1):
            off = _PHASE_OFFSETS[j % _S1] + j // _S1
            taps.append(hb[off:off + S, :])
        rows.append(jnp.concatenate(taps, axis=1))         # (S, K1*C0)
    im2col = rows[0] if B == 1 else jnp.concatenate(rows, axis=0)   # (B*S, 64)
    x = _gelu(jnp.dot(im2col, m32("conv1_w"), preferred_element_type=f32))

    # ----------------- feature projection -----------------
    x = _layernorm(x, vrow("feat_ln_g"), vrow("feat_ln_b"))
    h = jnp.dot(x, m32("proj_w"), preferred_element_type=f32) + vrow("proj_b")
    h = h * feat_mask_ref[...]                  # zero padded frames (HF masking)
    # TODO(synk): Wav2Vec2 convolutional positional embedding (pos_conv_embed)
    #             omitted.
    h = _layernorm(h, vrow("enc_ln_g"), vrow("enc_ln_b"))

    hmask_S = m32("hmask_S")                    # (H*B*S,  INNER)
    hmask_L = m32("hmask_L")                    # (H*B*Ld, INNER)

    # ----------------- wav2vec2 transformer encoder (post-norm) -----------------
    w2v_bias = w2v_bias_ref[...]                # (B*S, H*B*S)
    dh = W2V_HIDDEN // W2V_HEADS
    scale = dh ** -0.5
    for l in range(W2V_LAYERS):
        q = (jnp.dot(h, m32(f"w2v_q_w{l}"), preferred_element_type=f32)
             + vrow(f"w2v_q_b{l}")) * scale
        k = jnp.dot(h, m32(f"w2v_k_w{l}"), preferred_element_type=f32) + vrow(f"w2v_k_b{l}")
        v = jnp.dot(h, m32(f"w2v_v_w{l}"), preferred_element_type=f32) + vrow(f"w2v_v_b{l}")
        a = _wide_attention(q, k, v, m32(f"w2v_o_w{l}"), w2v_bias, hmask_S,
                            W2V_HEADS) + vrow(f"w2v_o_b{l}")
        h = _layernorm(h + a, vrow(f"w2v_ln1_g{l}"), vrow(f"w2v_ln1_b{l}"))
        ff = _gelu(jnp.dot(h, m64(f"w2v_wi_w{l}"), preferred_element_type=f32)
                   + vrow(f"w2v_wi_b{l}"))
        ff = (jnp.dot(ff, m32(f"w2v_wo_w{l}"), preferred_element_type=f32)
              + vrow(f"w2v_wo_b{l}"))
        h = _layernorm(h + ff, vrow(f"w2v_ln2_g{l}"), vrow(f"w2v_ln2_b{l}"))

    # ----------------- reduction layer: wav2vec hidden -> t5 d_model -----------------
    e = jnp.dot(h, m32("red_w"), preferred_element_type=f32) + vrow("red_b")

    # ----------------- T5 encoder (pre-RMSNorm) -----------------
    t5e_bias = t5e_bias_ref[...]
    for l in range(T5_ENC_LAYERS):
        n = _rmsnorm(e, vrow(f"t5e_ln1_{l}"))
        q = jnp.dot(n, m32(f"t5e_q_w{l}"), preferred_element_type=f32)
        k = jnp.dot(n, m32(f"t5e_k_w{l}"), preferred_element_type=f32)
        v = jnp.dot(n, m32(f"t5e_v_w{l}"), preferred_element_type=f32)
        e = e + _wide_attention(q, k, v, m32(f"t5e_o_w{l}"), t5e_bias, hmask_S,
                                T5_HEADS)
        n = _rmsnorm(e, vrow(f"t5e_ln2_{l}"))
        ff = jnp.maximum(jnp.dot(n, m64(f"t5e_wi_w{l}"),
                                 preferred_element_type=f32), 0.0)
        e = e + jnp.dot(ff, m32(f"t5e_wo_w{l}"), preferred_element_type=f32)
    enc = _rmsnorm(e, vrow("t5e_fln"))                     # (B*S, D)

    # ----------------- T5 decoder -----------------
    d = dec_emb_ref[...]                                   # (B*Ld, D)
    sbias = dec_self_bias_ref[...]                         # (B*Ld, H*B*Ld)
    cbias = cross_bias_ref[...]                            # (B*Ld, H*B*S)
    for l in range(T5_DEC_LAYERS):
        # masked self-attention
        n = _rmsnorm(d, vrow(f"t5d_ln1_{l}"))
        q = jnp.dot(n, m32(f"t5d_sq_w{l}"), preferred_element_type=f32)
        k = jnp.dot(n, m32(f"t5d_sk_w{l}"), preferred_element_type=f32)
        v = jnp.dot(n, m32(f"t5d_sv_w{l}"), preferred_element_type=f32)
        d = d + _wide_attention(q, k, v, m32(f"t5d_so_w{l}"), sbias, hmask_L,
                                T5_HEADS)
        # cross-attention over encoder output
        n = _rmsnorm(d, vrow(f"t5d_ln2_{l}"))
        q = jnp.dot(n, m32(f"t5d_cq_w{l}"), preferred_element_type=f32)
        k = jnp.dot(enc, m32(f"t5d_ck_w{l}"), preferred_element_type=f32)
        v = jnp.dot(enc, m32(f"t5d_cv_w{l}"), preferred_element_type=f32)
        d = d + _wide_attention(q, k, v, m32(f"t5d_co_w{l}"), cbias, hmask_S,
                                T5_HEADS)
        # FFN (ReLU)
        n = _rmsnorm(d, vrow(f"t5d_ln3_{l}"))
        ff = jnp.maximum(jnp.dot(n, m64(f"t5d_wi_w{l}"),
                                 preferred_element_type=f32), 0.0)
        d = d + jnp.dot(ff, m32(f"t5d_wo_w{l}"), preferred_element_type=f32)

    # ----------------- tied LM head (vocab padded to 128 lanes) -----------------
    d = _rmsnorm(d, vrow("t5d_fln")) * (D_MODEL ** -0.5)
    logits = jax.lax.dot_general(d, m32("shared_pad"), (((1,), (1,)), ((), ())),
                                 preferred_element_type=f32)    # (B*Ld, 128)
    logits_ref[...] = logits

    # ----------------- token-level cross entropy (ignore_index via valid mask) ---
    vocab_ids = jax.lax.broadcasted_iota(jnp.int32, logits.shape, 1)
    lm = jnp.where(vocab_ids < VOCAB, logits, NEG_INF)      # mask padded vocab lanes
    mx = jnp.max(lm, axis=-1, keepdims=True)
    lse = jnp.log(jnp.sum(jnp.exp(lm - mx), axis=-1, keepdims=True)) + mx
    tgt = jnp.sum(jnp.where(vocab_ids == labels_ref[...], logits, 0.0),
                  axis=-1, keepdims=True)
    nll = (lse - tgt) * valid_ref[...]
    total = jnp.sum(nll, axis=0, keepdims=True)
    count = jnp.sum(valid_ref[...], axis=0, keepdims=True)
    loss_ref[...] = total / jnp.maximum(count, 1.0)


# ============================ pallas_call wrapper ============================
def _fused_call(prep, patches0, feat_mask_col, w2v_bias, t5e_bias, dec_emb,
                dec_self_bias, cross_bias, labels_clamped, valid):
    ins = (patches0, feat_mask_col, w2v_bias, t5e_bias, dec_emb,
           dec_self_bias, cross_bias, labels_clamped, valid,
           prep["conv0_w"], prep["vecs"], prep["w32"], prep["w64"])
    return pl.pallas_call(
        _model_kernel,
        out_shape=(jax.ShapeDtypeStruct((B * DEC_LEN, LOGIT_PAD), jnp.float32),
                   jax.ShapeDtypeStruct((1, 1), jnp.float32)),
        in_specs=[VMEM_SPEC] * len(ins),
        out_specs=(VMEM_SPEC, VMEM_SPEC),
        compiler_params=pltpu.CompilerParams(vmem_limit_bytes=32 * 1024 * 1024),
        cost_estimate=pl.CostEstimate(flops=7_000_000, transcendentals=64_000,
                                      bytes_accessed=600_000),
    )(*ins)


# ==================== host-side statics: rel-pos bias etc. ===================
def _rel_pos_bucket_np(relative_position, bidirectional, num_buckets, max_distance):
    rp = relative_position.astype(np.int64)
    if bidirectional:
        nb = num_buckets // 2
        ret = (rp > 0).astype(np.int64) * nb
        rp = np.abs(rp)
    else:
        nb = num_buckets
        ret = np.zeros_like(rp)
        rp = -np.minimum(rp, 0)
    max_exact = nb // 2
    is_small = rp < max_exact
    rp_f = np.maximum(rp.astype(np.float64), 1.0)
    rp_large = max_exact + (np.log(rp_f / max_exact)
                            / np.log(max_distance / max_exact)
                            * (nb - max_exact)).astype(np.int64)
    rp_large = np.minimum(rp_large, nb - 1)
    return ret + np.where(is_small, rp, rp_large)


def _rel_bias_np(rel_emb, q_len, k_len, bidirectional):
    ctx = np.arange(q_len)[:, None]
    mem = np.arange(k_len)[None, :]
    buckets = _rel_pos_bucket_np(mem - ctx, bidirectional, REL_BUCKETS, REL_MAXDIST)
    bias = np.asarray(rel_emb)[buckets]                    # (q, k, H)
    return np.transpose(bias, (2, 0, 1)).astype(np.float32)   # (H, q, k)


def _rel_wide_np(rel_hqk, sq, sk):
    """(H, sq, sk) -> (B*sq, H*B*sk) wide-attention layout (tiled over batches)."""
    a = np.transpose(rel_hqk, (1, 0, 2))                   # (sq, H, sk)
    a = np.broadcast_to(a[None, :, :, None, :], (B, sq, T5_HEADS, B, sk))
    return np.reshape(a, (B * sq, T5_HEADS * B * sk)).astype(np.float32)


def _head_mask_np(rows_k):
    """(H*rows_k, INNER) head-block expansion mask."""
    rh = np.arange(T5_HEADS * rows_k)[:, None] // rows_k
    ch = np.arange(INNER)[None, :] // D_KV
    return (rh == ch).astype(np.float32)


# ================================ parameters =================================
class _KeyGen:
    def __init__(self, key):
        self._key = key

    def __call__(self):
        self._key, sub = jax.random.split(self._key)
        return sub


def _w(kg, shape, std=0.02):
    return jax.random.normal(kg(), shape, jnp.float32) * std


def init_params(key):
    kg = _KeyGen(key)
    C0, C1 = CONV_DIMS
    K0, K1 = CONV_KERNELS
    D = W2V_HIDDEN
    ones = lambda n: jnp.ones((n,), jnp.float32)
    zeros = lambda n: jnp.zeros((n,), jnp.float32)
    p = {}
    # --- wav2vec2 feature extractor ---
    p["conv0_w"] = _w(kg, (K0, C0))
    p["gn_g"] = ones(C0); p["gn_b"] = zeros(C0)
    p["conv1_w"] = _w(kg, (K1 * C0, C1))
    p["feat_ln_g"] = ones(C1); p["feat_ln_b"] = zeros(C1)
    p["proj_w"] = _w(kg, (C1, D)); p["proj_b"] = zeros(D)
    p["enc_ln_g"] = ones(D); p["enc_ln_b"] = zeros(D)
    # --- wav2vec2 transformer encoder ---
    for l in range(W2V_LAYERS):
        p[f"w2v_q_w{l}"] = _w(kg, (D, D)); p[f"w2v_q_b{l}"] = zeros(D)
        p[f"w2v_k_w{l}"] = _w(kg, (D, D)); p[f"w2v_k_b{l}"] = zeros(D)
        p[f"w2v_v_w{l}"] = _w(kg, (D, D)); p[f"w2v_v_b{l}"] = zeros(D)
        p[f"w2v_o_w{l}"] = _w(kg, (D, D)); p[f"w2v_o_b{l}"] = zeros(D)
        p[f"w2v_ln1_g{l}"] = ones(D); p[f"w2v_ln1_b{l}"] = zeros(D)
        p[f"w2v_wi_w{l}"] = _w(kg, (D, W2V_FFN)); p[f"w2v_wi_b{l}"] = zeros(W2V_FFN)
        p[f"w2v_wo_w{l}"] = _w(kg, (W2V_FFN, D)); p[f"w2v_wo_b{l}"] = zeros(D)
        p[f"w2v_ln2_g{l}"] = ones(D); p[f"w2v_ln2_b{l}"] = zeros(D)
    # --- reduction layer ---
    p["red_w"] = _w(kg, (D, D_MODEL)); p["red_b"] = zeros(D_MODEL)
    # --- T5 ---
    p["shared"] = _w(kg, (VOCAB, D_MODEL))
    p["enc_rel"] = _w(kg, (REL_BUCKETS, T5_HEADS))
    p["dec_rel"] = _w(kg, (REL_BUCKETS, T5_HEADS))
    for l in range(T5_ENC_LAYERS):
        p[f"t5e_ln1_{l}"] = ones(D_MODEL)
        p[f"t5e_q_w{l}"] = _w(kg, (D_MODEL, INNER))
        p[f"t5e_k_w{l}"] = _w(kg, (D_MODEL, INNER))
        p[f"t5e_v_w{l}"] = _w(kg, (D_MODEL, INNER))
        p[f"t5e_o_w{l}"] = _w(kg, (INNER, D_MODEL))
        p[f"t5e_ln2_{l}"] = ones(D_MODEL)
        p[f"t5e_wi_w{l}"] = _w(kg, (D_MODEL, D_FF))
        p[f"t5e_wo_w{l}"] = _w(kg, (D_FF, D_MODEL))
    p["t5e_fln"] = ones(D_MODEL)
    for l in range(T5_DEC_LAYERS):
        p[f"t5d_ln1_{l}"] = ones(D_MODEL)
        p[f"t5d_sq_w{l}"] = _w(kg, (D_MODEL, INNER))
        p[f"t5d_sk_w{l}"] = _w(kg, (D_MODEL, INNER))
        p[f"t5d_sv_w{l}"] = _w(kg, (D_MODEL, INNER))
        p[f"t5d_so_w{l}"] = _w(kg, (INNER, D_MODEL))
        p[f"t5d_ln2_{l}"] = ones(D_MODEL)
        p[f"t5d_cq_w{l}"] = _w(kg, (D_MODEL, INNER))
        p[f"t5d_ck_w{l}"] = _w(kg, (D_MODEL, INNER))
        p[f"t5d_cv_w{l}"] = _w(kg, (D_MODEL, INNER))
        p[f"t5d_co_w{l}"] = _w(kg, (INNER, D_MODEL))
        p[f"t5d_ln3_{l}"] = ones(D_MODEL)
        p[f"t5d_wi_w{l}"] = _w(kg, (D_MODEL, D_FF))
        p[f"t5d_wo_w{l}"] = _w(kg, (D_FF, D_MODEL))
    p["t5d_fln"] = ones(D_MODEL)
    return p


def prepare_params(p):
    """Pack parameters into lane-dense slabs and precompute static glue (host)."""
    vecs = np.zeros((_VEC.rows, 128), np.float32)
    for name, (r, w) in _VEC.index.items():
        vecs[r, :w] = np.asarray(p[name]).reshape(-1)

    w32 = np.zeros((_W32.rows, 32), np.float32)
    for name, (r, n) in _W32.index.items():
        if name in _DERIVED_W32:
            continue
        w32[r:r + n, :] = np.asarray(p[name])
    r, _ = _W32.index["shared_pad"]
    w32[r:r + VOCAB, :] = np.asarray(p["shared"])
    r, n = _W32.index["hmask_S"]
    w32[r:r + n, :] = _head_mask_np(B * S_FEAT)
    r, n = _W32.index["hmask_L"]
    w32[r:r + n, :] = _head_mask_np(B * DEC_LEN)

    w64 = np.zeros((_W64.rows, 64), np.float32)
    for name, (r, n) in _W64.index.items():
        w64[r:r + n, :] = np.asarray(p[name])

    enc_rel = _rel_bias_np(p["enc_rel"], S_FEAT, S_FEAT, bidirectional=True)
    dec_rel = _rel_bias_np(p["dec_rel"], DEC_LEN, DEC_LEN, bidirectional=False)
    causal_extra = ((1.0 - np.tril(np.ones((DEC_LEN, DEC_LEN), np.float32)))
                    * NEG_INF)

    return {
        "conv0_w": jnp.asarray(p["conv0_w"]),
        "vecs": jnp.asarray(vecs),
        "w32": jnp.asarray(w32),
        "w64": jnp.asarray(w64),
        "shared": jnp.asarray(p["shared"]),
        "enc_rel_wide": jnp.asarray(_rel_wide_np(enc_rel, S_FEAT, S_FEAT)),
        "dec_rel_wide": jnp.asarray(_rel_wide_np(dec_rel, DEC_LEN, DEC_LEN)),
        "causal_extra": jnp.asarray(causal_extra),
    }


# ====================== per-forward additive attention bias ==================
def _assemble_bias(key_bias, sq, sk, rel_wide=None, extra_qk=None):
    """Build the (B*sq, H*B*sk) additive bias for the wide attention layout.

    key_bias: (B, sk) additive key-padding bias (for the KEY's batch).
    extra_qk: optional (sq, sk) additive mask (causal), same for all batches.
    Cross-batch blocks always get -inf (artifact of folding batches into rows).
    """
    nh = T5_HEADS
    cross = (1.0 - jnp.eye(B, dtype=jnp.float32)) * NEG_INF          # (Bq, Bk)
    kb = key_bias[None, :, :] + cross[:, :, None]                    # (Bq, Bk, sk)
    bias = jnp.broadcast_to(kb[:, None, None, :, :], (B, sq, nh, B, sk))
    if extra_qk is not None:
        bias = bias + extra_qk[None, :, None, None, :]
    bias = bias.reshape(B * sq, nh * B * sk)
    if rel_wide is not None:
        bias = bias + rel_wide
    return bias


# ================================== forward ==================================
def forward(prep, input_values, attention_mask, labels, decoder_attention_mask):
    Bsz = input_values.shape[0]
    Ld = labels.shape[1]

    # ---- one-time glue: conv0 patch gather (phase row order), masks ----
    patches0 = input_values[:, _CONV0_GATHER_IDX]              # (B, L0, K0)
    patches0 = patches0.reshape(Bsz * L0_FEAT, CONV_KERNELS[0])

    lengths = jnp.sum(attention_mask, axis=-1).astype(jnp.int32)
    for k, s in zip(CONV_KERNELS, CONV_STRIDES):
        lengths = (lengths - k) // s + 1
    feat_mask = (jnp.arange(S_FEAT)[None, :] < lengths[:, None]).astype(jnp.float32)
    key_bias_feat = (1.0 - feat_mask) * NEG_INF                # (B, S) additive
    feat_mask_col = feat_mask.reshape(Bsz * S_FEAT, 1)
    t5_key_bias = (key_bias_feat if T5_USE_AUDIO_PADDING_MASK
                   else jnp.zeros_like(key_bias_feat))

    # ---- additive attention biases in the wide (batch+head folded) layout ----
    w2v_bias = _assemble_bias(key_bias_feat, S_FEAT, S_FEAT)
    t5e_bias = _assemble_bias(t5_key_bias, S_FEAT, S_FEAT,
                              rel_wide=prep["enc_rel_wide"])
    cross_bias = _assemble_bias(t5_key_bias, Ld, S_FEAT)
    dec_key_bias = (1.0 - decoder_attention_mask.astype(jnp.float32)) * NEG_INF
    dec_self_bias = _assemble_bias(dec_key_bias, Ld, Ld,
                                   rel_wide=prep["dec_rel_wide"],
                                   extra_qk=prep["causal_extra"])

    # ---- decoder glue: shift-right, embedding gather, labels ----
    dec_in = jnp.concatenate(
        [jnp.zeros((Bsz, 1), labels.dtype), labels[:, :-1]], axis=1)
    dec_in = jnp.where(dec_in == -100, 0, dec_in)
    dec_emb = prep["shared"][dec_in].reshape(Bsz * Ld, D_MODEL)

    labels_clamped = jnp.where(labels < 0, 0, labels).astype(jnp.int32)
    labels_clamped = labels_clamped.reshape(Bsz * Ld, 1)
    valid = (labels != -100).astype(jnp.float32).reshape(Bsz * Ld, 1)

    # ---- the single fused kernel ----
    logits_pad, loss = _fused_call(prep, patches0, feat_mask_col, w2v_bias,
                                   t5e_bias, dec_emb, dec_self_bias, cross_bias,
                                   labels_clamped, valid)
    logits = logits_pad[:, :VOCAB].reshape(Bsz, Ld, VOCAB)
    return {"loss": loss[0, 0], "logits": logits}


# ==================================== main ===================================
if __name__ == "__main__":
    key = jax.random.PRNGKey(0)
    pkey, k1, k2 = jax.random.split(key, 3)

    params = init_params(pkey)
    prep = prepare_params(params)          # packing + static glue, outside jit

    input_values = jax.random.normal(k1, (B, AUDIO_LEN), jnp.float32)
    attention_mask = jnp.stack([
        jnp.ones((AUDIO_LEN,), jnp.float32),
        (jnp.arange(AUDIO_LEN) < 96).astype(jnp.float32),
    ])
    labels = jax.random.randint(k2, (B, DEC_LEN), 0, VOCAB, dtype=jnp.int32)
    decoder_attention_mask = jnp.stack([
        jnp.ones((DEC_LEN,), jnp.int32),
        (jnp.arange(DEC_LEN) < DEC_LEN - 2).astype(jnp.int32),
    ])
    labels = jnp.where(decoder_attention_mask == 1, labels, -100)

    out = jax.jit(forward)(prep, input_values, attention_mask,
                           labels, decoder_attention_mask)
    jax.block_until_ready(out)
    assert out["logits"].shape == (B, DEC_LEN, VOCAB)
    assert bool(jnp.isfinite(out["loss"]))
    print("KERNEL_OK")
</pallas_src>

<mosaic_0001>
module attributes {stable_mosaic.version = 11 : i64} {
  func.func @_model_kernel(%arg0: memref<62x8xf32, #tpu.memory_space<vmem>>, %arg1: memref<28x1xf32, #tpu.memory_space<vmem>>, %arg2: memref<28x112xf32, #tpu.memory_space<vmem>>, %arg3: memref<28x112xf32, #tpu.memory_space<vmem>>, %arg4: memref<16x32xf32, #tpu.memory_space<vmem>>, %arg5: memref<16x64xf32, #tpu.memory_space<vmem>>, %arg6: memref<16x112xf32, #tpu.memory_space<vmem>>, %arg7: memref<16x1xi32, #tpu.memory_space<vmem>>, %arg8: memref<16x1xf32, #tpu.memory_space<vmem>>, %arg9: memref<8x16xf32, #tpu.memory_space<vmem>>, %arg10: memref<40x128xf32, #tpu.memory_space<vmem>>, %arg11: memref<1840x32xf32, #tpu.memory_space<vmem>>, %arg12: memref<192x64xf32, #tpu.memory_space<vmem>>, %arg13: memref<16x128xf32, #tpu.memory_space<vmem>>, %arg14: memref<1x1xf32, #tpu.memory_space<vmem>>) attributes {dimension_semantics = [], scalar_prefetch = 0 : i64, scratch_operands = 0 : i64, tpu.core_type = #tpu.core_type<tc>} {
    %c0 = arith.constant 0 : index
    %c0_0 = arith.constant 0 : index
    %0 = vector.load %arg10[%c0, %c0_0] : memref<40x128xf32, #tpu.memory_space<vmem>>, vector<40x128xf32>
    %c0_1 = arith.constant 0 : index
    %c0_2 = arith.constant 0 : index
    %1 = vector.load %arg0[%c0_1, %c0_2] : memref<62x8xf32, #tpu.memory_space<vmem>>, vector<62x8xf32>
    %c0_3 = arith.constant 0 : index
    %c0_4 = arith.constant 0 : index
    %2 = vector.load %arg9[%c0_3, %c0_4] : memref<8x16xf32, #tpu.memory_space<vmem>>, vector<8x16xf32>
    %cst = arith.constant dense<0.000000e+00> : vector<62x16xf32>
    %3 = tpu.matmul %1, %2, %cst {dimension_numbers = #tpu.dot_dimension_numbers<[1], [0], [0], [1], [0, 0, 1, 1], [], []>} : vector<62x8xf32>, vector<8x16xf32>, vector<62x16xf32> -> vector<62x16xf32>
    %4 = vector.extract_strided_slice %0 {offsets = [0, 0], sizes = [1, 16], strides = [1, 1]} : vector<40x128xf32> to vector<1x16xf32>
    %5 = vector.extract_strided_slice %0 {offsets = [1, 0], sizes = [1, 16], strides = [1, 1]} : vector<40x128xf32> to vector<1x16xf32>
    %6 = vector.extract_strided_slice %3 {offsets = [0, 0], sizes = [31, 16], strides = [1, 1]} : vector<62x16xf32> to vector<31x16xf32>
    %cst_5 = arith.constant dense<0.000000e+00> : vector<16xf32>
    %7 = vector.multi_reduction <add>, %6, %cst_5 [0] : vector<31x16xf32> to vector<16xf32>
    %8 = vector.shape_cast %7 : vector<16xf32> to vector<1x16xf32>
    %cst_6 = arith.constant 3.100000e+01 : f32
    %9 = vector.broadcast %cst_6 : f32 to vector<1x16xf32>
    %10 = arith.divf %8, %9 : vector<1x16xf32>
    %11 = vector.broadcast %10 : vector<1x16xf32> to vector<31x16xf32>
    %12 = arith.subf %6, %11 : vector<31x16xf32>
    %13 = arith.mulf %12, %12 : vector<31x16xf32>
    %cst_7 = arith.constant dense<0.000000e+00> : vector<16xf32>
    %14 = vector.multi_reduction <add>, %13, %cst_7 [0] : vector<31x16xf32> to vector<16xf32>
    %15 = vector.shape_cast %14 : vector<16xf32> to vector<1x16xf32>
    %cst_8 = arith.constant 3.100000e+01 : f32
    %16 = vector.broadcast %cst_8 : f32 to vector<1x16xf32>
    %17 = arith.divf %15, %16 : vector<1x16xf32>
    %18 = vector.broadcast %10 : vector<1x16xf32> to vector<31x16xf32>
    %19 = arith.subf %6, %18 : vector<31x16xf32>
    %cst_9 = arith.constant 9.99999974E-6 : f32
    %20 = vector.broadcast %cst_9 : f32 to vector<1x16xf32>
    %21 = arith.addf %17, %20 : vector<1x16xf32>
    %22 = math.rsqrt %21 : vector<1x16xf32>
    %23 = vector.broadcast %22 : vector<1x16xf32> to vector<31x16xf32>
    %24 = arith.mulf %19, %23 : vector<31x16xf32>
    %25 = vector.broadcast %4 : vector<1x16xf32> to vector<31x16xf32>
    %26 = arith.mulf %24, %25 : vector<31x16xf32>
    %27 = vector.broadcast %5 : vector<1x16xf32> to vector<31x16xf32>
    %28 = arith.addf %26, %27 : vector<31x16xf32>
    %29 = arith.mulf %28, %28 : vector<31x16xf32>
    %30 = arith.mulf %28, %29 : vector<31x16xf32>
    %cst_10 = arith.constant 4.471500e-02 : f32
    %31 = vector.broadcast %cst_10 : f32 to vector<31x16xf32>
    %32 = arith.mulf %31, %30 : vector<31x16xf32>
    %33 = arith.addf %28, %32 : vector<31x16xf32>
    %cst_11 = arith.constant 0.797884583 : f32
    %34 = vector.broadcast %cst_11 : f32 to vector<31x16xf32>
    %35 = arith.mulf %34, %33 : vector<31x16xf32>
    %36 = math.tanh %35 : vector<31x16xf32>
    %cst_12 = arith.constant 1.000000e+00 : f32
    %37 = vector.broadcast %cst_12 : f32 to vector<31x16xf32>
    %38 = arith.addf %37, %36 : vector<31x16xf32>
    %cst_13 = arith.constant 5.000000e-01 : f32
    %39 = vector.broadcast %cst_13 : f32 to vector<31x16xf32>
    %40 = arith.mulf %39, %38 : vector<31x16xf32>
    %41 = arith.mulf %28, %40 : vector<31x16xf32>
    %42 = vector.extract_strided_slice %41 {offsets = [0, 0], sizes = [14, 16], strides = [1, 1]} : vector<31x16xf32> to vector<14x16xf32>
    %43 = vector.extract_strided_slice %41 {offsets = [16, 0], sizes = [14, 16], strides = [1, 1]} : vector<31x16xf32> to vector<14x16xf32>
    %44 = vector.extract_strided_slice %41 {offsets = [1, 0], sizes = [14, 16], strides = [1, 1]} : vector<31x16xf32> to vector<14x16xf32>
    %45 = vector.extract_strided_slice %41 {offsets = [17, 0], sizes = [14, 16], strides = [1, 1]} : vector<31x16xf32> to vector<14x16xf32>
    %46 = tpu.concatenate %42, %43, %44, %45 in 1 : vector<14x16xf32>, vector<14x16xf32>, vector<14x16xf32>, vector<14x16xf32> -> vector<14x64xf32>
    %47 = vector.extract_strided_slice %3 {offsets = [31, 0], sizes = [31, 16], strides = [1, 1]} : vector<62x16xf32> to vector<31x16xf32>
    %cst_14 = arith.constant dense<0.000000e+00> : vector<16xf32>
    %48 = vector.multi_reduction <add>, %47, %cst_14 [0] : vector<31x16xf32> to vector<16xf32>
    %49 = vector.shape_cast %48 : vector<16xf32> to vector<1x16xf32>
    %cst_15 = arith.constant 3.100000e+01 : f32
    %50 = vector.broadcast %cst_15 : f32 to vector<1x16xf32>
    %51 = arith.divf %49, %50 : vector<1x16xf32>
    %52 = vector.broadcast %51 : vector<1x16xf32> to vector<31x16xf32>
    %53 = arith.subf %47, %52 : vector<31x16xf32>
    %54 = arith.mulf %53, %53 : vector<31x16xf32>
    %cst_16 = arith.constant dense<0.000000e+00> : vector<16xf32>
    %55 = vector.multi_reduction <add>, %54, %cst_16 [0] : vector<31x16xf32> to vector<16xf32>
    %56 = vector.shape_cast %55 : vector<16xf32> to vector<1x16xf32>
    %cst_17 = arith.constant 3.100000e+01 : f32
    %57 = vector.broadcast %cst_17 : f32 to vector<1x16xf32>
    %58 = arith.divf %56, %57 : vector<1x16xf32>
    %59 = vector.broadcast %51 : vector<1x16xf32> to vector<31x16xf32>
    %60 = arith.subf %47, %59 : vector<31x16xf32>
    %cst_18 = arith.constant 9.99999974E-6 : f32
    %61 = vector.broadcast %cst_18 : f32 to vector<1x16xf32>
    %62 = arith.addf %58, %61 : vector<1x16xf32>
    %63 = math.rsqrt %62 : vector<1x16xf32>
    %64 = vector.broadcast %63 : vector<1x16xf32> to vector<31x16xf32>
    %65 = arith.mulf %60, %64 : vector<31x16xf32>
    %66 = vector.broadcast %4 : vector<1x16xf32> to vector<31x16xf32>
    %67 = arith.mulf %65, %66 : vector<31x16xf32>
    %68 = vector.broadcast %5 : vector<1x16xf32> to vector<31x16xf32>
    %69 = arith.addf %67, %68 : vector<31x16xf32>
    %70 = arith.mulf %69, %69 : vector<31x16xf32>
    %71 = arith.mulf %69, %70 : vector<31x16xf32>
    %cst_19 = arith.constant 4.471500e-02 : f32
    %72 = vector.broadcast %cst_19 : f32 to vector<31x16xf32>
    %73 = arith.mulf %72, %71 : vector<31x16xf32>
    %74 = arith.addf %69, %73 : vector<31x16xf32>
    %cst_20 = arith.constant 0.797884583 : f32
    %75 = vector.broadcast %cst_20 : f32 to vector<31x16xf32>
    %76 = arith.mulf %75, %74 : vector<31x16xf32>
    %77 = math.tanh %76 : vector<31x16xf32>
    %cst_21 = arith.constant 1.000000e+00 : f32
    %78 = vector.broadcast %cst_21 : f32 to vector<31x16xf32>
    %79 = arith.addf %78, %77 : vector<31x16xf32>
    %cst_22 = arith.constant 5.000000e-01 : f32
    %80 = vector.broadcast %cst_22 : f32 to vector<31x16xf32>
    %81 = arith.mulf %80, %79 : vector<31x16xf32>
    %82 = arith.mulf %69, %81 : vector<31x16xf32>
    %83 = vector.extract_strided_slice %82 {offsets = [0, 0], sizes = [14, 16], strides = [1, 1]} : vector<31x16xf32> to vector<14x16xf32>
    %84 = vector.extract_strided_slice %82 {offsets = [16, 0], sizes = [14, 16], strides = [1, 1]} : vector<31x16xf32> to vector<14x16xf32>
    %85 = vector.extract_strided_slice %82 {offsets = [1, 0], sizes = [14, 16], strides = [1, 1]} : vector<31x16xf32> to vector<14x16xf32>
    %86 = vector.extract_strided_slice %82 {offsets = [17, 0], sizes = [14, 16], strides = [1, 1]} : vector<31x16xf32> to vector<14x16xf32>
    %87 = tpu.concatenate %83, %84, %85, %86 in 1 : vector<14x16xf32>, vector<14x16xf32>, vector<14x16xf32>, vector<14x16xf32> -> vector<14x64xf32>
    %88 = tpu.concatenate %46, %87 in 0 : vector<14x64xf32>, vector<14x64xf32> -> vector<28x64xf32>
    %c0_23 = arith.constant 0 : index
    %c0_24 = arith.constant 0 : index
    %89 = vector.load %arg11[%c0_23, %c0_24] : memref<1840x32xf32, #tpu.memory_space<vmem>>, vector<64x32xf32>
    %cst_25 = arith.constant dense<0.000000e+00> : vector<28x32xf32>
    %90 = tpu.matmul %88, %89, %cst_25 {dimension_numbers = #tpu.dot_dimension_numbers<[1], [0], [0], [1], [0, 0, 1, 1], [], []>} : vector<28x64xf32>, vector<64x32xf32>, vector<28x32xf32> -> vector<28x32xf32>
    %91 = arith.mulf %90, %90 : vector<28x32xf32>
    %92 = arith.mulf %90, %91 : vector<28x32xf32>
    %cst_26 = arith.constant 4.471500e-02 : f32
    %93 = vector.broadcast %cst_26 : f32 to vector<28x32xf32>
    %94 = arith.mulf %93, %92 : vector<28x32xf32>
    %95 = arith.addf %90, %94 : vector<28x32xf32>
    %cst_27 = arith.constant 0.797884583 : f32
    %96 = vector.broadcast %cst_27 : f32 to vector<28x32xf32>
    %97 = arith.mulf %96, %95 : vector<28x32xf32>
    %98 = math.tanh %97 : vector<28x32xf32>
    %cst_28 = arith.constant 1.000000e+00 : f32
    %99 = vector.broadcast %cst_28 : f32 to vector<28x32xf32>
    %100 = arith.addf %99, %98 : vector<28x32xf32>
    %cst_29 = arith.constant 5.000000e-01 : f32
    %101 = vector.broadcast %cst_29 : f32 to vector<28x32xf32>
    %102 = arith.mulf %101, %100 : vector<28x32xf32>
    %103 = arith.mulf %90, %102 : vector<28x32xf32>
    %104 = vector.extract_strided_slice %0 {offsets = [2, 0], sizes = [1, 32], strides = [1, 1]} : vector<40x128xf32> to vector<1x32xf32>
    %105 = vector.extract_strided_slice %0 {offsets = [3, 0], sizes = [1, 32], strides = [1, 1]} : vector<40x128xf32> to vector<1x32xf32>
    %cst_30 = arith.constant dense<0.000000e+00> : vector<28xf32>
    %106 = vector.multi_reduction <add>, %103, %cst_30 [1] : vector<28x32xf32> to vector<28xf32>
    %107 = vector.shape_cast %106 : vector<28xf32> to vector<28x1xf32>
    %cst_31 = arith.constant 3.200000e+01 : f32
    %108 = vector.broadcast %cst_31 : f32 to vector<28x1xf32>
    %109 = arith.divf %107, %108 : vector<28x1xf32>
    %110 = vector.broadcast %109 : vector<28x1xf32> to vector<28x32xf32>
    %111 = arith.subf %103, %110 : vector<28x32xf32>
    %112 = arith.mulf %111, %111 : vector<28x32xf32>
    %cst_32 = arith.constant dense<0.000000e+00> : vector<28xf32>
    %113 = vector.multi_reduction <add>, %112, %cst_32 [1] : vector<28x32xf32> to vector<28xf32>
    %114 = vector.shape_cast %113 : vector<28xf32> to vector<28x1xf32>
    %cst_33 = arith.constant 3.200000e+01 : f32
    %115 = vector.broadcast %cst_33 : f32 to vector<28x1xf32>
    %116 = arith.divf %114, %115 : vector<28x1xf32>
    %117 = vector.broadcast %109 : vector<28x1xf32> to vector<28x32xf32>
    %118 = arith.subf %103, %117 : vector<28x32xf32>
    %cst_34 = arith.constant 9.99999974E-6 : f32
    %119 = vector.broadcast %cst_34 : f32 to vector<28x1xf32>
    %120 = arith.addf %116, %119 : vector<28x1xf32>
    %121 = math.rsqrt %120 : vector<28x1xf32>
    %122 = vector.broadcast %121 : vector<28x1xf32> to vector<28x32xf32>
    %123 = arith.mulf %118, %122 : vector<28x32xf32>
    %124 = vector.broadcast %104 : vector<1x32xf32> to vector<28x32xf32>
    %125 = arith.mulf %123, %124 : vector<28x32xf32>
    %126 = vector.broadcast %105 : vector<1x32xf32> to vector<28x32xf32>
    %127 = arith.addf %125, %126 : vector<28x32xf32>
    %c64 = arith.constant 64 : index
    %c0_35 = arith.constant 0 : index
    %128 = vector.load %arg11[%c64, %c0_35] : memref<1840x32xf32, #tpu.memory_space<vmem>>, vector<32x32xf32>
    %cst_36 = arith.constant dense<0.000000e+00> : vector<28x32xf32>
    %129 = tpu.matmul %127, %128, %cst_36 {dimension_numbers = #tpu.dot_dimension_numbers<[1], [0], [0], [1], [0, 0, 1, 1], [], []>} : vector<28x32xf32>, vector<32x32xf32>, vector<28x32xf32> -> vector<28x32xf32>
    %130 = vector.extract_strided_slice %0 {offsets = [4, 0], sizes = [1, 32], strides = [1, 1]} : vector<40x128xf32> to vector<1x32xf32>
    %131 = vector.broadcast %130 : vector<1x32xf32> to vector<28x32xf32>
    %132 = arith.addf %129, %131 : vector<28x32xf32>
    %c0_37 = arith.constant 0 : index
    %c0_38 = arith.constant 0 : index
    %133 = vector.load %arg1[%c0_37, %c0_38] : memref<28x1xf32, #tpu.memory_space<vmem>>, vector<28x1xf32>
    %134 = vector.broadcast %133 : vector<28x1xf32> to vector<28x32xf32>
    %135 = arith.mulf %132, %134 : vector<28x32xf32>
    %136 = vector.extract_strided_slice %0 {offsets = [5, 0], sizes = [1, 32], strides = [1, 1]} : vector<40x128xf32> to vector<1x32xf32>
    %137 = vector.extract_strided_slice %0 {offsets = [6, 0], sizes = [1, 32], strides = [1, 1]} : vector<40x128xf32> to vector<1x32xf32>
    %cst_39 = arith.constant dense<0.000000e+00> : vector<28xf32>
    %138 = vector.multi_reduction <add>, %135, %cst_39 [1] : vector<28x32xf32> to vector<28xf32>
    %139 = vector.shape_cast %138 : vector<28xf32> to vector<28x1xf32>
    %cst_40 = arith.constant 3.200000e+01 : f32
    %140 = vector.broadcast %cst_40 : f32 to vector<28x1xf32>
    %141 = arith.divf %139, %140 : vector<28x1xf32>
    %142 = vector.broadcast %141 : vector<28x1xf32> to vector<28x32xf32>
    %143 = arith.subf %135, %142 : vector<28x32xf32>
    %144 = arith.mulf %143, %143 : vector<28x32xf32>
    %cst_41 = arith.constant dense<0.000000e+00> : vector<28xf32>
    %145 = vector.multi_reduction <add>, %144, %cst_41 [1] : vector<28x32xf32> to vector<28xf32>
    %146 = vector.shape_cast %145 : vector<28xf32> to vector<28x1xf32>
    %cst_42 = arith.constant 3.200000e+01 : f32
    %147 = vector.broadcast %cst_42 : f32 to vector<28x1xf32>
    %148 = arith.divf %146, %147 : vector<28x1xf32>
    %149 = vector.broadcast %141 : vector<28x1xf32> to vector<28x32xf32>
    %150 = arith.subf %135, %149 : vector<28x32xf32>
    %cst_43 = arith.constant 9.99999974E-6 : f32
    %151 = vector.broadcast %cst_43 : f32 to vector<28x1xf32>
    %152 = arith.addf %148, %151 : vector<28x1xf32>
    %153 = math.rsqrt %152 : vector<28x1xf32>
    %154 = vector.broadcast %153 : vector<28x1xf32> to vector<28x32xf32>
    %155 = arith.mulf %150, %154 : vector<28x32xf32>
    %156 = vector.broadcast %136 : vector<1x32xf32> to vector<28x32xf32>
    %157 = arith.mulf %155, %156 : vector<28x32xf32>
    %158 = vector.broadcast %137 : vector<1x32xf32> to vector<28x32xf32>
    %159 = arith.addf %157, %158 : vector<28x32xf32>
    %c1664 = arith.constant 1664 : index
    %c0_44 = arith.constant 0 : index
    %160 = vector.load %arg11[%c1664, %c0_44] : memref<1840x32xf32, #tpu.memory_space<vmem>>, vector<112x32xf32>
    %c1776 = arith.constant 1776 : index
    %c0_45 = arith.constant 0 : index
    %161 = vector.load %arg11[%c1776, %c0_45] : memref<1840x32xf32, #tpu.memory_space<vmem>>, vector<64x32xf32>
    %c0_46 = arith.constant 0 : index
    %c0_47 = arith.constant 0 : index
    %162 = vector.load %arg2[%c0_46, %c0_47] : memref<28x112xf32, #tpu.memory_space<vmem>>, vector<28x112xf32>
    %c96 = arith.constant 96 : index
    %c0_48 = arith.constant 0 : index
    %163 = vector.load %arg11[%c96, %c0_48] : memref<1840x32xf32, #tpu.memory_space<vmem>>, vector<32x32xf32>
    %cst_49 = arith.constant dense<0.000000e+00> : vector<28x32xf32>
    %164 = tpu.matmul %159, %163, %cst_49 {dimension_numbers = #tpu.dot_dimension_numbers<[1], [0], [0], [1], [0, 0, 1, 1], [], []>} : vector<28x32xf32>, vector<32x32xf32>, vector<28x32xf32> -> vector<28x32xf32>
    %165 = vector.extract_strided_slice %0 {offsets = [8, 0], sizes = [1, 32], strides = [1, 1]} : vector<40x128xf32> to vector<1x32xf32>
    %166 = vector.broadcast %165 : vector<1x32xf32> to vector<28x32xf32>
    %167 = arith.addf %164, %166 : vector<28x32xf32>
    %cst_50 = arith.constant 0.353553385 : f32
    %168 = vector.broadcast %cst_50 : f32 to vector<28x32xf32>
    %169 = arith.mulf %167, %168 : vector<28x32xf32>
    %c128 = arith.constant 128 : index
    %c0_51 = arith.constant 0 : index
    %170 = vector.load %arg11[%c128, %c0_51] : memref<1840x32xf32, #tpu.memory_space<vmem>>, vector<32x32xf32>
    %cst_52 = arith.constant dense<0.000000e+00> : vector<28x32xf32>
    %171 = tpu.matmul %159, %170, %cst_52 {dimension_numbers = #tpu.dot_dimension_numbers<[1], [0], [0], [1], [0, 0, 1, 1], [], []>} : vector<28x32xf32>, vector<32x32xf32>, vector<28x32xf32> -> vector<28x32xf32>
    %172 = vector.extract_strided_slice %0 {offsets = [9, 0], sizes = [1, 32], strides = [1, 1]} : vector<40x128xf32> to vector<1x32xf32>
    %173 = vector.broadcast %172 : vector<1x32xf32> to vector<28x32xf32>
    %174 = arith.addf %171, %173 : vector<28x32xf32>
    %c160 = arith.constant 160 : index
    %c0_53 = arith.constant 0 : index
    %175 = vector.load %arg11[%c160, %c0_53] : memref<1840x32xf32, #tpu.memory_space<vmem>>, vector<32x32xf32>
    %cst_54 = arith.constant dense<0.000000e+00> : vector<28x32xf32>
    %176 = tpu.matmul %159, %175, %cst_54 {dimension_numbers = #tpu.dot_dimension_numbers<[1], [0], [0], [1], [0, 0, 1, 1], [], []>} : vector<28x32xf32>, vector<32x32xf32>, vector<28x32xf32> -> vector<28x32xf32>
    %177 = vector.extract_strided_slice %0 {offsets = [10, 0], sizes = [1, 32], strides = [1, 1]} : vector<40x128xf32> to vector<1x32xf32>
    %178 = vector.broadcast %177 : vector<1x32xf32> to vector<28x32xf32>
    %179 = arith.addf %176, %178 : vector<28x32xf32>
    %c192 = arith.constant 192 : index
    %c0_55 = arith.constant 0 : index
    %180 = vector.load %arg11[%c192, %c0_55] : memref<1840x32xf32, #tpu.memory_space<vmem>>, vector<32x32xf32>
    %181 = tpu.concatenate %174, %174, %174, %174 in 0 : vector<28x32xf32>, vector<28x32xf32>, vector<28x32xf32>, vector<28x32xf32> -> vector<112x32xf32>
    %182 = arith.mulf %181, %160 : vector<112x32xf32>
    %183 = tpu.concatenate %179, %179, %179, %179 in 0 : vector<28x32xf32>, vector<28x32xf32>, vector<28x32xf32>, vector<28x32xf32> -> vector<112x32xf32>
    %184 = arith.mulf %183, %160 : vector<112x32xf32>
    %cst_56 = arith.constant dense<0.000000e+00> : vector<28x112xf32>
    %185 = tpu.matmul %169, %182, %cst_56 {dimension_numbers = #tpu.dot_dimension_numbers<[1], [1], [0], [0], [0, 0, 1, 0], [], []>} : vector<28x32xf32>, vector<112x32xf32>, vector<28x112xf32> -> vector<28x112xf32>
    %186 = arith.addf %185, %162 : vector<28x112xf32>
    %cst_57 = arith.constant dense<0xFF800000> : vector<28xf32>
    %187 = vector.multi_reduction <maximumf>, %186, %cst_57 [1] : vector<28x112xf32> to vector<28xf32>
    %188 = vector.shape_cast %187 : vector<28xf32> to vector<28x1xf32>
    %189 = vector.broadcast %188 : vector<28x1xf32> to vector<28x112xf32>
    %190 = arith.subf %186, %189 : vector<28x112xf32>
    %191 = math.exp %190 : vector<28x112xf32>
    %cst_58 = arith.constant dense<0.000000e+00> : vector<28x32xf32>
    %192 = tpu.matmul %191, %160, %cst_58 {dimension_numbers = #tpu.dot_dimension_numbers<[1], [0], [0], [1], [0, 0, 1, 1], [], []>} : vector<28x112xf32>, vector<112x32xf32>, vector<28x32xf32> -> vector<28x32xf32>
    %cst_59 = arith.constant dense<0.000000e+00> : vector<28x32xf32>
    %193 = tpu.matmul %191, %184, %cst_59 {dimension_numbers = #tpu.dot_dimension_numbers<[1], [0], [0], [1], [0, 0, 1, 1], [], []>} : vector<28x112xf32>, vector<112x32xf32>, vector<28x32xf32> -> vector<28x32xf32>
    %cst_60 = arith.constant 9.99999968E-21 : f32
    %194 = vector.broadcast %cst_60 : f32 to vector<28x32xf32>
    %195 = arith.maximumf %192, %194 : vector<28x32xf32>
    %196 = tpu.reciprocal %195 {approx = true} : vector<28x32xf32> -> vector<28x32xf32>
    %197 = arith.mulf %193, %196 : vector<28x32xf32>
    %cst_61 = arith.constant dense<0.000000e+00> : vector<28x32xf32>
    %198 = tpu.matmul %197, %180, %cst_61 {dimension_numbers = #tpu.dot_dimension_numbers<[1], [0], [0], [1], [0, 0, 1, 1], [], []>} : vector<28x32xf32>, vector<32x32xf32>, vector<28x32xf32> -> vector<28x32xf32>
    %199 = vector.extract_strided_slice %0 {offsets = [11, 0], sizes = [1, 32], strides = [1, 1]} : vector<40x128xf32> to vector<1x32xf32>
    %200 = vector.broadcast %199 : vector<1x32xf32> to vector<28x32xf32>
    %201 = arith.addf %198, %200 : vector<28x32xf32>
    %202 = arith.addf %159, %201 : vector<28x32xf32>
    %203 = vector.extract_strided_slice %0 {offsets = [12, 0], sizes = [1, 32], strides = [1, 1]} : vector<40x128xf32> to vector<1x32xf32>
    %204 = vector.extract_strided_slice %0 {offsets = [13, 0], sizes = [1, 32], strides = [1, 1]} : vector<40x128xf32> to vector<1x32xf32>
    %cst_62 = arith.constant dense<0.000000e+00> : vector<28xf32>
    %205 = vector.multi_reduction <add>, %202, %cst_62 [1] : vector<28x32xf32> to vector<28xf32>
    %206 = vector.shape_cast %205 : vector<28xf32> to vector<28x1xf32>
    %cst_63 = arith.constant 3.200000e+01 : f32
    %207 = vector.broadcast %cst_63 : f32 to vector<28x1xf32>
    %208 = arith.divf %206, %207 : vector<28x1xf32>
    %209 = vector.broadcast %208 : vector<28x1xf32> to vector<28x32xf32>
    %210 = arith.subf %202, %209 : vector<28x32xf32>
    %211 = arith.mulf %210, %210 : vector<28x32xf32>
    %cst_64 = arith.constant dense<0.000000e+00> : vector<28xf32>
    %212 = vector.multi_reduction <add>, %211, %cst_64 [1] : vector<28x32xf32> to vector<28xf32>
    %213 = vector.shape_cast %212 : vector<28xf32> to vector<28x1xf32>
    %cst_65 = arith.constant 3.200000e+01 : f32
    %214 = vector.broadcast %cst_65 : f32 to vector<28x1xf32>
    %215 = arith.divf %213, %214 : vector<28x1xf32>
    %216 = vector.broadcast %208 : vector<28x1xf32> to vector<28x32xf32>
    %217 = arith.subf %202, %216 : vector<28x32xf32>
    %cst_66 = arith.constant 9.99999974E-6 : f32
    %218 = vector.broadcast %cst_66 : f32 to vector<28x1xf32>
    %219 = arith.addf %215, %218 : vector<28x1xf32>
    %220 = math.rsqrt %219 : vector<28x1xf32>
    %221 = vector.broadcast %220 : vector<28x1xf32> to vector<28x32xf32>
    %222 = arith.mulf %217, %221 : vector<28x32xf32>
    %223 = vector.broadcast %203 : vector<1x32xf32> to vector<28x32xf32>
    %224 = arith.mulf %222, %223 : vector<28x32xf32>
    %225 = vector.broadcast %204 : vector<1x32xf32> to vector<28x32xf32>
    %226 = arith.addf %224, %225 : vector<28x32xf32>
    %c0_67 = arith.constant 0 : index
    %c0_68 = arith.constant 0 : index
    %227 = vector.load %arg12[%c0_67, %c0_68] : memref<192x64xf32, #tpu.memory_space<vmem>>, vector<32x64xf32>
    %cst_69 = arith.constant dense<0.000000e+00> : vector<28x64xf32>
    %228 = tpu.matmul %226, %227, %cst_69 {dimension_numbers = #tpu.dot_dimension_numbers<[1], [0], [0], [1], [0, 0, 1, 1], [], []>} : vector<28x32xf32>, vector<32x64xf32>, vector<28x64xf32> -> vector<28x64xf32>
    %229 = vector.extract_strided_slice %0 {offsets = [17, 0], sizes = [1, 64], strides = [1, 1]} : vector<40x128xf32> to vector<1x64xf32>
    %230 = vector.broadcast %229 : vector<1x64xf32> to vector<28x64xf32>
    %231 = arith.addf %228, %230 : vector<28x64xf32>
    %232 = arith.mulf %231, %231 : vector<28x64xf32>
    %233 = arith.mulf %231, %232 : vector<28x64xf32>
    %cst_70 = arith.constant 4.471500e-02 : f32
    %234 = vector.broadcast %cst_70 : f32 to vector<28x64xf32>
    %235 = arith.mulf %234, %233 : vector<28x64xf32>
    %236 = arith.addf %231, %235 : vector<28x64xf32>
    %cst_71 = arith.constant 0.797884583 : f32
    %237 = vector.broadcast %cst_71 : f32 to vector<28x64xf32>
    %238 = arith.mulf %237, %236 : vector<28x64xf32>
    %239 = math.tanh %238 : vector<28x64xf32>
    %cst_72 = arith.constant 1.000000e+00 : f32
    %240 = vector.broadcast %cst_72 : f32 to vector<28x64xf32>
    %241 = arith.addf %240, %239 : vector<28x64xf32>
    %cst_73 = arith.constant 5.000000e-01 : f32
    %242 = vector.broadcast %cst_73 : f32 to vector<28x64xf32>
    %243 = arith.mulf %242, %241 : vector<28x64xf32>
    %244 = arith.mulf %231, %243 : vector<28x64xf32>
    %c224 = arith.constant 224 : index
    %c0_74 = arith.constant 0 : index
    %245 = vector.load %arg11[%c224, %c0_74] : memref<1840x32xf32, #tpu.memory_space<vmem>>, vector<64x32xf32>
    %cst_75 = arith.constant dense<0.000000e+00> : vector<28x32xf32>
    %246 = tpu.matmul %244, %245, %cst_75 {dimension_numbers = #tpu.dot_dimension_numbers<[1], [0], [0], [1], [0, 0, 1, 1], [], []>} : vector<28x64xf32>, vector<64x32xf32>, vector<28x32xf32> -> vector<28x32xf32>
    %247 = vector.extract_strided_slice %0 {offsets = [14, 0], sizes = [1, 32], strides = [1, 1]} : vector<40x128xf32> to vector<1x32xf32>
    %248 = vector.broadcast %247 : vector<1x32xf32> to vector<28x32xf32>
    %249 = arith.addf %246, %248 : vector<28x32xf32>
    %250 = arith.addf %226, %249 : vector<28x32xf32>
    %251 = vector.extract_strided_slice %0 {offsets = [15, 0], sizes = [1, 32], strides = [1, 1]} : vector<40x128xf32> to vector<1x32xf32>
    %252 = vector.extract_strided_slice %0 {offsets = [16, 0], sizes = [1, 32], strides = [1, 1]} : vector<40x128xf32> to vector<1x32xf32>
    %cst_76 = arith.constant dense<0.000000e+00> : vector<28xf32>
    %253 = vector.multi_reduction <add>, %250, %cst_76 [1] : vector<28x32xf32> to vector<28xf32>
    %254 = vector.shape_cast %253 : vector<28xf32> to vector<28x1xf32>
    %cst_77 = arith.constant 3.200000e+01 : f32
    %255 = vector.broadcast %cst_77 : f32 to vector<28x1xf32>
    %256 = arith.divf %254, %255 : vector<28x1xf32>
    %257 = vector.broadcast %256 : vector<28x1xf32> to vector<28x32xf32>
    %258 = arith.subf %250, %257 : vector<28x32xf32>
    %259 = arith.mulf %258, %258 : vector<28x32xf32>
    %cst_78 = arith.constant dense<0.000000e+00> : vector<28xf32>
    %260 = vector.multi_reduction <add>, %259, %cst_78 [1] : vector<28x32xf32> to vector<28xf32>
    %261 = vector.shape_cast %260 : vector<28xf32> to vector<28x1xf32>
    %cst_79 = arith.constant 3.200000e+01 : f32
    %262 = vector.broadcast %cst_79 : f32 to vector<28x1xf32>
    %263 = arith.divf %261, %262 : vector<28x1xf32>
    %264 = vector.broadcast %256 : vector<28x1xf32> to vector<28x32xf32>
    %265 = arith.subf %250, %264 : vector<28x32xf32>
    %cst_80 = arith.constant 9.99999974E-6 : f32
    %266 = vector.broadcast %cst_80 : f32 to vector<28x1xf32>
    %267 = arith.addf %263, %266 : vector<28x1xf32>
    %268 = math.rsqrt %267 : vector<28x1xf32>
    %269 = vector.broadcast %268 : vector<28x1xf32> to vector<28x32xf32>
    %270 = arith.mulf %265, %269 : vector<28x32xf32>
    %271 = vector.broadcast %251 : vector<1x32xf32> to vector<28x32xf32>
    %272 = arith.mulf %270, %271 : vector<28x32xf32>
    %273 = vector.broadcast %252 : vector<1x32xf32> to vector<28x32xf32>
    %274 = arith.addf %272, %273 : vector<28x32xf32>
    %c288 = arith.constant 288 : index
    %c0_81 = arith.constant 0 : index
    %275 = vector.load %arg11[%c288, %c0_81] : memref<1840x32xf32, #tpu.memory_space<vmem>>, vector<32x32xf32>
    %cst_82 = arith.constant dense<0.000000e+00> : vector<28x32xf32>
    %276 = tpu.matmul %274, %275, %cst_82 {dimension_numbers = #tpu.dot_dimension_numbers<[1], [0], [0], [1], [0, 0, 1, 1], [], []>} : vector<28x32xf32>, vector<32x32xf32>, vector<28x32xf32> -> vector<28x32xf32>
    %277 = vector.extract_strided_slice %0 {offsets = [18, 0], sizes = [1, 32], strides = [1, 1]} : vector<40x128xf32> to vector<1x32xf32>
    %278 = vector.broadcast %277 : vector<1x32xf32> to vector<28x32xf32>
    %279 = arith.addf %276, %278 : vector<28x32xf32>
    %cst_83 = arith.constant 0.353553385 : f32
    %280 = vector.broadcast %cst_83 : f32 to vector<28x32xf32>
    %281 = arith.mulf %279, %280 : vector<28x32xf32>
    %c320 = arith.constant 320 : index
    %c0_84 = arith.constant 0 : index
    %282 = vector.load %arg11[%c320, %c0_84] : memref<1840x32xf32, #tpu.memory_space<vmem>>, vector<32x32xf32>
    %cst_85 = arith.constant dense<0.000000e+00> : vector<28x32xf32>
    %283 = tpu.matmul %274, %282, %cst_85 {dimension_numbers = #tpu.dot_dimension_numbers<[1], [0], [0], [1], [0, 0, 1, 1], [], []>} : vector<28x32xf32>, vector<32x32xf32>, vector<28x32xf32> -> vector<28x32xf32>
    %284 = vector.extract_strided_slice %0 {offsets = [19, 0], sizes = [1, 32], strides = [1, 1]} : vector<40x128xf32> to vector<1x32xf32>
    %285 = vector.broadcast %284 : vector<1x32xf32> to vector<28x32xf32>
    %286 = arith.addf %283, %285 : vector<28x32xf32>
    %c352 = arith.constant 352 : index
    %c0_86 = arith.constant 0 : index
    %287 = vector.load %arg11[%c352, %c0_86] : memref<1840x32xf32, #tpu.memory_space<vmem>>, vector<32x32xf32>
    %cst_87 = arith.constant dense<0.000000e+00> : vector<28x32xf32>
    %288 = tpu.matmul %274, %287, %cst_87 {dimension_numbers = #tpu.dot_dimension_numbers<[1], [0], [0], [1], [0, 0, 1, 1], [], []>} : vector<28x32xf32>, vector<32x32xf32>, vector<28x32xf32> -> vector<28x32xf32>
    %289 = vector.extract_strided_slice %0 {offsets = [20, 0], sizes = [1, 32], strides = [1, 1]} : vector<40x128xf32> to vector<1x32xf32>
    %290 = vector.broadcast %289 : vector<1x32xf32> to vector<28x32xf32>
    %291 = arith.addf %288, %290 : vector<28x32xf32>
    %c384 = arith.constant 384 : index
    %c0_88 = arith.constant 0 : index
    %292 = vector.load %arg11[%c384, %c0_88] : memref<1840x32xf32, #tpu.memory_space<vmem>>, vector<32x32xf32>
    %293 = tpu.concatenate %286, %286, %286, %286 in 0 : vector<28x32xf32>, vector<28x32xf32>, vector<28x32xf32>, vector<28x32xf32> -> vector<112x32xf32>
    %294 = arith.mulf %293, %160 : vector<112x32xf32>
    %295 = tpu.concatenate %291, %291, %291, %291 in 0 : vector<28x32xf32>, vector<28x32xf32>, vector<28x32xf32>, vector<28x32xf32> -> vector<112x32xf32>
    %296 = arith.mulf %295, %160 : vector<112x32xf32>
    %cst_89 = arith.constant dense<0.000000e+00> : vector<28x112xf32>
    %297 = tpu.matmul %281, %294, %cst_89 {dimension_numbers = #tpu.dot_dimension_numbers<[1], [1], [0], [0], [0, 0, 1, 0], [], []>} : vector<28x32xf32>, vector<112x32xf32>, vector<28x112xf32> -> vector<28x112xf32>
    %298 = arith.addf %297, %162 : vector<28x112xf32>
    %cst_90 = arith.constant dense<0xFF800000> : vector<28xf32>
    %299 = vector.multi_reduction <maximumf>, %298, %cst_90 [1] : vector<28x112xf32> to vector<28xf32>
    %300 = vector.shape_cast %299 : vector<28xf32> to vector<28x1xf32>
    %301 = vector.broadcast %300 : vector<28x1xf32> to vector<28x112xf32>
    %302 = arith.subf %298, %301 : vector<28x112xf32>
    %303 = math.exp %302 : vector<28x112xf32>
    %cst_91 = arith.constant dense<0.000000e+00> : vector<28x32xf32>
    %304 = tpu.matmul %303, %160, %cst_91 {dimension_numbers = #tpu.dot_dimension_numbers<[1], [0], [0], [1], [0, 0, 1, 1], [], []>} : vector<28x112xf32>, vector<112x32xf32>, vector<28x32xf32> -> vector<28x32xf32>
    %cst_92 = arith.constant dense<0.000000e+00> : vector<28x32xf32>
    %305 = tpu.matmul %303, %296, %cst_92 {dimension_numbers = #tpu.dot_dimension_numbers<[1], [0], [0], [1], [0, 0, 1, 1], [], []>} : vector<28x112xf32>, vector<112x32xf32>, vector<28x32xf32> -> vector<28x32xf32>
    %cst_93 = arith.constant 9.99999968E-21 : f32
    %306 = vector.broadcast %cst_93 : f32 to vector<28x32xf32>
    %307 = arith.maximumf %304, %306 : vector<28x32xf32>
    %308 = tpu.reciprocal %307 {approx = true} : vector<28x32xf32> -> vector<28x32xf32>
    %309 = arith.mulf %305, %308 : vector<28x32xf32>
    %cst_94 = arith.constant dense<0.000000e+00> : vector<28x32xf32>
    %310 = tpu.matmul %309, %292, %cst_94 {dimension_numbers = #tpu.dot_dimension_numbers<[1], [0], [0], [1], [0, 0, 1, 1], [], []>} : vector<28x32xf32>, vector<32x32xf32>, vector<28x32xf32> -> vector<28x32xf32>
    %311 = vector.extract_strided_slice %0 {offsets = [21, 0], sizes = [1, 32], strides = [1, 1]} : vector<40x128xf32> to vector<1x32xf32>
    %312 = vector.broadcast %311 : vector<1x32xf32> to vector<28x32xf32>
    %313 = arith.addf %310, %312 : vector<28x32xf32>
    %314 = arith.addf %274, %313 : vector<28x32xf32>
    %315 = vector.extract_strided_slice %0 {offsets = [22, 0], sizes = [1, 32], strides = [1, 1]} : vector<40x128xf32> to vector<1x32xf32>
    %316 = vector.extract_strided_slice %0 {offsets = [23, 0], sizes = [1, 32], strides = [1, 1]} : vector<40x128xf32> to vector<1x32xf32>
    %cst_95 = arith.constant dense<0.000000e+00> : vector<28xf32>
    %317 = vector.multi_reduction <add>, %314, %cst_95 [1] : vector<28x32xf32> to vector<28xf32>
    %318 = vector.shape_cast %317 : vector<28xf32> to vector<28x1xf32>
    %cst_96 = arith.constant 3.200000e+01 : f32
    %319 = vector.broadcast %cst_96 : f32 to vector<28x1xf32>
    %320 = arith.divf %318, %319 : vector<28x1xf32>
    %321 = vector.broadcast %320 : vector<28x1xf32> to vector<28x32xf32>
    %322 = arith.subf %314, %321 : vector<28x32xf32>
    %323 = arith.mulf %322, %322 : vector<28x32xf32>
    %cst_97 = arith.constant dense<0.000000e+00> : vector<28xf32>
    %324 = vector.multi_reduction <add>, %323, %cst_97 [1] : vector<28x32xf32> to vector<28xf32>
    %325 = vector.shape_cast %324 : vector<28xf32> to vector<28x1xf32>
    %cst_98 = arith.constant 3.200000e+01 : f32
    %326 = vector.broadcast %cst_98 : f32 to vector<28x1xf32>
    %327 = arith.divf %325, %326 : vector<28x1xf32>
    %328 = vector.broadcast %320 : vector<28x1xf32> to vector<28x32xf32>
    %329 = arith.subf %314, %328 : vector<28x32xf32>
    %cst_99 = arith.constant 9.99999974E-6 : f32
    %330 = vector.broadcast %cst_99 : f32 to vector<28x1xf32>
    %331 = arith.addf %327, %330 : vector<28x1xf32>
    %332 = math.rsqrt %331 : vector<28x1xf32>
    %333 = vector.broadcast %332 : vector<28x1xf32> to vector<28x32xf32>
    %334 = arith.mulf %329, %333 : vector<28x32xf32>
    %335 = vector.broadcast %315 : vector<1x32xf32> to vector<28x32xf32>
    %336 = arith.mulf %334, %335 : vector<28x32xf32>
    %337 = vector.broadcast %316 : vector<1x32xf32> to vector<28x32xf32>
    %338 = arith.addf %336, %337 : vector<28x32xf32>
    %c32 = arith.constant 32 : index
    %c0_100 = arith.constant 0 : index
    %339 = vector.load %arg12[%c32, %c0_100] : memref<192x64xf32, #tpu.memory_space<vmem>>, vector<32x64xf32>
    %cst_101 = arith.constant dense<0.000000e+00> : vector<28x64xf32>
    %340 = tpu.matmul %338, %339, %cst_101 {dimension_numbers = #tpu.dot_dimension_numbers<[1], [0], [0], [1], [0, 0, 1, 1], [], []>} : vector<28x32xf32>, vector<32x64xf32>, vector<28x64xf32> -> vector<28x64xf32>
    %341 = vector.extract_strided_slice %0 {offsets = [27, 0], sizes = [1, 64], strides = [1, 1]} : vector<40x128xf32> to vector<1x64xf32>
    %342 = vector.broadcast %341 : vector<1x64xf32> to vector<28x64xf32>
    %343 = arith.addf %340, %342 : vector<28x64xf32>
    %344 = arith.mulf %343, %343 : vector<28x64xf32>
    %345 = arith.mulf %343, %344 : vector<28x64xf32>
    %cst_102 = arith.constant 4.471500e-02 : f32
    %346 = vector.broadcast %cst_102 : f32 to vector<28x64xf32>
    %347 = arith.mulf %346, %345 : vector<28x64xf32>
    %348 = arith.addf %343, %347 : vector<28x64xf32>
    %cst_103 = arith.constant 0.797884583 : f32
    %349 = vector.broadcast %cst_103 : f32 to vector<28x64xf32>
    %350 = arith.mulf %349, %348 : vector<28x64xf32>
    %351 = math.tanh %350 : vector<28x64xf32>
    %cst_104 = arith.constant 1.000000e+00 : f32
    %352 = vector.broadcast %cst_104 : f32 to vector<28x64xf32>
    %353 = arith.addf %352, %351 : vector<28x64xf32>
    %cst_105 = arith.constant 5.000000e-01 : f32
    %354 = vector.broadcast %cst_105 : f32 to vector<28x64xf32>
    %355 = arith.mulf %354, %353 : vector<28x64xf32>
    %356 = arith.mulf %343, %355 : vector<28x64xf32>
    %c416 = arith.constant 416 : index
    %c0_106 = arith.constant 0 : index
    %357 = vector.load %arg11[%c416, %c0_106] : memref<1840x32xf32, #tpu.memory_space<vmem>>, vector<64x32xf32>
    %cst_107 = arith.constant dense<0.000000e+00> : vector<28x32xf32>
    %358 = tpu.matmul %356, %357, %cst_107 {dimension_numbers = #tpu.dot_dimension_numbers<[1], [0], [0], [1], [0, 0, 1, 1], [], []>} : vector<28x64xf32>, vector<64x32xf32>, vector<28x32xf32> -> vector<28x32xf32>
    %359 = vector.extract_strided_slice %0 {offsets = [24, 0], sizes = [1, 32], strides = [1, 1]} : vector<40x128xf32> to vector<1x32xf32>
    %360 = vector.broadcast %359 : vector<1x32xf32> to vector<28x32xf32>
    %361 = arith.addf %358, %360 : vector<28x32xf32>
    %362 = arith.addf %338, %361 : vector<28x32xf32>
    %363 = vector.extract_strided_slice %0 {offsets = [25, 0], sizes = [1, 32], strides = [1, 1]} : vector<40x128xf32> to vector<1x32xf32>
    %364 = vector.extract_strided_slice %0 {offsets = [26, 0], sizes = [1, 32], strides = [1, 1]} : vector<40x128xf32> to vector<1x32xf32>
    %cst_108 = arith.constant dense<0.000000e+00> : vector<28xf32>
    %365 = vector.multi_reduction <add>, %362, %cst_108 [1] : vector<28x32xf32> to vector<28xf32>
    %366 = vector.shape_cast %365 : vector<28xf32> to vector<28x1xf32>
    %cst_109 = arith.constant 3.200000e+01 : f32
    %367 = vector.broadcast %cst_109 : f32 to vector<28x1xf32>
    %368 = arith.divf %366, %367 : vector<28x1xf32>
    %369 = vector.broadcast %368 : vector<28x1xf32> to vector<28x32xf32>
    %370 = arith.subf %362, %369 : vector<28x32xf32>
    %371 = arith.mulf %370, %370 : vector<28x32xf32>
    %cst_110 = arith.constant dense<0.000000e+00> : vector<28xf32>
    %372 = vector.multi_reduction <add>, %371, %cst_110 [1] : vector<28x32xf32> to vector<28xf32>
    %373 = vector.shape_cast %372 : vector<28xf32> to vector<28x1xf32>
    %cst_111 = arith.constant 3.200000e+01 : f32
    %374 = vector.broadcast %cst_111 : f32 to vector<28x1xf32>
    %375 = arith.divf %373, %374 : vector<28x1xf32>
    %376 = vector.broadcast %368 : vector<28x1xf32> to vector<28x32xf32>
    %377 = arith.subf %362, %376 : vector<28x32xf32>
    %cst_112 = arith.constant 9.99999974E-6 : f32
    %378 = vector.broadcast %cst_112 : f32 to vector<28x1xf32>
    %379 = arith.addf %375, %378 : vector<28x1xf32>
    %380 = math.rsqrt %379 : vector<28x1xf32>
    %381 = vector.broadcast %380 : vector<28x1xf32> to vector<28x32xf32>
    %382 = arith.mulf %377, %381 : vector<28x32xf32>
    %383 = vector.broadcast %363 : vector<1x32xf32> to vector<28x32xf32>
    %384 = arith.mulf %382, %383 : vector<28x32xf32>
    %385 = vector.broadcast %364 : vector<1x32xf32> to vector<28x32xf32>
    %386 = arith.addf %384, %385 : vector<28x32xf32>
    %c480 = arith.constant 480 : index
    %c0_113 = arith.constant 0 : index
    %387 = vector.load %arg11[%c480, %c0_113] : memref<1840x32xf32, #tpu.memory_space<vmem>>, vector<32x32xf32>
    %cst_114 = arith.constant dense<0.000000e+00> : vector<28x32xf32>
    %388 = tpu.matmul %386, %387, %cst_114 {dimension_numbers = #tpu.dot_dimension_numbers<[1], [0], [0], [1], [0, 0, 1, 1], [], []>} : vector<28x32xf32>, vector<32x32xf32>, vector<28x32xf32> -> vector<28x32xf32>
    %389 = vector.extract_strided_slice %0 {offsets = [7, 0], sizes = [1, 32], strides = [1, 1]} : vector<40x128xf32> to vector<1x32xf32>
    %390 = vector.broadcast %389 : vector<1x32xf32> to vector<28x32xf32>
    %391 = arith.addf %388, %390 : vector<28x32xf32>
    %c0_115 = arith.constant 0 : index
    %c0_116 = arith.constant 0 : index
    %392 = vector.load %arg3[%c0_115, %c0_116] : memref<28x112xf32, #tpu.memory_space<vmem>>, vector<28x112xf32>
    %393 = vector.extract_strided_slice %0 {offsets = [28, 0], sizes = [1, 32], strides = [1, 1]} : vector<40x128xf32> to vector<1x32xf32>
    %394 = arith.mulf %391, %391 : vector<28x32xf32>
    %cst_117 = arith.constant dense<0.000000e+00> : vector<28xf32>
    %395 = vector.multi_reduction <add>, %394, %cst_117 [1] : vector<28x32xf32> to vector<28xf32>
    %396 = vector.shape_cast %395 : vector<28xf32> to vector<28x1xf32>
    %cst_118 = arith.constant 3.200000e+01 : f32
    %397 = vector.broadcast %cst_118 : f32 to vector<28x1xf32>
    %398 = arith.divf %396, %397 : vector<28x1xf32>
    %cst_119 = arith.constant 9.99999997E-7 : f32
    %399 = vector.broadcast %cst_119 : f32 to vector<28x1xf32>
    %400 = arith.addf %398, %399 : vector<28x1xf32>
    %401 = math.rsqrt %400 : vector<28x1xf32>
    %402 = vector.broadcast %401 : vector<28x1xf32> to vector<28x32xf32>
    %403 = arith.mulf %391, %402 : vector<28x32xf32>
    %404 = vector.broadcast %393 : vector<1x32xf32> to vector<28x32xf32>
    %405 = arith.mulf %403, %404 : vector<28x32xf32>
    %c512 = arith.constant 512 : index
    %c0_120 = arith.constant 0 : index
    %406 = vector.load %arg11[%c512, %c0_120] : memref<1840x32xf32, #tpu.memory_space<vmem>>, vector<32x32xf32>
    %cst_121 = arith.constant dense<0.000000e+00> : vector<28x32xf32>
    %407 = tpu.matmul %405, %406, %cst_121 {dimension_numbers = #tpu.dot_dimension_numbers<[1], [0], [0], [1], [0, 0, 1, 1], [], []>} : vector<28x32xf32>, vector<32x32xf32>, vector<28x32xf32> -> vector<28x32xf32>
    %c544 = arith.constant 544 : index
    %c0_122 = arith.constant 0 : index
    %408 = vector.load %arg11[%c544, %c0_122] : memref<1840x32xf32, #tpu.memory_space<vmem>>, vector<32x32xf32>
    %cst_123 = arith.constant dense<0.000000e+00> : vector<28x32xf32>
    %409 = tpu.matmul %405, %408, %cst_123 {dimension_numbers = #tpu.dot_dimension_numbers<[1], [0], [0], [1], [0, 0, 1, 1], [], []>} : vector<28x32xf32>, vector<32x32xf32>, vector<28x32xf32> -> vector<28x32xf32>
    %c576 = arith.constant 576 : index
    %c0_124 = arith.constant 0 : index
    %410 = vector.load %arg11[%c576, %c0_124] : memref<1840x32xf32, #tpu.memory_space<vmem>>, vector<32x32xf32>
    %cst_125 = arith.constant dense<0.000000e+00> : vector<28x32xf32>
    %411 = tpu.matmul %405, %410, %cst_125 {dimension_numbers = #tpu.dot_dimension_numbers<[1], [0], [0], [1], [0, 0, 1, 1], [], []>} : vector<28x32xf32>, vector<32x32xf32>, vector<28x32xf32> -> vector<28x32xf32>
    %c608 = arith.constant 608 : index
    %c0_126 = arith.constant 0 : index
    %412 = vector.load %arg11[%c608, %c0_126] : memref<1840x32xf32, #tpu.memory_space<vmem>>, vector<32x32xf32>
    %413 = tpu.concatenate %409, %409, %409, %409 in 0 : vector<28x32xf32>, vector<28x32xf32>, vector<28x32xf32>, vector<28x32xf32> -> vector<112x32xf32>
    %414 = arith.mulf %413, %160 : vector<112x32xf32>
    %415 = tpu.concatenate %411, %411, %411, %411 in 0 : vector<28x32xf32>, vector<28x32xf32>, vector<28x32xf32>, vector<28x32xf32> -> vector<112x32xf32>
    %416 = arith.mulf %415, %160 : vector<112x32xf32>
    %cst_127 = arith.constant dense<0.000000e+00> : vector<28x112xf32>
    %417 = tpu.matmul %407, %414, %cst_127 {dimension_numbers = #tpu.dot_dimension_numbers<[1], [1], [0], [0], [0, 0, 1, 0], [], []>} : vector<28x32xf32>, vector<112x32xf32>, vector<28x112xf32> -> vector<28x112xf32>
    %418 = arith.addf %417, %392 : vector<28x112xf32>
    %cst_128 = arith.constant dense<0xFF800000> : vector<28xf32>
    %419 = vector.multi_reduction <maximumf>, %418, %cst_128 [1] : vector<28x112xf32> to vector<28xf32>
    %420 = vector.shape_cast %419 : vector<28xf32> to vector<28x1xf32>
    %421 = vector.broadcast %420 : vector<28x1xf32> to vector<28x112xf32>
    %422 = arith.subf %418, %421 : vector<28x112xf32>
    %423 = math.exp %422 : vector<28x112xf32>
    %cst_129 = arith.constant dense<0.000000e+00> : vector<28x32xf32>
    %424 = tpu.matmul %423, %160, %cst_129 {dimension_numbers = #tpu.dot_dimension_numbers<[1], [0], [0], [1], [0, 0, 1, 1], [], []>} : vector<28x112xf32>, vector<112x32xf32>, vector<28x32xf32> -> vector<28x32xf32>
    %cst_130 = arith.constant dense<0.000000e+00> : vector<28x32xf32>
    %425 = tpu.matmul %423, %416, %cst_130 {dimension_numbers = #tpu.dot_dimension_numbers<[1], [0], [0], [1], [0, 0, 1, 1], [], []>} : vector<28x112xf32>, vector<112x32xf32>, vector<28x32xf32> -> vector<28x32xf32>
    %cst_131 = arith.constant 9.99999968E-21 : f32
    %426 = vector.broadcast %cst_131 : f32 to vector<28x32xf32>
    %427 = arith.maximumf %424, %426 : vector<28x32xf32>
    %428 = tpu.reciprocal %427 {approx = true} : vector<28x32xf32> -> vector<28x32xf32>
    %429 = arith.mulf %425, %428 : vector<28x32xf32>
    %cst_132 = arith.constant dense<0.000000e+00> : vector<28x32xf32>
    %430 = tpu.matmul %429, %412, %cst_132 {dimension_numbers = #tpu.dot_dimension_numbers<[1], [0], [0], [1], [0, 0, 1, 1], [], []>} : vector<28x32xf32>, vector<32x32xf32>, vector<28x32xf32> -> vector<28x32xf32>
    %431 = arith.addf %391, %430 : vector<28x32xf32>
    %432 = vector.extract_strided_slice %0 {offsets = [29, 0], sizes = [1, 32], strides = [1, 1]} : vector<40x128xf32> to vector<1x32xf32>
    %433 = arith.mulf %431, %431 : vector<28x32xf32>
    %cst_133 = arith.constant dense<0.000000e+00> : vector<28xf32>
    %434 = vector.multi_reduction <add>, %433, %cst_133 [1] : vector<28x32xf32> to vector<28xf32>
    %435 = vector.shape_cast %434 : vector<28xf32> to vector<28x1xf32>
    %cst_134 = arith.constant 3.200000e+01 : f32
    %436 = vector.broadcast %cst_134 : f32 to vector<28x1xf32>
    %437 = arith.divf %435, %436 : vector<28x1xf32>
    %cst_135 = arith.constant 9.99999997E-7 : f32
    %438 = vector.broadcast %cst_135 : f32 to vector<28x1xf32>
    %439 = arith.addf %437, %438 : vector<28x1xf32>
    %440 = math.rsqrt %439 : vector<28x1xf32>
    %441 = vector.broadcast %440 : vector<28x1xf32> to vector<28x32xf32>
    %442 = arith.mulf %431, %441 : vector<28x32xf32>
    %443 = vector.broadcast %432 : vector<1x32xf32> to vector<28x32xf32>
    %444 = arith.mulf %442, %443 : vector<28x32xf32>
    %c64_136 = arith.constant 64 : index
    %c0_137 = arith.constant 0 : index
    %445 = vector.load %arg12[%c64_136, %c0_137] : memref<192x64xf32, #tpu.memory_space<vmem>>, vector<32x64xf32>
    %cst_138 = arith.constant dense<0.000000e+00> : vector<28x64xf32>
    %446 = tpu.matmul %444, %445, %cst_138 {dimension_numbers = #tpu.dot_dimension_numbers<[1], [0], [0], [1], [0, 0, 1, 1], [], []>} : vector<28x32xf32>, vector<32x64xf32>, vector<28x64xf32> -> vector<28x64xf32>
    %cst_139 = arith.constant 0.000000e+00 : f32
    %447 = vector.broadcast %cst_139 : f32 to vector<28x64xf32>
    %448 = arith.maximumf %446, %447 : vector<28x64xf32>
    %c640 = arith.constant 640 : index
    %c0_140 = arith.constant 0 : index
    %449 = vector.load %arg11[%c640, %c0_140] : memref<1840x32xf32, #tpu.memory_space<vmem>>, vector<64x32xf32>
    %cst_141 = arith.constant dense<0.000000e+00> : vector<28x32xf32>
    %450 = tpu.matmul %448, %449, %cst_141 {dimension_numbers = #tpu.dot_dimension_numbers<[1], [0], [0], [1], [0, 0, 1, 1], [], []>} : vector<28x64xf32>, vector<64x32xf32>, vector<28x32xf32> -> vector<28x32xf32>
    %451 = arith.addf %431, %450 : vector<28x32xf32>
    %452 = vector.extract_strided_slice %0 {offsets = [30, 0], sizes = [1, 32], strides = [1, 1]} : vector<40x128xf32> to vector<1x32xf32>
    %453 = arith.mulf %451, %451 : vector<28x32xf32>
    %cst_142 = arith.constant dense<0.000000e+00> : vector<28xf32>
    %454 = vector.multi_reduction <add>, %453, %cst_142 [1] : vector<28x32xf32> to vector<28xf32>
    %455 = vector.shape_cast %454 : vector<28xf32> to vector<28x1xf32>
    %cst_143 = arith.constant 3.200000e+01 : f32
    %456 = vector.broadcast %cst_143 : f32 to vector<28x1xf32>
    %457 = arith.divf %455, %456 : vector<28x1xf32>
    %cst_144 = arith.constant 9.99999997E-7 : f32
    %458 = vector.broadcast %cst_144 : f32 to vector<28x1xf32>
    %459 = arith.addf %457, %458 : vector<28x1xf32>
    %460 = math.rsqrt %459 : vector<28x1xf32>
    %461 = vector.broadcast %460 : vector<28x1xf32> to vector<28x32xf32>
    %462 = arith.mulf %451, %461 : vector<28x32xf32>
    %463 = vector.broadcast %452 : vector<1x32xf32> to vector<28x32xf32>
    %464 = arith.mulf %462, %463 : vector<28x32xf32>
    %c704 = arith.constant 704 : index
    %c0_145 = arith.constant 0 : index
    %465 = vector.load %arg11[%c704, %c0_145] : memref<1840x32xf32, #tpu.memory_space<vmem>>, vector<32x32xf32>
    %cst_146 = arith.constant dense<0.000000e+00> : vector<28x32xf32>
    %466 = tpu.matmul %464, %465, %cst_146 {dimension_numbers = #tpu.dot_dimension_numbers<[1], [0], [0], [1], [0, 0, 1, 1], [], []>} : vector<28x32xf32>, vector<32x32xf32>, vector<28x32xf32> -> vector<28x32xf32>
    %c736 = arith.constant 736 : index
    %c0_147 = arith.constant 0 : index
    %467 = vector.load %arg11[%c736, %c0_147] : memref<1840x32xf32, #tpu.memory_space<vmem>>, vector<32x32xf32>
    %cst_148 = arith.constant dense<0.000000e+00> : vector<28x32xf32>
    %468 = tpu.matmul %464, %467, %cst_148 {dimension_numbers = #tpu.dot_dimension_numbers<[1], [0], [0], [1], [0, 0, 1, 1], [], []>} : vector<28x32xf32>, vector<32x32xf32>, vector<28x32xf32> -> vector<28x32xf32>
    %c768 = arith.constant 768 : index
    %c0_149 = arith.constant 0 : index
    %469 = vector.load %arg11[%c768, %c0_149] : memref<1840x32xf32, #tpu.memory_space<vmem>>, vector<32x32xf32>
    %cst_150 = arith.constant dense<0.000000e+00> : vector<28x32xf32>
    %470 = tpu.matmul %464, %469, %cst_150 {dimension_numbers = #tpu.dot_dimension_numbers<[1], [0], [0], [1], [0, 0, 1, 1], [], []>} : vector<28x32xf32>, vector<32x32xf32>, vector<28x32xf32> -> vector<28x32xf32>
    %c800 = arith.constant 800 : index
    %c0_151 = arith.constant 0 : index
    %471 = vector.load %arg11[%c800, %c0_151] : memref<1840x32xf32, #tpu.memory_space<vmem>>, vector<32x32xf32>
    %472 = tpu.concatenate %468, %468, %468, %468 in 0 : vector<28x32xf32>, vector<28x32xf32>, vector<28x32xf32>, vector<28x32xf32> -> vector<112x32xf32>
    %473 = arith.mulf %472, %160 : vector<112x32xf32>
    %474 = tpu.concatenate %470, %470, %470, %470 in 0 : vector<28x32xf32>, vector<28x32xf32>, vector<28x32xf32>, vector<28x32xf32> -> vector<112x32xf32>
    %475 = arith.mulf %474, %160 : vector<112x32xf32>
    %cst_152 = arith.constant dense<0.000000e+00> : vector<28x112xf32>
    %476 = tpu.matmul %466, %473, %cst_152 {dimension_numbers = #tpu.dot_dimension_numbers<[1], [1], [0], [0], [0, 0, 1, 0], [], []>} : vector<28x32xf32>, vector<112x32xf32>, vector<28x112xf32> -> vector<28x112xf32>
    %477 = arith.addf %476, %392 : vector<28x112xf32>
    %cst_153 = arith.constant dense<0xFF800000> : vector<28xf32>
    %478 = vector.multi_reduction <maximumf>, %477, %cst_153 [1] : vector<28x112xf32> to vector<28xf32>
    %479 = vector.shape_cast %478 : vector<28xf32> to vector<28x1xf32>
    %480 = vector.broadcast %479 : vector<28x1xf32> to vector<28x112xf32>
    %481 = arith.subf %477, %480 : vector<28x112xf32>
    %482 = math.exp %481 : vector<28x112xf32>
    %cst_154 = arith.constant dense<0.000000e+00> : vector<28x32xf32>
    %483 = tpu.matmul %482, %160, %cst_154 {dimension_numbers = #tpu.dot_dimension_numbers<[1], [0], [0], [1], [0, 0, 1, 1], [], []>} : vector<28x112xf32>, vector<112x32xf32>, vector<28x32xf32> -> vector<28x32xf32>
    %cst_155 = arith.constant dense<0.000000e+00> : vector<28x32xf32>
    %484 = tpu.matmul %482, %475, %cst_155 {dimension_numbers = #tpu.dot_dimension_numbers<[1], [0], [0], [1], [0, 0, 1, 1], [], []>} : vector<28x112xf32>, vector<112x32xf32>, vector<28x32xf32> -> vector<28x32xf32>
    %cst_156 = arith.constant 9.99999968E-21 : f32
    %485 = vector.broadcast %cst_156 : f32 to vector<28x32xf32>
    %486 = arith.maximumf %483, %485 : vector<28x32xf32>
    %487 = tpu.reciprocal %486 {approx = true} : vector<28x32xf32> -> vector<28x32xf32>
    %488 = arith.mulf %484, %487 : vector<28x32xf32>
    %cst_157 = arith.constant dense<0.000000e+00> : vector<28x32xf32>
    %489 = tpu.matmul %488, %471, %cst_157 {dimension_numbers = #tpu.dot_dimension_numbers<[1], [0], [0], [1], [0, 0, 1, 1], [], []>} : vector<28x32xf32>, vector<32x32xf32>, vector<28x32xf32> -> vector<28x32xf32>
    %490 = arith.addf %451, %489 : vector<28x32xf32>
    %491 = vector.extract_strided_slice %0 {offsets = [31, 0], sizes = [1, 32], strides = [1, 1]} : vector<40x128xf32> to vector<1x32xf32>
    %492 = arith.mulf %490, %490 : vector<28x32xf32>
    %cst_158 = arith.constant dense<0.000000e+00> : vector<28xf32>
    %493 = vector.multi_reduction <add>, %492, %cst_158 [1] : vector<28x32xf32> to vector<28xf32>
    %494 = vector.shape_cast %493 : vector<28xf32> to vector<28x1xf32>
    %cst_159 = arith.constant 3.200000e+01 : f32
    %495 = vector.broadcast %cst_159 : f32 to vector<28x1xf32>
    %496 = arith.divf %494, %495 : vector<28x1xf32>
    %cst_160 = arith.constant 9.99999997E-7 : f32
    %497 = vector.broadcast %cst_160 : f32 to vector<28x1xf32>
    %498 = arith.addf %496, %497 : vector<28x1xf32>
    %499 = math.rsqrt %498 : vector<28x1xf32>
    %500 = vector.broadcast %499 : vector<28x1xf32> to vector<28x32xf32>
    %501 = arith.mulf %490, %500 : vector<28x32xf32>
    %502 = vector.broadcast %491 : vector<1x32xf32> to vector<28x32xf32>
    %503 = arith.mulf %501, %502 : vector<28x32xf32>
    %c96_161 = arith.constant 96 : index
    %c0_162 = arith.constant 0 : index
    %504 = vector.load %arg12[%c96_161, %c0_162] : memref<192x64xf32, #tpu.memory_space<vmem>>, vector<32x64xf32>
    %cst_163 = arith.constant dense<0.000000e+00> : vector<28x64xf32>
    %505 = tpu.matmul %503, %504, %cst_163 {dimension_numbers = #tpu.dot_dimension_numbers<[1], [0], [0], [1], [0, 0, 1, 1], [], []>} : vector<28x32xf32>, vector<32x64xf32>, vector<28x64xf32> -> vector<28x64xf32>
    %cst_164 = arith.constant 0.000000e+00 : f32
    %506 = vector.broadcast %cst_164 : f32 to vector<28x64xf32>
    %507 = arith.maximumf %505, %506 : vector<28x64xf32>
    %c832 = arith.constant 832 : index
    %c0_165 = arith.constant 0 : index
    %508 = vector.load %arg11[%c832, %c0_165] : memref<1840x32xf32, #tpu.memory_space<vmem>>, vector<64x32xf32>
    %cst_166 = arith.constant dense<0.000000e+00> : vector<28x32xf32>
    %509 = tpu.matmul %507, %508, %cst_166 {dimension_numbers = #tpu.dot_dimension_numbers<[1], [0], [0], [1], [0, 0, 1, 1], [], []>} : vector<28x64xf32>, vector<64x32xf32>, vector<28x32xf32> -> vector<28x32xf32>
    %510 = arith.addf %490, %509 : vector<28x32xf32>
    %511 = vector.extract_strided_slice %0 {offsets = [32, 0], sizes = [1, 32], strides = [1, 1]} : vector<40x128xf32> to vector<1x32xf32>
    %512 = arith.mulf %510, %510 : vector<28x32xf32>
    %cst_167 = arith.constant dense<0.000000e+00> : vector<28xf32>
    %513 = vector.multi_reduction <add>, %512, %cst_167 [1] : vector<28x32xf32> to vector<28xf32>
    %514 = vector.shape_cast %513 : vector<28xf32> to vector<28x1xf32>
    %cst_168 = arith.constant 3.200000e+01 : f32
    %515 = vector.broadcast %cst_168 : f32 to vector<28x1xf32>
    %516 = arith.divf %514, %515 : vector<28x1xf32>
    %cst_169 = arith.constant 9.99999997E-7 : f32
    %517 = vector.broadcast %cst_169 : f32 to vector<28x1xf32>
    %518 = arith.addf %516, %517 : vector<28x1xf32>
    %519 = math.rsqrt %518 : vector<28x1xf32>
    %520 = vector.broadcast %519 : vector<28x1xf32> to vector<28x32xf32>
    %521 = arith.mulf %510, %520 : vector<28x32xf32>
    %522 = vector.broadcast %511 : vector<1x32xf32> to vector<28x32xf32>
    %523 = arith.mulf %521, %522 : vector<28x32xf32>
    %c0_170 = arith.constant 0 : index
    %c0_171 = arith.constant 0 : index
    %524 = vector.load %arg4[%c0_170, %c0_171] : memref<16x32xf32, #tpu.memory_space<vmem>>, vector<16x32xf32>
    %c0_172 = arith.constant 0 : index
    %c0_173 = arith.constant 0 : index
    %525 = vector.load %arg5[%c0_172, %c0_173] : memref<16x64xf32, #tpu.memory_space<vmem>>, vector<16x64xf32>
    %c0_174 = arith.constant 0 : index
    %c0_175 = arith.constant 0 : index
    %526 = vector.load %arg6[%c0_174, %c0_175] : memref<16x112xf32, #tpu.memory_space<vmem>>, vector<16x112xf32>
    %527 = vector.extract_strided_slice %0 {offsets = [33, 0], sizes = [1, 32], strides = [1, 1]} : vector<40x128xf32> to vector<1x32xf32>
    %528 = arith.mulf %524, %524 : vector<16x32xf32>
    %cst_176 = arith.constant dense<0.000000e+00> : vector<16xf32>
    %529 = vector.multi_reduction <add>, %528, %cst_176 [1] : vector<16x32xf32> to vector<16xf32>
    %530 = vector.shape_cast %529 : vector<16xf32> to vector<16x1xf32>
    %cst_177 = arith.constant 3.200000e+01 : f32
    %531 = vector.broadcast %cst_177 : f32 to vector<16x1xf32>
    %532 = arith.divf %530, %531 : vector<16x1xf32>
    %cst_178 = arith.constant 9.99999997E-7 : f32
    %533 = vector.broadcast %cst_178 : f32 to vector<16x1xf32>
    %534 = arith.addf %532, %533 : vector<16x1xf32>
    %535 = math.rsqrt %534 : vector<16x1xf32>
    %536 = vector.broadcast %535 : vector<16x1xf32> to vector<16x32xf32>
    %537 = arith.mulf %524, %536 : vector<16x32xf32>
    %538 = vector.broadcast %527 : vector<1x32xf32> to vector<16x32xf32>
    %539 = arith.mulf %537, %538 : vector<16x32xf32>
    %c896 = arith.constant 896 : index
    %c0_179 = arith.constant 0 : index
    %540 = vector.load %arg11[%c896, %c0_179] : memref<1840x32xf32, #tpu.memory_space<vmem>>, vector<32x32xf32>
    %cst_180 = arith.constant dense<0.000000e+00> : vector<16x32xf32>
    %541 = tpu.matmul %539, %540, %cst_180 {dimension_numbers = #tpu.dot_dimension_numbers<[1], [0], [0], [1], [0, 0, 1, 1], [], []>} : vector<16x32xf32>, vector<32x32xf32>, vector<16x32xf32> -> vector<16x32xf32>
    %c928 = arith.constant 928 : index
    %c0_181 = arith.constant 0 : index
    %542 = vector.load %arg11[%c928, %c0_181] : memref<1840x32xf32, #tpu.memory_space<vmem>>, vector<32x32xf32>
    %cst_182 = arith.constant dense<0.000000e+00> : vector<16x32xf32>
    %543 = tpu.matmul %539, %542, %cst_182 {dimension_numbers = #tpu.dot_dimension_numbers<[1], [0], [0], [1], [0, 0, 1, 1], [], []>} : vector<16x32xf32>, vector<32x32xf32>, vector<16x32xf32> -> vector<16x32xf32>
    %c960 = arith.constant 960 : index
    %c0_183 = arith.constant 0 : index
    %544 = vector.load %arg11[%c960, %c0_183] : memref<1840x32xf32, #tpu.memory_space<vmem>>, vector<32x32xf32>
    %cst_184 = arith.constant dense<0.000000e+00> : vector<16x32xf32>
    %545 = tpu.matmul %539, %544, %cst_184 {dimension_numbers = #tpu.dot_dimension_numbers<[1], [0], [0], [1], [0, 0, 1, 1], [], []>} : vector<16x32xf32>, vector<32x32xf32>, vector<16x32xf32> -> vector<16x32xf32>
    %c992 = arith.constant 992 : index
    %c0_185 = arith.constant 0 : index
    %546 = vector.load %arg11[%c992, %c0_185] : memref<1840x32xf32, #tpu.memory_space<vmem>>, vector<32x32xf32>
    %547 = tpu.concatenate %543, %543, %543, %543 in 0 : vector<16x32xf32>, vector<16x32xf32>, vector<16x32xf32>, vector<16x32xf32> -> vector<64x32xf32>
    %548 = arith.mulf %547, %161 : vector<64x32xf32>
    %549 = tpu.concatenate %545, %545, %545, %545 in 0 : vector<16x32xf32>, vector<16x32xf32>, vector<16x32xf32>, vector<16x32xf32> -> vector<64x32xf32>
    %550 = arith.mulf %549, %161 : vector<64x32xf32>
    %cst_186 = arith.constant dense<0.000000e+00> : vector<16x64xf32>
    %551 = tpu.matmul %541, %548, %cst_186 {dimension_numbers = #tpu.dot_dimension_numbers<[1], [1], [0], [0], [0, 0, 1, 0], [], []>} : vector<16x32xf32>, vector<64x32xf32>, vector<16x64xf32> -> vector<16x64xf32>
    %552 = arith.addf %551, %525 : vector<16x64xf32>
    %cst_187 = arith.constant dense<0xFF800000> : vector<16xf32>
    %553 = vector.multi_reduction <maximumf>, %552, %cst_187 [1] : vector<16x64xf32> to vector<16xf32>
    %554 = vector.shape_cast %553 : vector<16xf32> to vector<16x1xf32>
    %555 = vector.broadcast %554 : vector<16x1xf32> to vector<16x64xf32>
    %556 = arith.subf %552, %555 : vector<16x64xf32>
    %557 = math.exp %556 : vector<16x64xf32>
    %cst_188 = arith.constant dense<0.000000e+00> : vector<16x32xf32>
    %558 = tpu.matmul %557, %161, %cst_188 {dimension_numbers = #tpu.dot_dimension_numbers<[1], [0], [0], [1], [0, 0, 1, 1], [], []>} : vector<16x64xf32>, vector<64x32xf32>, vector<16x32xf32> -> vector<16x32xf32>
    %cst_189 = arith.constant dense<0.000000e+00> : vector<16x32xf32>
    %559 = tpu.matmul %557, %550, %cst_189 {dimension_numbers = #tpu.dot_dimension_numbers<[1], [0], [0], [1], [0, 0, 1, 1], [], []>} : vector<16x64xf32>, vector<64x32xf32>, vector<16x32xf32> -> vector<16x32xf32>
    %cst_190 = arith.constant 9.99999968E-21 : f32
    %560 = vector.broadcast %cst_190 : f32 to vector<16x32xf32>
    %561 = arith.maximumf %558, %560 : vector<16x32xf32>
    %562 = tpu.reciprocal %561 {approx = true} : vector<16x32xf32> -> vector<16x32xf32>
    %563 = arith.mulf %559, %562 : vector<16x32xf32>
    %cst_191 = arith.constant dense<0.000000e+00> : vector<16x32xf32>
    %564 = tpu.matmul %563, %546, %cst_191 {dimension_numbers = #tpu.dot_dimension_numbers<[1], [0], [0], [1], [0, 0, 1, 1], [], []>} : vector<16x32xf32>, vector<32x32xf32>, vector<16x32xf32> -> vector<16x32xf32>
    %565 = arith.addf %524, %564 : vector<16x32xf32>
    %566 = vector.extract_strided_slice %0 {offsets = [34, 0], sizes = [1, 32], strides = [1, 1]} : vector<40x128xf32> to vector<1x32xf32>
    %567 = arith.mulf %565, %565 : vector<16x32xf32>
    %cst_192 = arith.constant dense<0.000000e+00> : vector<16xf32>
    %568 = vector.multi_reduction <add>, %567, %cst_192 [1] : vector<16x32xf32> to vector<16xf32>
    %569 = vector.shape_cast %568 : vector<16xf32> to vector<16x1xf32>
    %cst_193 = arith.constant 3.200000e+01 : f32
    %570 = vector.broadcast %cst_193 : f32 to vector<16x1xf32>
    %571 = arith.divf %569, %570 : vector<16x1xf32>
    %cst_194 = arith.constant 9.99999997E-7 : f32
    %572 = vector.broadcast %cst_194 : f32 to vector<16x1xf32>
    %573 = arith.addf %571, %572 : vector<16x1xf32>
    %574 = math.rsqrt %573 : vector<16x1xf32>
    %575 = vector.broadcast %574 : vector<16x1xf32> to vector<16x32xf32>
    %576 = arith.mulf %565, %575 : vector<16x32xf32>
    %577 = vector.broadcast %566 : vector<1x32xf32> to vector<16x32xf32>
    %578 = arith.mulf %576, %577 : vector<16x32xf32>
    %c1024 = arith.constant 1024 : index
    %c0_195 = arith.constant 0 : index
    %579 = vector.load %arg11[%c1024, %c0_195] : memref<1840x32xf32, #tpu.memory_space<vmem>>, vector<32x32xf32>
    %cst_196 = arith.constant dense<0.000000e+00> : vector<16x32xf32>
    %580 = tpu.matmul %578, %579, %cst_196 {dimension_numbers = #tpu.dot_dimension_numbers<[1], [0], [0], [1], [0, 0, 1, 1], [], []>} : vector<16x32xf32>, vector<32x32xf32>, vector<16x32xf32> -> vector<16x32xf32>
    %c1056 = arith.constant 1056 : index
    %c0_197 = arith.constant 0 : index
    %581 = vector.load %arg11[%c1056, %c0_197] : memref<1840x32xf32, #tpu.memory_space<vmem>>, vector<32x32xf32>
    %cst_198 = arith.constant dense<0.000000e+00> : vector<28x32xf32>
    %582 = tpu.matmul %523, %581, %cst_198 {dimension_numbers = #tpu.dot_dimension_numbers<[1], [0], [0], [1], [0, 0, 1, 1], [], []>} : vector<28x32xf32>, vector<32x32xf32>, vector<28x32xf32> -> vector<28x32xf32>
    %c1088 = arith.constant 1088 : index
    %c0_199 = arith.constant 0 : index
    %583 = vector.load %arg11[%c1088, %c0_199] : memref<1840x32xf32, #tpu.memory_space<vmem>>, vector<32x32xf32>
    %cst_200 = arith.constant dense<0.000000e+00> : vector<28x32xf32>
    %584 = tpu.matmul %523, %583, %cst_200 {dimension_numbers = #tpu.dot_dimension_numbers<[1], [0], [0], [1], [0, 0, 1, 1], [], []>} : vector<28x32xf32>, vector<32x32xf32>, vector<28x32xf32> -> vector<28x32xf32>
    %c1120 = arith.constant 1120 : index
    %c0_201 = arith.constant 0 : index
    %585 = vector.load %arg11[%c1120, %c0_201] : memref<1840x32xf32, #tpu.memory_space<vmem>>, vector<32x32xf32>
    %586 = tpu.concatenate %582, %582, %582, %582 in 0 : vector<28x32xf32>, vector<28x32xf32>, vector<28x32xf32>, vector<28x32xf32> -> vector<112x32xf32>
    %587 = arith.mulf %586, %160 : vector<112x32xf32>
    %588 = tpu.concatenate %584, %584, %584, %584 in 0 : vector<28x32xf32>, vector<28x32xf32>, vector<28x32xf32>, vector<28x32xf32> -> vector<112x32xf32>
    %589 = arith.mulf %588, %160 : vector<112x32xf32>
    %cst_202 = arith.constant dense<0.000000e+00> : vector<16x112xf32>
    %590 = tpu.matmul %580, %587, %cst_202 {dimension_numbers = #tpu.dot_dimension_numbers<[1], [1], [0], [0], [0, 0, 1, 0], [], []>} : vector<16x32xf32>, vector<112x32xf32>, vector<16x112xf32> -> vector<16x112xf32>
    %591 = arith.addf %590, %526 : vector<16x112xf32>
    %cst_203 = arith.constant dense<0xFF800000> : vector<16xf32>
    %592 = vector.multi_reduction <maximumf>, %591, %cst_203 [1] : vector<16x112xf32> to vector<16xf32>
    %593 = vector.shape_cast %592 : vector<16xf32> to vector<16x1xf32>
    %594 = vector.broadcast %593 : vector<16x1xf32> to vector<16x112xf32>
    %595 = arith.subf %591, %594 : vector<16x112xf32>
    %596 = math.exp %595 : vector<16x112xf32>
    %cst_204 = arith.constant dense<0.000000e+00> : vector<16x32xf32>
    %597 = tpu.matmul %596, %160, %cst_204 {dimension_numbers = #tpu.dot_dimension_numbers<[1], [0], [0], [1], [0, 0, 1, 1], [], []>} : vector<16x112xf32>, vector<112x32xf32>, vector<16x32xf32> -> vector<16x32xf32>
    %cst_205 = arith.constant dense<0.000000e+00> : vector<16x32xf32>
    %598 = tpu.matmul %596, %589, %cst_205 {dimension_numbers = #tpu.dot_dimension_numbers<[1], [0], [0], [1], [0, 0, 1, 1], [], []>} : vector<16x112xf32>, vector<112x32xf32>, vector<16x32xf32> -> vector<16x32xf32>
    %cst_206 = arith.constant 9.99999968E-21 : f32
    %599 = vector.broadcast %cst_206 : f32 to vector<16x32xf32>
    %600 = arith.maximumf %597, %599 : vector<16x32xf32>
    %601 = tpu.reciprocal %600 {approx = true} : vector<16x32xf32> -> vector<16x32xf32>
    %602 = arith.mulf %598, %601 : vector<16x32xf32>
    %cst_207 = arith.constant dense<0.000000e+00> : vector<16x32xf32>
    %603 = tpu.matmul %602, %585, %cst_207 {dimension_numbers = #tpu.dot_dimension_numbers<[1], [0], [0], [1], [0, 0, 1, 1], [], []>} : vector<16x32xf32>, vector<32x32xf32>, vector<16x32xf32> -> vector<16x32xf32>
    %604 = arith.addf %565, %603 : vector<16x32xf32>
    %605 = vector.extract_strided_slice %0 {offsets = [35, 0], sizes = [1, 32], strides = [1, 1]} : vector<40x128xf32> to vector<1x32xf32>
    %606 = arith.mulf %604, %604 : vector<16x32xf32>
    %cst_208 = arith.constant dense<0.000000e+00> : vector<16xf32>
    %607 = vector.multi_reduction <add>, %606, %cst_208 [1] : vector<16x32xf32> to vector<16xf32>
    %608 = vector.shape_cast %607 : vector<16xf32> to vector<16x1xf32>
    %cst_209 = arith.constant 3.200000e+01 : f32
    %609 = vector.broadcast %cst_209 : f32 to vector<16x1xf32>
    %610 = arith.divf %608, %609 : vector<16x1xf32>
    %cst_210 = arith.constant 9.99999997E-7 : f32
    %611 = vector.broadcast %cst_210 : f32 to vector<16x1xf32>
    %612 = arith.addf %610, %611 : vector<16x1xf32>
    %613 = math.rsqrt %612 : vector<16x1xf32>
    %614 = vector.broadcast %613 : vector<16x1xf32> to vector<16x32xf32>
    %615 = arith.mulf %604, %614 : vector<16x32xf32>
    %616 = vector.broadcast %605 : vector<1x32xf32> to vector<16x32xf32>
    %617 = arith.mulf %615, %616 : vector<16x32xf32>
    %c128_211 = arith.constant 128 : index
    %c0_212 = arith.constant 0 : index
    %618 = vector.load %arg12[%c128_211, %c0_212] : memref<192x64xf32, #tpu.memory_space<vmem>>, vector<32x64xf32>
    %cst_213 = arith.constant dense<0.000000e+00> : vector<16x64xf32>
    %619 = tpu.matmul %617, %618, %cst_213 {dimension_numbers = #tpu.dot_dimension_numbers<[1], [0], [0], [1], [0, 0, 1, 1], [], []>} : vector<16x32xf32>, vector<32x64xf32>, vector<16x64xf32> -> vector<16x64xf32>
    %cst_214 = arith.constant 0.000000e+00 : f32
    %620 = vector.broadcast %cst_214 : f32 to vector<16x64xf32>
    %621 = arith.maximumf %619, %620 : vector<16x64xf32>
    %c1152 = arith.constant 1152 : index
    %c0_215 = arith.constant 0 : index
    %622 = vector.load %arg11[%c1152, %c0_215] : memref<1840x32xf32, #tpu.memory_space<vmem>>, vector<64x32xf32>
    %cst_216 = arith.constant dense<0.000000e+00> : vector<16x32xf32>
    %623 = tpu.matmul %621, %622, %cst_216 {dimension_numbers = #tpu.dot_dimension_numbers<[1], [0], [0], [1], [0, 0, 1, 1], [], []>} : vector<16x64xf32>, vector<64x32xf32>, vector<16x32xf32> -> vector<16x32xf32>
    %624 = arith.addf %604, %623 : vector<16x32xf32>
    %625 = vector.extract_strided_slice %0 {offsets = [36, 0], sizes = [1, 32], strides = [1, 1]} : vector<40x128xf32> to vector<1x32xf32>
    %626 = arith.mulf %624, %624 : vector<16x32xf32>
    %cst_217 = arith.constant dense<0.000000e+00> : vector<16xf32>
    %627 = vector.multi_reduction <add>, %626, %cst_217 [1] : vector<16x32xf32> to vector<16xf32>
    %628 = vector.shape_cast %627 : vector<16xf32> to vector<16x1xf32>
    %cst_218 = arith.constant 3.200000e+01 : f32
    %629 = vector.broadcast %cst_218 : f32 to vector<16x1xf32>
    %630 = arith.divf %628, %629 : vector<16x1xf32>
    %cst_219 = arith.constant 9.99999997E-7 : f32
    %631 = vector.broadcast %cst_219 : f32 to vector<16x1xf32>
    %632 = arith.addf %630, %631 : vector<16x1xf32>
    %633 = math.rsqrt %632 : vector<16x1xf32>
    %634 = vector.broadcast %633 : vector<16x1xf32> to vector<16x32xf32>
    %635 = arith.mulf %624, %634 : vector<16x32xf32>
    %636 = vector.broadcast %625 : vector<1x32xf32> to vector<16x32xf32>
    %637 = arith.mulf %635, %636 : vector<16x32xf32>
    %c1216 = arith.constant 1216 : index
    %c0_220 = arith.constant 0 : index
    %638 = vector.load %arg11[%c1216, %c0_220] : memref<1840x32xf32, #tpu.memory_space<vmem>>, vector<32x32xf32>
    %cst_221 = arith.constant dense<0.000000e+00> : vector<16x32xf32>
    %639 = tpu.matmul %637, %638, %cst_221 {dimension_numbers = #tpu.dot_dimension_numbers<[1], [0], [0], [1], [0, 0, 1, 1], [], []>} : vector<16x32xf32>, vector<32x32xf32>, vector<16x32xf32> -> vector<16x32xf32>
    %c1248 = arith.constant 1248 : index
    %c0_222 = arith.constant 0 : index
    %640 = vector.load %arg11[%c1248, %c0_222] : memref<1840x32xf32, #tpu.memory_space<vmem>>, vector<32x32xf32>
    %cst_223 = arith.constant dense<0.000000e+00> : vector<16x32xf32>
    %641 = tpu.matmul %637, %640, %cst_223 {dimension_numbers = #tpu.dot_dimension_numbers<[1], [0], [0], [1], [0, 0, 1, 1], [], []>} : vector<16x32xf32>, vector<32x32xf32>, vector<16x32xf32> -> vector<16x32xf32>
    %c1280 = arith.constant 1280 : index
    %c0_224 = arith.constant 0 : index
    %642 = vector.load %arg11[%c1280, %c0_224] : memref<1840x32xf32, #tpu.memory_space<vmem>>, vector<32x32xf32>
    %cst_225 = arith.constant dense<0.000000e+00> : vector<16x32xf32>
    %643 = tpu.matmul %637, %642, %cst_225 {dimension_numbers = #tpu.dot_dimension_numbers<[1], [0], [0], [1], [0, 0, 1, 1], [], []>} : vector<16x32xf32>, vector<32x32xf32>, vector<16x32xf32> -> vector<16x32xf32>
    %c1312 = arith.constant 1312 : index
    %c0_226 = arith.constant 0 : index
    %644 = vector.load %arg11[%c1312, %c0_226] : memref<1840x32xf32, #tpu.memory_space<vmem>>, vector<32x32xf32>
    %645 = tpu.concatenate %641, %641, %641, %641 in 0 : vector<16x32xf32>, vector<16x32xf32>, vector<16x32xf32>, vector<16x32xf32> -> vector<64x32xf32>
    %646 = arith.mulf %645, %161 : vector<64x32xf32>
    %647 = tpu.concatenate %643, %643, %643, %643 in 0 : vector<16x32xf32>, vector<16x32xf32>, vector<16x32xf32>, vector<16x32xf32> -> vector<64x32xf32>
    %648 = arith.mulf %647, %161 : vector<64x32xf32>
    %cst_227 = arith.constant dense<0.000000e+00> : vector<16x64xf32>
    %649 = tpu.matmul %639, %646, %cst_227 {dimension_numbers = #tpu.dot_dimension_numbers<[1], [1], [0], [0], [0, 0, 1, 0], [], []>} : vector<16x32xf32>, vector<64x32xf32>, vector<16x64xf32> -> vector<16x64xf32>
    %650 = arith.addf %649, %525 : vector<16x64xf32>
    %cst_228 = arith.constant dense<0xFF800000> : vector<16xf32>
    %651 = vector.multi_reduction <maximumf>, %650, %cst_228 [1] : vector<16x64xf32> to vector<16xf32>
    %652 = vector.shape_cast %651 : vector<16xf32> to vector<16x1xf32>
    %653 = vector.broadcast %652 : vector<16x1xf32> to vector<16x64xf32>
    %654 = arith.subf %650, %653 : vector<16x64xf32>
    %655 = math.exp %654 : vector<16x64xf32>
    %cst_229 = arith.constant dense<0.000000e+00> : vector<16x32xf32>
    %656 = tpu.matmul %655, %161, %cst_229 {dimension_numbers = #tpu.dot_dimension_numbers<[1], [0], [0], [1], [0, 0, 1, 1], [], []>} : vector<16x64xf32>, vector<64x32xf32>, vector<16x32xf32> -> vector<16x32xf32>
    %cst_230 = arith.constant dense<0.000000e+00> : vector<16x32xf32>
    %657 = tpu.matmul %655, %648, %cst_230 {dimension_numbers = #tpu.dot_dimension_numbers<[1], [0], [0], [1], [0, 0, 1, 1], [], []>} : vector<16x64xf32>, vector<64x32xf32>, vector<16x32xf32> -> vector<16x32xf32>
    %cst_231 = arith.constant 9.99999968E-21 : f32
    %658 = vector.broadcast %cst_231 : f32 to vector<16x32xf32>
    %659 = arith.maximumf %656, %658 : vector<16x32xf32>
    %660 = tpu.reciprocal %659 {approx = true} : vector<16x32xf32> -> vector<16x32xf32>
    %661 = arith.mulf %657, %660 : vector<16x32xf32>
    %cst_232 = arith.constant dense<0.000000e+00> : vector<16x32xf32>
    %662 = tpu.matmul %661, %644, %cst_232 {dimension_numbers = #tpu.dot_dimension_numbers<[1], [0], [0], [1], [0, 0, 1, 1], [], []>} : vector<16x32xf32>, vector<32x32xf32>, vector<16x32xf32> -> vector<16x32xf32>
    %663 = arith.addf %624, %662 : vector<16x32xf32>
    %664 = vector.extract_strided_slice %0 {offsets = [37, 0], sizes = [1, 32], strides = [1, 1]} : vector<40x128xf32> to vector<1x32xf32>
    %665 = arith.mulf %663, %663 : vector<16x32xf32>
    %cst_233 = arith.constant dense<0.000000e+00> : vector<16xf32>
    %666 = vector.multi_reduction <add>, %665, %cst_233 [1] : vector<16x32xf32> to vector<16xf32>
    %667 = vector.shape_cast %666 : vector<16xf32> to vector<16x1xf32>
    %cst_234 = arith.constant 3.200000e+01 : f32
    %668 = vector.broadcast %cst_234 : f32 to vector<16x1xf32>
    %669 = arith.divf %667, %668 : vector<16x1xf32>
    %cst_235 = arith.constant 9.99999997E-7 : f32
    %670 = vector.broadcast %cst_235 : f32 to vector<16x1xf32>
    %671 = arith.addf %669, %670 : vector<16x1xf32>
    %672 = math.rsqrt %671 : vector<16x1xf32>
    %673 = vector.broadcast %672 : vector<16x1xf32> to vector<16x32xf32>
    %674 = arith.mulf %663, %673 : vector<16x32xf32>
    %675 = vector.broadcast %664 : vector<1x32xf32> to vector<16x32xf32>
    %676 = arith.mulf %674, %675 : vector<16x32xf32>
    %c1344 = arith.constant 1344 : index
    %c0_236 = arith.constant 0 : index
    %677 = vector.load %arg11[%c1344, %c0_236] : memref<1840x32xf32, #tpu.memory_space<vmem>>, vector<32x32xf32>
    %cst_237 = arith.constant dense<0.000000e+00> : vector<16x32xf32>
    %678 = tpu.matmul %676, %677, %cst_237 {dimension_numbers = #tpu.dot_dimension_numbers<[1], [0], [0], [1], [0, 0, 1, 1], [], []>} : vector<16x32xf32>, vector<32x32xf32>, vector<16x32xf32> -> vector<16x32xf32>
    %c1376 = arith.constant 1376 : index
    %c0_238 = arith.constant 0 : index
    %679 = vector.load %arg11[%c1376, %c0_238] : memref<1840x32xf32, #tpu.memory_space<vmem>>, vector<32x32xf32>
    %cst_239 = arith.constant dense<0.000000e+00> : vector<28x32xf32>
    %680 = tpu.matmul %523, %679, %cst_239 {dimension_numbers = #tpu.dot_dimension_numbers<[1], [0], [0], [1], [0, 0, 1, 1], [], []>} : vector<28x32xf32>, vector<32x32xf32>, vector<28x32xf32> -> vector<28x32xf32>
    %c1408 = arith.constant 1408 : index
    %c0_240 = arith.constant 0 : index
    %681 = vector.load %arg11[%c1408, %c0_240] : memref<1840x32xf32, #tpu.memory_space<vmem>>, vector<32x32xf32>
    %cst_241 = arith.constant dense<0.000000e+00> : vector<28x32xf32>
    %682 = tpu.matmul %523, %681, %cst_241 {dimension_numbers = #tpu.dot_dimension_numbers<[1], [0], [0], [1], [0, 0, 1, 1], [], []>} : vector<28x32xf32>, vector<32x32xf32>, vector<28x32xf32> -> vector<28x32xf32>
    %c1440 = arith.constant 1440 : index
    %c0_242 = arith.constant 0 : index
    %683 = vector.load %arg11[%c1440, %c0_242] : memref<1840x32xf32, #tpu.memory_space<vmem>>, vector<32x32xf32>
    %684 = tpu.concatenate %680, %680, %680, %680 in 0 : vector<28x32xf32>, vector<28x32xf32>, vector<28x32xf32>, vector<28x32xf32> -> vector<112x32xf32>
    %685 = arith.mulf %684, %160 : vector<112x32xf32>
    %686 = tpu.concatenate %682, %682, %682, %682 in 0 : vector<28x32xf32>, vector<28x32xf32>, vector<28x32xf32>, vector<28x32xf32> -> vector<112x32xf32>
    %687 = arith.mulf %686, %160 : vector<112x32xf32>
    %cst_243 = arith.constant dense<0.000000e+00> : vector<16x112xf32>
    %688 = tpu.matmul %678, %685, %cst_243 {dimension_numbers = #tpu.dot_dimension_numbers<[1], [1], [0], [0], [0, 0, 1, 0], [], []>} : vector<16x32xf32>, vector<112x32xf32>, vector<16x112xf32> -> vector<16x112xf32>
    %689 = arith.addf %688, %526 : vector<16x112xf32>
    %cst_244 = arith.constant dense<0xFF800000> : vector<16xf32>
    %690 = vector.multi_reduction <maximumf>, %689, %cst_244 [1] : vector<16x112xf32> to vector<16xf32>
    %691 = vector.shape_cast %690 : vector<16xf32> to vector<16x1xf32>
    %692 = vector.broadcast %691 : vector<16x1xf32> to vector<16x112xf32>
    %693 = arith.subf %689, %692 : vector<16x112xf32>
    %694 = math.exp %693 : vector<16x112xf32>
    %cst_245 = arith.constant dense<0.000000e+00> : vector<16x32xf32>
    %695 = tpu.matmul %694, %160, %cst_245 {dimension_numbers = #tpu.dot_dimension_numbers<[1], [0], [0], [1], [0, 0, 1, 1], [], []>} : vector<16x112xf32>, vector<112x32xf32>, vector<16x32xf32> -> vector<16x32xf32>
    %cst_246 = arith.constant dense<0.000000e+00> : vector<16x32xf32>
    %696 = tpu.matmul %694, %687, %cst_246 {dimension_numbers = #tpu.dot_dimension_numbers<[1], [0], [0], [1], [0, 0, 1, 1], [], []>} : vector<16x112xf32>, vector<112x32xf32>, vector<16x32xf32> -> vector<16x32xf32>
    %cst_247 = arith.constant 9.99999968E-21 : f32
    %697 = vector.broadcast %cst_247 : f32 to vector<16x32xf32>
    %698 = arith.maximumf %695, %697 : vector<16x32xf32>
    %699 = tpu.reciprocal %698 {approx = true} : vector<16x32xf32> -> vector<16x32xf32>
    %700 = arith.mulf %696, %699 : vector<16x32xf32>
    %cst_248 = arith.constant dense<0.000000e+00> : vector<16x32xf32>
    %701 = tpu.matmul %700, %683, %cst_248 {dimension_numbers = #tpu.dot_dimension_numbers<[1], [0], [0], [1], [0, 0, 1, 1], [], []>} : vector<16x32xf32>, vector<32x32xf32>, vector<16x32xf32> -> vector<16x32xf32>
    %702 = arith.addf %663, %701 : vector<16x32xf32>
    %703 = vector.extract_strided_slice %0 {offsets = [38, 0], sizes = [1, 32], strides = [1, 1]} : vector<40x128xf32> to vector<1x32xf32>
    %704 = arith.mulf %702, %702 : vector<16x32xf32>
    %cst_249 = arith.constant dense<0.000000e+00> : vector<16xf32>
    %705 = vector.multi_reduction <add>, %704, %cst_249 [1] : vector<16x32xf32> to vector<16xf32>
    %706 = vector.shape_cast %705 : vector<16xf32> to vector<16x1xf32>
    %cst_250 = arith.constant 3.200000e+01 : f32
    %707 = vector.broadcast %cst_250 : f32 to vector<16x1xf32>
    %708 = arith.divf %706, %707 : vector<16x1xf32>
    %cst_251 = arith.constant 9.99999997E-7 : f32
    %709 = vector.broadcast %cst_251 : f32 to vector<16x1xf32>
    %710 = arith.addf %708, %709 : vector<16x1xf32>
    %711 = math.rsqrt %710 : vector<16x1xf32>
    %712 = vector.broadcast %711 : vector<16x1xf32> to vector<16x32xf32>
    %713 = arith.mulf %702, %712 : vector<16x32xf32>
    %714 = vector.broadcast %703 : vector<1x32xf32> to vector<16x32xf32>
    %715 = arith.mulf %713, %714 : vector<16x32xf32>
    %c160_252 = arith.constant 160 : index
    %c0_253 = arith.constant 0 : index
    %716 = vector.load %arg12[%c160_252, %c0_253] : memref<192x64xf32, #tpu.memory_space<vmem>>, vector<32x64xf32>
    %cst_254 = arith.constant dense<0.000000e+00> : vector<16x64xf32>
    %717 = tpu.matmul %715, %716, %cst_254 {dimension_numbers = #tpu.dot_dimension_numbers<[1], [0], [0], [1], [0, 0, 1, 1], [], []>} : vector<16x32xf32>, vector<32x64xf32>, vector<16x64xf32> -> vector<16x64xf32>
    %cst_255 = arith.constant 0.000000e+00 : f32
    %718 = vector.broadcast %cst_255 : f32 to vector<16x64xf32>
    %719 = arith.maximumf %717, %718 : vector<16x64xf32>
    %c1472 = arith.constant 1472 : index
    %c0_256 = arith.constant 0 : index
    %720 = vector.load %arg11[%c1472, %c0_256] : memref<1840x32xf32, #tpu.memory_space<vmem>>, vector<64x32xf32>
    %cst_257 = arith.constant dense<0.000000e+00> : vector<16x32xf32>
    %721 = tpu.matmul %719, %720, %cst_257 {dimension_numbers = #tpu.dot_dimension_numbers<[1], [0], [0], [1], [0, 0, 1, 1], [], []>} : vector<16x64xf32>, vector<64x32xf32>, vector<16x32xf32> -> vector<16x32xf32>
    %722 = arith.addf %702, %721 : vector<16x32xf32>
    %723 = vector.extract_strided_slice %0 {offsets = [39, 0], sizes = [1, 32], strides = [1, 1]} : vector<40x128xf32> to vector<1x32xf32>
    %724 = arith.mulf %722, %722 : vector<16x32xf32>
    %cst_258 = arith.constant dense<0.000000e+00> : vector<16xf32>
    %725 = vector.multi_reduction <add>, %724, %cst_258 [1] : vector<16x32xf32> to vector<16xf32>
    %726 = vector.shape_cast %725 : vector<16xf32> to vector<16x1xf32>
    %cst_259 = arith.constant 3.200000e+01 : f32
    %727 = vector.broadcast %cst_259 : f32 to vector<16x1xf32>
    %728 = arith.divf %726, %727 : vector<16x1xf32>
    %cst_260 = arith.constant 9.99999997E-7 : f32
    %729 = vector.broadcast %cst_260 : f32 to vector<16x1xf32>
    %730 = arith.addf %728, %729 : vector<16x1xf32>
    %731 = math.rsqrt %730 : vector<16x1xf32>
    %732 = vector.broadcast %731 : vector<16x1xf32> to vector<16x32xf32>
    %733 = arith.mulf %722, %732 : vector<16x32xf32>
    %734 = vector.broadcast %723 : vector<1x32xf32> to vector<16x32xf32>
    %735 = arith.mulf %733, %734 : vector<16x32xf32>
    %cst_261 = arith.constant 0.176776692 : f32
    %736 = vector.broadcast %cst_261 : f32 to vector<16x32xf32>
    %737 = arith.mulf %735, %736 : vector<16x32xf32>
    %c1536 = arith.constant 1536 : index
    %c0_262 = arith.constant 0 : index
    %738 = vector.load %arg11[%c1536, %c0_262] : memref<1840x32xf32, #tpu.memory_space<vmem>>, vector<128x32xf32>
    %cst_263 = arith.constant dense<0.000000e+00> : vector<16x128xf32>
    %739 = tpu.matmul %737, %738, %cst_263 {dimension_numbers = #tpu.dot_dimension_numbers<[1], [1], [0], [0], [0, 0, 1, 0], [], []>} : vector<16x32xf32>, vector<128x32xf32>, vector<16x128xf32> -> vector<16x128xf32>
    %c0_264 = arith.constant 0 : index
    %c0_265 = arith.constant 0 : index
    %740 = vector.load %arg13[%c0_264, %c0_265] : memref<16x128xf32, #tpu.memory_space<vmem>>, vector<16x128xf32>
    tpu.vector_store %arg13[%c0_264, %c0_265], %739 {strides = array<i32>} : memref<16x128xf32, #tpu.memory_space<vmem>>, vector<16x128xf32>,
    %741 = tpu.iota {dimensions = array<i32: 1>} : vector<16x128xi32>
    %c64_i32 = arith.constant 64 : i32
    %742 = vector.broadcast %c64_i32 : i32 to vector<16x128xi32>
    %743 = arith.cmpi slt, %741, %742 : vector<16x128xi32>
    %cst_266 = arith.constant -1.000000e+09 : f32
    %744 = vector.broadcast %cst_266 : f32 to vector<16x128xf32>
    %745 = arith.select %743, %739, %744 : vector<16x128xi1>, vector<16x128xf32>
    %cst_267 = arith.constant dense<0xFF800000> : vector<16xf32>
    %746 = vector.multi_reduction <maximumf>, %745, %cst_267 [1] : vector<16x128xf32> to vector<16xf32>
    %747 = vector.shape_cast %746 : vector<16xf32> to vector<16x1xf32>
    %748 = vector.broadcast %747 : vector<16x1xf32> to vector<16x128xf32>
    %749 = arith.subf %745, %748 : vector<16x128xf32>
    %750 = math.exp %749 : vector<16x128xf32>
    %cst_268 = arith.constant dense<0.000000e+00> : vector<16xf32>
    %751 = vector.multi_reduction <add>, %750, %cst_268 [1] : vector<16x128xf32> to vector<16xf32>
    %752 = vector.shape_cast %751 : vector<16xf32> to vector<16x1xf32>
    %753 = math.log %752 : vector<16x1xf32>
    %754 = arith.addf %753, %747 : vector<16x1xf32>
    %c0_269 = arith.constant 0 : index
    %c0_270 = arith.constant 0 : index
    %755 = vector.load %arg7[%c0_269, %c0_270] : memref<16x1xi32, #tpu.memory_space<vmem>>, vector<16x1xi32>
    %756 = vector.broadcast %755 : vector<16x1xi32> to vector<16x128xi32>
    %757 = arith.cmpi eq, %741, %756 : vector<16x128xi32>
    %cst_271 = arith.constant 0.000000e+00 : f32
    %758 = vector.broadcast %cst_271 : f32 to vector<16x128xf32>
    %759 = arith.select %757, %739, %758 : vector<16x128xi1>, vector<16x128xf32>
    %cst_272 = arith.constant dense<0.000000e+00> : vector<16xf32>
    %760 = vector.multi_reduction <add>, %759, %cst_272 [1] : vector<16x128xf32> to vector<16xf32>
    %761 = vector.shape_cast %760 : vector<16xf32> to vector<16x1xf32>
    %762 = arith.subf %754, %761 : vector<16x1xf32>
    %c0_273 = arith.constant 0 : index
    %c0_274 = arith.constant 0 : index
    %763 = vector.load %arg8[%c0_273, %c0_274] : memref<16x1xf32, #tpu.memory_space<vmem>>, vector<16x1xf32>
    %764 = arith.mulf %762, %763 : vector<16x1xf32>
    %cst_275 = arith.constant dense<0.000000e+00> : vector<1xf32>
    %765 = vector.multi_reduction <add>, %764, %cst_275 [0] : vector<16x1xf32> to vector<1xf32>
    %766 = vector.shape_cast %765 : vector<1xf32> to vector<1x1xf32>
    %c0_276 = arith.constant 0 : index
    %c0_277 = arith.constant 0 : index
    %767 = vector.load %arg8[%c0_276, %c0_277] : memref<16x1xf32, #tpu.memory_space<vmem>>, vector<16x1xf32>
    %cst_278 = arith.constant dense<0.000000e+00> : vector<1xf32>
    %768 = vector.multi_reduction <add>, %767, %cst_278 [0] : vector<16x1xf32> to vector<1xf32>
    %769 = vector.shape_cast %768 : vector<1xf32> to vector<1x1xf32>
    %cst_279 = arith.constant 1.000000e+00 : f32
    %770 = vector.broadcast %cst_279 : f32 to vector<1x1xf32>
    %771 = arith.maximumf %769, %770 : vector<1x1xf32>
    %772 = arith.divf %766, %771 : vector<1x1xf32>
    %c0_280 = arith.constant 0 : index
    %c0_281 = arith.constant 0 : index
    %773 = vector.load %arg14[%c0_280, %c0_281] : memref<1x1xf32, #tpu.memory_space<vmem>>, vector<1x1xf32>
    tpu.vector_store %arg14[%c0_280, %c0_281], %772 {strides = array<i32>} : memref<1x1xf32, #tpu.memory_space<vmem>>, vector<1x1xf32>,
    return
  }
}

</mosaic_0001>

<bundles_post_ra>
// kernel: forward.1
= control target key start
LH: loop header
LB: loop body
LE: loop exit
PB: predicated region body
PF: predicated region fallthrough
CT: control target
= control target key end

     0   :  { %vm61_vm0 = vcmask 64512   ;;  %s16208_s0 = inlined_call_operand.vmem [shape: f32[62,8], index: 0, kind: input, shape index: {}]   ;;  %s16209_s1 = inlined_call_operand.vmem [shape: f32[28,1], index: 1, kind: input, shape index: {}]   ;;  %s16210_s2 = inlined_call_operand.vmem [shape: f32[28,112], index: 2, kind: input, shape index: {}]   ;;  %s16211_s3 = inlined_call_operand.vmem [shape: f32[28,112], index: 3, kind: input, shape index: {}]   ;;  %s16212_s4 = inlined_call_operand.vmem [shape: f32[16,32], index: 4, kind: input, shape index: {}]   ;;  %s16213_s5 = inlined_call_operand.vmem [shape: f32[16,64], index: 5, kind: input, shape index: {}]   ;;  %s16214_s6 = inlined_call_operand.vmem [shape: f32[16,112], index: 6, kind: input, shape index: {}]   ;;  %s16215_s7 = inlined_call_operand.vmem [shape: s32[16,1], index: 7, kind: input, shape index: {}]   ;;  %s16216_s8 = inlined_call_operand.vmem [shape: f32[16,1], index: 8, kind: input, shape index: {}]   ;;  %s16217_s9 = inlined_call_operand.vmem [shape: f32[8,16], index: 9, kind: input, shape index: {}]   ;;  %s16218_s10 = inlined_call_operand.vmem [shape: f32[40,128], index: 10, kind: input, shape index: {}]   ;;  %s16219_s11 = inlined_call_operand.vmem [shape: f32[1840,32], index: 11, kind: input, shape index: {}]   ;;  %s16220_s12 = inlined_call_operand.vmem [shape: f32[192,64], index: 12, kind: input, shape index: {}]   ;;  %s16221_s13 = inlined_call_operand.vmem [shape: f32[16,128], index: 13, kind: output, shape index: {0}]   ;;  %s16222_s14 = inlined_call_operand.hbm [shape: f32[1,1], index: 14, kind: output, shape index: {1}]  }
   0x1   :  { %v60_v0 = vld [vmem:[%s16217_s9] sm:$0xff]  ;;  %v53_v2 = vld [vmem:[%s16208_s0 + $0x8] sm:$0xff]  ;;  %v54_v3 = vld [vmem:[%s16208_s0 + $0x10] sm:$0xff] }
   0x2   :  { %v52_v1 = vld [vmem:[%s16208_s0] sm:$0xff]  ;;  %10275 = vmatprep.subr.mxu0 %v60_v0 }
   0x3   :  { %10277 = vmatprep.mubr.msk.f32.mxu0 %vm61_vm0, %v52_v1  ;;  %10276 = vmatpush3.msra.mxu0 %v60_v0 }
   0x4   :  { %10278 = vmatmul.mubr.msk.f32.vlgmr.msra.gmra.mrb[0].mxu0 %vm61_vm0, %v53_v2 }
   0x5   :  { %20 = vsyncpa [#allocation3], 0  ;;  %10280 = vmatprep.mubr.msk.f32.mxu0 %vm61_vm0, %v54_v3  ;;  %v55_v4 = vld [vmem:[%s16208_s0 + $0x18] sm:$0xff]  ;;  %v56_v5 = vld [vmem:[%s16208_s0 + $0x20] sm:$0xff]  ;;  %vm191_vm1 = vcmask 130048   ;;  %vm197_vm2 = vcmask 129024  }
   0x6   :  { %v57_v6 = vld [vmem:[%s16208_s0 + $0x28] sm:$0xff]  ;;  %v58_v7 = vld [vmem:[%s16208_s0 + $0x30] sm:$0xff]  ;;  %v59_v8 = vld [vmem:[%s16208_s0 + $0x38] sm:$0x3f]  ;;  %vm330_vm3 = vcmask 1040384   ;;  %s13248_s15 = smov 16  }
   0x7   :  { %vm298_vm4 = vcmask 1046528   ;;  %s13249_s20 = smov 32   ;;  %s13250_s24 = smov 48   ;;  %vm319_vm5 = vcmask 261120   ;;  %vm322_vm6 = vcmask 392192   ;;  %vm527_vm7 = vcmask 523264  }
   0x8   :  { %10281 = vmatmul.mubr.msk.f32.gmra.mrb[2].mxu0 %vm61_vm0, %v55_v4  ;;  %vm517_vm8 = vcmask 1045504   ;;  %vm668_vm9 = vcmask 257024   ;;  %vm1259_vm10 = vcmask 1043456   ;;  %vm13778_vm11 = vmpackc.low %vm319_vm5, %vm319_vm5  ;;  %vm1455_vm12 = vcmask 916480  }
   0x9   :  { %10283 = vmatprep.mubr.msk.f32.mxu0 %vm61_vm0, %v56_v5  ;;  %vm1465_vm13 = vcmask 912384  }
   0xc   :  { %10284 = vmatmul.mubr.msk.f32.gmra.mrb[4].mxu0 %vm61_vm0, %v57_v6 }
   0xd   :  { %10286 = vmatprep.mubr.msk.f32.mxu0 %vm61_vm0, %v58_v7 }
  0x10   :  { %10287 = vmatmul.mubr.msk.f32.gmra.mrb[6].mxu0 %vm61_vm0, %v59_v8 }
  0xd7   :  { %v10279_v9 = vpop.f32.mrb[0].mxu0 }
  0xd8   :  { %v193_v10 = vsel %vm191_vm1, %v10279_v9, 0.0  ;;  %v152_v11 = vpop.f32.mrb[1].mxu0 }
  0xd9   :  { %v192_v12 = vsel %vm191_vm1, %v152_v11, 0.0 }
  0xda   :  { %v194_v13 = vadd.f32 %v193_v10, %v192_v12 }
  0xdb   :  { %v10282_v14 = vpop.f32.mrb[2].mxu0 }
  0xdc   :  { %v162_v15 = vpop.f32.mrb[3].mxu0  ;;  %v198_v18 = vsel %vm197_vm2, %v10282_v14, 0.0  ;;  %v331_v23 = vrot.slane %v10282_v14, 7 }
  0xdd   :  { %v195_v16 = vsel %vm191_vm1, %v162_v15, 0.0 }
  0xde   :  { %v196_v17 = vadd.f32 %v195_v16, %v194_v13 }
  0xdf   :  { %v10285_v19 = vpop.f32.mrb[4].mxu0 }
  0xe0   :  { %v199_v20 = vadd.f32 %v198_v18, %v196_v17  ;;  %v334_v21 = vrot.slane %v10285_v19, 7  ;;  %v172_v22 = vpop.f32.mrb[5].mxu0 }
  0xe1   :  { %v332_v24 = vrot.slane %v172_v22, 7 }
  0xe2   :  { %v200_v25 = vrot.slane %v199_v20, 4 }
  0xe3   :  { %v333_v26 = vsel %vm330_vm3, %v331_v23, %v332_v24  ;;  %v335_v27 = vsel %vm330_vm3, %v332_v24, %v334_v21  ;;  %v10288_v28 = vpop.f32.mrb[6].mxu0 }
  0xe4   :  { %v201_v29 = vadd.f32 %v200_v25, %v199_v20  ;;  %v344_v30 = vsel %vm191_vm1, %v333_v26, 0.0  ;;  %v345_v31 = vsel %vm191_vm1, %v335_v27, 0.0  ;;  %v338_v32 = vrot.slane %v10288_v28, 7  ;;  %v182_v33 = vpop.f32.mrb[7].mxu0 }
  0xe5   :  { %v346_v34 = vadd.f32 %v345_v31, %v344_v30  ;;  %v336_v35 = vrot.slane %v182_v33, 7 }
  0xe6   :  { %v202_v36 = vrot.slane %v201_v29, 2 }
  0xe7   :  { %v337_v37 = vsel %vm330_vm3, %v334_v21, %v336_v35  ;;  %v339_v38 = vsel %vm330_vm3, %v336_v35, %v338_v32 }
  0xe8   :  { %v203_v39 = vadd.f32 %v202_v36, %v201_v29  ;;  %v347_v40 = vsel %vm191_vm1, %v337_v37, 0.0  ;;  %v349_v43 = vsel %vm197_vm2, %v339_v38, 0.0  ;;  %v16223_v38 = vlaneseq }
  0xe9   :  { %v348_v41 = vadd.f32 %v347_v40, %v346_v34 }
  0xea   :  { %v204_v42 = vrot.slane %v203_v39, 1 }
  0xeb   :  { %v350_v44 = vadd.f32 %v349_v43, %v348_v41 }
  0xec   :  { %v205_v45 = vadd.f32 %v204_v42, %v203_v39  ;;  %v13424_v42 = vshrl.u32 %v16223_v38, 7 }
  0xed   :  { %v351_v46 = vrot.slane %v350_v44, 4 }
  0xee   :  { %v207_v47 = vmul.f32 0.032258064, %v205_v45  ;;  %v13427_v45 = vsub.s32 0, %v13424_v42 }
  0xef   :  { %v352_v48 = vadd.f32 %v351_v46, %v350_v44  ;;  %v13432_v46 = vld [vmem:[%s16218_s10] sm:$0xff] }
  0xf0   :  { %v13375_v49 = vsub.f32 %v152_v11, %v207_v47  ;;  %v13377_v50 = vsub.f32 %v10279_v9, %v207_v47  ;;  %v13379_v51 = vsub.f32 %v162_v15, %v207_v47  ;;  %v13381_v52 = vsub.f32 %v10282_v14, %v207_v47 }
  0xf1   :  { %v353_v53 = vrot.slane %v352_v48, 2  ;;  %v13435_v47 = vsub.s32 1, %v13424_v42 }
  0xf2   :  { %v212_v54 = vmul.f32 %v13375_v49, %v13375_v49  ;;  %v213_v55 = vmul.f32 %v13377_v50, %v13377_v50  ;;  %v214_v56 = vmul.f32 %v13379_v51, %v13379_v51  ;;  %v215_v58 = vmul.f32 %v13381_v52, %v13381_v52 }
  0xf3   :  { %v354_v57 = vadd.f32 %v353_v53, %v352_v48 }
  0xf4   :  { %v216_v59 = vsel %vm191_vm1, %v212_v54, 0.0  ;;  %v217_v60 = vsel %vm191_vm1, %v213_v55, 0.0  ;;  %v219_v63 = vsel %vm191_vm1, %v214_v56, 0.0  ;;  %v221_v2 = vsel %vm197_vm2, %v215_v58, 0.0 }
  0xf5   :  { %v218_v61 = vadd.f32 %v217_v60, %v216_v59  ;;  %v355_v62 = vrot.slane %v354_v57, 1  ;;  %v239_v54 = vrot.slane %v13432_v46, %v13427_v45  ;;  %v247_v56 = vrot.slane %v13432_v46, %v13435_v47 }
  0xf7   :  { %v220_v0 = vadd.f32 %v219_v63, %v218_v61  ;;  %v356_v1 = vadd.f32 %v355_v62, %v354_v57 }
  0xf9   :  { %v222_v3 = vadd.f32 %v221_v2, %v220_v0  ;;  %v357_v4 = vmul.f32 0.032258064, %v356_v1 }
  0xfb   :  { %v223_v5 = vrot.slane %v222_v3, 4  ;;  %v13395_v6 = vsub.f32 %v10282_v14, %v357_v4  ;;  %v13397_v7 = vsub.f32 %v172_v22, %v357_v4  ;;  %v13399_v8 = vsub.f32 %v10285_v19, %v357_v4 }
  0xfc   :  { %v13401_v9 = vsub.f32 %v182_v33, %v357_v4  ;;  %v13403_v10 = vsub.f32 %v10288_v28, %v357_v4 }
  0xfd   :  { %v224_v11 = vadd.f32 %v223_v5, %v222_v3  ;;  %v363_v12 = vmul.f32 %v13395_v6, %v13395_v6  ;;  %v364_v13 = vmul.f32 %v13397_v7, %v13397_v7  ;;  %v365_v15 = vmul.f32 %v13399_v8, %v13399_v8 }
  0xfe   :  { %v366_v14 = vmul.f32 %v13401_v9, %v13401_v9  ;;  %v367_v16 = vmul.f32 %v13403_v10, %v13403_v10 }
  0xff   :  { %v225_v17 = vrot.slane %v224_v11, 2  ;;  %v373_v18 = vrot.slane %v363_v12, 7  ;;  %v374_v19 = vrot.slane %v364_v13, 7  ;;  %v376_v20 = vrot.slane %v365_v15, 7 }
 0x100   :  { %v378_v21 = vrot.slane %v366_v14, 7  ;;  %v380_v22 = vrot.slane %v367_v16, 7 }
 0x101   :  { %v226_v23 = vadd.f32 %v225_v17, %v224_v11  ;;  %v375_v24 = vsel %vm330_vm3, %v373_v18, %v374_v19  ;;  %v377_v25 = vsel %vm330_vm3, %v374_v19, %v376_v20 }
 0x102   :  { %v379_v26 = vsel %vm330_vm3, %v376_v20, %v378_v21  ;;  %v381_v27 = vsel %vm330_vm3, %v378_v21, %v380_v22  ;;  %v386_v28 = vsel %vm191_vm1, %v375_v24, 0.0  ;;  %v387_v29 = vsel %vm191_vm1, %v377_v25, 0.0 }
 0x103   :  { %v227_v30 = vrot.slane %v226_v23, 1  ;;  %v388_v31 = vadd.f32 %v387_v29, %v386_v28  ;;  %v389_v32 = vsel %vm191_vm1, %v379_v26, 0.0  ;;  %v391_v35 = vsel %vm197_vm2, %v381_v27, 0.0 }
 0x104   :  { %vm9130_vm2 = vcmask 0  }
 0x105   :  { %v228_v33 = vadd.f32 %v227_v30, %v226_v23  ;;  %v390_v34 = vadd.f32 %v389_v32, %v388_v31 }
 0x107   :  { %v229_v36 = vmul.f32 0.032258064, %v228_v33  ;;  %v392_v37 = vadd.f32 %v391_v35, %v390_v34 }
 0x109   :  { %v230_v39 = vadd.f32 1e-05, %v229_v36  ;;  %v393_v40 = vrot.slane %v392_v37, 4 }
 0x10b   :  { %12885 = vrsqrt.f32 %v230_v39  ;;  %v394_v41 = vadd.f32 %v393_v40, %v392_v37 }
 0x10d   :  { %v395_v43 = vrot.slane %v394_v41, 2 }
 0x10f   :  { %v396_v44 = vadd.f32 %v395_v43, %v394_v41 }
 0x111   :  { %v397_v48 = vrot.slane %v396_v44, 1 }
 0x113   :  { %v398_v53 = vadd.f32 %v397_v48, %v396_v44 }
 0x115   :  { %v12886_v55 = vpop.eup %12885  ;;  %v399_v57 = vmul.f32 0.032258064, %v398_v53 }
 0x116   :  { %v232_v58 = vmul.f32 %v12886_v55, %v13375_v49  ;;  %v233_v59 = vmul.f32 %v12886_v55, %v13377_v50  ;;  %v234_v60 = vmul.f32 %v12886_v55, %v13379_v51  ;;  %v235_v61 = vmul.f32 %v12886_v55, %v13381_v52 }
 0x117   :  { %v400_v62 = vadd.f32 1e-05, %v399_v57 }
 0x118   :  { %v240_v63 = vmul.f32 %v239_v54, %v232_v58  ;;  %v242_v0 = vmul.f32 %v239_v54, %v234_v60  ;;  %v243_v1 = vmul.f32 %v239_v54, %v235_v61  ;;  %v241_v2 = vmul.f32 %v239_v54, %v233_v59 }
 0x119   :  { %12887 = vrsqrt.f32 %v400_v62 }
 0x11a   :  { %v13445_v3 = vadd.f32 %v247_v56, %v242_v0  ;;  %v13447_v4 = vadd.f32 %v247_v56, %v243_v1  ;;  %v13449_v5 = vadd.f32 %v247_v56, %v241_v2  ;;  %v13451_v11 = vadd.f32 %v247_v56, %v240_v63 }
 0x11c   :  { %v255_v49 = vmul.f32 %v13447_v4, %v13447_v4  ;;  %v254_v50 = vmul.f32 %v13445_v3, %v13445_v3  ;;  %v253_v51 = vmul.f32 %v13449_v5, %v13449_v5  ;;  %v252_v52 = vmul.f32 %v13451_v11, %v13451_v11 }
 0x11e   :  { %v259_v12 = vmul.f32 %v255_v49, %v13447_v4  ;;  %v258_v13 = vmul.f32 %v254_v50, %v13445_v3  ;;  %v257_v15 = vmul.f32 %v253_v51, %v13449_v5  ;;  %v256_v14 = vmul.f32 %v252_v52, %v13451_v11 }
 0x120   :  { %v263_v16 = vmul.f32 0.044715, %v259_v12  ;;  %v262_v17 = vmul.f32 0.044715, %v258_v13  ;;  %v261_v18 = vmul.f32 0.044715, %v257_v15 }
 0x121   :  { %v260_v19 = vmul.f32 0.044715, %v256_v14 }
 0x122   :  { %v267_v20 = vadd.f32 %v263_v16, %v13447_v4  ;;  %v266_v21 = vadd.f32 %v262_v17, %v13445_v3  ;;  %v265_v22 = vadd.f32 %v261_v18, %v13449_v5 }
 0x123   :  { %v12888_v23 = vpop.eup %12887  ;;  %v264_v24 = vadd.f32 %v260_v19, %v13451_v11 }
 0x124   :  { %v405_v25 = vmul.f32 %v12888_v23, %v13401_v9  ;;  %v406_v26 = vmul.f32 %v12888_v23, %v13403_v10  ;;  %v271_v27 = vmul.f32 0.7978846, %v267_v20  ;;  %v270_v28 = vmul.f32 0.7978846, %v266_v21 }
 0x125   :  { %v269_v29 = vmul.f32 0.7978846, %v265_v22  ;;  %v268_v30 = vmul.f32 0.7978846, %v264_v24  ;;  %v404_v31 = vmul.f32 %v12888_v23, %v13399_v8  ;;  %v403_v32 = vmul.f32 %v12888_v23, %v13397_v7 }
 0x126   :  { %v410_v33 = vmul.f32 %v405_v25, %v239_v54  ;;  %12889 = vtanh.f32 %v271_v27  ;;  %v411_v34 = vmul.f32 %v406_v26, %v239_v54  ;;  %v402_v35 = vmul.f32 %v12888_v23, %v13395_v6  ;;  %v519_v26 = vld [vmem:[%s16219_s11] sm:$0xff]  ;;  %v520_v27 = vld [vmem:[%s16219_s11 + $0x8] sm:$0xff] }
 0x127   :  { %12891 = vtanh.f32 %v270_v28  ;;  %v409_v36 = vmul.f32 %v404_v31, %v239_v54  ;;  %v408_v37 = vmul.f32 %v403_v32, %v239_v54  ;;  %v522_v31 = vld [vmem:[%s16219_s11 + $0x18] sm:$0xff] }
 0x128   :  { %v13474_v39 = vadd.f32 %v410_v33, %v247_v56  ;;  %12893 = vtanh.f32 %v269_v29  ;;  %v13476_v9 = vadd.f32 %v411_v34, %v247_v56  ;;  %v407_v10 = vmul.f32 %v402_v35, %v239_v54 }
 0x129   :  { %12895 = vtanh.f32 %v268_v30  ;;  %v13478_v40 = vadd.f32 %v409_v36, %v247_v56  ;;  %v13480_v8 = vadd.f32 %v408_v37, %v247_v56  ;;  %v11698_v29 = vpack.c.bf16 %v520_v27, %v519_v26  ;;  %v521_v30 = vld [vmem:[%s16219_s11 + $0x10] sm:$0xff] }
 0x12a   :  { %v420_v7 = vmul.f32 %v13474_v39, %v13474_v39  ;;  %v421_v6 = vmul.f32 %v13476_v9, %v13476_v9  ;;  %v13486_v41 = vadd.f32 %v407_v10, %v247_v56  ;;  %v11702_v33 = vpack.c.bf16 %v522_v31, %v521_v30 }
 0x12b   :  { %v419_v43 = vmul.f32 %v13478_v40, %v13478_v40  ;;  %v418_v44 = vmul.f32 %v13480_v8, %v13480_v8  ;;  %11699 = vmatprep.subr.bf16.mxu1 %v11698_v29 }
 0x12c   :  { %v425_v48 = vmul.f32 %v420_v7, %v13474_v39  ;;  %v426_v53 = vmul.f32 %v421_v6, %v13476_v9  ;;  %11701 = vmatpush3.bf16.msra.mxu1 %v11698_v29 }
 0x12d   :  { %v424_v54 = vmul.f32 %v419_v43, %v13478_v40  ;;  %v423_v55 = vmul.f32 %v418_v44, %v13480_v8  ;;  %11703 = vmatprep.subr.bf16.mxu1 %v11702_v33  ;;  %v523_v43 = vld [vmem:[%s16219_s11 + $0x20] sm:$0xff]  ;;  %v524_v44 = vld [vmem:[%s16219_s11 + $0x28] sm:$0xff] }
 0x12e   :  { %v430_v57 = vmul.f32 0.044715, %v425_v48  ;;  %v431_v58 = vmul.f32 0.044715, %v426_v53 }
 0x12f   :  { %v429_v59 = vmul.f32 0.044715, %v424_v54  ;;  %v428_v60 = vmul.f32 0.044715, %v423_v55  ;;  %v11706_v54 = vpack.c.bf16 %v524_v44, %v523_v43 }
 0x130   :  { %v12890_v56 = vpop.eup %12889  ;;  %v435_v61 = vadd.f32 %v430_v57, %v13474_v39  ;;  %v436_v62 = vadd.f32 %v431_v58, %v13476_v9  ;;  %11705 = vmatpush3.bf16.msra.mxu1 %v11702_v33 }
 0x131   :  { %v12892_v63 = vpop.eup %12891  ;;  %v279_v0 = vadd.f32 1.0, %v12890_v56  ;;  %v434_v1 = vadd.f32 %v429_v59, %v13478_v40  ;;  %v433_v2 = vadd.f32 %v428_v60, %v13480_v8  ;;  %11707 = vmatprep.subr.bf16.mxu1 %v11706_v54  ;;  %v525_v56 = vld [vmem:[%s16219_s11 + $0x30] sm:$0xff] }
 0x132   :  { %v12894_v49 = vpop.eup %12893  ;;  %v278_v50 = vadd.f32 1.0, %v12892_v63  ;;  %v440_v51 = vmul.f32 0.7978846, %v435_v61  ;;  %v441_v52 = vmul.f32 0.7978846, %v436_v62  ;;  %v526_v61 = vld [vmem:[%s16219_s11 + $0x38] sm:$0xff] }
 0x133   :  { %v12896_v12 = vpop.eup %12895  ;;  %v283_v13 = vmul.f32 0.5, %v279_v0  ;;  %v277_v15 = vadd.f32 1.0, %v12894_v49  ;;  %v439_v14 = vmul.f32 0.7978846, %v434_v1  ;;  %v438_v16 = vmul.f32 0.7978846, %v433_v2 }
 0x134   :  { %v282_v17 = vmul.f32 0.5, %v278_v50  ;;  %v276_v18 = vadd.f32 1.0, %v12896_v12  ;;  %12897 = vtanh.f32 %v440_v51  ;;  %11709 = vmatpush3.bf16.msra.mxu1 %v11706_v54  ;;  %v11710_v62 = vpack.c.bf16 %v526_v61, %v525_v56 }
 0x135   :  { %v13501_v19 = vmul.f32 %v283_v13, %v13447_v4  ;;  %v281_v20 = vmul.f32 0.5, %v277_v15  ;;  %12899 = vtanh.f32 %v439_v14 }
 0x136   :  { %v286_v21 = vmul.f32 %v282_v17, %v13445_v3  ;;  %v280_v22 = vmul.f32 0.5, %v276_v18  ;;  %12901 = vtanh.f32 %v438_v16  ;;  %11711 = vmatprep.subr.bf16.mxu1 %v11710_v62 }
 0x137   :  { %292 = vrot.lane.b32.xlu1 %v13501_v19, %s13248_s15  ;;  %v309_v23 = vrot.slane %v13501_v19, 1  ;;  %v13508_v24 = vmul.f32 %v281_v20, %v13449_v5  ;;  %12903 = vtanh.f32 %v441_v52 }
 0x138   :  { %290 = vrot.lane.b32.xlu0 %v286_v21, %s13248_s15  ;;  %v308_v4 = vrot.slane %v286_v21, 1  ;;  %v13512_v25 = vmul.f32 %v280_v22, %v13451_v11  ;;  %11713 = vmatpush3.bf16.msra.mxu1 %v11710_v62 }
 0x139   :  { %v300_v3 = vrot.slane %v13508_v24, 1 }
 0x13a   :  { %v299_v5 = vrot.slane %v13512_v25, 1  ;;  %v310_v28 = vsel %vm298_vm4, %v308_v4, %v309_v23 }
 0x13b   :  { %304 = vrot.lane.b32.xlu1 %v300_v3, %s13249_s20 }
 0x13c   :  { %v301_v11 = vsel %vm298_vm4, %v299_v5, %v300_v3 }
 0x13d   :  { %302 = vrot.lane.b32.xlu0 %v301_v11, %s13249_s20 }
 0x13e   :  { %v12898_v32 = vpop.eup %12897 }
 0x13f   :  { %v12900_v34 = vpop.eup %12899  ;;  %v450_v35 = vadd.f32 1.0, %v12898_v32 }
 0x140   :  { %v12902_v36 = vpop.eup %12901  ;;  %v449_v37 = vadd.f32 1.0, %v12900_v34 }
 0x141   :  { %v12904_v10 = vpop.eup %12903  ;;  %311 = vrot.lane.b32.xlu0 %v310_v28, %s13250_s24  ;;  %v448_v7 = vadd.f32 1.0, %v12902_v36  ;;  %v455_v6 = vmul.f32 0.5, %v450_v35 }
 0x142   :  { %v454_v48 = vmul.f32 0.5, %v449_v37  ;;  %v451_v53 = vadd.f32 1.0, %v12904_v10 }
 0x143   :  { %v453_v55 = vmul.f32 0.5, %v448_v7  ;;  %v460_v57 = vmul.f32 %v455_v6, %v13474_v39 }
 0x144   :  { %v13543_v58 = vmul.f32 %v454_v48, %v13478_v40  ;;  %v456_v59 = vmul.f32 0.5, %v451_v53 }
 0x145   :  { %v458_v60 = vmul.f32 %v453_v55, %v13480_v8  ;;  %v487_v39 = vrot.slane %v460_v57, 1 }
 0x146   :  { %465 = vrot.lane.b32.xlu0 %v13543_v58, %s13248_s15  ;;  %v461_v40 = vmul.f32 %v456_v59, %v13476_v9  ;;  %v476_v0 = vrot.slane %v13543_v58, 1  ;;  %v417_v9 = vmul.f32 %v13486_v41, %v13486_v41 }
 0x147   :  { %v475_v63 = vrot.slane %v458_v60, 1 }
 0x148   :  { %v488_v8 = vrot.slane %v461_v40, 1  ;;  %v422_v49 = vmul.f32 %v417_v9, %v13486_v41 }
 0x149   :  { %478 = vrot.lane.b32.xlu1 %v475_v63, %s13249_s20  ;;  %v477_v2 = vsel %vm298_vm4, %v475_v63, %v476_v0 }
 0x14a   :  { %467 = vrot.lane.b32.xlu0 %v460_v57, %s13248_s15  ;;  %v489_v1 = vsel %vm298_vm4, %v487_v39, %v488_v8  ;;  %v427_v50 = vmul.f32 0.044715, %v422_v49 }
 0x14c   :  { %v432_v51 = vadd.f32 %v427_v50, %v13486_v41 }
 0x14d   :  { %480 = vrot.lane.b32.xlu1 %v477_v2, %s13249_s20 }
 0x14e   :  { %490 = vrot.lane.b32.xlu0 %v487_v39, %s13250_s24  ;;  %v437_v52 = vmul.f32 0.7978846, %v432_v51 }
 0x150   :  { %12905 = vtanh.f32 %v437_v52 }
 0x151   :  { %492 = vrot.lane.b32.xlu1 %v489_v1, %s13250_s24 }
 0x152   :  { %469 = vrot.lane.b32.xlu0 %v461_v40, %s13248_s15 }
 0x155   :  { %313 = vrot.lane.b32.xlu1 %v309_v23, %s13250_s24 }
 0x156   :  { %494 = vrot.lane.b32.xlu0 %v488_v8, %s13250_s24 }
 0x159   :  { %482 = vrot.lane.b32.xlu1 %v476_v0, %s13249_s20 }
 0x15a   :  { %v12906_v15 = vpop.eup %12905 }
 0x15b   :  { %v447_v20 = vadd.f32 1.0, %v12906_v15 }
 0x15d   :  { %v452_v22 = vmul.f32 0.5, %v447_v20 }
 0x15f   :  { %v457_v3 = vmul.f32 %v452_v22, %v13486_v41 }
 0x1a9   :  { %v293_v14 = vpop.permute.xlu1 %292 }
 0x1aa   :  { %v291_v12 = vpop.permute.xlu0 %290  ;;  %v318_v41 = vsel %vm191_vm1, %v13508_v24, %v293_v14 }
 0x1ab   :  { %v317_v16 = vsel %vm191_vm1, %v13512_v25, %v291_v12 }
 0x1ad   :  { %v305_v21 = vpop.permute.xlu1 %304 }
 0x1ae   :  { %v321_v36 = vsel %vm319_vm5, %v318_v41, %v305_v21 }
 0x1af   :  { %v303_v13 = vpop.permute.xlu0 %302 }
 0x1b0   :  { %v320_v17 = vsel %vm319_vm5, %v317_v16, %v303_v13 }
 0x1b3   :  { %v312_v18 = vpop.permute.xlu0 %311 }
 0x1b4   :  { %v323_v19 = vsel %vm322_vm6, %v320_v17, %v312_v18 }
 0x1b5   :  { %10305 = vmatprep.mubr.msk.f32.mxu1 %vm527_vm7, %v323_v19 }
 0x1b8   :  { %v466_v23 = vpop.permute.xlu0 %465 }
 0x1b9   :  { %v499_v27 = vsel %vm191_vm1, %v457_v3, %v466_v23 }
 0x1bb   :  { %v479_v4 = vpop.permute.xlu1 %478 }
 0x1bc   :  { %v468_v26 = vpop.permute.xlu0 %467  ;;  %v502_v29 = vsel %vm319_vm5, %v499_v27, %v479_v4 }
 0x1bd   :  { %v500_v25 = vsel %vm191_vm1, %v458_v60, %v468_v26 }
 0x1bf   :  { %v481_v5 = vpop.permute.xlu1 %480 }
 0x1c0   :  { %v491_v28 = vpop.permute.xlu0 %490  ;;  %v503_v30 = vsel %vm319_vm5, %v500_v25, %v481_v5 }
 0x1c1   :  { %v505_v11 = vsel %vm322_vm6, %v502_v29, %v491_v28 }
 0x1c2   :  { %v511_v33 = vrot.slane %v505_v11, 1 }
 0x1c3   :  { %v493_v31 = vpop.permute.xlu1 %492 }
 0x1c4   :  { %v506_v32 = vsel %vm322_vm6, %v503_v30, %v493_v31  ;;  %v470_v35 = vpop.permute.xlu0 %469 }
 0x1c5   :  { %v512_v34 = vrot.slane %v506_v32, 1  ;;  %v501_v43 = vsel %vm191_vm1, %v13543_v58, %v470_v35  ;;  %vm9108_vm1 = vcmask 7168  }
 0x1c7   :  { %v314_v37 = vpop.permute.xlu1 %313  ;;  %v513_v10 = vsel %vm298_vm4, %v511_v33, %v512_v34 }
 0x1c8   :  { %v324_v7 = vsel %vm322_vm6, %v321_v36, %v314_v37  ;;  %v495_v48 = vpop.permute.xlu0 %494 }
 0x1c9   :  { %v518_v6 = vsel %vm517_vm8, %v324_v7, %v513_v10 }
 0x1ca   :  { %10306 = vmatmul.mubr.msk.f32.vlgmr.msra.gmra.mrb[0].mxu1 %vm527_vm7, %v518_v6 }
 0x1cb   :  { %v483_v44 = vpop.permute.xlu1 %482 }
 0x1cc   :  { %v504_v53 = vsel %vm319_vm5, %v501_v43, %v483_v44 }
 0x1cd   :  { %v507_v24 = vsel %vm322_vm6, %v504_v53, %v495_v48 }
 0x1ce   :  { %v514_v54 = vrot.slane %v507_v24, 1 }
 0x1d0   :  { %v515_v55 = vsel %vm298_vm4, %v512_v34, %v514_v54 }
 0x1d1   :  { %10308 = vmatprep.mubr.msk.f32.mxu1 %vm527_vm7, %v515_v55 }
 0x1d2   :  { %10309 = vmatmul.mubr.msk.f32.gmra.mrb[2].mxu1 %vm527_vm7, %v514_v54 }
 0x29d   :  { %v10307_v57 = vpop.f32.mrb[0].mxu1 }
 0x29e   :  { %v624_v59 = vmul.f32 %v10307_v57, %v10307_v57  ;;  %v604_v60 = vpop.f32.mrb[1].mxu1 }
 0x29f   :  { %v623_v56 = vmul.f32 %v604_v60, %v604_v60 }
 0x2a0   :  { %v628_v61 = vmul.f32 %v10307_v57, %v624_v59 }
 0x2a1   :  { %v627_v39 = vmul.f32 %v623_v56, %v604_v60 }
 0x2a2   :  { %v632_v58 = vmul.f32 0.044715, %v628_v61 }
 0x2a3   :  { %v631_v40 = vmul.f32 0.044715, %v627_v39  ;;  %v729_v39 = vld [vmem:[%s16219_s11 + $0x40] sm:$0xff] }
 0x2a4   :  { %v636_v62 = vadd.f32 %v10307_v57, %v632_v58  ;;  %v730_v58 = vld [vmem:[%s16219_s11 + $0x48] sm:$0xff] }
 0x2a5   :  { %v635_v63 = vadd.f32 %v631_v40, %v604_v60  ;;  %v10310_v0 = vpop.f32.mrb[2].mxu1  ;;  %v11714_v40 = vpack.c.bf16 %v730_v58, %v729_v39 }
 0x2a6   :  { %v640_v8 = vmul.f32 0.7978846, %v636_v62  ;;  %v626_v1 = vmul.f32 %v10310_v0, %v10310_v0  ;;  %v614_v2 = vpop.f32.mrb[3].mxu1  ;;  %v731_v62 = vld [vmem:[%s16219_s11 + $0x50] sm:$0xff] }
 0x2a7   :  { %v639_v9 = vmul.f32 0.7978846, %v635_v63  ;;  %v625_v49 = vmul.f32 %v614_v2, %v614_v2  ;;  %11715 = vmatprep.subr.bf16.mxu0 %v11714_v40  ;;  %v732_v63 = vld [vmem:[%s16219_s11 + $0x58] sm:$0xff] }
 0x2a8   :  { %12907 = vtanh.f32 %v640_v8  ;;  %v630_v50 = vmul.f32 %v10310_v0, %v626_v1  ;;  %11717 = vmatpush3.bf16.msra.mxu0 %v11714_v40  ;;  %v835_v8 = vld [vmem:[%s16209_s1 + $0x8] sm:$0xff]  ;;  %v834_v1 = vld [vmem:[%s16209_s1] sm:$0xff] }
 0x2a9   :  { %12909 = vtanh.f32 %v639_v9  ;;  %v629_v51 = vmul.f32 %v625_v49, %v614_v2  ;;  %v836_v9 = vld [vmem:[%s16209_s1 + $0x10] sm:$0xff]  ;;  %v837_v49 = vld [vmem:[%s16209_s1 + $0x18] sm:$0xf] }
 0x2aa   :  { %v634_v52 = vmul.f32 0.044715, %v630_v50 }
 0x2ab   :  { %v633_v12 = vmul.f32 0.044715, %v629_v51 }
 0x2ac   :  { %v638_v13 = vadd.f32 %v10310_v0, %v634_v52 }
 0x2ad   :  { %v637_v15 = vadd.f32 %v633_v12, %v614_v2 }
 0x2ae   :  { %v642_v14 = vmul.f32 0.7978846, %v638_v13 }
 0x2af   :  { %v641_v16 = vmul.f32 0.7978846, %v637_v15 }
 0x2b0   :  { %12911 = vtanh.f32 %v642_v14 }
 0x2b1   :  { %12913 = vtanh.f32 %v641_v16 }
 0x2b2   :  { %v12908_v17 = vpop.eup %12907 }
 0x2b3   :  { %v12910_v18 = vpop.eup %12909  ;;  %v648_v19 = vadd.f32 1.0, %v12908_v17 }
 0x2b4   :  { %v647_v20 = vadd.f32 1.0, %v12910_v18  ;;  %v13631_v18 = vsub.s32 2, %v13424_v42 }
 0x2b5   :  { %v652_v21 = vmul.f32 0.5, %v648_v19 }
 0x2b6   :  { %v651_v22 = vmul.f32 0.5, %v647_v20 }
 0x2b7   :  { %v656_v23 = vmul.f32 %v10307_v57, %v652_v21 }
 0x2b8   :  { %v655_v4 = vmul.f32 %v651_v22, %v604_v60  ;;  %v13634_v22 = vsub.s32 3, %v13424_v42 }
 0x2b9   :  { %v662_v3 = vsel %vm319_vm5, %v656_v23, 0.0 }
 0x2ba   :  { %v12912_v26 = vpop.eup %12911  ;;  %663 = vadd.xlane.f32.xlu0 %v662_v3  ;;  %v659_v27 = vsel %vm319_vm5, %v655_v4, 0.0  ;;  %16238 = vst [vmem:[#allocation5_spill] sm:$0xff] %v13634_v22 }
 0x2bb   :  { %v12914_v5 = vpop.eup %12913  ;;  %660 = vadd.xlane.f32.xlu1 %v659_v27  ;;  %v650_v25 = vadd.f32 1.0, %v12912_v26 }
 0x2bc   :  { %v649_v28 = vadd.f32 1.0, %v12914_v5  ;;  %v724_v5 = vrot.slane %v13432_v46, %v13634_v22 }
 0x2bd   :  { %v654_v29 = vmul.f32 0.5, %v650_v25 }
 0x2be   :  { %v653_v11 = vmul.f32 0.5, %v649_v28 }
 0x2bf   :  { %v658_v30 = vmul.f32 %v10310_v0, %v654_v29  ;;  %v11718_v0 = vpack.c.bf16 %v732_v63, %v731_v62 }
 0x2c0   :  { %v657_v31 = vmul.f32 %v653_v11, %v614_v2  ;;  %v13251_v2 = vmov 0  }
 0x2c1   :  { %v669_v32 = vsel %vm668_vm9, %v658_v30, 0.0  ;;  %11719 = vmatprep.subr.bf16.mxu0 %v11718_v0  ;;  %12884 = vset.pattern.permute.xlu1 %v13251_v2 }
 0x2c2   :  { %670 = vadd.xlane.f32.xlu1 %v669_v32  ;;  %v665_v33 = vsel %vm319_vm5, %v657_v31, 0.0  ;;  %11721 = vmatpush3.bf16.msra.mxu0 %v11718_v0 }
 0x2c3   :  { %666 = vadd.xlane.f32.xlu0 %v665_v33 }
 0x2c4   :  { %12883 = vset.pattern.permute.xlu0 %v13251_v2 }
 0x347   :  { %v664_v34 = vpop.xlane.xlu0 %663 }
 0x348   :  { %v674_v41 = vmul.f32 0.03125, %v664_v34  ;;  %v661_v35 = vpop.xlane.xlu1 %660 }
 0x349   :  { %v673_v36 = vmul.f32 0.03125, %v661_v35 }
 0x34a   :  { %v678_v37 = vsub.f32 %v656_v23, %v674_v41  ;;  %v716_v23 = vrot.slane %v13432_v46, %v13631_v18 }
 0x34b   :  { %v677_v10 = vsub.f32 %v655_v4, %v673_v36 }
 0x34c   :  { %v682_v7 = vmul.f32 %v678_v37, %v678_v37 }
 0x34d   :  { %v681_v6 = vmul.f32 %v677_v10, %v677_v10 }
 0x34e   :  { %v688_v43 = vsel %vm319_vm5, %v682_v7, 0.0 }
 0x34f   :  { %v671_v44 = vpop.xlane.xlu1 %670  ;;  %689 = vadd.xlane.f32.xlu1 %v688_v43  ;;  %v685_v48 = vsel %vm319_vm5, %v681_v6, 0.0 }
 0x350   :  { %v676_v53 = vmul.f32 0.03125, %v671_v44  ;;  %686 = vadd.xlane.f32.xlu0 %v685_v48  ;;  %v667_v24 = vpop.xlane.xlu0 %666 }
 0x351   :  { %v675_v54 = vmul.f32 0.03125, %v667_v24 }
 0x352   :  { %v680_v55 = vsub.f32 %v658_v30, %v676_v53 }
 0x353   :  { %v679_v57 = vsub.f32 %v657_v31, %v675_v54 }
 0x354   :  { %v684_v59 = vmul.f32 %v680_v55, %v680_v55 }
 0x355   :  { %v683_v60 = vmul.f32 %v679_v57, %v679_v57 }
 0x356   :  { %v694_v56 = vsel %vm668_vm9, %v684_v59, 0.0 }
 0x357   :  { %695 = vadd.xlane.f32.xlu1 %v694_v56  ;;  %v691_v61 = vsel %vm319_vm5, %v683_v60, 0.0 }
 0x358   :  { %692 = vadd.xlane.f32.xlu0 %v691_v61 }
 0x368   :  { %845 = vperm.xlu1 %12884, %v835_v8  }
 0x36c   :  { %850 = vperm.xlu1 %12884, %v836_v9  }
 0x36e   :  { %840 = vperm.xlu0 %12883, %v834_v1  }
 0x370   :  { %855 = vperm.xlu1 %12884, %v837_v49  }
 0x3dc   :  { %v690_v50 = vpop.xlane.xlu1 %689 }
 0x3dd   :  { %v698_v51 = vmul.f32 0.03125, %v690_v50  ;;  %v687_v52 = vpop.xlane.xlu0 %686 }
 0x3de   :  { %v697_v12 = vmul.f32 0.03125, %v687_v52 }
 0x3df   :  { %v702_v13 = vadd.f32 1e-05, %v698_v51 }
 0x3e0   :  { %v701_v15 = vadd.f32 1e-05, %v697_v12 }
 0x3e1   :  { %12915 = vrsqrt.f32 %v702_v13 }
 0x3e2   :  { %12917 = vrsqrt.f32 %v701_v15 }
 0x3e4   :  { %v696_v14 = vpop.xlane.xlu1 %695 }
 0x3e5   :  { %v700_v16 = vmul.f32 0.03125, %v696_v14  ;;  %v693_v17 = vpop.xlane.xlu0 %692 }
 0x3e6   :  { %v699_v19 = vmul.f32 0.03125, %v693_v17 }
 0x3e7   :  { %v704_v20 = vadd.f32 1e-05, %v700_v16 }
 0x3e8   :  { %v703_v21 = vadd.f32 1e-05, %v699_v19  ;;  %v846_v7 = vpop.permute.xlu1 %845 }
 0x3e9   :  { %12919 = vrsqrt.f32 %v704_v20 }
 0x3ea   :  { %12921 = vrsqrt.f32 %v703_v21 }
 0x3eb   :  { %v12916_v4 = vpop.eup %12915 }
 0x3ec   :  { %v12918_v3 = vpop.eup %12917  ;;  %v710_v26 = vmul.f32 %v12916_v4, %v678_v37  ;;  %v13645_v37 = vsub.s32 4, %v13424_v42  ;;  %v851_v59 = vpop.permute.xlu1 %850 }
 0x3ed   :  { %v709_v27 = vmul.f32 %v12918_v3, %v677_v10  ;;  %v841_v48 = vpop.permute.xlu0 %840 }
 0x3ee   :  { %v718_v25 = vmul.f32 %v716_v23, %v710_v26  ;;  %16239 = vst [vmem:[#allocation6_spill] sm:$0xff] %v13645_v37  ;;  %v736_v10 = vrot.slane %v13432_v46, %v13645_v37  ;;  %v1065_v26 = vld [vmem:[%s16219_s11 + $0x80] sm:$0xff] }
 0x3ef   :  { %v717_v28 = vmul.f32 %v716_v23, %v709_v27  ;;  %v1066_v27 = vld [vmem:[%s16219_s11 + $0x88] sm:$0xff] }
 0x3f0   :  { %v726_v11 = vadd.f32 %v724_v5, %v718_v25  ;;  %v856_v40 = vpop.permute.xlu1 %855  ;;  %v11730_v25 = vpack.c.bf16 %v1066_v27, %v1065_v26  ;;  %v13771_v27 = vld [vmem:[%s16219_s11 + $0x680] sm:$0xff] }
 0x3f1   :  { %v725_v29 = vadd.f32 %v724_v5, %v717_v28  ;;  %v957_v28 = vld [vmem:[%s16219_s11 + $0x68] sm:$0xff] }
 0x3f2   :  { %11731 = vmatprep.subr.bf16.mxu0 %v11730_v25 }
 0x3f3   :  { %v12920_v30 = vpop.eup %12919  ;;  %10319 = vmatprep.mubr.msk.f32.mxu0 %vm319_vm5, %v725_v29 }
 0x3f4   :  { %v12922_v31 = vpop.eup %12921  ;;  %10320 = vmatmul.mubr.msk.f32.vlgmr.msra.gmra.mrb[8].mxu0 %vm319_vm5, %v726_v11  ;;  %v712_v32 = vmul.f32 %v12920_v30, %v680_v55  ;;  %v1067_v11 = vld [vmem:[%s16219_s11 + $0x90] sm:$0xff]  ;;  %v1068_v30 = vld [vmem:[%s16219_s11 + $0x98] sm:$0xff] }
 0x3f5   :  { %v711_v33 = vmul.f32 %v12922_v31, %v679_v57  ;;  %11733 = vmatpush3.bf16.msra.mxu0 %v11730_v25  ;;  %v958_v31 = vld [vmem:[%s16219_s11 + $0x70] sm:$0xff] }
 0x3f6   :  { %v720_v34 = vmul.f32 %v716_v23, %v712_v32  ;;  %v11734_v32 = vpack.c.bf16 %v1068_v30, %v1067_v11 }
 0x3f7   :  { %v719_v41 = vmul.f32 %v716_v23, %v711_v33  ;;  %v959_v33 = vld [vmem:[%s16219_s11 + $0x78] sm:$0xff] }
 0x3f8   :  { %v728_v36 = vadd.f32 %v724_v5, %v720_v34  ;;  %v11726_v34 = vpack.c.bf16 %v959_v33, %v958_v31  ;;  %11735 = vmatprep.subr.bf16.mxu0 %v11734_v32 }
 0x3f9   :  { %v727_v35 = vadd.f32 %v724_v5, %v719_v41  ;;  %v956_v5 = vld [vmem:[%s16219_s11 + $0x60] sm:$0xff]  ;;  %11737 = vmatpush3.bf16.msra.mxu0 %v11734_v32 }
 0x3fa   :  { %v11722_v29 = vpack.c.bf16 %v957_v28, %v956_v5  ;;  %v1158_v41 = vld [vmem:[%s16219_s11 + $0xa0] sm:$0xff] }
 0x3fb   :  { %10322 = vmatprep.mubr.msk.f32.mxu0 %vm319_vm5, %v727_v35  ;;  %v1159_v35 = vld [vmem:[%s16219_s11 + $0xa8] sm:$0xff] }
 0x3fc   :  { %10323 = vmatmul.mubr.msk.f32.gmra.mrb[10].mxu0 %vm319_vm5, %v728_v36  ;;  %11723 = vmatprep.subr.bf16.mxu1 %v11722_v29  ;;  %v11738_v36 = vpack.c.bf16 %v1159_v35, %v1158_v41  ;;  %v13787_v35 = vld [vmem:[%s16219_s11 + $0x6c0] sm:$0xff] }
 0x3fd   :  { %11725 = vmatpush3.bf16.msra.mxu1 %v11722_v29 }
 0x3fe   :  { %11727 = vmatprep.subr.bf16.mxu1 %v11726_v34 }
 0x401   :  { %11729 = vmatpush3.bf16.msra.mxu1 %v11726_v34 }
 0x402   :  { %11739 = vmatprep.subr.bf16.mxu1 %v11738_v36 }
 0x4c7   :  { %v10321_v6 = vpop.f32.mrb[8].mxu0 }
 0x4c8   :  { %v821_v43 = vadd.f32 %v10321_v6, %v736_v10  ;;  %v815_v44 = vpop.f32.mrb[9].mxu0 }
 0x4c9   :  { %v816_v53 = vadd.f32 %v815_v44, %v736_v10 }
 0x4ca   :  { %v859_v24 = vmul.f32 %v846_v7, %v821_v43 }
 0x4cb   :  { %v858_v54 = vmul.f32 %v841_v48, %v816_v53 }
 0x4cc   :  { %v865_v55 = vsel %vm319_vm5, %v859_v24, 0.0 }
 0x4cd   :  { %866 = vadd.xlane.f32.xlu0 %v865_v55  ;;  %v862_v57 = vsel %vm319_vm5, %v858_v54, 0.0 }
 0x4ce   :  { %863 = vadd.xlane.f32.xlu1 %v862_v57 }
 0x4cf   :  { %v10324_v60 = vpop.f32.mrb[10].mxu0 }
 0x4d0   :  { %v825_v56 = vpop.f32.mrb[11].mxu0  ;;  %v831_v61 = vadd.f32 %v10324_v60, %v736_v10 }
 0x4d1   :  { %v826_v39 = vadd.f32 %v825_v56, %v736_v10 }
 0x4d2   :  { %v861_v63 = vmul.f32 %v856_v40, %v831_v61 }
 0x4d3   :  { %v860_v58 = vmul.f32 %v851_v59, %v826_v39  ;;  %v13703_v59 = vsub.s32 6, %v13424_v42 }
 0x4d4   :  { %v871_v0 = vsel %vm668_vm9, %v861_v63, 0.0 }
 0x4d5   :  { %v868_v62 = vsel %vm319_vm5, %v860_v58, 0.0  ;;  %16241 = vst [vmem:[#allocation8_spill] sm:$0xff] %v13703_v59  ;;  %v925_v40 = vrot.slane %v13432_v46, %v13703_v59 }
 0x4d6   :  { %869 = vadd.xlane.f32.xlu1 %v868_v62 }
 0x4da   :  { %872 = vadd.xlane.f32.xlu1 %v871_v0 }
 0x55a   :  { %v867_v8 = vpop.xlane.xlu0 %866 }
 0x55b   :  { %v875_v1 = vmul.f32 0.03125, %v867_v8  ;;  %v864_v2 = vpop.xlane.xlu1 %863 }
 0x55c   :  { %v874_v9 = vmul.f32 0.03125, %v864_v2  ;;  %v1161_v2 = vld [vmem:[%s16219_s11 + $0xb8] sm:$0xff] }
 0x55d   :  { %v13653_v49 = vsub.f32 %v859_v24, %v875_v1  ;;  %v1160_v1 = vld [vmem:[%s16219_s11 + $0xb0] sm:$0xff] }
 0x55e   :  { %v878_v50 = vsub.f32 %v858_v54, %v874_v9  ;;  %v13700_v54 = vsub.s32 5, %v13424_v42 }
 0x55f   :  { %v883_v12 = vmul.f32 %v13653_v49, %v13653_v49 }
 0x560   :  { %v882_v51 = vmul.f32 %v878_v50, %v878_v50  ;;  %16240 = vst [vmem:[#allocation7_spill] sm:$0xff] %v13700_v54  ;;  %v917_v56 = vrot.slane %v13432_v46, %v13700_v54 }
 0x561   :  { %v889_v16 = vsel %vm319_vm5, %v883_v12, 0.0 }
 0x562   :  { %v886_v52 = vsel %vm319_vm5, %v882_v51, 0.0  ;;  %v11742_v51 = vpack.c.bf16 %v1161_v2, %v1160_v1 }
 0x563   :  { %887 = vadd.xlane.f32.xlu1 %v886_v52  ;;  %v870_v13 = vpop.xlane.xlu1 %869 }
 0x564   :  { %v876_v15 = vmul.f32 0.03125, %v870_v13 }
 0x566   :  { %v13658_v14 = vsub.f32 %v860_v58, %v876_v15 }
 0x567   :  { %v873_v17 = vpop.xlane.xlu1 %872  ;;  %890 = vadd.xlane.f32.xlu1 %v889_v16 }
 0x568   :  { %v877_v19 = vmul.f32 0.03125, %v873_v17  ;;  %v884_v20 = vmul.f32 %v13658_v14, %v13658_v14  ;;  %v13753_v17 = vld [vmem:[%s16218_s10 + $0x8] sm:$0xff] }
 0x56a   :  { %v13663_v21 = vsub.f32 %v861_v63, %v877_v19  ;;  %v892_v23 = vsel %vm319_vm5, %v884_v20, 0.0  ;;  %v1072_v19 = vrot.slane %v13753_v17, %v13435_v47  ;;  %v13759_v20 = vrot.slane %v13753_v17, %v13427_v45 }
 0x56b   :  { %893 = vadd.xlane.f32.xlu0 %v892_v23  ;;  %v13766_v23 = vld [vmem:[%s16219_s11 + $0x688] sm:$0xff] }
 0x56c   :  { %v885_v4 = vmul.f32 %v13663_v21, %v13663_v21 }
 0x56e   :  { %v895_v3 = vsel %vm668_vm9, %v885_v4, 0.0 }
 0x56f   :  { %896 = vadd.xlane.f32.xlu1 %v895_v3 }
 0x5f0   :  { %v888_v10 = vpop.xlane.xlu1 %887 }
 0x5f1   :  { %v898_v7 = vmul.f32 0.03125, %v888_v10 }
 0x5f3   :  { %v902_v6 = vadd.f32 1e-05, %v898_v7 }
 0x5f4   :  { %v891_v43 = vpop.xlane.xlu1 %890 }
 0x5f5   :  { %12923 = vrsqrt.f32 %v902_v6  ;;  %v899_v44 = vmul.f32 0.03125, %v891_v43  ;;  %v13802_v43 = vld [vmem:[%s16219_s11 + $0x698] sm:$0xff] }
 0x5f7   :  { %v903_v48 = vadd.f32 1e-05, %v899_v44  ;;  %v13807_v44 = vld [vmem:[%s16219_s11 + $0x6d0] sm:$0xff] }
 0x5f8   :  { %v894_v53 = vpop.xlane.xlu0 %893 }
 0x5f9   :  { %12925 = vrsqrt.f32 %v903_v48  ;;  %v900_v24 = vmul.f32 0.03125, %v894_v53 }
 0x5fb   :  { %v904_v55 = vadd.f32 1e-05, %v900_v24 }
 0x5fc   :  { %v897_v57 = vpop.xlane.xlu1 %896 }
 0x5fd   :  { %12927 = vrsqrt.f32 %v904_v55  ;;  %v901_v60 = vmul.f32 0.03125, %v897_v57  ;;  %v1165_v55 = vrot.slane %v13753_v17, %v13631_v18  ;;  %v13818_v57 = vld [vmem:[%s16219_s11 + $0x6d8] sm:$0xff] }
 0x5ff   :  { %v12924_v61 = vpop.eup %12923  ;;  %v905_v39 = vadd.f32 1e-05, %v901_v60  ;;  %v13823_v60 = vld [vmem:[%s16219_s11 + $0x690] sm:$0xff] }
 0x600   :  { %v910_v58 = vmul.f32 %v12924_v61, %v878_v50 }
 0x601   :  { %12929 = vrsqrt.f32 %v905_v39  ;;  %v13833_v39 = vld [vmem:[%s16219_s11 + $0x6a0] sm:$0xff] }
 0x602   :  { %v918_v62 = vmul.f32 %v917_v56, %v910_v58 }
 0x603   :  { %v12926_v63 = vpop.eup %12925 }
 0x604   :  { %v911_v0 = vmul.f32 %v12926_v63, %v13653_v49  ;;  %v13710_v8 = vadd.f32 %v925_v40, %v918_v62 }
 0x606   :  { %v919_v9 = vmul.f32 %v917_v56, %v911_v0  ;;  %10333 = vmatprep.mubr.msk.f32.mxu1 %vm319_vm5, %v13710_v8  ;;  %10347 = vmatprep.mubr.msk.f32.mxu0 %vm319_vm5, %v13710_v8 }
 0x607   :  { %v12928_v46 = vpop.eup %12927 }
 0x608   :  { %v13722_v50 = vadd.f32 %v925_v40, %v919_v9  ;;  %v912_v49 = vmul.f32 %v12928_v46, %v13658_v14 }
 0x60a   :  { %10334 = vmatmul.mubr.msk.f32.vlgmr.msra.gmra.mrb[4].mxu1 %vm319_vm5, %v13722_v50  ;;  %10348 = vmatmul.mubr.msk.f32.vlgmr.msra.gmra.mrb[12].mxu0 %vm319_vm5, %v13722_v50  ;;  %v920_v52 = vmul.f32 %v917_v56, %v912_v49 }
 0x60b   :  { %v12930_v12 = vpop.eup %12929  ;;  %11741 = vmatpush3.bf16.msra.mxu1 %v11738_v36  ;;  %v13792_v36 = vld [vmem:[%s16219_s11 + $0x6b8] sm:$0xff] }
 0x60c   :  { %v13729_v13 = vadd.f32 %v925_v40, %v920_v52  ;;  %v913_v15 = vmul.f32 %v12930_v12, %v13663_v21  ;;  %11743 = vmatprep.subr.bf16.mxu1 %v11742_v51 }
 0x60e   :  { %10336 = vmatprep.mubr.msk.f32.mxu1 %vm319_vm5, %v13729_v13  ;;  %10350 = vmatprep.mubr.msk.f32.mxu0 %vm319_vm5, %v13729_v13  ;;  %v921_v14 = vmul.f32 %v917_v56, %v913_v15  ;;  %v13828_v56 = vld [vmem:[%s16219_s11 + $0x6c8] sm:$0xff] }
 0x60f   :  { %11745 = vmatpush3.bf16.msra.mxu1 %v11742_v51 }
 0x610   :  { %v13736_v16 = vadd.f32 %v925_v40, %v921_v14 }
 0x612   :  { %10337 = vmatmul.mubr.msk.f32.gmra.mrb[6].mxu1 %vm319_vm5, %v13736_v16  ;;  %10351 = vmatmul.mubr.msk.f32.gmra.mrb[14].mxu0 %vm319_vm5, %v13736_v16 }
 0x613   :  { %10361 = vmatprep.mubr.msk.f32.mxu1 %vm319_vm5, %v13710_v8 }
 0x616   :  { %10362 = vmatmul.mubr.msk.f32.vlgmr.msra.gmra.mrb[8].mxu1 %vm319_vm5, %v13722_v50 }
 0x617   :  { %10364 = vmatprep.mubr.msk.f32.mxu1 %vm319_vm5, %v13729_v13 }
 0x61a   :  { %10365 = vmatmul.mubr.msk.f32.gmra.mrb[10].mxu1 %vm319_vm5, %v13736_v16 }
 0x6dd   :  { %v13761_v21 = vpop.f32.mrb[4].mxu1  ;;  %v10349_v4 = vpop.f32.mrb[12].mxu0 }
 0x6de   :  { %v1145_v3 = vadd.f32 %v10349_v4, %v1072_v19  ;;  %v1042_v26 = vpop.f32.mrb[5].mxu1  ;;  %v1139_v5 = vpop.f32.mrb[13].mxu0 }
 0x6df   :  { %v1043_v25 = vadd.f32 %v1042_v26, %v13759_v20  ;;  %v1140_v28 = vadd.f32 %v1139_v5, %v1072_v19  ;;  %v13854_v26 = vld [vmem:[%s16219_s11 + $0x6b0] sm:$0xff] }
 0x6e0   :  { %v1261_v29 = vrot.slane %v1145_v3, 4  ;;  %v1273_v11 = vmul.f32 %v1145_v3, %v13766_v23  ;;  %v1280_v58 = vmul.f32 %v1145_v3, %v13787_v35  ;;  %v13849_v3 = vld [vmem:[%s16219_s11 + $0x6a8] sm:$0xff] }
 0x6e1   :  { %v1061_v30 = vmul.f32 0.35355338, %v1043_v25  ;;  %v1260_v31 = vrot.slane %v1140_v28, 4  ;;  %v1272_v32 = vmul.f32 %v1140_v28, %v13771_v27  ;;  %v1279_v40 = vmul.f32 %v1140_v28, %v13792_v36  ;;  %v13861_v25 = vld [vmem:[%s16219_s11 + $0x6e0] sm:$0xff] }
 0x6e3   :  { %v1262_v34 = vsel %vm1259_vm10, %v1260_v31, %v1261_v29  ;;  %v11746_v41 = vpack.c.bf16 %v1273_v11, %v1272_v32  ;;  %10395 = vmatprep.mubr.msk.f32.mxu0 %vm319_vm5, %v1061_v30 }
 0x6e4   :  { %v1283_v46 = vmul.f32 %v1262_v34, %v13818_v57  ;;  %v1276_v15 = vmul.f32 %v1262_v34, %v13833_v39 }
 0x6e5   :  { %v10338_v10 = vpop.f32.mrb[6].mxu1  ;;  %v10352_v7 = vpop.f32.mrb[14].mxu0  ;;  %11748 = vmatprep.subr.msk.bf16.mxu0 %vm13778_vm11, %v11746_v41 }
 0x6e6   :  { %v13797_v6 = vadd.f32 %v10338_v10, %v13759_v20  ;;  %v1155_v48 = vadd.f32 %v10352_v7, %v1072_v19  ;;  %v13809_v53 = vpop.f32.mrb[7].mxu1  ;;  %v1149_v24 = vpop.f32.mrb[15].mxu0  ;;  %11751 = vmatpush3.bf16.xpose.msk.msra.mxu0 %vm13778_vm11, %v11746_v41 }
 0x6e7   :  { %v1150_v61 = vadd.f32 %v1149_v24, %v1072_v19 }
 0x6e8   :  { %v1265_v62 = vrot.slane %v1155_v48, 4  ;;  %v1271_v63 = vsel %vm1259_vm10, %v1155_v48, %v1260_v31  ;;  %v13867_v31 = vld [vmem:[%s16219_s11 + $0x6e8] sm:$0xff] }
 0x6e9   :  { %v1275_v0 = vmul.f32 %v1271_v63, %v13802_v43  ;;  %v1282_v1 = vmul.f32 %v1271_v63, %v13807_v44  ;;  %v1263_v2 = vrot.slane %v1150_v61, 4  ;;  %v10363_v9 = vpop.f32.mrb[8].mxu1  ;;  %v1274_v49 = vmul.f32 %v1150_v61, %v13823_v60 }
 0x6ea   :  { %v1281_v51 = vmul.f32 %v1150_v61, %v13828_v56  ;;  %v1238_v52 = vadd.f32 %v10363_v9, %v1165_v55  ;;  %v1232_v12 = vpop.f32.mrb[9].mxu1 }
 0x6eb   :  { %v1264_v14 = vsel %vm1259_vm10, %v1261_v29, %v1263_v2  ;;  %v1266_v19 = vsel %vm1259_vm10, %v1263_v2, %v1265_v62  ;;  %v1233_v4 = vadd.f32 %v1232_v12, %v1165_v55  ;;  %v13856_v5 = vpack.c.bf16 %v1283_v46, %v1282_v1 }
 0x6ec   :  { %v11752_v28 = vpack.c.bf16 %v1275_v0, %v1274_v49  ;;  %v11770_v29 = vpack.c.bf16 %v1281_v51, %v1280_v58  ;;  %v1291_v11 = vrot.slane %v1238_v52, 4  ;;  %v1303_v30 = vmul.f32 %v1238_v52, %v13766_v23 }
 0x6ed   :  { %v1310_v32 = vmul.f32 %v1238_v52, %v13787_v35  ;;  %v1290_v34 = vrot.slane %v1233_v4, 4  ;;  %v1302_v41 = vmul.f32 %v1233_v4, %v13771_v27  ;;  %v1309_v10 = vmul.f32 %v1233_v4, %v13792_v36  ;;  %v10366_v7 = vpop.f32.mrb[10].mxu1 }
 0x6ee   :  { %v1248_v48 = vadd.f32 %v10366_v7, %v1165_v55  ;;  %11754 = vmatprep.subr.msk.bf16.mxu0 %vm13778_vm11, %v11752_v28  ;;  %v1242_v24 = vpop.f32.mrb[11].mxu1  ;;  %v1277_v61 = vmul.f32 %v1264_v14, %v13849_v3  ;;  %v1278_v58 = vmul.f32 %v1266_v19, %v13854_v26  ;;  %v1284_v62 = vmul.f32 %v1264_v14, %v13861_v25 }
 0x6ef   :  { %v1243_v63 = vadd.f32 %v1242_v24, %v1165_v55  ;;  %11757 = vmatpush3.bf16.xpose.msk.msra.mxu0 %vm13778_vm11, %v11752_v28  ;;  %v11816_v0 = vpack.c.bf16 %v1303_v30, %v1302_v41  ;;  %v1292_v1 = vsel %vm1259_vm10, %v1290_v34, %v1291_v11  ;;  %v1285_v2 = vmul.f32 %v1266_v19, %v13867_v31 }
 0x6f0   :  { %v1295_v9 = vrot.slane %v1248_v48, 4  ;;  %v1301_v46 = vsel %vm1259_vm10, %v1248_v48, %v1290_v34  ;;  %v11758_v49 = vpack.c.bf16 %v1277_v61, %v1276_v15  ;;  %v11764_v51 = vpack.c.bf16 %v1279_v40, %v1278_v58 }
 0x6f1   :  { %v1293_v52 = vrot.slane %v1243_v63, 4  ;;  %v1304_v12 = vmul.f32 %v1243_v63, %v13823_v60  ;;  %v1311_v4 = vmul.f32 %v1243_v63, %v13828_v56  ;;  %11817 = vmatprep.subr.bf16.mxu1 %v11816_v0  ;;  %v1305_v55 = vmul.f32 %v1301_v46, %v13802_v43 }
 0x6f2   :  { %11760 = vmatprep.subr.msk.bf16.mxu0 %vm13778_vm11, %v11758_v49  ;;  %11819 = vmatpush3.bf16.msra.mxu1 %v11816_v0  ;;  %v1306_v14 = vmul.f32 %v1292_v1, %v13833_v39  ;;  %v1312_v19 = vmul.f32 %v1301_v46, %v13807_v44  ;;  %v1313_v28 = vmul.f32 %v1292_v1, %v13818_v57 }
 0x6f3   :  { %v11820_v15 = vpack.c.bf16 %v1305_v55, %v1304_v12  ;;  %v1294_v40 = vsel %vm1259_vm10, %v1291_v11, %v1293_v52  ;;  %v1296_v30 = vsel %vm1259_vm10, %v1293_v52, %v1295_v9  ;;  %v11832_v34 = vpack.c.bf16 %v1311_v4, %v1310_v32 }
 0x6f4   :  { %v1307_v41 = vmul.f32 %v1294_v40, %v13849_v3  ;;  %v1308_v7 = vmul.f32 %v1296_v30, %v13854_v26  ;;  %v11836_v48 = vpack.c.bf16 %v1313_v28, %v1312_v19  ;;  %v1314_v24 = vmul.f32 %v1294_v40, %v13861_v25 }
 0x6f5   :  { %11821 = vmatprep.subr.bf16.mxu1 %v11820_v15  ;;  %v1315_v61 = vmul.f32 %v1296_v30, %v13867_v31  ;;  %v11782_v58 = vpack.c.bf16 %v1285_v2, %v1284_v62  ;;  %v1048_v32 = vadd.f32 %v13761_v21, %v13759_v20  ;;  %v13926_v1 = vpack.c.bf16 %v13766_v23, %v13771_v27  ;;  %v953_v23 = vld [vmem:[%s16210_s2 + $0x8] sm:$0xff]  ;;  %v952_v27 = vld [vmem:[%s16210_s2] sm:$0xff]  ;;  %v954_v2 = vld [vmem:[%s16210_s2 + $0x10] sm:$0xff] }
 0x6f6   :  { %11823 = vmatpush3.bf16.msra.mxu1 %v11820_v15  ;;  %v11824_v63 = vpack.c.bf16 %v1307_v41, %v1306_v14  ;;  %v11828_v0 = vpack.c.bf16 %v1309_v10, %v1308_v7  ;;  %v13930_v21 = vpack.c.bf16 %v13802_v43, %v13823_v60  ;;  %v13960_v55 = vpack.c.bf16 %v13792_v36, %v13854_v26 }
 0x6f7   :  { %11763 = vmatpush3.bf16.xpose.msk.msra.mxu0 %vm13778_vm11, %v11758_v49  ;;  %v11840_v11 = vpack.c.bf16 %v1315_v61, %v1314_v24  ;;  %v1062_v10 = vmul.f32 0.35355338, %v1048_v32  ;;  %v13966_v14 = vpack.c.bf16 %v13828_v56, %v13787_v35  ;;  %v13970_v19 = vpack.c.bf16 %v13818_v57, %v13807_v44  ;;  %v1251_v61 = vld [vmem:[%s16219_s11 + $0xc0] sm:$0xff] }
 0x6f8   :  { %11766 = vmatprep.subr.msk.bf16.mxu0 %vm13778_vm11, %v11764_v51  ;;  %11825 = vmatprep.subr.bf16.mxu1 %v11824_v63  ;;  %v13977_v36 = vpack.c.bf16 %v13867_v31, %v13861_v25 }
 0x6f9   :  { %16244 = vst [vmem:[#allocation9_spill] sm:$0xff] %v13966_v14  ;;  %16245 = vst [vmem:[#allocation10_spill] sm:$0xff] %v13970_v19 }
 0x6fa   :  { %11827 = vmatpush3.bf16.msra.mxu1 %v11824_v63  ;;  %16246 = vst [vmem:[#allocation11_spill] sm:$0xff] %v13977_v36 }
 0x6fb   :  { %11829 = vmatprep.subr.bf16.mxu1 %v11828_v0 }
 0x6fe   :  { %11831 = vmatpush3.bf16.msra.mxu1 %v11828_v0  ;;  %v1253_v0 = vld [vmem:[%s16219_s11 + $0xd0] sm:$0xff] }
 0x6ff   :  { %11769 = vmatpush3.bf16.xpose.msk.msra.mxu0 %vm13778_vm11, %v11764_v51  ;;  %11833 = vmatprep.subr.bf16.mxu1 %v11832_v34 }
 0x700   :  { %11772 = vmatprep.subr.msk.bf16.mxu0 %vm13778_vm11, %v11770_v29 }
 0x702   :  { %11835 = vmatpush3.bf16.msra.mxu1 %v11832_v34 }
 0x703   :  { %11837 = vmatprep.subr.bf16.mxu1 %v11836_v48 }
 0x706   :  { %11839 = vmatpush3.bf16.msra.mxu1 %v11836_v48 }
 0x707   :  { %11775 = vmatpush3.bf16.xpose.msk.msra.mxu0 %vm13778_vm11, %v11770_v29  ;;  %11841 = vmatprep.subr.bf16.mxu1 %v11840_v11  ;;  %v1053_v29 = vadd.f32 %v13809_v53, %v13759_v20  ;;  %v13937_v20 = vpack.c.bf16 %v13849_v3, %v13833_v39  ;;  %v955_v39 = vld [vmem:[%s16210_s2 + $0x18] sm:$0xf] }
 0x708   :  { %11778 = vmatprep.subr.msk.bf16.mxu0 %vm13778_vm11, %v13856_v5 }
 0x709   :  { %v1063_v62 = vmul.f32 0.35355338, %v1053_v29 }
 0x70a   :  { %11843 = vmatpush3.bf16.msra.mxu1 %v11840_v11  ;;  %v1254_v11 = vld [vmem:[%s16219_s11 + $0xd8] sm:$0xff] }
 0x70b   :  { %v11848_v32 = vpack.c.bf16 %v1254_v11, %v1253_v0 }
 0x70f   :  { %11781 = vmatpush3.bf16.xpose.msk.msra.mxu0 %vm13778_vm11, %v13856_v5  ;;  %v1064_v5 = vmul.f32 0.35355338, %v13797_v6 }
 0x710   :  { %11784 = vmatprep.subr.msk.bf16.mxu0 %vm13778_vm11, %v11782_v58 }
 0x717   :  { %11787 = vmatpush3.bf16.xpose.msk.msra.mxu0 %vm13778_vm11, %v11782_v58  ;;  %v1252_v58 = vld [vmem:[%s16219_s11 + $0xc8] sm:$0xff] }
 0x718   :  { %11789 = vmatprep.subr.bf16.mxu0 %v13926_v1  ;;  %v11844_v63 = vpack.c.bf16 %v1252_v58, %v1251_v61 }
 0x71e   :  { %10396 = vmatmul.mubr.msk.f32.vlgmr.msra.gmra.mrb[16].mxu0 %vm319_vm5, %v1062_v10 }
 0x71f   :  { %10398 = vmatprep.mubr.msk.f32.mxu0 %vm319_vm5, %v1063_v62  ;;  %11791 = vmatpush3.bf16.msra.mxu0 %v13926_v1 }
 0x720   :  { %11793 = vmatprep.subr.bf16.mxu0 %v13930_v21 }
 0x722   :  { %10399 = vmatmul.mubr.msk.f32.gmra.mrb[18].mxu0 %vm319_vm5, %v1064_v5 }
 0x723   :  { %11795 = vmatpush3.bf16.msra.mxu0 %v13930_v21 }
 0x724   :  { %11797 = vmatprep.subr.bf16.mxu0 %v13937_v20 }
 0x727   :  { %11799 = vmatpush3.bf16.msra.mxu0 %v13937_v20 }
 0x728   :  { %11801 = vmatprep.subr.bf16.mxu0 %v13960_v55 }
 0x72b   :  { %11803 = vmatpush3.bf16.msra.mxu0 %v13960_v55 }
 0x72c   :  { %11805 = vmatprep.subr.bf16.mxu0 %v13966_v14 }
 0x72f   :  { %11807 = vmatpush3.bf16.msra.mxu0 %v13966_v14 }
 0x730   :  { %11809 = vmatprep.subr.bf16.mxu0 %v13970_v19 }
 0x733   :  { %11811 = vmatpush3.bf16.msra.mxu0 %v13970_v19 }
 0x734   :  { %11813 = vmatprep.subr.bf16.mxu0 %v13977_v36 }
 0x737   :  { %11815 = vmatpush3.bf16.msra.mxu0 %v13977_v36 }
 0x738   :  { %11845 = vmatprep.subr.bf16.mxu0 %v11844_v63 }
 0x7f1   :  { %v10397_v6 = vpop.f32.mrb[16].mxu0 }
 0x7f2   :  { %v1442_v43 = vadd.f32 %v10397_v6, %v953_v23  ;;  %v1436_v53 = vpop.f32.mrb[17].mxu0 }
 0x7f3   :  { %v1437_v60 = vadd.f32 %v1436_v53, %v952_v27 }
 0x7f4   :  { %v1459_v3 = vsel %vm1455_vm12, %v1442_v43, -inf }
 0x7f5   :  { %1460 = vmax.xlane.f32.xlu1 %v1459_v3  ;;  %v10400_v9 = vpop.f32.mrb[18].mxu0  ;;  %v1456_v46 = vsel %vm1455_vm12, %v1437_v60, -inf }
 0x7f6   :  { %v1452_v49 = vadd.f32 %v10400_v9, %v955_v39  ;;  %1457 = vmax.xlane.f32.xlu0 %v1456_v46  ;;  %v1446_v51 = vpop.f32.mrb[19].mxu0 }
 0x7f7   :  { %v1447_v52 = vadd.f32 %v1446_v51, %v954_v2 }
 0x7f8   :  { %v1466_v12 = vsel %vm1465_vm13, %v1452_v49, -inf }
 0x7f9   :  { %1467 = vmax.xlane.f32.xlu1 %v1466_v12  ;;  %v1462_v4 = vsel %vm1455_vm12, %v1447_v52, -inf }
 0x7fa   :  { %1463 = vmax.xlane.f32.xlu0 %v1462_v4 }
 0x882   :  { %v1461_v35 = vpop.xlane.xlu1 %1460 }
 0x883   :  { %v1470_v56 = vsub.f32 %v1442_v43, %v1461_v35  ;;  %v1458_v44 = vpop.xlane.xlu0 %1457  ;;  %v1678_v35 = vrot.slane %v13753_v17, %v13634_v22 }
 0x884   :  { %v1469_v57 = vsub.f32 %v1437_v60, %v1458_v44 }
 0x885   :  { %v1475_v26 = vmul.f32 1.442695, %v1470_v56 }
 0x886   :  { %v1473_v28 = vmul.f32 1.442695, %v1469_v57  ;;  %v1468_v15 = vpop.xlane.xlu1 %1467 }
 0x887   :  { %v1472_v40 = vsub.f32 %v1452_v49, %v1468_v15  ;;  %v1464_v30 = vpop.xlane.xlu0 %1463 }
 0x888   :  { %12931 = vpow2.f32 %v1473_v28  ;;  %v1471_v34 = vsub.f32 %v1447_v52, %v1464_v30 }
 0x889   :  { %12933 = vpow2.f32 %v1475_v26  ;;  %v1479_v25 = vmul.f32 1.442695, %v1472_v40 }
 0x88a   :  { %v1477_v31 = vmul.f32 1.442695, %v1471_v34 }
 0x88c   :  { %12935 = vpow2.f32 %v1477_v31 }
 0x88d   :  { %12937 = vpow2.f32 %v1479_v25 }
 0x892   :  { %v12932_v41 = vpop.eup %12931 }
 0x893   :  { %v12934_v7 = vpop.eup %12933  ;;  %10429 = vmatprep.mubr.msk.f32.mxu0 %vm1455_vm12, %v12932_v41  ;;  %10463 = vmatprep.mubr.msk.f32.mxu1 %vm1455_vm12, %v12932_v41 }
 0x894   :  { %10430 = vmatmul.mubr.msk.f32.vlgmr.msra.gmra.mrb[20].mxu0 %vm1455_vm12, %v12934_v7  ;;  %10464 = vmatmul.mubr.msk.f32.vlgmr.msra.gmra.mrb[12].mxu1 %vm1455_vm12, %v12934_v7 }
 0x895   :  { %11847 = vmatpush3.bf16.msra.mxu0 %v11844_v63 }
 0x896   :  { %v12936_v48 = vpop.eup %12935  ;;  %11849 = vmatprep.subr.bf16.mxu0 %v11848_v32 }
 0x897   :  { %v12938_v24 = vpop.eup %12937  ;;  %10432 = vmatprep.mubr.msk.f32.mxu0 %vm1455_vm12, %v12936_v48  ;;  %10466 = vmatprep.mubr.msk.f32.mxu1 %vm1455_vm12, %v12936_v48 }
 0x898   :  { %10433 = vmatmul.mubr.msk.f32.gmra.mrb[22].mxu0 %vm1455_vm12, %v12938_v24  ;;  %10467 = vmatmul.mubr.msk.f32.gmra.mrb[14].mxu1 %vm1455_vm12, %v12938_v24 }
 0x899   :  { %11851 = vmatpush3.bf16.msra.mxu0 %v11848_v32 }
 0x967   :  { %v10431_v29 = vpop.f32.mrb[20].mxu0  ;;  %v10465_v10 = vpop.f32.mrb[12].mxu1 }
 0x968   :  { %v1664_v62 = vmax.f32 %v10431_v29, 1e-20  ;;  %v1559_v5 = vpop.f32.mrb[21].mxu0  ;;  %v1644_v23 = vpop.f32.mrb[13].mxu1 }
 0x969   :  { %v1663_v27 = vmax.f32 %v1559_v5, 1e-20 }
 0x96a   :  { %12939 = vrcp.f32 %v1664_v62 }
 0x96b   :  { %12941 = vrcp.f32 %v1663_v27  ;;  %v10434_v6 = vpop.f32.mrb[22].mxu0  ;;  %v10468_v43 = vpop.f32.mrb[14].mxu1 }
 0x96c   :  { %v1666_v53 = vmax.f32 %v10434_v6, 1e-20  ;;  %v1569_v60 = vpop.f32.mrb[23].mxu0  ;;  %v1654_v39 = vpop.f32.mrb[15].mxu1 }
 0x96d   :  { %v1665_v3 = vmax.f32 %v1569_v60, 1e-20 }
 0x96e   :  { %12943 = vrcp.f32 %v1666_v53 }
 0x96f   :  { %12945 = vrcp.f32 %v1665_v3  ;;  %v1848_v3 = vld [vmem:[%s16220_s12] sm:$0xff] }
 0x974   :  { %v12940_v2 = vpop.eup %12939 }
 0x975   :  { %v12942_v9 = vpop.eup %12941  ;;  %v1672_v46 = vmul.f32 %v12940_v2, %v10465_v10  ;;  %v1849_v2 = vld [vmem:[%s16220_s12 + $0x8] sm:$0xff] }
 0x976   :  { %v1671_v49 = vmul.f32 %v12942_v9, %v1644_v23  ;;  %v1850_v9 = vld [vmem:[%s16220_s12 + $0x10] sm:$0xff] }
 0x978   :  { %v12944_v51 = vpop.eup %12943  ;;  %10477 = vmatprep.mubr.msk.f32.mxu0 %vm319_vm5, %v1671_v49  ;;  %v1851_v49 = vld [vmem:[%s16220_s12 + $0x18] sm:$0xff] }
 0x979   :  { %v12946_v52 = vpop.eup %12945  ;;  %v1674_v12 = vmul.f32 %v12944_v51, %v10468_v43  ;;  %10478 = vmatmul.mubr.msk.f32.vlgmr.msra.gmra.mrb[24].mxu0 %vm319_vm5, %v1672_v46  ;;  %v11852_v46 = vpack.c.bf16 %v1849_v2, %v1848_v3  ;;  %v11856_v51 = vpack.c.bf16 %v1851_v49, %v1850_v9  ;;  %v1996_v3 = vld [vmem:[%s16219_s11 + $0x118] sm:$0xff]  ;;  %v14079_v9 = vld [vmem:[%s16218_s10 + $0x10] sm:$0xff] }
 0x97a   :  { %v1673_v4 = vmul.f32 %v12946_v52, %v1654_v39 }
 0x97b   :  { %11853 = vmatprep.subr.bf16.mxu1 %v11852_v46 }
 0x97c   :  { %10480 = vmatprep.mubr.msk.f32.mxu0 %vm319_vm5, %v1673_v4  ;;  %11855 = vmatpush3.bf16.msra.mxu1 %v11852_v46  ;;  %v1855_v46 = vrot.slane %v14079_v9, %v13435_v47 }
 0x97d   :  { %10481 = vmatmul.mubr.msk.f32.gmra.mrb[26].mxu0 %vm319_vm5, %v1674_v12  ;;  %11857 = vmatprep.subr.bf16.mxu1 %v11856_v51 }
 0x980   :  { %11859 = vmatpush3.bf16.msra.mxu1 %v11856_v51 }
 0xa4c   :  { %v10479_v56 = vpop.f32.mrb[24].mxu0 }
 0xa4d   :  { %v1763_v44 = vadd.f32 %v10479_v56, %v1678_v35  ;;  %v1757_v57 = vpop.f32.mrb[25].mxu0 }
 0xa4e   :  { %v1758_v26 = vadd.f32 %v1757_v57, %v1678_v35 }
 0xa4f   :  { %v1777_v28 = vadd.f32 %v1763_v44, %v13722_v50 }
 0xa50   :  { %v10482_v15 = vpop.f32.mrb[26].mxu0  ;;  %v1776_v40 = vadd.f32 %v1758_v26, %v13710_v8 }
 0xa51   :  { %v1773_v30 = vadd.f32 %v10482_v15, %v1678_v35  ;;  %v1767_v34 = vpop.f32.mrb[27].mxu0  ;;  %v1783_v25 = vsel %vm319_vm5, %v1777_v28, 0.0 }
 0xa52   :  { %v1768_v31 = vadd.f32 %v1767_v34, %v1678_v35  ;;  %1784 = vadd.xlane.f32.xlu1 %v1783_v25  ;;  %v1780_v41 = vsel %vm319_vm5, %v1776_v40, 0.0  ;;  %v1835_v34 = vrot.slane %v13753_v17, %v13645_v37 }
 0xa53   :  { %1781 = vadd.xlane.f32.xlu0 %v1780_v41  ;;  %v1779_v7 = vadd.f32 %v1773_v30, %v13736_v16 }
 0xa54   :  { %v1778_v48 = vadd.f32 %v1768_v31, %v13729_v13 }
 0xa55   :  { %v1789_v24 = vsel %vm668_vm9, %v1779_v7, 0.0 }
 0xa56   :  { %1790 = vadd.xlane.f32.xlu1 %v1789_v24  ;;  %v1786_v50 = vsel %vm319_vm5, %v1778_v48, 0.0 }
 0xa57   :  { %1787 = vadd.xlane.f32.xlu0 %v1786_v50 }
 0xadf   :  { %v1785_v8 = vpop.xlane.xlu1 %1784 }
 0xae0   :  { %v1793_v61 = vmul.f32 0.03125, %v1785_v8  ;;  %v1782_v58 = vpop.xlane.xlu0 %1781 }
 0xae1   :  { %v1792_v63 = vmul.f32 0.03125, %v1782_v58 }
 0xae2   :  { %v1797_v0 = vsub.f32 %v1777_v28, %v1793_v61 }
 0xae3   :  { %v1796_v11 = vsub.f32 %v1776_v40, %v1792_v63  ;;  %v1791_v32 = vpop.xlane.xlu1 %1790 }
 0xae4   :  { %v1795_v29 = vmul.f32 0.03125, %v1791_v32  ;;  %v1788_v10 = vpop.xlane.xlu0 %1787  ;;  %v1801_v62 = vmul.f32 %v1797_v0, %v1797_v0 }
 0xae5   :  { %v1794_v5 = vmul.f32 0.03125, %v1788_v10  ;;  %v1800_v16 = vmul.f32 %v1796_v11, %v1796_v11 }
 0xae6   :  { %v1799_v23 = vsub.f32 %v1779_v7, %v1795_v29  ;;  %v1807_v13 = vsel %vm319_vm5, %v1801_v62, 0.0 }
 0xae7   :  { %v1798_v27 = vsub.f32 %v1778_v48, %v1794_v5  ;;  %1808 = vadd.xlane.f32.xlu1 %v1807_v13  ;;  %v1804_v6 = vsel %vm319_vm5, %v1800_v16, 0.0  ;;  %v1843_v48 = vrot.slane %v13753_v17, %v13700_v54  ;;  %v1989_v5 = vld [vmem:[%s16219_s11 + $0xe0] sm:$0xff]  ;;  %v1990_v16 = vld [vmem:[%s16219_s11 + $0xe8] sm:$0xff]  ;;  %v1991_v13 = vld [vmem:[%s16219_s11 + $0xf0] sm:$0xff] }
 0xae8   :  { %1805 = vadd.xlane.f32.xlu0 %v1804_v6  ;;  %v1803_v43 = vmul.f32 %v1799_v23, %v1799_v23 }
 0xae9   :  { %v1802_v53 = vmul.f32 %v1798_v27, %v1798_v27 }
 0xaea   :  { %v1813_v60 = vsel %vm668_vm9, %v1803_v43, 0.0  ;;  %v1993_v43 = vld [vmem:[%s16219_s11 + $0x100] sm:$0xff] }
 0xaeb   :  { %1814 = vadd.xlane.f32.xlu1 %v1813_v60  ;;  %v1810_v39 = vsel %vm319_vm5, %v1802_v53, 0.0  ;;  %v1994_v53 = vld [vmem:[%s16219_s11 + $0x108] sm:$0xff] }
 0xaec   :  { %1811 = vadd.xlane.f32.xlu0 %v1810_v39  ;;  %v11868_v60 = vpack.c.bf16 %v1994_v53, %v1993_v43  ;;  %v1995_v39 = vld [vmem:[%s16219_s11 + $0x110] sm:$0xff] }
 0xaed   :  { %v11872_v2 = vpack.c.bf16 %v1996_v3, %v1995_v39 }
 0xb74   :  { %v1809_v52 = vpop.xlane.xlu1 %1808 }
 0xb75   :  { %v1817_v12 = vmul.f32 0.03125, %v1809_v52  ;;  %v1806_v4 = vpop.xlane.xlu0 %1805 }
 0xb76   :  { %v1816_v35 = vmul.f32 0.03125, %v1806_v4 }
 0xb77   :  { %v1821_v56 = vadd.f32 1e-05, %v1817_v12 }
 0xb78   :  { %v1820_v44 = vadd.f32 1e-05, %v1816_v35  ;;  %v1815_v57 = vpop.xlane.xlu1 %1814 }
 0xb79   :  { %12947 = vrsqrt.f32 %v1821_v56  ;;  %v1819_v26 = vmul.f32 0.03125, %v1815_v57  ;;  %v1812_v28 = vpop.xlane.xlu0 %1811 }
 0xb7a   :  { %12949 = vrsqrt.f32 %v1820_v44  ;;  %v1818_v15 = vmul.f32 0.03125, %v1812_v28 }
 0xb7b   :  { %v1823_v40 = vadd.f32 1e-05, %v1819_v26 }
 0xb7c   :  { %v1822_v30 = vadd.f32 1e-05, %v1818_v15 }
 0xb7d   :  { %12951 = vrsqrt.f32 %v1823_v40 }
 0xb7e   :  { %12953 = vrsqrt.f32 %v1822_v30 }
 0xb83   :  { %v12948_v25 = vpop.eup %12947 }
 0xb84   :  { %v12950_v31 = vpop.eup %12949  ;;  %v1829_v41 = vmul.f32 %v12948_v25, %v1797_v0 }
 0xb85   :  { %v1828_v7 = vmul.f32 %v12950_v31, %v1796_v11 }
 0xb86   :  { %v1837_v24 = vmul.f32 %v1835_v34, %v1829_v41 }
 0xb87   :  { %v12952_v50 = vpop.eup %12951  ;;  %v1836_v8 = vmul.f32 %v1835_v34, %v1828_v7 }
 0xb88   :  { %v12954_v61 = vpop.eup %12953  ;;  %v1831_v58 = vmul.f32 %v12952_v50, %v1799_v23  ;;  %v14038_v29 = vadd.f32 %v1843_v48, %v1837_v24  ;;  %v11860_v23 = vpack.c.bf16 %v1990_v16, %v1989_v5 }
 0xb89   :  { %v14036_v63 = vadd.f32 %v1843_v48, %v1836_v8  ;;  %v1830_v32 = vmul.f32 %v12954_v61, %v1798_v27  ;;  %v1992_v27 = vld [vmem:[%s16219_s11 + $0xf8] sm:$0xff] }
 0xb8a   :  { %v1839_v10 = vmul.f32 %v1835_v34, %v1831_v58  ;;  %11861 = vmatprep.subr.bf16.mxu0 %v11860_v23  ;;  %v11864_v6 = vpack.c.bf16 %v1992_v27, %v1991_v13 }
 0xb8b   :  { %10491 = vmatprep.mubr.msk.f32.mxu1 %vm319_vm5, %v14036_v63  ;;  %v1838_v62 = vmul.f32 %v1835_v34, %v1830_v32  ;;  %11863 = vmatpush3.bf16.msra.mxu0 %v11860_v23 }
 0xb8c   :  { %10492 = vmatmul.mubr.msk.f32.vlgmr.msra.gmra.mrb[16].mxu1 %vm319_vm5, %v14038_v29  ;;  %v14046_v11 = vadd.f32 %v1843_v48, %v1839_v10  ;;  %11865 = vmatprep.subr.bf16.mxu0 %v11864_v6 }
 0xb8d   :  { %v14044_v0 = vadd.f32 %v1843_v48, %v1838_v62 }
 0xb8f   :  { %10494 = vmatprep.mubr.msk.f32.mxu1 %vm319_vm5, %v14044_v0  ;;  %11867 = vmatpush3.bf16.msra.mxu0 %v11864_v6 }
 0xb90   :  { %10495 = vmatmul.mubr.msk.f32.gmra.mrb[18].mxu1 %vm319_vm5, %v14046_v11  ;;  %11869 = vmatprep.subr.bf16.mxu0 %v11868_v60 }
 0xb93   :  { %11871 = vmatpush3.bf16.msra.mxu0 %v11868_v60 }
 0xb94   :  { %11873 = vmatprep.subr.bf16.mxu0 %v11872_v2 }
 0xb97   :  { %11875 = vmatpush3.bf16.msra.mxu0 %v11872_v2 }
 0xc5f   :  { %v10493_v49 = vpop.f32.mrb[16].mxu1 }
 0xc60   :  { %v1940_v51 = vadd.f32 %v10493_v49, %v1855_v46  ;;  %v1934_v52 = vpop.f32.mrb[17].mxu1 }
 0xc61   :  { %v1935_v12 = vadd.f32 %v1934_v52, %v1855_v46 }
 0xc62   :  { %v1954_v4 = vmul.f32 %v1940_v51, %v1940_v51 }
 0xc63   :  { %v1953_v35 = vmul.f32 %v1935_v12, %v1935_v12  ;;  %v10496_v56 = vpop.f32.mrb[18].mxu1 }
 0xc64   :  { %v1958_v44 = vmul.f32 %v1954_v4, %v1940_v51  ;;  %v1950_v57 = vadd.f32 %v10496_v56, %v1855_v46  ;;  %v1944_v26 = vpop.f32.mrb[19].mxu1 }
 0xc65   :  { %v1957_v28 = vmul.f32 %v1953_v35, %v1935_v12  ;;  %v1945_v15 = vadd.f32 %v1944_v26, %v1855_v46  ;;  %v2000_v35 = vrot.slane %v13753_v17, %v13703_v59 }
 0xc66   :  { %v1962_v40 = vmul.f32 0.044715, %v1958_v44  ;;  %v1956_v30 = vmul.f32 %v1950_v57, %v1950_v57 }
 0xc67   :  { %v1961_v34 = vmul.f32 0.044715, %v1957_v28  ;;  %v1955_v25 = vmul.f32 %v1945_v15, %v1945_v15 }
 0xc68   :  { %v1966_v31 = vadd.f32 %v1962_v40, %v1940_v51  ;;  %v1960_v41 = vmul.f32 %v1956_v30, %v1950_v57 }
 0xc69   :  { %v1965_v7 = vadd.f32 %v1961_v34, %v1935_v12  ;;  %v1959_v48 = vmul.f32 %v1955_v25, %v1945_v15 }
 0xc6a   :  { %v1970_v24 = vmul.f32 0.7978846, %v1966_v31  ;;  %v1964_v50 = vmul.f32 0.044715, %v1960_v41 }
 0xc6b   :  { %v1969_v8 = vmul.f32 0.7978846, %v1965_v7  ;;  %v1963_v61 = vmul.f32 0.044715, %v1959_v48 }
 0xc6c   :  { %12955 = vtanh.f32 %v1970_v24  ;;  %v1968_v58 = vadd.f32 %v1964_v50, %v1950_v57 }
 0xc6d   :  { %12957 = vtanh.f32 %v1969_v8  ;;  %v1967_v32 = vadd.f32 %v1963_v61, %v1945_v15 }
 0xc6e   :  { %v1972_v10 = vmul.f32 0.7978846, %v1968_v58 }
 0xc6f   :  { %v1971_v62 = vmul.f32 0.7978846, %v1967_v32 }
 0xc70   :  { %12959 = vtanh.f32 %v1972_v10 }
 0xc71   :  { %12961 = vtanh.f32 %v1971_v62 }
 0xc76   :  { %v12956_v5 = vpop.eup %12955 }
 0xc77   :  { %v12958_v16 = vpop.eup %12957  ;;  %v1978_v23 = vadd.f32 1.0, %v12956_v5 }
 0xc78   :  { %v1977_v13 = vadd.f32 1.0, %v12958_v16 }
 0xc79   :  { %v1982_v27 = vmul.f32 0.5, %v1978_v23 }
 0xc7a   :  { %v12960_v6 = vpop.eup %12959  ;;  %v1981_v43 = vmul.f32 0.5, %v1977_v13 }
 0xc7b   :  { %v12962_v53 = vpop.eup %12961  ;;  %v1980_v60 = vadd.f32 1.0, %v12960_v6  ;;  %v1986_v2 = vmul.f32 %v1982_v27, %v1940_v51 }
 0xc7c   :  { %v1985_v39 = vmul.f32 %v1981_v43, %v1935_v12  ;;  %v1979_v3 = vadd.f32 1.0, %v12962_v53 }
 0xc7d   :  { %v1984_v46 = vmul.f32 0.5, %v1980_v60  ;;  %v2170_v60 = vld [vmem:[%s16219_s11 + $0x120] sm:$0xff] }
 0xc7e   :  { %10513 = vmatprep.mubr.msk.f32.mxu0 %vm527_vm7, %v1985_v39  ;;  %v1983_v49 = vmul.f32 0.5, %v1979_v3  ;;  %v2171_v39 = vld [vmem:[%s16219_s11 + $0x128] sm:$0xff]  ;;  %v2372_v3 = vld [vmem:[%s16219_s11 + $0x160] sm:$0xff] }
 0xc7f   :  { %10514 = vmatmul.mubr.msk.f32.vlgmr.msra.gmra.mrb[28].mxu0 %vm527_vm7, %v1986_v2  ;;  %v1988_v4 = vmul.f32 %v1984_v46, %v1950_v57  ;;  %v11876_v2 = vpack.c.bf16 %v2171_v39, %v2170_v60  ;;  %v2373_v46 = vld [vmem:[%s16219_s11 + $0x168] sm:$0xff] }
 0xc80   :  { %v1987_v52 = vmul.f32 %v1983_v49, %v1945_v15  ;;  %v2172_v49 = vld [vmem:[%s16219_s11 + $0x130] sm:$0xff] }
 0xc81   :  { %11877 = vmatprep.subr.bf16.mxu1 %v11876_v2 }
 0xc82   :  { %10516 = vmatprep.mubr.msk.f32.mxu0 %vm527_vm7, %v1987_v52  ;;  %v2173_v52 = vld [vmem:[%s16219_s11 + $0x138] sm:$0xff]  ;;  %11879 = vmatpush3.bf16.msra.mxu1 %v11876_v2  ;;  %v2379_v2 = vrot.slane %v14079_v9, %v13645_v37 }
 0xc83   :  { %10517 = vmatmul.mubr.msk.f32.gmra.mrb[30].mxu0 %vm527_vm7, %v1988_v4  ;;  %v11892_v4 = vpack.c.bf16 %v2373_v46, %v2372_v3  ;;  %v2177_v3 = vrot.slane %v14079_v9, %v13631_v18 }
 0xc85   :  { %11893 = vmatprep.subr.bf16.mxu0 %v11892_v4 }
 0xc86   :  { %11895 = vmatpush3.bf16.msra.mxu0 %v11892_v4 }
 0xd52   :  { %v10515_v56 = vpop.f32.mrb[28].mxu0 }
 0xd53   :  { %v2085_v44 = vadd.f32 %v10515_v56, %v2000_v35  ;;  %v2079_v12 = vpop.f32.mrb[29].mxu0  ;;  %v2374_v56 = vld [vmem:[%s16219_s11 + $0x170] sm:$0xff] }
 0xd54   :  { %v2080_v26 = vadd.f32 %v2079_v12, %v2000_v35 }
 0xd55   :  { %v2099_v51 = vadd.f32 %v2085_v44, %v14038_v29  ;;  %v2375_v44 = vld [vmem:[%s16219_s11 + $0x178] sm:$0xff] }
 0xd56   :  { %v10518_v28 = vpop.f32.mrb[30].mxu0  ;;  %v2098_v40 = vadd.f32 %v2080_v26, %v14036_v63  ;;  %v11896_v12 = vpack.c.bf16 %v2375_v44, %v2374_v56  ;;  %v2279_v26 = vld [vmem:[%s16219_s11 + $0x140] sm:$0xff] }
 0xd57   :  { %v2095_v30 = vadd.f32 %v10518_v28, %v2000_v35  ;;  %v2089_v34 = vpop.f32.mrb[31].mxu0  ;;  %v2105_v57 = vsel %vm319_vm5, %v2099_v51, 0.0 }
 0xd58   :  { %v2090_v15 = vadd.f32 %v2089_v34, %v2000_v35  ;;  %2106 = vadd.xlane.f32.xlu1 %v2105_v57  ;;  %v2102_v25 = vsel %vm319_vm5, %v2098_v40, 0.0  ;;  %v11880_v35 = vpack.c.bf16 %v2173_v52, %v2172_v49  ;;  %11897 = vmatprep.subr.bf16.mxu0 %v11896_v12 }
 0xd59   :  { %2103 = vadd.xlane.f32.xlu0 %v2102_v25  ;;  %v2101_v31 = vadd.f32 %v2095_v30, %v14046_v11  ;;  %11899 = vmatpush3.bf16.msra.mxu0 %v11896_v12 }
 0xd5a   :  { %v2100_v41 = vadd.f32 %v2090_v15, %v14044_v0  ;;  %11881 = vmatprep.subr.bf16.mxu1 %v11880_v35  ;;  %11943 = vmatprep.subr.bf16.mxu0 %v13926_v1 }
 0xd5b   :  { %v2111_v7 = vsel %vm668_vm9, %v2101_v31, 0.0  ;;  %11883 = vmatpush3.bf16.msra.mxu1 %v11880_v35 }
 0xd5c   :  { %2112 = vadd.xlane.f32.xlu1 %v2111_v7  ;;  %v2108_v29 = vsel %vm319_vm5, %v2100_v41, 0.0 }
 0xd5d   :  { %2109 = vadd.xlane.f32.xlu0 %v2108_v29 }
 0xde5   :  { %v2107_v63 = vpop.xlane.xlu1 %2106 }
 0xde6   :  { %v2115_v48 = vmul.f32 0.03125, %v2107_v63  ;;  %v2104_v24 = vpop.xlane.xlu0 %2103 }
 0xde7   :  { %v2114_v50 = vmul.f32 0.03125, %v2104_v24  ;;  %v14149_v24 = vsub.s32 7, %v13424_v42  ;;  %v2281_v42 = vld [vmem:[%s16219_s11 + $0x150] sm:$0xff] }
 0xde8   :  { %v14097_v8 = vsub.f32 %v2099_v51, %v2115_v48  ;;  %v2280_v51 = vld [vmem:[%s16219_s11 + $0x148] sm:$0xff] }
 0xde9   :  { %v14099_v61 = vsub.f32 %v2098_v40, %v2114_v50  ;;  %v2113_v58 = vpop.xlane.xlu1 %2112  ;;  %v11884_v28 = vpack.c.bf16 %v2280_v51, %v2279_v26  ;;  %16247 = vst [vmem:[#allocation12_spill] sm:$0xff] %v14149_v24  ;;  %v2157_v50 = vrot.slane %v13753_v17, %v14149_v24  ;;  %v2282_v17 = vld [vmem:[%s16219_s11 + $0x158] sm:$0xff]  ;;  %v13153_v51 = vld [vmem:[%s16219_s11 + $0x688] sm:$0xff] }
 0xdea   :  { %v2117_v32 = vmul.f32 0.03125, %v2113_v58  ;;  %v2110_v10 = vpop.xlane.xlu0 %2109  ;;  %v2123_v0 = vmul.f32 %v14097_v8, %v14097_v8 }
 0xdeb   :  { %v2116_v11 = vmul.f32 0.03125, %v2110_v10  ;;  %v2122_v62 = vmul.f32 %v14099_v61, %v14099_v61  ;;  %11885 = vmatprep.subr.bf16.mxu1 %v11884_v28 }
 0xdec   :  { %v14105_v5 = vsub.f32 %v2101_v31, %v2117_v32  ;;  %v2129_v16 = vsel %vm319_vm5, %v2123_v0, 0.0 }
 0xded   :  { %v14108_v23 = vsub.f32 %v2100_v41, %v2116_v11  ;;  %2130 = vadd.xlane.f32.xlu1 %v2129_v16  ;;  %v2126_v13 = vsel %vm319_vm5, %v2122_v62, 0.0  ;;  %v2165_v11 = vrot.slane %v14079_v9, %v13427_v45 }
 0xdee   :  { %2127 = vadd.xlane.f32.xlu0 %v2126_v13  ;;  %v2125_v27 = vmul.f32 %v14105_v5, %v14105_v5 }
 0xdef   :  { %v2124_v6 = vmul.f32 %v14108_v23, %v14108_v23 }
 0xdf0   :  { %v2135_v43 = vsel %vm668_vm9, %v2125_v27, 0.0 }
 0xdf1   :  { %2136 = vadd.xlane.f32.xlu1 %v2135_v43  ;;  %v2132_v53 = vsel %vm319_vm5, %v2124_v6, 0.0 }
 0xdf2   :  { %2133 = vadd.xlane.f32.xlu0 %v2132_v53  ;;  %v11888_v53 = vpack.c.bf16 %v2282_v17, %v2281_v42  ;;  %v13157_v17 = vld [vmem:[%s16219_s11 + $0x690] sm:$0xff] }
 0xe7a   :  { %v2131_v40 = vpop.xlane.xlu1 %2130 }
 0xe7b   :  { %v2139_v30 = vmul.f32 0.03125, %v2131_v40  ;;  %v2128_v34 = vpop.xlane.xlu0 %2127 }
 0xe7c   :  { %v2138_v57 = vmul.f32 0.03125, %v2128_v34  ;;  %v13154_v34 = vld [vmem:[%s16219_s11 + $0x680] sm:$0xff] }
 0xe7d   :  { %v2143_v15 = vadd.f32 1e-05, %v2139_v30 }
 0xe7e   :  { %v2142_v25 = vadd.f32 1e-05, %v2138_v57  ;;  %v2137_v31 = vpop.xlane.xlu1 %2136 }
 0xe7f   :  { %12963 = vrsqrt.f32 %v2143_v15  ;;  %v2141_v41 = vmul.f32 0.03125, %v2137_v31  ;;  %v2134_v7 = vpop.xlane.xlu0 %2133 }
 0xe80   :  { %12965 = vrsqrt.f32 %v2142_v25  ;;  %v2140_v29 = vmul.f32 0.03125, %v2134_v7 }
 0xe81   :  { %v2145_v63 = vadd.f32 1e-05, %v2141_v41 }
 0xe82   :  { %v2144_v48 = vadd.f32 1e-05, %v2140_v29 }
 0xe83   :  { %12967 = vrsqrt.f32 %v2145_v63  ;;  %v2286_v63 = vrot.slane %v14079_v9, %v13634_v22 }
 0xe84   :  { %12969 = vrsqrt.f32 %v2144_v48 }
 0xe89   :  { %v12964_v58 = vpop.eup %12963 }
 0xe8a   :  { %v12966_v32 = vpop.eup %12965  ;;  %v2151_v10 = vmul.f32 %v12964_v58, %v14097_v8 }
 0xe8b   :  { %v2150_v0 = vmul.f32 %v12966_v32, %v14099_v61 }
 0xe8c   :  { %v2159_v62 = vmul.f32 %v2157_v50, %v2151_v10  ;;  %v13155_v10 = vld [vmem:[%s16219_s11 + $0x6c0] sm:$0xff] }
 0xe8d   :  { %v12968_v16 = vpop.eup %12967  ;;  %v2158_v13 = vmul.f32 %v2157_v50, %v2150_v0 }
 0xe8e   :  { %v12970_v27 = vpop.eup %12969  ;;  %v2153_v6 = vmul.f32 %v12968_v16, %v14105_v5  ;;  %v14167_v43 = vadd.f32 %v2165_v11, %v2159_v62  ;;  %v13156_v16 = vld [vmem:[%s16219_s11 + $0x6b8] sm:$0xff] }
 0xe8f   :  { %v14164_v8 = vadd.f32 %v2165_v11, %v2158_v13  ;;  %v2152_v61 = vmul.f32 %v12970_v27, %v14108_v23 }
 0xe90   :  { %v2161_v60 = vmul.f32 %v2157_v50, %v2153_v6  ;;  %v13158_v6 = vld [vmem:[%s16219_s11 + $0x6c8] sm:$0xff] }
 0xe91   :  { %10527 = vmatprep.mubr.msk.f32.mxu1 %vm319_vm5, %v14164_v8  ;;  %10555 = vmatprep.mubr.msk.f32.mxu0 %vm319_vm5, %v14164_v8  ;;  %v2160_v39 = vmul.f32 %v2157_v50, %v2152_v61 }
 0xe92   :  { %10528 = vmatmul.mubr.msk.f32.vlgmr.msra.gmra.mrb[20].mxu1 %vm319_vm5, %v14167_v43  ;;  %10556 = vmatmul.mubr.msk.f32.vlgmr.msra.gmra.mrb[32].mxu0 %vm319_vm5, %v14167_v43  ;;  %v14180_v23 = vadd.f32 %v2165_v11, %v2161_v60 }
 0xe93   :  { %11887 = vmatpush3.bf16.msra.mxu1 %v11884_v28  ;;  %v14177_v5 = vadd.f32 %v2165_v11, %v2160_v39  ;;  %11945 = vmatpush3.bf16.msra.mxu0 %v13926_v1 }
 0xe94   :  { %11889 = vmatprep.subr.bf16.mxu1 %v11888_v53  ;;  %11947 = vmatprep.subr.bf16.mxu0 %v13930_v21 }
 0xe95   :  { %10530 = vmatprep.mubr.msk.f32.mxu1 %vm319_vm5, %v14177_v5  ;;  %10558 = vmatprep.mubr.msk.f32.mxu0 %vm319_vm5, %v14177_v5 }
 0xe96   :  { %10531 = vmatmul.mubr.msk.f32.gmra.mrb[22].mxu1 %vm319_vm5, %v14180_v23  ;;  %10559 = vmatmul.mubr.msk.f32.gmra.mrb[34].mxu0 %vm319_vm5, %v14180_v23 }
 0xe97   :  { %11891 = vmatpush3.bf16.msra.mxu1 %v11888_v53  ;;  %10541 = vmatprep.mubr.msk.f32.mxu1 %vm319_vm5, %v14164_v8 }
 0xe98   :  { %11949 = vmatpush3.bf16.msra.mxu0 %v13930_v21 }
 0xe99   :  { %11951 = vmatprep.subr.bf16.mxu0 %v13937_v20 }
 0xe9a   :  { %10542 = vmatmul.mubr.msk.f32.vlgmr.msra.gmra.mrb[24].mxu1 %vm319_vm5, %v14167_v43 }
 0xe9b   :  { %10544 = vmatprep.mubr.msk.f32.mxu1 %vm319_vm5, %v14177_v5 }
 0xe9c   :  { %11953 = vmatpush3.bf16.msra.mxu0 %v13937_v20 }
 0xe9d   :  { %11955 = vmatprep.subr.bf16.mxu0 %v13960_v55 }
 0xe9e   :  { %10545 = vmatmul.mubr.msk.f32.gmra.mrb[26].mxu1 %vm319_vm5, %v14180_v23 }
 0xea0   :  { %11957 = vmatpush3.bf16.msra.mxu0 %v13960_v55 }
 0xea1   :  { %11959 = vmatprep.subr.bf16.mxu0 %v13966_v14 }
 0xea4   :  { %11961 = vmatpush3.bf16.msra.mxu0 %v13966_v14 }
 0xea5   :  { %11963 = vmatprep.subr.bf16.mxu0 %v13970_v19 }
 0xea8   :  { %11965 = vmatpush3.bf16.msra.mxu0 %v13970_v19 }
 0xea9   :  { %11967 = vmatprep.subr.bf16.mxu0 %v13977_v36 }
 0xeac   :  { %11969 = vmatpush3.bf16.msra.mxu0 %v13977_v36 }
 0xf65   :  { %v10529_v46 = vpop.f32.mrb[20].mxu1  ;;  %v10557_v49 = vpop.f32.mrb[32].mxu0 }
 0xf66   :  { %v14214_v52 = vadd.f32 %v10529_v46, %v2177_v3  ;;  %v2452_v4 = vadd.f32 %v10557_v49, %v2379_v2  ;;  %v2256_v35 = vpop.f32.mrb[21].mxu1  ;;  %v2446_v56 = vpop.f32.mrb[33].mxu0  ;;  %v13160_v46 = vld [vmem:[%s16219_s11 + $0x6d0] sm:$0xff] }
 0xf67   :  { %v2257_v44 = vadd.f32 %v2256_v35, %v2177_v3  ;;  %v2447_v12 = vadd.f32 %v2446_v56, %v2379_v2 }
 0xf68   :  { %v2504_v26 = vrot.slane %v2452_v4, 4  ;;  %v2516_v28 = vmul.f32 %v13153_v51, %v2452_v4  ;;  %v2523_v0 = vmul.f32 %v13155_v10, %v2452_v4  ;;  %v13161_v4 = vld [vmem:[%s16219_s11 + $0x6d8] sm:$0xff] }
 0xf69   :  { %v2275_v40 = vmul.f32 0.35355338, %v2257_v44  ;;  %v2503_v30 = vrot.slane %v2447_v12, 4  ;;  %v2515_v57 = vmul.f32 %v13154_v34, %v2447_v12  ;;  %v10532_v15 = vpop.f32.mrb[22].mxu1  ;;  %v10560_v25 = vpop.f32.mrb[34].mxu0  ;;  %v2522_v13 = vmul.f32 %v13156_v16, %v2447_v12 }
 0xf6a   :  { %v14222_v31 = vadd.f32 %v10532_v15, %v2177_v3  ;;  %v2462_v41 = vadd.f32 %v10560_v25, %v2379_v2  ;;  %v2266_v7 = vpop.f32.mrb[23].mxu1  ;;  %v2456_v29 = vpop.f32.mrb[35].mxu0  ;;  %v13162_v15 = vld [vmem:[%s16219_s11 + $0x6a0] sm:$0xff] }
 0xf6b   :  { %v14226_v48 = vadd.f32 %v2266_v7, %v2177_v3  ;;  %v2457_v50 = vadd.f32 %v2456_v29, %v2379_v2  ;;  %10589 = vmatprep.mubr.msk.f32.mxu1 %vm319_vm5, %v2275_v40  ;;  %v14229_v58 = vpack.c.bf16 %v2516_v28, %v2515_v57  ;;  %v2505_v32 = vsel %vm1259_vm10, %v2503_v30, %v2504_v26  ;;  %v13159_v3 = vld [vmem:[%s16219_s11 + $0x698] sm:$0xff] }
 0xf6c   :  { %v2508_v11 = vrot.slane %v2462_v41, 4  ;;  %v2514_v62 = vsel %vm1259_vm10, %v2462_v41, %v2503_v30  ;;  %v2526_v35 = vmul.f32 %v13161_v4, %v2505_v32  ;;  %v2519_v25 = vmul.f32 %v13162_v15, %v2505_v32 }
 0xf6d   :  { %v2506_v42 = vrot.slane %v2457_v50, 4  ;;  %v2517_v27 = vmul.f32 %v13157_v17, %v2457_v50  ;;  %v2524_v61 = vmul.f32 %v13158_v6, %v2457_v50  ;;  %v10543_v53 = vpop.f32.mrb[24].mxu1  ;;  %11971 = vmatprep.subr.bf16.mxu0 %v14229_v58  ;;  %v2518_v2 = vmul.f32 %v13159_v3, %v2514_v62 }
 0xf6e   :  { %v2359_v60 = vadd.f32 %v10543_v53, %v2286_v63  ;;  %v2353_v39 = vpop.f32.mrb[25].mxu1  ;;  %v2525_v49 = vmul.f32 %v13160_v46, %v2514_v62 }
 0xf6f   :  { %v2354_v56 = vadd.f32 %v2353_v39, %v2286_v63  ;;  %v2507_v44 = vsel %vm1259_vm10, %v2504_v26, %v2506_v42  ;;  %v2509_v12 = vsel %vm1259_vm10, %v2506_v42, %v2508_v11  ;;  %v14257_v28 = vpack.c.bf16 %v2524_v61, %v2523_v0  ;;  %v13163_v26 = vld [vmem:[%s16219_s11 + $0x6a8] sm:$0xff] }
 0xf70   :  { %v2474_v40 = vrot.slane %v2359_v60, 4  ;;  %v2486_v30 = vmul.f32 %v13153_v51, %v2359_v60  ;;  %v14259_v57 = vpack.c.bf16 %v2518_v2, %v2517_v27  ;;  %v2493_v41 = vmul.f32 %v13155_v10, %v2359_v60  ;;  %v13164_v51 = vld [vmem:[%s16219_s11 + $0x6b0] sm:$0xff] }
 0xf71   :  { %v2473_v7 = vrot.slane %v2354_v56, 4  ;;  %v2485_v29 = vmul.f32 %v13154_v34, %v2354_v56  ;;  %v10546_v50 = vpop.f32.mrb[26].mxu1  ;;  %v2520_v11 = vmul.f32 %v13163_v26, %v2507_v44  ;;  %v2492_v0 = vmul.f32 %v13156_v16, %v2354_v56  ;;  %v13165_v16 = vld [vmem:[%s16219_s11 + $0x6e0] sm:$0xff] }
 0xf72   :  { %v2369_v62 = vadd.f32 %v10546_v50, %v2286_v63  ;;  %v2363_v42 = vpop.f32.mrb[27].mxu1  ;;  %v2521_v27 = vmul.f32 %v13164_v51, %v2509_v12  ;;  %v14270_v61 = vpack.c.bf16 %v2526_v35, %v2525_v49  ;;  %v2527_v56 = vmul.f32 %v13165_v16, %v2507_v44 }
 0xf73   :  { %v2475_v32 = vsel %vm1259_vm10, %v2473_v7, %v2474_v40  ;;  %v11900_v10 = vpack.c.bf16 %v2486_v30, %v2485_v29  ;;  %v2364_v34 = vadd.f32 %v2363_v42, %v2286_v63  ;;  %v14273_v53 = vpack.c.bf16 %v2520_v11, %v2519_v25 }
 0xf74   :  { %v2478_v60 = vrot.slane %v2369_v62, 4  ;;  %v2484_v39 = vsel %vm1259_vm10, %v2369_v62, %v2473_v7  ;;  %v2496_v2 = vmul.f32 %v13161_v4, %v2475_v32  ;;  %v2489_v63 = vmul.f32 %v13162_v15, %v2475_v32  ;;  %v13166_v4 = vld [vmem:[%s16219_s11 + $0x6e8] sm:$0xff] }
 0xf75   :  { %v2488_v50 = vmul.f32 %v13159_v3, %v2484_v39  ;;  %v2495_v38 = vmul.f32 %v13160_v46, %v2484_v39  ;;  %v2476_v36 = vrot.slane %v2364_v34, 4  ;;  %v2487_v49 = vmul.f32 %v13157_v17, %v2364_v34  ;;  %11902 = vmatprep.subr.msk.bf16.mxu1 %vm13778_vm11, %v11900_v10  ;;  %v13170_v39 = vld [vmem:[%s16210_s2 + $0x10] sm:$0xff] }
 0xf76   :  { %v2494_v35 = vmul.f32 %v13158_v6, %v2364_v34  ;;  %11905 = vmatpush3.bf16.xpose.msk.msra.mxu1 %vm13778_vm11, %v11900_v10  ;;  %v14283_v30 = vpack.c.bf16 %v2522_v13, %v2521_v27  ;;  %v2528_v25 = vmul.f32 %v13166_v4, %v2509_v12  ;;  %v2278_v12 = vmul.f32 0.35355338, %v14222_v31  ;;  %v13169_v10 = vld [vmem:[%s16210_s2 + $0x18] sm:$0xf] }
 0xf77   :  { %v2477_v3 = vsel %vm1259_vm10, %v2474_v40, %v2476_v36  ;;  %v2479_v46 = vsel %vm1259_vm10, %v2476_v36, %v2478_v60  ;;  %v11906_v17 = vpack.c.bf16 %v2488_v50, %v2487_v49  ;;  %v11930_v44 = vpack.c.bf16 %v2496_v2, %v2495_v38 }
 0xf78   :  { %v11924_v7 = vpack.c.bf16 %v2494_v35, %v2493_v41  ;;  %v2490_v29 = vmul.f32 %v13163_v26, %v2477_v3  ;;  %v2491_v6 = vmul.f32 %v13164_v51, %v2479_v46  ;;  %v2497_v11 = vmul.f32 %v13165_v16, %v2477_v3  ;;  %v13167_v41 = vld [vmem:[%s16210_s2 + $0x8] sm:$0xff] }
 0xf79   :  { %11908 = vmatprep.subr.msk.bf16.mxu1 %vm13778_vm11, %v11906_v17  ;;  %v2498_v13 = vmul.f32 %v13166_v4, %v2479_v46  ;;  %v14292_v15 = vpack.c.bf16 %v2528_v25, %v2527_v56  ;;  %v2276_v38 = vmul.f32 0.35355338, %v14214_v52  ;;  %v2277_v36 = vmul.f32 0.35355338, %v14226_v48  ;;  %v13168_v52 = vld [vmem:[%s16210_s2] sm:$0xff] }
 0xf7a   :  { %v11912_v62 = vpack.c.bf16 %v2490_v29, %v2489_v63  ;;  %v11918_v42 = vpack.c.bf16 %v2492_v0, %v2491_v6 }
 0xf7b   :  { %v11936_v27 = vpack.c.bf16 %v2498_v13, %v2497_v11 }
 0xf7e   :  { %11911 = vmatpush3.bf16.xpose.msk.msra.mxu1 %vm13778_vm11, %v11906_v17 }
 0xf7f   :  { %11914 = vmatprep.subr.msk.bf16.mxu1 %vm13778_vm11, %v11912_v62 }
 0xf86   :  { %11917 = vmatpush3.bf16.xpose.msk.msra.mxu1 %vm13778_vm11, %v11912_v62 }
 0xf87   :  { %11920 = vmatprep.subr.msk.bf16.mxu1 %vm13778_vm11, %v11918_v42 }
 0xf8e   :  { %11923 = vmatpush3.bf16.xpose.msk.msra.mxu1 %vm13778_vm11, %v11918_v42 }
 0xf8f   :  { %11926 = vmatprep.subr.msk.bf16.mxu1 %vm13778_vm11, %v11924_v7 }
 0xf96   :  { %11929 = vmatpush3.bf16.xpose.msk.msra.mxu1 %vm13778_vm11, %v11924_v7 }
 0xf97   :  { %11932 = vmatprep.subr.msk.bf16.mxu1 %vm13778_vm11, %v11930_v44 }
 0xf9e   :  { %11935 = vmatpush3.bf16.xpose.msk.msra.mxu1 %vm13778_vm11, %v11930_v44 }
 0xf9f   :  { %11938 = vmatprep.subr.msk.bf16.mxu1 %vm13778_vm11, %v11936_v27 }
 0xfa6   :  { %11941 = vmatpush3.bf16.xpose.msk.msra.mxu1 %vm13778_vm11, %v11936_v27 }
 0xfad   :  { %10590 = vmatmul.mubr.msk.f32.vlgmr.msra.gmra.mrb[28].mxu1 %vm319_vm5, %v2276_v38 }
 0xfae   :  { %10592 = vmatprep.mubr.msk.f32.mxu1 %vm319_vm5, %v2277_v36 }
 0xfb1   :  { %10593 = vmatmul.mubr.msk.f32.gmra.mrb[30].mxu1 %vm319_vm5, %v2278_v12 }
0x1080   :  { %v10591_v40 = vpop.f32.mrb[28].mxu1 }
0x1081   :  { %v2655_v26 = vadd.f32 %v13167_v41, %v10591_v40  ;;  %v2649_v0 = vpop.f32.mrb[29].mxu1 }
0x1082   :  { %v2650_v48 = vadd.f32 %v13168_v52, %v2649_v0 }
0x1083   :  { %v2671_v51 = vsel %vm1455_vm12, %v2655_v26, -inf }
0x1084   :  { %2672 = vmax.xlane.f32.xlu1 %v2671_v51  ;;  %v10594_v32 = vpop.f32.mrb[30].mxu1  ;;  %v2668_v31 = vsel %vm1455_vm12, %v2650_v48, -inf }
0x1085   :  { %v2665_v34 = vadd.f32 %v13169_v10, %v10594_v32  ;;  %2669 = vmax.xlane.f32.xlu0 %v2668_v31  ;;  %v2659_v60 = vpop.f32.mrb[31].mxu1 }
0x1086   :  { %v2660_v2 = vadd.f32 %v13170_v39, %v2659_v60 }
0x1087   :  { %v2677_v16 = vsel %vm1465_vm13, %v2665_v34, -inf }
0x1088   :  { %2678 = vmax.xlane.f32.xlu1 %v2677_v16  ;;  %v2674_v56 = vsel %vm1455_vm12, %v2660_v2, -inf  ;;  %v2889_v16 = vrot.slane %v14079_v9, %v13700_v54 }
0x1089   :  { %2675 = vmax.xlane.f32.xlu0 %v2674_v56 }
0x1111   :  { %v2673_v50 = vpop.xlane.xlu1 %2672 }
0x1112   :  { %v2681_v49 = vsub.f32 %v2655_v26, %v2673_v50  ;;  %v2670_v35 = vpop.xlane.xlu0 %2669 }
0x1113   :  { %v2680_v63 = vsub.f32 %v2650_v48, %v2670_v35 }
0x1114   :  { %v2686_v4 = vmul.f32 1.442695, %v2681_v49 }
0x1115   :  { %v2684_v25 = vmul.f32 1.442695, %v2680_v63  ;;  %v2679_v3 = vpop.xlane.xlu1 %2678 }
0x1116   :  { %v2683_v46 = vsub.f32 %v2665_v34, %v2679_v3  ;;  %v2676_v17 = vpop.xlane.xlu0 %2675 }
0x1117   :  { %12971 = vpow2.f32 %v2684_v25  ;;  %v2682_v44 = vsub.f32 %v2660_v2, %v2676_v17 }
0x1118   :  { %12973 = vpow2.f32 %v2686_v4  ;;  %v2690_v7 = vmul.f32 1.442695, %v2683_v46 }
0x1119   :  { %v2688_v29 = vmul.f32 1.442695, %v2682_v44 }
0x111b   :  { %12975 = vpow2.f32 %v2688_v29 }
0x111c   :  { %12977 = vpow2.f32 %v2690_v7 }
0x1121   :  { %v12972_v6 = vpop.eup %12971 }
0x1122   :  { %v12974_v11 = vpop.eup %12973  ;;  %10623 = vmatprep.mubr.msk.f32.mxu0 %vm1455_vm12, %v12972_v6 }
0x1123   :  { %10624 = vmatmul.mubr.msk.f32.vlgmr.msra.gmra.mrb[36].mxu0 %vm1455_vm12, %v12974_v11 }
0x1124   :  { %11973 = vmatpush3.bf16.msra.mxu0 %v14229_v58  ;;  %v2465_v58 = vld [vmem:[%s16219_s11 + $0x180] sm:$0xff] }
0x1125   :  { %v12976_v13 = vpop.eup %12975  ;;  %11975 = vmatprep.subr.bf16.mxu0 %v14259_v57 }
0x1126   :  { %v12978_v62 = vpop.eup %12977  ;;  %10626 = vmatprep.mubr.msk.f32.mxu0 %vm1455_vm12, %v12976_v13 }
0x1127   :  { %10627 = vmatmul.mubr.msk.f32.gmra.mrb[38].mxu0 %vm1455_vm12, %v12978_v62 }
0x1128   :  { %11977 = vmatpush3.bf16.msra.mxu0 %v14259_v57  ;;  %10657 = vmatprep.mubr.msk.f32.mxu0 %vm1455_vm12, %v12972_v6 }
0x1129   :  { %11979 = vmatprep.subr.bf16.mxu0 %v14273_v53 }
0x112c   :  { %11981 = vmatpush3.bf16.msra.mxu0 %v14273_v53  ;;  %v2468_v53 = vld [vmem:[%s16219_s11 + $0x198] sm:$0xff] }
0x112d   :  { %11983 = vmatprep.subr.bf16.mxu0 %v14283_v30 }
0x1130   :  { %11985 = vmatpush3.bf16.msra.mxu0 %v14283_v30 }
0x1131   :  { %11987 = vmatprep.subr.bf16.mxu0 %v14257_v28 }
0x1134   :  { %11989 = vmatpush3.bf16.msra.mxu0 %v14257_v28  ;;  %v2466_v28 = vld [vmem:[%s16219_s11 + $0x188] sm:$0xff] }
0x1135   :  { %11991 = vmatprep.subr.bf16.mxu0 %v14270_v61  ;;  %v11998_v57 = vpack.c.bf16 %v2466_v28, %v2465_v58 }
0x1137   :  { %11999 = vmatprep.subr.bf16.mxu1 %v11998_v57 }
0x1138   :  { %11993 = vmatpush3.bf16.msra.mxu0 %v14270_v61  ;;  %12001 = vmatpush3.bf16.msra.mxu1 %v11998_v57  ;;  %v2467_v61 = vld [vmem:[%s16219_s11 + $0x190] sm:$0xff] }
0x1139   :  { %11995 = vmatprep.subr.bf16.mxu0 %v14292_v15  ;;  %v12002_v30 = vpack.c.bf16 %v2468_v53, %v2467_v61 }
0x113b   :  { %12003 = vmatprep.subr.bf16.mxu1 %v12002_v30 }
0x113c   :  { %11997 = vmatpush3.bf16.msra.mxu0 %v14292_v15  ;;  %12005 = vmatpush3.bf16.msra.mxu1 %v12002_v30 }
0x113f   :  { %10658 = vmatmul.mubr.msk.f32.vlgmr.msra.gmra.mrb[40].mxu0 %vm1455_vm12, %v12974_v11 }
0x1140   :  { %10660 = vmatprep.mubr.msk.f32.mxu0 %vm1455_vm12, %v12976_v13 }
0x1143   :  { %10661 = vmatmul.mubr.msk.f32.gmra.mrb[42].mxu0 %vm1455_vm12, %v12978_v62 }
0x11f6   :  { %v10625_v15 = vpop.f32.mrb[36].mxu0 }
0x11f7   :  { %v2770_v42 = vpop.f32.mrb[37].mxu0  ;;  %v2875_v36 = vmax.f32 %v10625_v15, 1e-20 }
0x11f8   :  { %v2874_v12 = vmax.f32 %v2770_v42, 1e-20 }
0x11f9   :  { %12979 = vrcp.f32 %v2875_v36 }
0x11fa   :  { %v10628_v27 = vpop.f32.mrb[38].mxu0  ;;  %12981 = vrcp.f32 %v2874_v12 }
0x11fb   :  { %v2780_v38 = vpop.f32.mrb[39].mxu0  ;;  %v2877_v40 = vmax.f32 %v10628_v27, 1e-20 }
0x11fc   :  { %v2876_v41 = vmax.f32 %v2780_v38, 1e-20 }
0x11fd   :  { %12983 = vrcp.f32 %v2877_v40 }
0x11fe   :  { %12985 = vrcp.f32 %v2876_v41 }
0x1203   :  { %v12980_v26 = vpop.eup %12979 }
0x1204   :  { %v12982_v52 = vpop.eup %12981 }
0x1207   :  { %v12984_v31 = vpop.eup %12983 }
0x1208   :  { %v12986_v34 = vpop.eup %12985 }
0x1212   :  { %v10659_v0 = vpop.f32.mrb[40].mxu0 }
0x1213   :  { %v2883_v48 = vmul.f32 %v12980_v26, %v10659_v0  ;;  %v2855_v51 = vpop.f32.mrb[41].mxu0  ;;  %v3059_v0 = vld [vmem:[%s16220_s12 + $0x20] sm:$0xff] }
0x1214   :  { %v2882_v32 = vmul.f32 %v12982_v52, %v2855_v51  ;;  %v3060_v52 = vld [vmem:[%s16220_s12 + $0x28] sm:$0xff] }
0x1215   :  { %v12006_v51 = vpack.c.bf16 %v3060_v52, %v3059_v0 }
0x1216   :  { %v10662_v10 = vpop.f32.mrb[42].mxu0  ;;  %10671 = vmatprep.mubr.msk.f32.mxu1 %vm319_vm5, %v2882_v32  ;;  %v3062_v32 = vld [vmem:[%s16220_s12 + $0x38] sm:$0xff] }
0x1217   :  { %v2885_v60 = vmul.f32 %v12984_v31, %v10662_v10  ;;  %v2865_v39 = vpop.f32.mrb[43].mxu0  ;;  %10672 = vmatmul.mubr.msk.f32.vlgmr.msra.gmra.mrb[32].mxu1 %vm319_vm5, %v2883_v48  ;;  %v3061_v48 = vld [vmem:[%s16220_s12 + $0x30] sm:$0xff]  ;;  %12007 = vmatprep.subr.bf16.mxu0 %v12006_v51 }
0x1218   :  { %v2884_v2 = vmul.f32 %v12986_v34, %v2865_v39  ;;  %v12010_v31 = vpack.c.bf16 %v3062_v32, %v3061_v48  ;;  %12009 = vmatpush3.bf16.msra.mxu0 %v12006_v51 }
0x121a   :  { %10674 = vmatprep.mubr.msk.f32.mxu1 %vm319_vm5, %v2884_v2  ;;  %12011 = vmatprep.subr.bf16.mxu0 %v12010_v31 }
0x121b   :  { %10675 = vmatmul.mubr.msk.f32.gmra.mrb[34].mxu1 %vm319_vm5, %v2885_v60 }
0x121c   :  { %12013 = vmatpush3.bf16.msra.mxu0 %v12010_v31 }
0x12ea   :  { %v10673_v56 = vpop.f32.mrb[32].mxu1 }
0x12eb   :  { %v2974_v50 = vadd.f32 %v10673_v56, %v2889_v16  ;;  %v2968_v49 = vpop.f32.mrb[33].mxu1 }
0x12ec   :  { %v2969_v35 = vadd.f32 %v2968_v49, %v2889_v16 }
0x12ed   :  { %v2988_v63 = vadd.f32 %v2974_v50, %v14167_v43 }
0x12ee   :  { %v10676_v4 = vpop.f32.mrb[34].mxu1  ;;  %v2987_v25 = vadd.f32 %v2969_v35, %v14164_v8 }
0x12ef   :  { %v2984_v3 = vadd.f32 %v10676_v4, %v2889_v16  ;;  %v2978_v46 = vpop.f32.mrb[35].mxu1  ;;  %v2994_v17 = vsel %vm319_vm5, %v2988_v63, 0.0 }
0x12f0   :  { %v2979_v44 = vadd.f32 %v2978_v46, %v2889_v16  ;;  %2995 = vadd.xlane.f32.xlu1 %v2994_v17  ;;  %v2991_v7 = vsel %vm319_vm5, %v2987_v25, 0.0 }
0x12f1   :  { %2992 = vadd.xlane.f32.xlu0 %v2991_v7  ;;  %v2990_v29 = vadd.f32 %v2984_v3, %v14180_v23  ;;  %v3054_v7 = vrot.slane %v14079_v9, %v14149_v24 }
0x12f2   :  { %v2989_v6 = vadd.f32 %v2979_v44, %v14177_v5 }
0x12f3   :  { %v3000_v11 = vsel %vm668_vm9, %v2990_v29, 0.0 }
0x12f4   :  { %3001 = vadd.xlane.f32.xlu1 %v3000_v11  ;;  %v2997_v43 = vsel %vm319_vm5, %v2989_v6, 0.0 }
0x12f5   :  { %2998 = vadd.xlane.f32.xlu0 %v2997_v43 }
0x137d   :  { %v2996_v8 = vpop.xlane.xlu1 %2995 }
0x137e   :  { %v3004_v13 = vmul.f32 0.03125, %v2996_v8  ;;  %v2993_v62 = vpop.xlane.xlu0 %2992 }
0x137f   :  { %v3003_v58 = vmul.f32 0.03125, %v2993_v62 }
0x1380   :  { %v3008_v28 = vsub.f32 %v2988_v63, %v3004_v13 }
0x1381   :  { %v3007_v57 = vsub.f32 %v2987_v25, %v3003_v58  ;;  %v3002_v61 = vpop.xlane.xlu1 %3001  ;;  %v3046_v25 = vrot.slane %v14079_v9, %v13703_v59 }
0x1382   :  { %v3006_v53 = vmul.f32 0.03125, %v3002_v61  ;;  %v2999_v30 = vpop.xlane.xlu0 %2998  ;;  %v3012_v15 = vmul.f32 %v3008_v28, %v3008_v28 }
0x1383   :  { %v3005_v42 = vmul.f32 0.03125, %v2999_v30  ;;  %v3011_v23 = vmul.f32 %v3007_v57, %v3007_v57  ;;  %v3201_v30 = vld [vmem:[%s16219_s11 + $0x1a8] sm:$0xff] }
0x1384   :  { %v3010_v27 = vsub.f32 %v2990_v29, %v3006_v53  ;;  %v3018_v5 = vsel %vm319_vm5, %v3012_v15, 0.0 }
0x1385   :  { %v3009_v38 = vsub.f32 %v2989_v6, %v3005_v42  ;;  %3019 = vadd.xlane.f32.xlu1 %v3018_v5  ;;  %v3015_v36 = vsel %vm319_vm5, %v3011_v23, 0.0  ;;  %v3202_v42 = vld [vmem:[%s16219_s11 + $0x1b0] sm:$0xff]  ;;  %v3203_v23 = vld [vmem:[%s16219_s11 + $0x1b8] sm:$0xff]  ;;  %v3204_v5 = vld [vmem:[%s16219_s11 + $0x1c0] sm:$0xff] }
0x1386   :  { %3016 = vadd.xlane.f32.xlu0 %v3015_v36  ;;  %v3014_v12 = vmul.f32 %v3010_v27, %v3010_v27 }
0x1387   :  { %v3013_v40 = vmul.f32 %v3009_v38, %v3009_v38 }
0x1388   :  { %v3024_v41 = vsel %vm668_vm9, %v3014_v12, 0.0  ;;  %v3206_v12 = vld [vmem:[%s16219_s11 + $0x1d0] sm:$0xff] }
0x1389   :  { %3025 = vadd.xlane.f32.xlu1 %v3024_v41  ;;  %v3021_v26 = vsel %vm319_vm5, %v3013_v40, 0.0  ;;  %v3207_v40 = vld [vmem:[%s16219_s11 + $0x1d8] sm:$0xff] }
0x138a   :  { %3022 = vadd.xlane.f32.xlu0 %v3021_v26  ;;  %v12026_v41 = vpack.c.bf16 %v3207_v40, %v3206_v12  ;;  %v14448_v26 = vld [vmem:[%s16218_s10 + $0x18] sm:$0xff] }
0x138b   :  { %v3066_v0 = vrot.slane %v14448_v26, %v13634_v22 }
0x1412   :  { %v3020_v10 = vpop.xlane.xlu1 %3019 }
0x1413   :  { %v3028_v34 = vmul.f32 0.03125, %v3020_v10  ;;  %v3017_v60 = vpop.xlane.xlu0 %3016 }
0x1414   :  { %v3027_v39 = vmul.f32 0.03125, %v3017_v60 }
0x1415   :  { %v3032_v2 = vadd.f32 1e-05, %v3028_v34 }
0x1416   :  { %v3031_v16 = vadd.f32 1e-05, %v3027_v39  ;;  %v3026_v56 = vpop.xlane.xlu1 %3025 }
0x1417   :  { %12987 = vrsqrt.f32 %v3032_v2  ;;  %v3030_v50 = vmul.f32 0.03125, %v3026_v56  ;;  %v3023_v49 = vpop.xlane.xlu0 %3022 }
0x1418   :  { %12989 = vrsqrt.f32 %v3031_v16  ;;  %v3029_v35 = vmul.f32 0.03125, %v3023_v49 }
0x1419   :  { %v3034_v63 = vadd.f32 1e-05, %v3030_v50 }
0x141a   :  { %v3033_v4 = vadd.f32 1e-05, %v3029_v35 }
0x141b   :  { %12991 = vrsqrt.f32 %v3034_v63 }
0x141c   :  { %12993 = vrsqrt.f32 %v3033_v4 }
0x1421   :  { %v12988_v3 = vpop.eup %12987 }
0x1422   :  { %v12990_v46 = vpop.eup %12989  ;;  %v3040_v17 = vmul.f32 %v12988_v3, %v3008_v28 }
0x1423   :  { %v3039_v44 = vmul.f32 %v12990_v46, %v3007_v57  ;;  %v3200_v57 = vld [vmem:[%s16219_s11 + $0x1a0] sm:$0xff] }
0x1424   :  { %v3048_v29 = vmul.f32 %v3046_v25, %v3040_v17  ;;  %v12014_v15 = vpack.c.bf16 %v3201_v30, %v3200_v57 }
0x1425   :  { %v12992_v6 = vpop.eup %12991  ;;  %v3047_v11 = vmul.f32 %v3046_v25, %v3039_v44 }
0x1426   :  { %v12994_v43 = vpop.eup %12993  ;;  %v3042_v8 = vmul.f32 %v12992_v6, %v3010_v27  ;;  %v14407_v58 = vadd.f32 %v3054_v7, %v3048_v29  ;;  %12015 = vmatprep.subr.bf16.mxu1 %v12014_v15  ;;  %v12018_v27 = vpack.c.bf16 %v3203_v23, %v3202_v42 }
0x1427   :  { %v14405_v13 = vadd.f32 %v3054_v7, %v3047_v11  ;;  %v3041_v62 = vmul.f32 %v12994_v43, %v3009_v38  ;;  %12017 = vmatpush3.bf16.msra.mxu1 %v12014_v15  ;;  %v3205_v38 = vld [vmem:[%s16219_s11 + $0x1c8] sm:$0xff] }
0x1428   :  { %v3050_v61 = vmul.f32 %v3046_v25, %v3042_v8  ;;  %12019 = vmatprep.subr.bf16.mxu1 %v12018_v27  ;;  %v12022_v36 = vpack.c.bf16 %v3205_v38, %v3204_v5 }
0x1429   :  { %10685 = vmatprep.mubr.msk.f32.mxu0 %vm319_vm5, %v14405_v13  ;;  %v3049_v53 = vmul.f32 %v3046_v25, %v3041_v62 }
0x142a   :  { %10686 = vmatmul.mubr.msk.f32.vlgmr.msra.gmra.mrb[44].mxu0 %vm319_vm5, %v14407_v58  ;;  %v14415_v9 = vadd.f32 %v3054_v7, %v3050_v61 }
0x142b   :  { %v14413_v28 = vadd.f32 %v3054_v7, %v3049_v53  ;;  %12021 = vmatpush3.bf16.msra.mxu1 %v12018_v27 }
0x142c   :  { %12023 = vmatprep.subr.bf16.mxu1 %v12022_v36 }
0x142d   :  { %10688 = vmatprep.mubr.msk.f32.mxu0 %vm319_vm5, %v14413_v28 }
0x142e   :  { %10689 = vmatmul.mubr.msk.f32.gmra.mrb[46].mxu0 %vm319_vm5, %v14415_v9 }
0x142f   :  { %12025 = vmatpush3.bf16.msra.mxu1 %v12022_v36 }
0x1430   :  { %12027 = vmatprep.subr.bf16.mxu1 %v12026_v41 }
0x1433   :  { %12029 = vmatpush3.bf16.msra.mxu1 %v12026_v41 }
0x14fd   :  { %v10687_v52 = vpop.f32.mrb[44].mxu0 }
0x14fe   :  { %v3151_v48 = vadd.f32 %v10687_v52, %v3066_v0  ;;  %v3145_v51 = vpop.f32.mrb[45].mxu0  ;;  %v3211_v52 = vrot.slane %v14448_v26, %v13427_v45 }
0x14ff   :  { %v3146_v32 = vadd.f32 %v3145_v51, %v3066_v0 }
0x1500   :  { %v3165_v31 = vmul.f32 %v3151_v48, %v3151_v48 }
0x1501   :  { %v3164_v10 = vmul.f32 %v3146_v32, %v3146_v32  ;;  %v10690_v34 = vpop.f32.mrb[46].mxu0 }
0x1502   :  { %v3169_v60 = vmul.f32 %v3165_v31, %v3151_v48  ;;  %v3161_v39 = vadd.f32 %v10690_v34, %v3066_v0  ;;  %v3155_v2 = vpop.f32.mrb[47].mxu0 }
0x1503   :  { %v3168_v16 = vmul.f32 %v3164_v10, %v3146_v32  ;;  %v3156_v56 = vadd.f32 %v3155_v2, %v3066_v0 }
0x1504   :  { %v3173_v50 = vmul.f32 0.044715, %v3169_v60  ;;  %v3167_v49 = vmul.f32 %v3161_v39, %v3161_v39 }
0x1505   :  { %v3172_v35 = vmul.f32 0.044715, %v3168_v16  ;;  %v3166_v63 = vmul.f32 %v3156_v56, %v3156_v56 }
0x1506   :  { %v3177_v4 = vadd.f32 %v3173_v50, %v3151_v48  ;;  %v3171_v25 = vmul.f32 %v3167_v49, %v3161_v39 }
0x1507   :  { %v3176_v3 = vadd.f32 %v3172_v35, %v3146_v32  ;;  %v3170_v46 = vmul.f32 %v3166_v63, %v3156_v56 }
0x1508   :  { %v3181_v17 = vmul.f32 0.7978846, %v3177_v4  ;;  %v3175_v44 = vmul.f32 0.044715, %v3171_v25 }
0x1509   :  { %v3180_v7 = vmul.f32 0.7978846, %v3176_v3  ;;  %v3174_v29 = vmul.f32 0.044715, %v3170_v46 }
0x150a   :  { %12995 = vtanh.f32 %v3181_v17  ;;  %v3179_v6 = vadd.f32 %v3175_v44, %v3161_v39 }
0x150b   :  { %12997 = vtanh.f32 %v3180_v7  ;;  %v3178_v11 = vadd.f32 %v3174_v29, %v3156_v56 }
0x150c   :  { %v3183_v43 = vmul.f32 0.7978846, %v3179_v6 }
0x150d   :  { %v3182_v8 = vmul.f32 0.7978846, %v3178_v11 }
0x150e   :  { %12999 = vtanh.f32 %v3183_v43 }
0x150f   :  { %13001 = vtanh.f32 %v3182_v8 }
0x1514   :  { %v12996_v62 = vpop.eup %12995 }
0x1515   :  { %v12998_v61 = vpop.eup %12997  ;;  %v3189_v53 = vadd.f32 1.0, %v12996_v62 }
0x1516   :  { %v3188_v57 = vadd.f32 1.0, %v12998_v61 }
0x1517   :  { %v3193_v30 = vmul.f32 0.5, %v3189_v53 }
0x1518   :  { %v13000_v15 = vpop.eup %12999  ;;  %v3192_v42 = vmul.f32 0.5, %v3188_v57 }
0x1519   :  { %v13002_v23 = vpop.eup %13001  ;;  %v3191_v27 = vadd.f32 1.0, %v13000_v15  ;;  %v3197_v36 = vmul.f32 %v3193_v30, %v3151_v48  ;;  %v3381_v15 = vld [vmem:[%s16219_s11 + $0x1e0] sm:$0xff] }
0x151a   :  { %v3196_v5 = vmul.f32 %v3192_v42, %v3146_v32  ;;  %v3190_v38 = vadd.f32 1.0, %v13002_v23  ;;  %v3382_v42 = vld [vmem:[%s16219_s11 + $0x1e8] sm:$0xff]  ;;  %v3383_v23 = vld [vmem:[%s16219_s11 + $0x1f0] sm:$0xff] }
0x151b   :  { %v3195_v12 = vmul.f32 0.5, %v3191_v27  ;;  %v12030_v27 = vpack.c.bf16 %v3382_v42, %v3381_v15 }
0x151c   :  { %10707 = vmatprep.mubr.msk.f32.mxu1 %vm527_vm7, %v3196_v5  ;;  %v3194_v40 = vmul.f32 0.5, %v3190_v38  ;;  %v3384_v5 = vld [vmem:[%s16219_s11 + $0x1f8] sm:$0xff] }
0x151d   :  { %10708 = vmatmul.mubr.msk.f32.vlgmr.msra.gmra.mrb[36].mxu1 %vm527_vm7, %v3197_v36  ;;  %v3199_v0 = vmul.f32 %v3195_v12, %v3161_v39  ;;  %v12034_v38 = vpack.c.bf16 %v3384_v5, %v3383_v23  ;;  %12031 = vmatprep.subr.bf16.mxu0 %v12030_v27 }
0x151e   :  { %v3198_v41 = vmul.f32 %v3194_v40, %v3156_v56  ;;  %12033 = vmatpush3.bf16.msra.mxu0 %v12030_v27 }
0x151f   :  { %12035 = vmatprep.subr.bf16.mxu0 %v12034_v38 }
0x1520   :  { %10710 = vmatprep.mubr.msk.f32.mxu1 %vm527_vm7, %v3198_v41 }
0x1521   :  { %10711 = vmatmul.mubr.msk.f32.gmra.mrb[38].mxu1 %vm527_vm7, %v3199_v0 }
0x1522   :  { %12037 = vmatpush3.bf16.msra.mxu0 %v12034_v38 }
0x15f0   :  { %v10709_v51 = vpop.f32.mrb[36].mxu1 }
0x15f1   :  { %v3296_v31 = vadd.f32 %v10709_v51, %v3211_v52  ;;  %v3290_v32 = vpop.f32.mrb[37].mxu1 }
0x15f2   :  { %v3291_v10 = vadd.f32 %v3290_v32, %v3211_v52 }
0x15f3   :  { %v3310_v48 = vadd.f32 %v3296_v31, %v14407_v58 }
0x15f4   :  { %v10712_v34 = vpop.f32.mrb[38].mxu1  ;;  %v3309_v60 = vadd.f32 %v3291_v10, %v14405_v13 }
0x15f5   :  { %v3306_v2 = vadd.f32 %v10712_v34, %v3211_v52  ;;  %v3300_v16 = vpop.f32.mrb[39].mxu1  ;;  %v3316_v39 = vsel %vm319_vm5, %v3310_v48, 0.0 }
0x15f6   :  { %v3301_v56 = vadd.f32 %v3300_v16, %v3211_v52  ;;  %3317 = vadd.xlane.f32.xlu1 %v3316_v39  ;;  %v3313_v50 = vsel %vm319_vm5, %v3309_v60, 0.0 }
0x15f7   :  { %3314 = vadd.xlane.f32.xlu0 %v3313_v50  ;;  %v3312_v49 = vadd.f32 %v3306_v2, %v14415_v9  ;;  %v3376_v50 = vrot.slane %v14448_v26, %v13631_v18 }
0x15f8   :  { %v3311_v35 = vadd.f32 %v3301_v56, %v14413_v28 }
0x15f9   :  { %v3322_v63 = vsel %vm668_vm9, %v3312_v49, 0.0 }
0x15fa   :  { %3323 = vadd.xlane.f32.xlu1 %v3322_v63  ;;  %v3319_v58 = vsel %vm319_vm5, %v3311_v35, 0.0 }
0x15fb   :  { %3320 = vadd.xlane.f32.xlu0 %v3319_v58 }
0x1683   :  { %v3318_v13 = vpop.xlane.xlu1 %3317 }
0x1684   :  { %v3326_v4 = vmul.f32 0.03125, %v3318_v13  ;;  %v3315_v25 = vpop.xlane.xlu0 %3314 }
0x1685   :  { %v3325_v3 = vmul.f32 0.03125, %v3315_v25 }
0x1686   :  { %v3330_v46 = vsub.f32 %v3310_v48, %v3326_v4 }
0x1687   :  { %v3329_v17 = vsub.f32 %v3309_v60, %v3325_v3  ;;  %v3324_v44 = vpop.xlane.xlu1 %3323  ;;  %v3368_v60 = vrot.slane %v14448_v26, %v13435_v47 }
0x1688   :  { %v3328_v7 = vmul.f32 0.03125, %v3324_v44  ;;  %v3321_v29 = vpop.xlane.xlu0 %3320  ;;  %v3334_v6 = vmul.f32 %v3330_v46, %v3330_v46 }
0x1689   :  { %v3327_v11 = vmul.f32 0.03125, %v3321_v29  ;;  %v3333_v9 = vmul.f32 %v3329_v17, %v3329_v17 }
0x168a   :  { %v3332_v43 = vsub.f32 %v3312_v49, %v3328_v7  ;;  %v3340_v28 = vsel %vm319_vm5, %v3334_v6, 0.0 }
0x168b   :  { %v3331_v8 = vsub.f32 %v3311_v35, %v3327_v11  ;;  %3341 = vadd.xlane.f32.xlu1 %v3340_v28  ;;  %v3337_v62 = vsel %vm319_vm5, %v3333_v9, 0.0 }
0x168c   :  { %3338 = vadd.xlane.f32.xlu0 %v3337_v62  ;;  %v3336_v61 = vmul.f32 %v3332_v43, %v3332_v43 }
0x168d   :  { %v3335_v53 = vmul.f32 %v3331_v8, %v3331_v8 }
0x168e   :  { %v3346_v57 = vsel %vm668_vm9, %v3336_v61, 0.0 }
0x168f   :  { %3347 = vadd.xlane.f32.xlu1 %v3346_v57  ;;  %v3343_v30 = vsel %vm319_vm5, %v3335_v53, 0.0 }
0x1690   :  { %3344 = vadd.xlane.f32.xlu0 %v3343_v30 }
0x1718   :  { %v3342_v36 = vpop.xlane.xlu1 %3341 }
0x1719   :  { %v3350_v12 = vmul.f32 0.03125, %v3342_v36  ;;  %v3339_v40 = vpop.xlane.xlu0 %3338  ;;  %v3631_v36 = vld [vmem:[%s16219_s11 + $0x220] sm:$0xff] }
0x171a   :  { %v3349_v41 = vmul.f32 0.03125, %v3339_v40  ;;  %v3530_v40 = vld [vmem:[%s16219_s11 + $0x200] sm:$0xff] }
0x171b   :  { %v3354_v0 = vadd.f32 1e-05, %v3350_v12  ;;  %v3632_v12 = vld [vmem:[%s16219_s11 + $0x228] sm:$0xff] }
0x171c   :  { %v3353_v52 = vadd.f32 1e-05, %v3349_v41  ;;  %v3348_v51 = vpop.xlane.xlu1 %3347  ;;  %v12046_v41 = vpack.c.bf16 %v3632_v12, %v3631_v36 }
0x171d   :  { %13003 = vrsqrt.f32 %v3354_v0  ;;  %v3352_v31 = vmul.f32 0.03125, %v3348_v51  ;;  %v3345_v32 = vpop.xlane.xlu0 %3344  ;;  %v3531_v0 = vld [vmem:[%s16219_s11 + $0x208] sm:$0xff]  ;;  %v3634_v51 = vld [vmem:[%s16219_s11 + $0x238] sm:$0xff] }
0x171e   :  { %13005 = vrsqrt.f32 %v3353_v52  ;;  %v3351_v10 = vmul.f32 0.03125, %v3345_v32  ;;  %v3633_v52 = vld [vmem:[%s16219_s11 + $0x230] sm:$0xff]  ;;  %12047 = vmatprep.subr.bf16.mxu1 %v12046_v41 }
0x171f   :  { %v3356_v48 = vadd.f32 1e-05, %v3352_v31  ;;  %v12038_v31 = vpack.c.bf16 %v3531_v0, %v3530_v40  ;;  %v12050_v32 = vpack.c.bf16 %v3634_v51, %v3633_v52  ;;  %12049 = vmatpush3.bf16.msra.mxu1 %v12046_v41  ;;  %v14587_v41 = vld [vmem:[%s16219_s11 + $0x688] sm:$0xff] }
0x1720   :  { %v3355_v34 = vadd.f32 1e-05, %v3351_v10  ;;  %v3532_v10 = vld [vmem:[%s16219_s11 + $0x210] sm:$0xff] }
0x1721   :  { %13007 = vrsqrt.f32 %v3356_v48  ;;  %v3533_v48 = vld [vmem:[%s16219_s11 + $0x218] sm:$0xff]  ;;  %12039 = vmatprep.subr.bf16.mxu0 %v12038_v31  ;;  %12051 = vmatprep.subr.bf16.mxu1 %v12050_v32 }
0x1722   :  { %13009 = vrsqrt.f32 %v3355_v34  ;;  %v12042_v34 = vpack.c.bf16 %v3533_v48, %v3532_v10 }
0x1723   :  { %12053 = vmatpush3.bf16.msra.mxu1 %v12050_v32  ;;  %v14593_v32 = vld [vmem:[%s16219_s11 + $0x680] sm:$0xff] }
0x1727   :  { %v13004_v2 = vpop.eup %13003 }
0x1728   :  { %v13006_v16 = vpop.eup %13005  ;;  %v3362_v39 = vmul.f32 %v13004_v2, %v3330_v46  ;;  %v3721_v2 = vld [vmem:[%s16219_s11 + $0x248] sm:$0xff] }
0x1729   :  { %v3361_v56 = vmul.f32 %v13006_v16, %v3329_v17  ;;  %v13171_v17 = vld [vmem:[%s16218_s10] sm:$0xff] }
0x172a   :  { %v3370_v49 = vmul.f32 %v3368_v60, %v3362_v39  ;;  %v3388_v6 = vrot.slane %v13171_v17, %v14149_v24 }
0x172b   :  { %v13008_v35 = vpop.eup %13007  ;;  %v3369_v63 = vmul.f32 %v3368_v60, %v3361_v56 }
0x172c   :  { %v13010_v58 = vpop.eup %13009  ;;  %v3364_v13 = vmul.f32 %v13008_v35, %v3332_v43  ;;  %v3378_v3 = vadd.f32 %v3376_v50, %v3370_v49 }
0x172d   :  { %v3377_v4 = vadd.f32 %v3376_v50, %v3369_v63  ;;  %v3363_v25 = vmul.f32 %v13010_v58, %v3331_v8 }
0x172e   :  { %v3372_v44 = vmul.f32 %v3368_v60, %v3364_v13 }
0x172f   :  { %10721 = vmatprep.mubr.msk.f32.mxu0 %vm319_vm5, %v3377_v4  ;;  %v3371_v7 = vmul.f32 %v3368_v60, %v3363_v25  ;;  %v3720_v60 = vld [vmem:[%s16219_s11 + $0x240] sm:$0xff] }
0x1730   :  { %10722 = vmatmul.mubr.msk.f32.vlgmr.msra.gmra.mrb[48].mxu0 %vm319_vm5, %v3378_v3  ;;  %v3380_v46 = vadd.f32 %v3376_v50, %v3372_v44  ;;  %v12054_v16 = vpack.c.bf16 %v3721_v2, %v3720_v60 }
0x1731   :  { %v3379_v29 = vadd.f32 %v3376_v50, %v3371_v7  ;;  %12041 = vmatpush3.bf16.msra.mxu0 %v12038_v31 }
0x1732   :  { %12043 = vmatprep.subr.bf16.mxu0 %v12042_v34 }
0x1733   :  { %10724 = vmatprep.mubr.msk.f32.mxu0 %vm319_vm5, %v3379_v29  ;;  %v3525_v29 = vrot.slane %v14448_v26, %v13645_v37 }
0x1734   :  { %10725 = vmatmul.mubr.msk.f32.gmra.mrb[50].mxu0 %vm319_vm5, %v3380_v46 }
0x1735   :  { %12045 = vmatpush3.bf16.msra.mxu0 %v12042_v34 }
0x1736   :  { %12055 = vmatprep.subr.bf16.mxu0 %v12054_v16 }
0x1803   :  { %v10723_v11 = vpop.f32.mrb[48].mxu0 }
0x1804   :  { %v14494_v9 = vadd.f32 %v10723_v11, %v3388_v6  ;;  %v3467_v43 = vpop.f32.mrb[49].mxu0  ;;  %v3722_v11 = vld [vmem:[%s16219_s11 + $0x250] sm:$0xff] }
0x1805   :  { %v14496_v28 = vadd.f32 %v3467_v43, %v3388_v6  ;;  %v3723_v43 = vld [vmem:[%s16219_s11 + $0x258] sm:$0xff] }
0x1806   :  { %v3491_v8 = vmul.f32 %v14494_v9, %v14494_v9 }
0x1807   :  { %v10726_v62 = vpop.f32.mrb[50].mxu0  ;;  %v3490_v61 = vmul.f32 %v14496_v28, %v14496_v28 }
0x1808   :  { %v14502_v53 = vadd.f32 %v10726_v62, %v3388_v6  ;;  %v3477_v57 = vpop.f32.mrb[51].mxu0  ;;  %v3497_v30 = vsel %vm319_vm5, %v3491_v8, 0.0 }
0x1809   :  { %v14505_v15 = vadd.f32 %v3477_v57, %v3388_v6  ;;  %3498 = vadd.xlane.f32.xlu1 %v3497_v30  ;;  %v3494_v42 = vsel %vm319_vm5, %v3490_v61, 0.0 }
0x180a   :  { %3495 = vadd.xlane.f32.xlu0 %v3494_v42  ;;  %v3493_v23 = vmul.f32 %v14502_v53, %v14502_v53  ;;  %v12058_v42 = vpack.c.bf16 %v3723_v43, %v3722_v11 }
0x180b   :  { %v3492_v27 = vmul.f32 %v14505_v15, %v14505_v15 }
0x180c   :  { %v3503_v5 = vsel %vm668_vm9, %v3493_v23, 0.0 }
0x180d   :  { %3504 = vadd.xlane.f32.xlu1 %v3503_v5  ;;  %v3500_v38 = vsel %vm319_vm5, %v3492_v27, 0.0 }
0x180e   :  { %3501 = vadd.xlane.f32.xlu0 %v3500_v38  ;;  %v16248_v38 = vld [vmem:[#allocation11_spill] sm:$0xff] }
0x1896   :  { %v3499_v39 = vpop.xlane.xlu1 %3498 }
0x1897   :  { %v3507_v56 = vmul.f32 0.03125, %v3499_v39  ;;  %v3496_v50 = vpop.xlane.xlu0 %3495 }
0x1898   :  { %v3506_v49 = vmul.f32 0.03125, %v3496_v50 }
0x1899   :  { %v3511_v35 = vadd.f32 1e-06, %v3507_v56  ;;  %v14604_v56 = vld [vmem:[%s16219_s11 + $0x6d8] sm:$0xff] }
0x189a   :  { %v3510_v63 = vadd.f32 1e-06, %v3506_v49  ;;  %v3505_v58 = vpop.xlane.xlu1 %3504 }
0x189b   :  { %13011 = vrsqrt.f32 %v3511_v35  ;;  %v3509_v13 = vmul.f32 0.03125, %v3505_v58  ;;  %v3502_v4 = vpop.xlane.xlu0 %3501 }
0x189c   :  { %13013 = vrsqrt.f32 %v3510_v63  ;;  %v3508_v25 = vmul.f32 0.03125, %v3502_v4  ;;  %v14612_v63 = vld [vmem:[%s16219_s11 + $0x698] sm:$0xff] }
0x189d   :  { %v3513_v3 = vadd.f32 1e-06, %v3509_v13  ;;  %v14618_v13 = vld [vmem:[%s16219_s11 + $0x6d0] sm:$0xff] }
0x189e   :  { %v3512_v44 = vadd.f32 1e-06, %v3508_v25 }
0x189f   :  { %13015 = vrsqrt.f32 %v3513_v3  ;;  %v14624_v3 = vld [vmem:[%s16219_s11 + $0x690] sm:$0xff] }
0x18a0   :  { %13017 = vrsqrt.f32 %v3512_v44 }
0x18a5   :  { %v13012_v7 = vpop.eup %13011 }
0x18a6   :  { %v13014_v46 = vpop.eup %13013  ;;  %v3519_v17 = vmul.f32 %v13012_v7, %v14494_v9  ;;  %v14632_v7 = vld [vmem:[%s16219_s11 + $0x6c0] sm:$0xff] }
0x18a7   :  { %v3518_v6 = vmul.f32 %v13014_v46, %v14496_v28  ;;  %v14638_v46 = vld [vmem:[%s16219_s11 + $0x6a0] sm:$0xff] }
0x18a8   :  { %v3527_v57 = vmul.f32 %v3525_v29, %v3519_v17 }
0x18a9   :  { %v13016_v8 = vpop.eup %13015  ;;  %v3526_v62 = vmul.f32 %v3525_v29, %v3518_v6  ;;  %v14644_v6 = vld [vmem:[%s16219_s11 + $0x6c8] sm:$0xff] }
0x18aa   :  { %v13018_v61 = vpop.eup %13017  ;;  %v3521_v30 = vmul.f32 %v13016_v8, %v14502_v53 }
0x18ab   :  { %10735 = vmatprep.mubr.msk.f32.mxu0 %vm319_vm5, %v3526_v62  ;;  %10749 = vmatprep.mubr.msk.f32.mxu1 %vm319_vm5, %v3526_v62  ;;  %v3520_v23 = vmul.f32 %v13018_v61, %v14505_v15 }
0x18ac   :  { %10736 = vmatmul.mubr.msk.f32.vlgmr.msra.gmra.mrb[52].mxu0 %vm319_vm5, %v3527_v57  ;;  %10750 = vmatmul.mubr.msk.f32.vlgmr.msra.gmra.mrb[40].mxu1 %vm319_vm5, %v3527_v57  ;;  %v3529_v5 = vmul.f32 %v3525_v29, %v3521_v30  ;;  %v14654_v30 = vld [vmem:[%s16219_s11 + $0x6a8] sm:$0xff] }
0x18ad   :  { %12057 = vmatpush3.bf16.msra.mxu0 %v12054_v16  ;;  %v3528_v27 = vmul.f32 %v3525_v29, %v3520_v23  ;;  %v14660_v23 = vld [vmem:[%s16219_s11 + $0x6b0] sm:$0xff] }
0x18ae   :  { %12059 = vmatprep.subr.bf16.mxu0 %v12058_v42 }
0x18af   :  { %10738 = vmatprep.mubr.msk.f32.mxu0 %vm319_vm5, %v3528_v27  ;;  %10752 = vmatprep.mubr.msk.f32.mxu1 %vm319_vm5, %v3528_v27 }
0x18b0   :  { %10739 = vmatmul.mubr.msk.f32.gmra.mrb[54].mxu0 %vm319_vm5, %v3529_v5  ;;  %10753 = vmatmul.mubr.msk.f32.gmra.mrb[42].mxu1 %vm319_vm5, %v3529_v5 }
0x18b1   :  { %12061 = vmatpush3.bf16.msra.mxu0 %v12058_v42  ;;  %10763 = vmatprep.mubr.msk.f32.mxu0 %vm319_vm5, %v3526_v62 }
0x18b2   :  { %12105 = vmatprep.subr.bf16.mxu0 %v13926_v1 }
0x18b4   :  { %10764 = vmatmul.mubr.msk.f32.vlgmr.msra.gmra.mrb[56].mxu0 %vm319_vm5, %v3527_v57 }
0x18b5   :  { %10766 = vmatprep.mubr.msk.f32.mxu0 %vm319_vm5, %v3528_v27  ;;  %12107 = vmatpush3.bf16.msra.mxu0 %v13926_v1 }
0x18b6   :  { %12109 = vmatprep.subr.bf16.mxu0 %v13930_v21 }
0x18b8   :  { %10767 = vmatmul.mubr.msk.f32.gmra.mrb[58].mxu0 %vm319_vm5, %v3529_v5  ;;  %v14666_v5 = vld [vmem:[%s16219_s11 + $0x6e0] sm:$0xff] }
0x18b9   :  { %12111 = vmatpush3.bf16.msra.mxu0 %v13930_v21 }
0x18ba   :  { %12113 = vmatprep.subr.bf16.mxu0 %v13937_v20 }
0x18bd   :  { %12115 = vmatpush3.bf16.msra.mxu0 %v13937_v20 }
0x18be   :  { %12117 = vmatprep.subr.bf16.mxu0 %v13960_v55 }
0x18c1   :  { %12119 = vmatpush3.bf16.msra.mxu0 %v13960_v55 }
0x18c2   :  { %12121 = vmatprep.subr.bf16.mxu0 %v13966_v14 }
0x18c5   :  { %12123 = vmatpush3.bf16.msra.mxu0 %v13966_v14 }
0x18c6   :  { %12125 = vmatprep.subr.bf16.mxu0 %v13970_v19 }
0x18c9   :  { %12127 = vmatpush3.bf16.msra.mxu0 %v13970_v19 }
0x18ca   :  { %12129 = vmatprep.subr.bf16.mxu0 %v16248_v38 }
0x18cd   :  { %12131 = vmatpush3.bf16.msra.mxu0 %v16248_v38 }
0x197f   :  { %v14582_v36 = vpop.f32.mrb[52].mxu0  ;;  %v10751_v12 = vpop.f32.mrb[40].mxu1 }
0x1980   :  { %v3818_v40 = vrot.slane %v10751_v12, 4  ;;  %v3830_v0 = vmul.f32 %v14587_v41, %v10751_v12  ;;  %v3612_v52 = vpop.f32.mrb[53].mxu0  ;;  %v3701_v51 = vpop.f32.mrb[41].mxu1  ;;  %v3837_v29 = vmul.f32 %v14632_v7, %v10751_v12 }
0x1981   :  { %v3817_v31 = vrot.slane %v3701_v51, 4  ;;  %v3829_v10 = vmul.f32 %v14593_v32, %v3701_v51  ;;  %10797 = vmatprep.mubr.msk.f32.mxu1 %vm319_vm5, %v3612_v52 }
0x1983   :  { %v12062_v48 = vpack.c.bf16 %v3830_v0, %v3829_v10  ;;  %v14597_v34 = vpop.f32.mrb[54].mxu0  ;;  %v10754_v60 = vpop.f32.mrb[42].mxu1  ;;  %v3819_v2 = vsel %vm1259_vm10, %v3817_v31, %v3818_v40 }
0x1984   :  { %v3822_v16 = vrot.slane %v10754_v60, 4  ;;  %v3828_v39 = vsel %vm1259_vm10, %v10754_v60, %v3817_v31  ;;  %v3840_v50 = vmul.f32 %v14604_v56, %v3819_v2  ;;  %v14607_v49 = vpop.f32.mrb[55].mxu0  ;;  %v3711_v35 = vpop.f32.mrb[43].mxu1  ;;  %v3833_v17 = vmul.f32 %v14638_v46, %v3819_v2  ;;  %v14678_v31 = vld [vmem:[%s16219_s11 + $0x6b8] sm:$0xff] }
0x1985   :  { %v3832_v58 = vmul.f32 %v14612_v63, %v3828_v39  ;;  %v3839_v4 = vmul.f32 %v14618_v13, %v3828_v39  ;;  %v3820_v25 = vrot.slane %v3711_v35, 4  ;;  %v3831_v44 = vmul.f32 %v14624_v3, %v3711_v35  ;;  %12064 = vmatprep.subr.msk.bf16.mxu1 %vm13778_vm11, %v12062_v48 }
0x1986   :  { %v3838_v11 = vmul.f32 %v14644_v6, %v3711_v35  ;;  %12067 = vmatpush3.bf16.xpose.msk.msra.mxu1 %vm13778_vm11, %v12062_v48  ;;  %v3836_v10 = vmul.f32 %v14678_v31, %v3701_v51 }
0x1987   :  { %v12092_v43 = vpack.c.bf16 %v3840_v50, %v3839_v4  ;;  %v3821_v8 = vsel %vm1259_vm10, %v3818_v40, %v3820_v25  ;;  %v3823_v62 = vsel %vm1259_vm10, %v3820_v25, %v3822_v16  ;;  %v12068_v61 = vpack.c.bf16 %v3832_v58, %v3831_v44  ;;  %v10765_v57 = vpop.f32.mrb[56].mxu0  ;;  %v14672_v40 = vld [vmem:[%s16219_s11 + $0x6e8] sm:$0xff] }
0x1988   :  { %v3834_v42 = vmul.f32 %v14654_v30, %v3821_v8  ;;  %v3835_v27 = vmul.f32 %v14660_v23, %v3823_v62  ;;  %v3841_v12 = vmul.f32 %v14666_v5, %v3821_v8  ;;  %v3842_v0 = vmul.f32 %v14672_v40, %v3823_v62  ;;  %v3790_v52 = vpop.f32.mrb[57].mxu0 }
0x1989   :  { %v12086_v48 = vpack.c.bf16 %v3838_v11, %v3837_v29  ;;  %v3848_v60 = vrot.slane %v10765_v57, 4  ;;  %v3860_v2 = vmul.f32 %v14587_v41, %v10765_v57  ;;  %12070 = vmatprep.subr.msk.bf16.mxu1 %vm13778_vm11, %v12068_v61  ;;  %v3847_v16 = vrot.slane %v3790_v52, 4 }
0x198a   :  { %v3859_v39 = vmul.f32 %v14593_v32, %v3790_v52  ;;  %v12074_v50 = vpack.c.bf16 %v3834_v42, %v3833_v17  ;;  %v3867_v35 = vmul.f32 %v14632_v7, %v10765_v57  ;;  %v12080_v4 = vpack.c.bf16 %v3836_v10, %v3835_v27 }
0x198b   :  { %v10768_v58 = vpop.f32.mrb[58].mxu0  ;;  %v12098_v25 = vpack.c.bf16 %v3842_v0, %v3841_v12  ;;  %v3849_v11 = vsel %vm1259_vm10, %v3847_v16, %v3848_v60  ;;  %v3866_v57 = vmul.f32 %v14678_v31, %v3790_v52 }
0x198c   :  { %v3852_v44 = vrot.slane %v10768_v58, 4  ;;  %v3858_v8 = vsel %vm1259_vm10, %v10768_v58, %v3847_v16  ;;  %v3800_v51 = vpop.f32.mrb[59].mxu0  ;;  %v14687_v29 = vpack.c.bf16 %v3860_v2, %v3859_v39  ;;  %v3870_v27 = vmul.f32 %v14604_v56, %v3849_v11 }
0x198d   :  { %v3862_v62 = vmul.f32 %v14612_v63, %v3858_v8  ;;  %v3869_v37 = vmul.f32 %v14618_v13, %v3858_v8  ;;  %v3850_v22 = vrot.slane %v3800_v51, 4  ;;  %v3861_v17 = vmul.f32 %v14624_v3, %v3800_v51 }
0x198e   :  { %v3868_v42 = vmul.f32 %v14644_v6, %v3800_v51  ;;  %12133 = vmatprep.subr.bf16.mxu0 %v14687_v29  ;;  %12073 = vmatpush3.bf16.xpose.msk.msra.mxu1 %vm13778_vm11, %v12068_v61  ;;  %v3863_v10 = vmul.f32 %v14638_v46, %v3849_v11 }
0x198f   :  { %12076 = vmatprep.subr.msk.bf16.mxu1 %vm13778_vm11, %v12074_v50  ;;  %v14701_v12 = vpack.c.bf16 %v3862_v62, %v3861_v17  ;;  %v3851_v0 = vsel %vm1259_vm10, %v3848_v60, %v3850_v22  ;;  %v3853_v52 = vsel %vm1259_vm10, %v3850_v22, %v3852_v44  ;;  %v14710_v61 = vpack.c.bf16 %v3870_v27, %v3869_v37  ;;  %v14747_v22 = vld [vmem:[%s16211_s3 + $0x8] sm:$0xff]  ;;  %v14752_v37 = vld [vmem:[%s16211_s3] sm:$0xff] }
0x1990   :  { %v3864_v2 = vmul.f32 %v14654_v30, %v3851_v0  ;;  %v3865_v16 = vmul.f32 %v14660_v23, %v3853_v52  ;;  %v14708_v39 = vpack.c.bf16 %v3868_v42, %v3867_v35  ;;  %v3871_v58 = vmul.f32 %v14666_v5, %v3851_v0  ;;  %v14765_v35 = vld [vmem:[%s16211_s3 + $0x10] sm:$0xff] }
0x1991   :  { %v3872_v8 = vmul.f32 %v14672_v40, %v3853_v52 }
0x1992   :  { %v14714_v51 = vpack.c.bf16 %v3864_v2, %v3863_v10  ;;  %v14716_v62 = vpack.c.bf16 %v3866_v57, %v3865_v16 }
0x1993   :  { %v14718_v60 = vpack.c.bf16 %v3872_v8, %v3871_v58 }
0x1996   :  { %12079 = vmatpush3.bf16.xpose.msk.msra.mxu1 %vm13778_vm11, %v12074_v50 }
0x1997   :  { %12082 = vmatprep.subr.msk.bf16.mxu1 %vm13778_vm11, %v12080_v4 }
0x199e   :  { %12085 = vmatpush3.bf16.xpose.msk.msra.mxu1 %vm13778_vm11, %v12080_v4 }
0x199f   :  { %12088 = vmatprep.subr.msk.bf16.mxu1 %vm13778_vm11, %v12086_v48 }
0x19a6   :  { %12091 = vmatpush3.bf16.xpose.msk.msra.mxu1 %vm13778_vm11, %v12086_v48 }
0x19a7   :  { %12094 = vmatprep.subr.msk.bf16.mxu1 %vm13778_vm11, %v12092_v43 }
0x19ae   :  { %12097 = vmatpush3.bf16.xpose.msk.msra.mxu1 %vm13778_vm11, %v12092_v43 }
0x19af   :  { %12100 = vmatprep.subr.msk.bf16.mxu1 %vm13778_vm11, %v12098_v25 }
0x19b6   :  { %12103 = vmatpush3.bf16.xpose.msk.msra.mxu1 %vm13778_vm11, %v12098_v25 }
0x19bd   :  { %10798 = vmatmul.mubr.msk.f32.vlgmr.msra.gmra.mrb[44].mxu1 %vm319_vm5, %v14582_v36 }
0x19be   :  { %10800 = vmatprep.mubr.msk.f32.mxu1 %vm319_vm5, %v14607_v49 }
0x19c1   :  { %10801 = vmatmul.mubr.msk.f32.gmra.mrb[46].mxu1 %vm319_vm5, %v14597_v34  ;;  %v14759_v34 = vld [vmem:[%s16211_s3 + $0x18] sm:$0xf] }
0x1a90   :  { %v10799_v43 = vpop.f32.mrb[44].mxu1 }
0x1a91   :  { %v3999_v48 = vadd.f32 %v10799_v43, %v14747_v22  ;;  %v3993_v36 = vpop.f32.mrb[45].mxu1 }
0x1a92   :  { %v3994_v50 = vadd.f32 %v3993_v36, %v14752_v37 }
0x1a93   :  { %v4015_v49 = vsel %vm1455_vm12, %v3999_v48, -inf }
0x1a94   :  { %4016 = vmax.xlane.f32.xlu1 %v4015_v49  ;;  %v10802_v4 = vpop.f32.mrb[46].mxu1  ;;  %v4012_v25 = vsel %vm1455_vm12, %v3994_v50, -inf }
0x1a95   :  { %v4009_v44 = vadd.f32 %v10802_v4, %v14759_v34  ;;  %4013 = vmax.xlane.f32.xlu0 %v4012_v25  ;;  %v4003_v11 = vpop.f32.mrb[47].mxu1 }
0x1a96   :  { %v4004_v17 = vadd.f32 %v4003_v11, %v14765_v35 }
0x1a97   :  { %v4021_v57 = vsel %vm1465_vm13, %v4009_v44, -inf }
0x1a98   :  { %4022 = vmax.xlane.f32.xlu1 %v4021_v57  ;;  %v4018_v42 = vsel %vm1455_vm12, %v4004_v17, -inf }
0x1a99   :  { %4019 = vmax.xlane.f32.xlu0 %v4018_v42 }
0x1b21   :  { %v4017_v27 = vpop.xlane.xlu1 %4016 }
0x1b22   :  { %v4025_v0 = vsub.f32 %v3999_v48, %v4017_v27  ;;  %v4014_v10 = vpop.xlane.xlu0 %4013 }
0x1b23   :  { %v4024_v52 = vsub.f32 %v3994_v50, %v4014_v10 }
0x1b24   :  { %v4030_v2 = vmul.f32 1.442695, %v4025_v0 }
0x1b25   :  { %v4028_v16 = vmul.f32 1.442695, %v4024_v52  ;;  %v4023_v58 = vpop.xlane.xlu1 %4022 }
0x1b26   :  { %v4027_v8 = vsub.f32 %v4009_v44, %v4023_v58  ;;  %v4020_v43 = vpop.xlane.xlu0 %4019 }
0x1b27   :  { %13019 = vpow2.f32 %v4028_v16  ;;  %v4026_v36 = vsub.f32 %v4004_v17, %v4020_v43 }
0x1b28   :  { %13021 = vpow2.f32 %v4030_v2  ;;  %v4034_v49 = vmul.f32 1.442695, %v4027_v8 }
0x1b29   :  { %v4032_v4 = vmul.f32 1.442695, %v4026_v36 }
0x1b2b   :  { %13023 = vpow2.f32 %v4032_v4 }
0x1b2c   :  { %13025 = vpow2.f32 %v4034_v49 }
0x1b31   :  { %v13020_v25 = vpop.eup %13019 }
0x1b32   :  { %v13022_v11 = vpop.eup %13021  ;;  %10831 = vmatprep.mubr.msk.f32.mxu0 %vm1455_vm12, %v13020_v25 }
0x1b33   :  { %10832 = vmatmul.mubr.msk.f32.vlgmr.msra.gmra.mrb[60].mxu0 %vm1455_vm12, %v13022_v11 }
0x1b34   :  { %12135 = vmatpush3.bf16.msra.mxu0 %v14687_v29  ;;  %v3809_v29 = vld [vmem:[%s16219_s11 + $0x260] sm:$0xff] }
0x1b35   :  { %v13024_v48 = vpop.eup %13023  ;;  %12137 = vmatprep.subr.bf16.mxu0 %v14701_v12 }
0x1b36   :  { %v13026_v50 = vpop.eup %13025  ;;  %10834 = vmatprep.mubr.msk.f32.mxu0 %vm1455_vm12, %v13024_v48 }
0x1b37   :  { %10835 = vmatmul.mubr.msk.f32.gmra.mrb[62].mxu0 %vm1455_vm12, %v13026_v50 }
0x1b38   :  { %12139 = vmatpush3.bf16.msra.mxu0 %v14701_v12  ;;  %10865 = vmatprep.mubr.msk.f32.mxu0 %vm1455_vm12, %v13020_v25  ;;  %v3810_v12 = vld [vmem:[%s16219_s11 + $0x268] sm:$0xff] }
0x1b39   :  { %12141 = vmatprep.subr.bf16.mxu0 %v14714_v51 }
0x1b3c   :  { %12143 = vmatpush3.bf16.msra.mxu0 %v14714_v51  ;;  %v3812_v51 = vld [vmem:[%s16219_s11 + $0x278] sm:$0xff] }
0x1b3d   :  { %12145 = vmatprep.subr.bf16.mxu0 %v14716_v62 }
0x1b40   :  { %12147 = vmatpush3.bf16.msra.mxu0 %v14716_v62 }
0x1b41   :  { %12149 = vmatprep.subr.bf16.mxu0 %v14708_v39 }
0x1b44   :  { %12151 = vmatpush3.bf16.msra.mxu0 %v14708_v39  ;;  %v12160_v39 = vpack.c.bf16 %v3810_v12, %v3809_v29 }
0x1b45   :  { %12153 = vmatprep.subr.bf16.mxu0 %v14710_v61 }
0x1b46   :  { %12161 = vmatprep.subr.bf16.mxu1 %v12160_v39 }
0x1b47   :  { %12163 = vmatpush3.bf16.msra.mxu1 %v12160_v39 }
0x1b48   :  { %12155 = vmatpush3.bf16.msra.mxu0 %v14710_v61  ;;  %v3811_v61 = vld [vmem:[%s16219_s11 + $0x270] sm:$0xff] }
0x1b49   :  { %12157 = vmatprep.subr.bf16.mxu0 %v14718_v60  ;;  %v12164_v62 = vpack.c.bf16 %v3812_v51, %v3811_v61 }
0x1b4b   :  { %12165 = vmatprep.subr.bf16.mxu1 %v12164_v62 }
0x1b4c   :  { %12159 = vmatpush3.bf16.msra.mxu0 %v14718_v60  ;;  %12167 = vmatpush3.bf16.msra.mxu1 %v12164_v62 }
0x1b4f   :  { %10866 = vmatmul.mubr.msk.f32.vlgmr.msra.gmra.mrb[64].mxu0 %vm1455_vm12, %v13022_v11 }
0x1b50   :  { %10868 = vmatprep.mubr.msk.f32.mxu0 %vm1455_vm12, %v13024_v48 }
0x1b53   :  { %10869 = vmatmul.mubr.msk.f32.gmra.mrb[66].mxu0 %vm1455_vm12, %v13026_v50 }
0x1c06   :  { %v10833_v60 = vpop.f32.mrb[60].mxu0 }
0x1c07   :  { %v4114_v44 = vpop.f32.mrb[61].mxu0  ;;  %v4219_v42 = vmax.f32 %v10833_v60, 1e-20 }
0x1c08   :  { %v4218_v27 = vmax.f32 %v4114_v44, 1e-20 }
0x1c09   :  { %13027 = vrcp.f32 %v4219_v42 }
0x1c0a   :  { %v10836_v17 = vpop.f32.mrb[62].mxu0  ;;  %13029 = vrcp.f32 %v4218_v27 }
0x1c0b   :  { %v4124_v57 = vpop.f32.mrb[63].mxu0  ;;  %v4221_v0 = vmax.f32 %v10836_v17, 1e-20 }
0x1c0c   :  { %v4220_v10 = vmax.f32 %v4124_v57, 1e-20 }
0x1c0d   :  { %13031 = vrcp.f32 %v4221_v0  ;;  %v4372_v0 = vld [vmem:[%s16220_s12 + $0x48] sm:$0xff] }
0x1c0e   :  { %13033 = vrcp.f32 %v4220_v10 }
0x1c13   :  { %v13028_v52 = vpop.eup %13027 }
0x1c14   :  { %v13030_v16 = vpop.eup %13029 }
0x1c17   :  { %v13032_v36 = vpop.eup %13031 }
0x1c18   :  { %v13034_v4 = vpop.eup %13033 }
0x1c22   :  { %v10867_v2 = vpop.f32.mrb[64].mxu0 }
0x1c23   :  { %v4227_v58 = vmul.f32 %v13028_v52, %v10867_v2  ;;  %v4199_v8 = vpop.f32.mrb[65].mxu0  ;;  %v4373_v52 = vld [vmem:[%s16220_s12 + $0x50] sm:$0xff]  ;;  %v4374_v2 = vld [vmem:[%s16220_s12 + $0x58] sm:$0xff] }
0x1c24   :  { %v4226_v43 = vmul.f32 %v13030_v16, %v4199_v8  ;;  %v12172_v16 = vpack.c.bf16 %v4374_v2, %v4373_v52  ;;  %v4477_v8 = vld [vmem:[%s16219_s11 + $0x288] sm:$0xff] }
0x1c26   :  { %v10870_v49 = vpop.f32.mrb[66].mxu0  ;;  %10879 = vmatprep.mubr.msk.f32.mxu1 %vm319_vm5, %v4226_v43  ;;  %v4478_v43 = vld [vmem:[%s16219_s11 + $0x290] sm:$0xff] }
0x1c27   :  { %v4229_v25 = vmul.f32 %v13032_v36, %v10870_v49  ;;  %v4209_v11 = vpop.f32.mrb[67].mxu0  ;;  %10880 = vmatmul.mubr.msk.f32.vlgmr.msra.gmra.mrb[48].mxu1 %vm319_vm5, %v4227_v58  ;;  %v4476_v58 = vld [vmem:[%s16219_s11 + $0x280] sm:$0xff]  ;;  %v4479_v49 = vld [vmem:[%s16219_s11 + $0x298] sm:$0xff] }
0x1c28   :  { %v4228_v48 = vmul.f32 %v13034_v4, %v4209_v11  ;;  %v12176_v36 = vpack.c.bf16 %v4477_v8, %v4476_v58  ;;  %v12180_v4 = vpack.c.bf16 %v4479_v49, %v4478_v43  ;;  %v4481_v11 = vld [vmem:[%s16219_s11 + $0x2a8] sm:$0xff] }
0x1c2a   :  { %10882 = vmatprep.mubr.msk.f32.mxu1 %vm319_vm5, %v4228_v48  ;;  %12177 = vmatprep.subr.bf16.mxu1 %v12176_v36 }
0x1c2b   :  { %10883 = vmatmul.mubr.msk.f32.gmra.mrb[50].mxu1 %vm319_vm5, %v4229_v25  ;;  %v4480_v25 = vld [vmem:[%s16219_s11 + $0x2a0] sm:$0xff] }
0x1c2c   :  { %12179 = vmatpush3.bf16.msra.mxu1 %v12176_v36  ;;  %v12184_v48 = vpack.c.bf16 %v4481_v11, %v4480_v25  ;;  %v4483_v11 = vld [vmem:[%s16219_s11 + $0x2b8] sm:$0xff] }
0x1c2d   :  { %12181 = vmatprep.subr.bf16.mxu1 %v12180_v4 }
0x1c30   :  { %12183 = vmatpush3.bf16.msra.mxu1 %v12180_v4 }
0x1c31   :  { %12185 = vmatprep.subr.bf16.mxu1 %v12184_v48 }
0x1c34   :  { %12187 = vmatpush3.bf16.msra.mxu1 %v12184_v48 }
0x1cfa   :  { %v10881_v50 = vpop.f32.mrb[48].mxu1 }
0x1cfb   :  { %v14810_v29 = vadd.f32 %v10881_v50, %v14494_v9  ;;  %v4308_v12 = vpop.f32.mrb[49].mxu1 }
0x1cfc   :  { %v14813_v39 = vadd.f32 %v4308_v12, %v14496_v28 }
0x1cfd   :  { %v4332_v61 = vmul.f32 %v14810_v29, %v14810_v29 }
0x1cfe   :  { %v10884_v51 = vpop.f32.mrb[50].mxu1  ;;  %v4331_v62 = vmul.f32 %v14813_v39, %v14813_v39 }
0x1cff   :  { %v14820_v60 = vadd.f32 %v10884_v51, %v14502_v53  ;;  %v4318_v44 = vpop.f32.mrb[51].mxu1  ;;  %v4338_v17 = vsel %vm319_vm5, %v4332_v61, 0.0 }
0x1d00   :  { %v14824_v9 = vadd.f32 %v4318_v44, %v14505_v15  ;;  %4339 = vadd.xlane.f32.xlu1 %v4338_v17  ;;  %v4335_v28 = vsel %vm319_vm5, %v4331_v62, 0.0  ;;  %v4371_v15 = vld [vmem:[%s16220_s12 + $0x40] sm:$0xff] }
0x1d01   :  { %4336 = vadd.xlane.f32.xlu0 %v4335_v28  ;;  %v4334_v57 = vmul.f32 %v14820_v60, %v14820_v60  ;;  %v12168_v10 = vpack.c.bf16 %v4372_v0, %v4371_v15  ;;  %v4366_v0 = vrot.slane %v14448_v26, %v13700_v54  ;;  %v4482_v26 = vld [vmem:[%s16219_s11 + $0x2b0] sm:$0xff] }
0x1d02   :  { %v4333_v42 = vmul.f32 %v14824_v9, %v14824_v9  ;;  %v12188_v48 = vpack.c.bf16 %v4483_v11, %v4482_v26  ;;  %v4627_v11 = vld [vmem:[%s16219_s11 + $0x2d0] sm:$0xff] }
0x1d03   :  { %v4344_v27 = vsel %vm668_vm9, %v4334_v57, 0.0  ;;  %12169 = vmatprep.subr.bf16.mxu0 %v12168_v10 }
0x1d04   :  { %4345 = vadd.xlane.f32.xlu1 %v4344_v27  ;;  %v4341_v53 = vsel %vm319_vm5, %v4333_v42, 0.0  ;;  %12171 = vmatpush3.bf16.msra.mxu0 %v12168_v10 }
0x1d05   :  { %4342 = vadd.xlane.f32.xlu0 %v4341_v53  ;;  %12173 = vmatprep.subr.bf16.mxu0 %v12172_v16 }
0x1d06   :  { %12189 = vmatprep.subr.bf16.mxu1 %v12188_v48 }
0x1d07   :  { %12191 = vmatpush3.bf16.msra.mxu1 %v12188_v48  ;;  %v4628_v48 = vld [vmem:[%s16219_s11 + $0x2d8] sm:$0xff] }
0x1d08   :  { %12175 = vmatpush3.bf16.msra.mxu0 %v12172_v16 }
0x1d8d   :  { %v4340_v50 = vpop.xlane.xlu1 %4339 }
0x1d8e   :  { %v4348_v12 = vmul.f32 0.03125, %v4340_v50  ;;  %v4337_v61 = vpop.xlane.xlu0 %4336 }
0x1d8f   :  { %v4347_v51 = vmul.f32 0.03125, %v4337_v61 }
0x1d90   :  { %v4352_v62 = vadd.f32 1e-06, %v4348_v12 }
0x1d91   :  { %v4351_v44 = vadd.f32 1e-06, %v4347_v51  ;;  %v4346_v17 = vpop.xlane.xlu1 %4345 }
0x1d92   :  { %13035 = vrsqrt.f32 %v4352_v62  ;;  %v4350_v28 = vmul.f32 0.03125, %v4346_v17  ;;  %v4343_v57 = vpop.xlane.xlu0 %4342 }
0x1d93   :  { %13037 = vrsqrt.f32 %v4351_v44  ;;  %v4349_v42 = vmul.f32 0.03125, %v4343_v57 }
0x1d94   :  { %v4354_v27 = vadd.f32 1e-06, %v4350_v28 }
0x1d95   :  { %v4353_v53 = vadd.f32 1e-06, %v4349_v42 }
0x1d96   :  { %13039 = vrsqrt.f32 %v4354_v27 }
0x1d97   :  { %13041 = vrsqrt.f32 %v4353_v53 }
0x1d9c   :  { %v13036_v15 = vpop.eup %13035 }
0x1d9d   :  { %v13038_v10 = vpop.eup %13037  ;;  %v4360_v52 = vmul.f32 %v13036_v15, %v14810_v29 }
0x1d9e   :  { %v4359_v2 = vmul.f32 %v13038_v10, %v14813_v39 }
0x1d9f   :  { %v4368_v43 = vmul.f32 %v4366_v0, %v4360_v52 }
0x1da0   :  { %v13040_v16 = vpop.eup %13039  ;;  %v4367_v58 = vmul.f32 %v4366_v0, %v4359_v2 }
0x1da1   :  { %v13042_v8 = vpop.eup %13041  ;;  %v4362_v36 = vmul.f32 %v13040_v16, %v14820_v60 }
0x1da2   :  { %10893 = vmatprep.mubr.msk.f32.mxu0 %vm319_vm5, %v4367_v58  ;;  %v4361_v49 = vmul.f32 %v13042_v8, %v14824_v9 }
0x1da3   :  { %10894 = vmatmul.mubr.msk.f32.vlgmr.msra.gmra.mrb[68].mxu0 %vm319_vm5, %v4368_v43  ;;  %v4370_v25 = vmul.f32 %v4366_v0, %v4362_v36  ;;  %v4626_v36 = vld [vmem:[%s16219_s11 + $0x2c8] sm:$0xff] }
0x1da4   :  { %v4369_v4 = vmul.f32 %v4366_v0, %v4361_v49  ;;  %v4815_v49 = vld [vmem:[%s16219_s11 + $0x300] sm:$0xff] }
0x1da6   :  { %10896 = vmatprep.mubr.msk.f32.mxu0 %vm319_vm5, %v4369_v4 }
0x1da7   :  { %10897 = vmatmul.mubr.msk.f32.gmra.mrb[70].mxu0 %vm319_vm5, %v4370_v25  ;;  %v4816_v25 = vld [vmem:[%s16219_s11 + $0x308] sm:$0xff] }
0x1da8   :  { %v12208_v26 = vpack.c.bf16 %v4816_v25, %v4815_v49 }
0x1daa   :  { %12209 = vmatprep.subr.bf16.mxu1 %v12208_v26 }
0x1e76   :  { %v10895_v50 = vpop.f32.mrb[68].mxu0 }
0x1e77   :  { %v4453_v12 = vpop.f32.mrb[69].mxu0  ;;  %v4473_v51 = vmax.f32 %v10895_v50, 0.0  ;;  %v4817_v50 = vld [vmem:[%s16219_s11 + $0x310] sm:$0xff] }
0x1e78   :  { %v4472_v61 = vmax.f32 %v4453_v12, 0.0  ;;  %v12196_v12 = vpack.c.bf16 %v4628_v48, %v4627_v11  ;;  %v4729_v11 = vld [vmem:[%s16219_s11 + $0x2f8] sm:$0xff] }
0x1e7a   :  { %v10898_v62 = vpop.f32.mrb[70].mxu0  ;;  %10915 = vmatprep.mubr.msk.f32.mxu1 %vm527_vm7, %v4472_v61  ;;  %v4818_v61 = vld [vmem:[%s16219_s11 + $0x318] sm:$0xff] }
0x1e7b   :  { %v4463_v44 = vpop.f32.mrb[71].mxu0  ;;  %10916 = vmatmul.mubr.msk.f32.vlgmr.msra.gmra.mrb[52].mxu1 %vm527_vm7, %v4473_v51  ;;  %v4475_v28 = vmax.f32 %v10898_v62, 0.0  ;;  %v12212_v51 = vpack.c.bf16 %v4818_v61, %v4817_v50  ;;  %v4726_v62 = vld [vmem:[%s16219_s11 + $0x2e0] sm:$0xff] }
0x1e7c   :  { %v4474_v17 = vmax.f32 %v4463_v44, 0.0  ;;  %12211 = vmatpush3.bf16.msra.mxu1 %v12208_v26  ;;  %v4727_v44 = vld [vmem:[%s16219_s11 + $0x2e8] sm:$0xff]  ;;  %v4728_v26 = vld [vmem:[%s16219_s11 + $0x2f0] sm:$0xff] }
0x1e7d   :  { %12213 = vmatprep.subr.bf16.mxu1 %v12212_v51 }
0x1e7e   :  { %10918 = vmatprep.mubr.msk.f32.mxu1 %vm527_vm7, %v4474_v17  ;;  %v12200_v17 = vpack.c.bf16 %v4727_v44, %v4726_v62 }
0x1e7f   :  { %10919 = vmatmul.mubr.msk.f32.gmra.mrb[54].mxu1 %vm527_vm7, %v4475_v28 }
0x1e80   :  { %12215 = vmatpush3.bf16.msra.mxu1 %v12212_v51  ;;  %v12204_v51 = vpack.c.bf16 %v4729_v11, %v4728_v26 }
0x1e81   :  { %12259 = vmatprep.subr.bf16.mxu1 %v13926_v1 }
0x1f4e   :  { %v10917_v57 = vpop.f32.mrb[52].mxu1 }
0x1f4f   :  { %v14884_v42 = vadd.f32 %v10917_v57, %v14810_v29  ;;  %v4562_v27 = vpop.f32.mrb[53].mxu1 }
0x1f50   :  { %v14887_v53 = vadd.f32 %v4562_v27, %v14813_v39 }
0x1f51   :  { %v4586_v15 = vmul.f32 %v14884_v42, %v14884_v42 }
0x1f52   :  { %v10920_v0 = vpop.f32.mrb[54].mxu1  ;;  %v4585_v10 = vmul.f32 %v14887_v53, %v14887_v53 }
0x1f53   :  { %v14894_v52 = vadd.f32 %v10920_v0, %v14820_v60  ;;  %v4572_v2 = vpop.f32.mrb[55].mxu1  ;;  %v4592_v16 = vsel %vm319_vm5, %v4586_v15, 0.0 }
0x1f54   :  { %v14898_v29 = vadd.f32 %v4572_v2, %v14824_v9  ;;  %4593 = vadd.xlane.f32.xlu1 %v4592_v16  ;;  %v4589_v39 = vsel %vm319_vm5, %v4585_v10, 0.0  ;;  %v4625_v9 = vld [vmem:[%s16219_s11 + $0x2c0] sm:$0xff] }
0x1f55   :  { %4590 = vadd.xlane.f32.xlu0 %v4589_v39  ;;  %v4588_v58 = vmul.f32 %v14894_v52, %v14894_v52  ;;  %v12192_v4 = vpack.c.bf16 %v4626_v36, %v4625_v9  ;;  %v14941_v9 = vld [vmem:[%s16218_s10 + $0x18] sm:$0xff] }
0x1f56   :  { %v4587_v8 = vmul.f32 %v14898_v29, %v14898_v29  ;;  %v4620_v36 = vrot.slane %v14941_v9, %v13703_v59 }
0x1f57   :  { %v4598_v43 = vsel %vm668_vm9, %v4588_v58, 0.0  ;;  %12193 = vmatprep.subr.bf16.mxu0 %v12192_v4 }
0x1f58   :  { %4599 = vadd.xlane.f32.xlu1 %v4598_v43  ;;  %v4595_v60 = vsel %vm319_vm5, %v4587_v8, 0.0  ;;  %12195 = vmatpush3.bf16.msra.mxu0 %v12192_v4 }
0x1f59   :  { %4596 = vadd.xlane.f32.xlu0 %v4595_v60  ;;  %12197 = vmatprep.subr.bf16.mxu0 %v12196_v12 }
0x1f5c   :  { %12199 = vmatpush3.bf16.msra.mxu0 %v12196_v12 }
0x1f5d   :  { %12201 = vmatprep.subr.bf16.mxu0 %v12200_v17 }
0x1fe1   :  { %v4594_v28 = vpop.xlane.xlu1 %4593 }
0x1fe2   :  { %v4602_v57 = vmul.f32 0.03125, %v4594_v28  ;;  %v4591_v27 = vpop.xlane.xlu0 %4590 }
0x1fe3   :  { %v4601_v15 = vmul.f32 0.03125, %v4591_v27 }
0x1fe4   :  { %v4606_v0 = vadd.f32 1e-06, %v4602_v57 }
0x1fe5   :  { %v4605_v10 = vadd.f32 1e-06, %v4601_v15  ;;  %v4600_v2 = vpop.xlane.xlu1 %4599 }
0x1fe6   :  { %13043 = vrsqrt.f32 %v4606_v0  ;;  %v4604_v16 = vmul.f32 0.03125, %v4600_v2  ;;  %v4597_v39 = vpop.xlane.xlu0 %4596 }
0x1fe7   :  { %13045 = vrsqrt.f32 %v4605_v10  ;;  %v4603_v58 = vmul.f32 0.03125, %v4597_v39 }
0x1fe8   :  { %v4608_v8 = vadd.f32 1e-06, %v4604_v16 }
0x1fe9   :  { %v4607_v43 = vadd.f32 1e-06, %v4603_v58 }
0x1fea   :  { %13047 = vrsqrt.f32 %v4608_v8 }
0x1feb   :  { %13049 = vrsqrt.f32 %v4607_v43 }
0x1ff0   :  { %v13044_v60 = vpop.eup %13043 }
0x1ff1   :  { %v13046_v49 = vpop.eup %13045  ;;  %v4614_v4 = vmul.f32 %v13044_v60, %v14884_v42 }
0x1ff2   :  { %v4613_v25 = vmul.f32 %v13046_v49, %v14887_v53 }
0x1ff3   :  { %v4622_v61 = vmul.f32 %v4620_v36, %v4614_v4 }
0x1ff4   :  { %v13048_v48 = vpop.eup %13047  ;;  %v4621_v50 = vmul.f32 %v4620_v36, %v4613_v25 }
0x1ff5   :  { %v13050_v12 = vpop.eup %13049  ;;  %v4616_v62 = vmul.f32 %v13048_v48, %v14894_v52 }
0x1ff6   :  { %10929 = vmatprep.mubr.msk.f32.mxu0 %vm319_vm5, %v4621_v50  ;;  %10957 = vmatprep.mubr.msk.f32.mxu1 %vm319_vm5, %v4621_v50  ;;  %v4615_v44 = vmul.f32 %v13050_v12, %v14898_v29 }
0x1ff7   :  { %10930 = vmatmul.mubr.msk.f32.vlgmr.msra.gmra.mrb[72].mxu0 %vm319_vm5, %v4622_v61  ;;  %10958 = vmatmul.mubr.msk.f32.vlgmr.msra.gmra.mrb[56].mxu1 %vm319_vm5, %v4622_v61  ;;  %v4624_v57 = vmul.f32 %v4620_v36, %v4616_v62 }
0x1ff8   :  { %12203 = vmatpush3.bf16.msra.mxu0 %v12200_v17  ;;  %v4623_v28 = vmul.f32 %v4620_v36, %v4615_v44  ;;  %12261 = vmatpush3.bf16.msra.mxu1 %v13926_v1 }
0x1ff9   :  { %12205 = vmatprep.subr.bf16.mxu0 %v12204_v51  ;;  %12263 = vmatprep.subr.bf16.mxu1 %v13930_v21 }
0x1ffa   :  { %10932 = vmatprep.mubr.msk.f32.mxu0 %vm319_vm5, %v4623_v28  ;;  %10960 = vmatprep.mubr.msk.f32.mxu1 %vm319_vm5, %v4623_v28 }
0x1ffb   :  { %10933 = vmatmul.mubr.msk.f32.gmra.mrb[74].mxu0 %vm319_vm5, %v4624_v57  ;;  %10961 = vmatmul.mubr.msk.f32.gmra.mrb[58].mxu1 %vm319_vm5, %v4624_v57 }
0x1ffc   :  { %12207 = vmatpush3.bf16.msra.mxu0 %v12204_v51  ;;  %10943 = vmatprep.mubr.msk.f32.mxu0 %vm319_vm5, %v4621_v50 }
0x1ffd   :  { %12265 = vmatpush3.bf16.msra.mxu1 %v13930_v21 }
0x1ffe   :  { %12267 = vmatprep.subr.bf16.mxu1 %v13937_v20 }
0x1fff   :  { %10944 = vmatmul.mubr.msk.f32.vlgmr.msra.gmra.mrb[76].mxu0 %vm319_vm5, %v4622_v61 }
0x2000   :  { %10946 = vmatprep.mubr.msk.f32.mxu0 %vm319_vm5, %v4623_v28 }
0x2001   :  { %12269 = vmatpush3.bf16.msra.mxu1 %v13937_v20 }
0x2002   :  { %12271 = vmatprep.subr.bf16.mxu1 %v13960_v55 }
0x2003   :  { %10947 = vmatmul.mubr.msk.f32.gmra.mrb[78].mxu0 %vm319_vm5, %v4624_v57 }
0x2005   :  { %12273 = vmatpush3.bf16.msra.mxu1 %v13960_v55 }
0x2006   :  { %12275 = vmatprep.subr.bf16.mxu1 %v13966_v14 }
0x2009   :  { %12277 = vmatpush3.bf16.msra.mxu1 %v13966_v14 }
0x200a   :  { %12279 = vmatprep.subr.bf16.mxu1 %v13970_v19 }
0x200d   :  { %12281 = vmatpush3.bf16.msra.mxu1 %v13970_v19 }
0x200e   :  { %12283 = vmatprep.subr.bf16.mxu1 %v16248_v38 }
0x2011   :  { %12285 = vmatpush3.bf16.msra.mxu1 %v16248_v38 }
0x20ca   :  { %v14980_v17 = vpop.f32.mrb[72].mxu0  ;;  %v10959_v27 = vpop.f32.mrb[56].mxu1 }
0x20cb   :  { %v4943_v15 = vrot.slane %v10959_v27, 4  ;;  %v4955_v0 = vmul.f32 %v14587_v41, %v10959_v27  ;;  %v4707_v10 = vpop.f32.mrb[73].mxu0  ;;  %v4885_v2 = vpop.f32.mrb[57].mxu1  ;;  %v4962_v61 = vmul.f32 %v14632_v7, %v10959_v27 }
0x20cc   :  { %v4942_v16 = vrot.slane %v4885_v2, 4  ;;  %v4954_v39 = vmul.f32 %v14593_v32, %v4885_v2  ;;  %10991 = vmatprep.mubr.msk.f32.mxu0 %vm319_vm5, %v4707_v10  ;;  %v4961_v27 = vmul.f32 %v14678_v31, %v4885_v2 }
0x20ce   :  { %v14985_v58 = vpop.f32.mrb[74].mxu0  ;;  %v10962_v8 = vpop.f32.mrb[58].mxu1  ;;  %v14987_v43 = vpack.c.bf16 %v4955_v0, %v4954_v39  ;;  %v4944_v60 = vsel %vm1259_vm10, %v4942_v16, %v4943_v15 }
0x20cf   :  { %v4947_v36 = vrot.slane %v10962_v8, 4  ;;  %v4953_v49 = vsel %vm1259_vm10, %v10962_v8, %v4942_v16  ;;  %v14991_v4 = vpop.f32.mrb[75].mxu0  ;;  %v4895_v25 = vpop.f32.mrb[59].mxu1  ;;  %v4965_v26 = vmul.f32 %v14604_v56, %v4944_v60  ;;  %v4958_v8 = vmul.f32 %v14638_v46, %v4944_v60 }
0x20d0   :  { %v4957_v11 = vmul.f32 %v14612_v63, %v4953_v49  ;;  %v4964_v48 = vmul.f32 %v14618_v13, %v4953_v49  ;;  %v4945_v50 = vrot.slane %v4895_v25, 4  ;;  %v4956_v12 = vmul.f32 %v14624_v3, %v4895_v25  ;;  %12287 = vmatprep.subr.bf16.mxu1 %v14987_v43 }
0x20d1   :  { %v4963_v51 = vmul.f32 %v14644_v6, %v4895_v25 }
0x20d2   :  { %v10945_v62 = vpop.f32.mrb[76].mxu0  ;;  %v15000_v44 = vpack.c.bf16 %v4957_v11, %v4956_v12  ;;  %v4946_v28 = vsel %vm1259_vm10, %v4943_v15, %v4945_v50  ;;  %v4948_v57 = vsel %vm1259_vm10, %v4945_v50, %v4947_v36  ;;  %v15004_v0 = vpack.c.bf16 %v4965_v26, %v4964_v48 }
0x20d3   :  { %v4913_v10 = vrot.slane %v10945_v62, 4  ;;  %v4925_v16 = vmul.f32 %v14587_v41, %v10945_v62  ;;  %v4796_v39 = vpop.f32.mrb[77].mxu0  ;;  %v4959_v49 = vmul.f32 %v14654_v30, %v4946_v28  ;;  %v4960_v12 = vmul.f32 %v14660_v23, %v4948_v57 }
0x20d4   :  { %v4912_v25 = vrot.slane %v4796_v39, 4  ;;  %v4924_v11 = vmul.f32 %v14593_v32, %v4796_v39  ;;  %v15014_v36 = vpack.c.bf16 %v4963_v51, %v4962_v61  ;;  %v4966_v26 = vmul.f32 %v14666_v5, %v4946_v28 }
0x20d5   :  { %v15012_v15 = vpack.c.bf16 %v4959_v49, %v4958_v8  ;;  %v4967_v41 = vmul.f32 %v14672_v40, %v4948_v57  ;;  %v15019_v59 = vpack.c.bf16 %v4961_v27, %v4960_v12  ;;  %v4932_v2 = vmul.f32 %v14632_v7, %v10945_v62 }
0x20d6   :  { %v12216_v48 = vpack.c.bf16 %v4925_v16, %v4924_v11  ;;  %v10948_v50 = vpop.f32.mrb[78].mxu0  ;;  %v4914_v60 = vsel %vm1259_vm10, %v4912_v25, %v4913_v10  ;;  %v4931_v16 = vmul.f32 %v14678_v31, %v4796_v39 }
0x20d7   :  { %v4917_v54 = vrot.slane %v10948_v50, 4  ;;  %v4923_v32 = vsel %vm1259_vm10, %v10948_v50, %v4912_v25  ;;  %v4935_v8 = vmul.f32 %v14604_v56, %v4914_v60  ;;  %v4806_v49 = vpop.f32.mrb[79].mxu0  ;;  %v4928_v7 = vmul.f32 %v14638_v46, %v4914_v60 }
0x20d8   :  { %v4927_v61 = vmul.f32 %v14612_v63, %v4923_v32  ;;  %v4934_v51 = vmul.f32 %v14618_v13, %v4923_v32  ;;  %v4915_v28 = vrot.slane %v4806_v49, 4  ;;  %v4926_v57 = vmul.f32 %v14624_v3, %v4806_v49  ;;  %12218 = vmatprep.subr.msk.bf16.mxu0 %vm13778_vm11, %v12216_v48 }
0x20d9   :  { %v4933_v62 = vmul.f32 %v14644_v6, %v4806_v49  ;;  %12221 = vmatpush3.bf16.xpose.msk.msra.mxu0 %vm13778_vm11, %v12216_v48  ;;  %v15034_v56 = vpack.c.bf16 %v4967_v41, %v4966_v26 }
0x20da   :  { %v12246_v63 = vpack.c.bf16 %v4935_v8, %v4934_v51  ;;  %v4916_v13 = vsel %vm1259_vm10, %v4913_v10, %v4915_v28  ;;  %v4918_v27 = vsel %vm1259_vm10, %v4915_v28, %v4917_v54  ;;  %v12222_v3 = vpack.c.bf16 %v4927_v61, %v4926_v57 }
0x20db   :  { %v4929_v25 = vmul.f32 %v14654_v30, %v4916_v13  ;;  %v4930_v11 = vmul.f32 %v14660_v23, %v4918_v27  ;;  %v4936_v31 = vmul.f32 %v14666_v5, %v4916_v13  ;;  %v4937_v46 = vmul.f32 %v14672_v40, %v4918_v27 }
0x20dc   :  { %v12240_v6 = vpack.c.bf16 %v4933_v62, %v4932_v2  ;;  %12224 = vmatprep.subr.msk.bf16.mxu0 %vm13778_vm11, %v12222_v3 }
0x20dd   :  { %v12228_v39 = vpack.c.bf16 %v4929_v25, %v4928_v7  ;;  %v12234_v12 = vpack.c.bf16 %v4931_v16, %v4930_v11  ;;  %v12252_v26 = vpack.c.bf16 %v4937_v46, %v4936_v31 }
0x20e1   :  { %12227 = vmatpush3.bf16.xpose.msk.msra.mxu0 %vm13778_vm11, %v12222_v3 }
0x20e2   :  { %12230 = vmatprep.subr.msk.bf16.mxu0 %vm13778_vm11, %v12228_v39 }
0x20e9   :  { %12233 = vmatpush3.bf16.xpose.msk.msra.mxu0 %vm13778_vm11, %v12228_v39 }
0x20ea   :  { %12236 = vmatprep.subr.msk.bf16.mxu0 %vm13778_vm11, %v12234_v12 }
0x20f1   :  { %12239 = vmatpush3.bf16.xpose.msk.msra.mxu0 %vm13778_vm11, %v12234_v12 }
0x20f2   :  { %12242 = vmatprep.subr.msk.bf16.mxu0 %vm13778_vm11, %v12240_v6 }
0x20f9   :  { %12245 = vmatpush3.bf16.xpose.msk.msra.mxu0 %vm13778_vm11, %v12240_v6 }
0x20fa   :  { %12248 = vmatprep.subr.msk.bf16.mxu0 %vm13778_vm11, %v12246_v63 }
0x2101   :  { %12251 = vmatpush3.bf16.xpose.msk.msra.mxu0 %vm13778_vm11, %v12246_v63 }
0x2102   :  { %12254 = vmatprep.subr.msk.bf16.mxu0 %vm13778_vm11, %v12252_v26 }
0x2109   :  { %12257 = vmatpush3.bf16.xpose.msk.msra.mxu0 %vm13778_vm11, %v12252_v26 }
0x2110   :  { %10992 = vmatmul.mubr.msk.f32.vlgmr.msra.gmra.mrb[80].mxu0 %vm319_vm5, %v14980_v17 }
0x2111   :  { %10994 = vmatprep.mubr.msk.f32.mxu0 %vm319_vm5, %v14991_v4 }
0x2114   :  { %10995 = vmatmul.mubr.msk.f32.gmra.mrb[82].mxu0 %vm319_vm5, %v14985_v58 }
0x21e3   :  { %v10993_v54 = vpop.f32.mrb[80].mxu0 }
0x21e4   :  { %v5094_v30 = vadd.f32 %v10993_v54, %v14747_v22  ;;  %v5088_v23 = vpop.f32.mrb[81].mxu0 }
0x21e5   :  { %v5089_v5 = vadd.f32 %v5088_v23, %v14752_v37 }
0x21e6   :  { %v5110_v40 = vsel %vm1455_vm12, %v5094_v30, -inf }
0x21e7   :  { %5111 = vmax.xlane.f32.xlu1 %v5110_v40  ;;  %v10996_v10 = vpop.f32.mrb[82].mxu0  ;;  %v5107_v41 = vsel %vm1455_vm12, %v5089_v5, -inf }
0x21e8   :  { %v5104_v17 = vadd.f32 %v10996_v10, %v14759_v34  ;;  %v5098_v48 = vpop.f32.mrb[83].mxu0  ;;  %5108 = vmax.xlane.f32.xlu0 %v5107_v41 }
0x21e9   :  { %v5099_v4 = vadd.f32 %v5098_v48, %v14765_v35 }
0x21ea   :  { %v5116_v58 = vsel %vm1465_vm13, %v5104_v17, -inf }
0x21eb   :  { %5117 = vmax.xlane.f32.xlu1 %v5116_v58  ;;  %v5113_v22 = vsel %vm1455_vm12, %v5099_v4, -inf }
0x21ec   :  { %5114 = vmax.xlane.f32.xlu0 %v5113_v22 }
0x2274   :  { %v5112_v50 = vpop.xlane.xlu1 %5111 }
0x2275   :  { %v5120_v37 = vsub.f32 %v5094_v30, %v5112_v50  ;;  %v5109_v60 = vpop.xlane.xlu0 %5108 }
0x2276   :  { %v5119_v2 = vsub.f32 %v5089_v5, %v5109_v60  ;;  %v15130_v60 = vld [vmem:[%s16212_s4 + $0x8] sm:$0xff] }
0x2277   :  { %v5125_v32 = vmul.f32 1.442695, %v5120_v37 }
0x2278   :  { %v5123_v8 = vmul.f32 1.442695, %v5119_v2  ;;  %v5118_v49 = vpop.xlane.xlu1 %5117 }
0x2279   :  { %v5122_v61 = vsub.f32 %v5104_v17, %v5118_v49  ;;  %v5115_v51 = vpop.xlane.xlu0 %5114 }
0x227a   :  { %13051 = vpow2.f32 %v5123_v8  ;;  %v5121_v34 = vsub.f32 %v5099_v4, %v5115_v51 }
0x227b   :  { %13053 = vpow2.f32 %v5125_v32  ;;  %v5129_v28 = vmul.f32 1.442695, %v5122_v61 }
0x227c   :  { %v5127_v35 = vmul.f32 1.442695, %v5121_v34 }
0x227e   :  { %13055 = vpow2.f32 %v5127_v35 }
0x227f   :  { %13057 = vpow2.f32 %v5129_v28 }
0x2284   :  { %v13052_v57 = vpop.eup %13051 }
0x2285   :  { %v13054_v16 = vpop.eup %13053  ;;  %11025 = vmatprep.mubr.msk.f32.mxu1 %vm1455_vm12, %v13052_v57 }
0x2286   :  { %11026 = vmatmul.mubr.msk.f32.vlgmr.msra.gmra.mrb[60].mxu1 %vm1455_vm12, %v13054_v16 }
0x2287   :  { %12289 = vmatpush3.bf16.msra.mxu1 %v14987_v43  ;;  %v4905_v43 = vld [vmem:[%s16219_s11 + $0x328] sm:$0xff] }
0x2288   :  { %v13056_v7 = vpop.eup %13055  ;;  %12291 = vmatprep.subr.bf16.mxu1 %v15000_v44 }
0x2289   :  { %v13058_v62 = vpop.eup %13057  ;;  %11028 = vmatprep.mubr.msk.f32.mxu1 %vm1455_vm12, %v13056_v7 }
0x228a   :  { %11029 = vmatmul.mubr.msk.f32.gmra.mrb[62].mxu1 %vm1455_vm12, %v13058_v62 }
0x228b   :  { %12293 = vmatpush3.bf16.msra.mxu1 %v15000_v44  ;;  %11059 = vmatprep.mubr.msk.f32.mxu1 %vm1455_vm12, %v13052_v57 }
0x228c   :  { %12295 = vmatprep.subr.bf16.mxu1 %v15012_v15 }
0x228f   :  { %12297 = vmatpush3.bf16.msra.mxu1 %v15012_v15  ;;  %v4907_v15 = vld [vmem:[%s16219_s11 + $0x338] sm:$0xff] }
0x2290   :  { %12299 = vmatprep.subr.bf16.mxu1 %v15019_v59 }
0x2293   :  { %12301 = vmatpush3.bf16.msra.mxu1 %v15019_v59  ;;  %v4904_v59 = vld [vmem:[%s16219_s11 + $0x320] sm:$0xff] }
0x2294   :  { %12303 = vmatprep.subr.bf16.mxu1 %v15014_v36  ;;  %v12314_v44 = vpack.c.bf16 %v4905_v43, %v4904_v59  ;;  %v5468_v59 = vld [vmem:[%s16220_s12 + $0x70] sm:$0xff]  ;;  %v5469_v43 = vld [vmem:[%s16220_s12 + $0x78] sm:$0xff] }
0x2296   :  { %12315 = vmatprep.subr.bf16.mxu0 %v12314_v44 }
0x2297   :  { %12305 = vmatpush3.bf16.msra.mxu1 %v15014_v36  ;;  %12317 = vmatpush3.bf16.msra.mxu0 %v12314_v44  ;;  %v12326_v44 = vpack.c.bf16 %v5469_v43, %v5468_v59 }
0x2298   :  { %12307 = vmatprep.subr.bf16.mxu1 %v15004_v0 }
0x229b   :  { %12309 = vmatpush3.bf16.msra.mxu1 %v15004_v0  ;;  %v4906_v0 = vld [vmem:[%s16219_s11 + $0x330] sm:$0xff] }
0x229c   :  { %12311 = vmatprep.subr.bf16.mxu1 %v15034_v56  ;;  %v12318_v36 = vpack.c.bf16 %v4907_v15, %v4906_v0  ;;  %v5748_v0 = vld [vmem:[%s16219_s11 + $0x380] sm:$0xff]  ;;  %v5749_v15 = vld [vmem:[%s16219_s11 + $0x388] sm:$0xff] }
0x229e   :  { %12319 = vmatprep.subr.bf16.mxu0 %v12318_v36 }
0x229f   :  { %12313 = vmatpush3.bf16.msra.mxu1 %v15034_v56  ;;  %12321 = vmatpush3.bf16.msra.mxu0 %v12318_v36  ;;  %v12346_v36 = vpack.c.bf16 %v5749_v15, %v5748_v0  ;;  %v5834_v0 = vld [vmem:[%s16219_s11 + $0x3a8] sm:$0xff] }
0x22a2   :  { %11060 = vmatmul.mubr.msk.f32.vlgmr.msra.gmra.mrb[64].mxu1 %vm1455_vm12, %v13054_v16  ;;  %v5466_v16 = vld [vmem:[%s16220_s12 + $0x60] sm:$0xff] }
0x22a3   :  { %11062 = vmatprep.mubr.msk.f32.mxu1 %vm1455_vm12, %v13056_v7  ;;  %v5467_v7 = vld [vmem:[%s16220_s12 + $0x68] sm:$0xff] }
0x22a6   :  { %11063 = vmatmul.mubr.msk.f32.gmra.mrb[66].mxu1 %vm1455_vm12, %v13058_v62  ;;  %v12322_v62 = vpack.c.bf16 %v5467_v7, %v5466_v16  ;;  %v15206_v16 = vld [vmem:[%s16218_s10 + $0x20] sm:$0xff] }
0x22a7   :  { %v5745_v15 = vrot.slane %v15206_v16, %v13435_v47  ;;  %v5836_v47 = vld [vmem:[%s16219_s11 + $0x3b8] sm:$0xff] }
0x22a8   :  { %12323 = vmatprep.subr.bf16.mxu1 %v12322_v62 }
0x22a9   :  { %12325 = vmatpush3.bf16.msra.mxu1 %v12322_v62 }
0x22aa   :  { %12327 = vmatprep.subr.bf16.mxu1 %v12326_v44 }
0x22ad   :  { %12329 = vmatpush3.bf16.msra.mxu1 %v12326_v44  ;;  %v5833_v44 = vld [vmem:[%s16219_s11 + $0x3a0] sm:$0xff] }
0x22ae   :  { %12347 = vmatprep.subr.bf16.mxu1 %v12346_v36 }
0x2359   :  { %v11027_v56 = vpop.f32.mrb[60].mxu1 }
0x235a   :  { %v5209_v63 = vpop.f32.mrb[61].mxu1  ;;  %v5314_v3 = vmax.f32 %v11027_v56, 1e-20  ;;  %v5571_v56 = vld [vmem:[%s16219_s11 + $0x340] sm:$0xff] }
0x235b   :  { %v5313_v25 = vmax.f32 %v5209_v63, 1e-20  ;;  %v5572_v63 = vld [vmem:[%s16219_s11 + $0x348] sm:$0xff] }
0x235c   :  { %13059 = vrcp.f32 %v5314_v3  ;;  %v5574_v3 = vld [vmem:[%s16219_s11 + $0x358] sm:$0xff] }
0x235d   :  { %v11030_v13 = vpop.f32.mrb[62].mxu1  ;;  %13061 = vrcp.f32 %v5313_v25 }
0x235e   :  { %v5219_v27 = vpop.f32.mrb[63].mxu1  ;;  %v5316_v11 = vmax.f32 %v11030_v13, 1e-20  ;;  %v5573_v13 = vld [vmem:[%s16219_s11 + $0x350] sm:$0xff] }
0x235f   :  { %v5315_v31 = vmax.f32 %v5219_v27, 1e-20  ;;  %v12330_v27 = vpack.c.bf16 %v5572_v63, %v5571_v56  ;;  %v12334_v25 = vpack.c.bf16 %v5574_v3, %v5573_v13 }
0x2360   :  { %13063 = vrcp.f32 %v5316_v11  ;;  %v5575_v11 = vld [vmem:[%s16219_s11 + $0x360] sm:$0xff] }
0x2361   :  { %13065 = vrcp.f32 %v5315_v31  ;;  %v5576_v31 = vld [vmem:[%s16219_s11 + $0x368] sm:$0xff]  ;;  %12331 = vmatprep.subr.bf16.mxu0 %v12330_v27 }
0x2366   :  { %v13060_v46 = vpop.eup %13059 }
0x2367   :  { %v13062_v39 = vpop.eup %13061 }
0x236a   :  { %v13064_v30 = vpop.eup %13063 }
0x236b   :  { %v13066_v5 = vpop.eup %13065 }
0x2375   :  { %v11061_v6 = vpop.f32.mrb[64].mxu1 }
0x2376   :  { %v5322_v12 = vmul.f32 %v13060_v46, %v11061_v6  ;;  %v5294_v26 = vpop.f32.mrb[65].mxu1  ;;  %v12338_v46 = vpack.c.bf16 %v5576_v31, %v5575_v11  ;;  %v5835_v31 = vld [vmem:[%s16219_s11 + $0x3b0] sm:$0xff] }
0x2377   :  { %v5321_v54 = vmul.f32 %v13062_v39, %v5294_v26 }
0x2379   :  { %v11064_v23 = vpop.f32.mrb[66].mxu1  ;;  %11073 = vmatprep.mubr.msk.f32.mxu0 %vm319_vm5, %v5321_v54 }
0x237a   :  { %v5324_v40 = vmul.f32 %v13064_v30, %v11064_v23  ;;  %v5304_v10 = vpop.f32.mrb[67].mxu1  ;;  %11074 = vmatmul.mubr.msk.f32.vlgmr.msra.gmra.mrb[84].mxu0 %vm319_vm5, %v5322_v12 }
0x237b   :  { %v5323_v41 = vmul.f32 %v13066_v5, %v5304_v10  ;;  %12333 = vmatpush3.bf16.msra.mxu0 %v12330_v27 }
0x237c   :  { %12335 = vmatprep.subr.bf16.mxu0 %v12334_v25 }
0x237d   :  { %11076 = vmatprep.mubr.msk.f32.mxu0 %vm319_vm5, %v5323_v41 }
0x237e   :  { %11077 = vmatmul.mubr.msk.f32.gmra.mrb[86].mxu0 %vm319_vm5, %v5324_v40 }
0x237f   :  { %12337 = vmatpush3.bf16.msra.mxu0 %v12334_v25  ;;  %v12354_v25 = vpack.c.bf16 %v5834_v0, %v5833_v44 }
0x2380   :  { %12339 = vmatprep.subr.bf16.mxu0 %v12338_v46 }
0x2383   :  { %12341 = vmatpush3.bf16.msra.mxu0 %v12338_v46 }
0x244d   :  { %v11075_v17 = vpop.f32.mrb[84].mxu0 }
0x244e   :  { %v15118_v48 = vadd.f32 %v11075_v17, %v14884_v42  ;;  %v5403_v4 = vpop.f32.mrb[85].mxu0 }
0x244f   :  { %v15121_v58 = vadd.f32 %v5403_v4, %v14887_v53  ;;  %v15139_v53 = vld [vmem:[%s16212_s4] sm:$0xff] }
0x2450   :  { %v5427_v22 = vmul.f32 %v15118_v48, %v15118_v48  ;;  %v5726_v34 = vmul.f32 %v15139_v53, %v15139_v53 }
0x2451   :  { %v11078_v50 = vpop.f32.mrb[86].mxu0  ;;  %v5426_v37 = vmul.f32 %v15121_v58, %v15121_v58 }
0x2452   :  { %v15133_v2 = vadd.f32 %v11078_v50, %v14894_v52  ;;  %v5413_v42 = vpop.f32.mrb[87].mxu0  ;;  %v5433_v32 = vsel %vm319_vm5, %v5427_v22, 0.0  ;;  %v5727_v52 = vmul.f32 %v15130_v60, %v15130_v60  ;;  %v5728_v57 = vsel %vm319_vm5, %v5726_v34, 0.0 }
0x2453   :  { %v15142_v8 = vadd.f32 %v5413_v42, %v14898_v29  ;;  %5434 = vadd.xlane.f32.xlu1 %v5433_v32  ;;  %v5430_v49 = vsel %vm319_vm5, %v5426_v37, 0.0 }
0x2454   :  { %5431 = vadd.xlane.f32.xlu0 %v5430_v49  ;;  %v5429_v61 = vmul.f32 %v15133_v2, %v15133_v2  ;;  %v5731_v35 = vsel %vm319_vm5, %v5727_v52, 0.0 }
0x2455   :  { %v5428_v51 = vmul.f32 %v15142_v8, %v15142_v8 }
0x2456   :  { %v5439_v28 = vsel %vm668_vm9, %v5429_v61, 0.0  ;;  %v5461_v61 = vrot.slane %v14941_v9, %v14149_v24 }
0x2457   :  { %5440 = vadd.xlane.f32.xlu1 %v5439_v28  ;;  %v5436_v29 = vsel %vm319_vm5, %v5428_v51, 0.0  ;;  %v5750_v28 = vld [vmem:[%s16219_s11 + $0x390] sm:$0xff] }
0x2458   :  { %5437 = vadd.xlane.f32.xlu0 %v5436_v29  ;;  %v5751_v29 = vld [vmem:[%s16219_s11 + $0x398] sm:$0xff] }
0x2459   :  { %v12350_v62 = vpack.c.bf16 %v5751_v29, %v5750_v28  ;;  %v951_v28 = vld [vmem:[%s16219_s11 + $0x728] sm:$0xff]  ;;  %v944_v29 = vld [vmem:[%s16219_s11 + $0x6f0] sm:$0xff] }
0x245b   :  { %5732 = vadd.xlane.f32.xlu1 %v5731_v35 }
0x245c   :  { %5729 = vadd.xlane.f32.xlu0 %v5728_v57 }
0x24e0   :  { %v5435_v6 = vpop.xlane.xlu1 %5434 }
0x24e1   :  { %v5443_v39 = vmul.f32 0.03125, %v5435_v6  ;;  %v5432_v12 = vpop.xlane.xlu0 %5431  ;;  %v12358_v6 = vpack.c.bf16 %v5836_v47, %v5835_v31 }
0x24e2   :  { %v5442_v26 = vmul.f32 0.03125, %v5432_v12  ;;  %v5578_v12 = vld [vmem:[%s16219_s11 + $0x378] sm:$0xff] }
0x24e3   :  { %v5447_v54 = vadd.f32 1e-06, %v5443_v39  ;;  %v5577_v39 = vld [vmem:[%s16219_s11 + $0x370] sm:$0xff] }
0x24e4   :  { %v5446_v30 = vadd.f32 1e-06, %v5442_v26  ;;  %v5441_v23 = vpop.xlane.xlu1 %5440  ;;  %v12342_v26 = vpack.c.bf16 %v5578_v12, %v5577_v39 }
0x24e5   :  { %13067 = vrsqrt.f32 %v5447_v54  ;;  %v5445_v5 = vmul.f32 0.03125, %v5441_v23  ;;  %v5438_v40 = vpop.xlane.xlu0 %5437  ;;  %v5912_v54 = vld [vmem:[%s16219_s11 + $0x3c0] sm:$0xff] }
0x24e6   :  { %13069 = vrsqrt.f32 %v5446_v30  ;;  %v5444_v10 = vmul.f32 0.03125, %v5438_v40  ;;  %12343 = vmatprep.subr.bf16.mxu0 %v12342_v26  ;;  %v5913_v30 = vld [vmem:[%s16219_s11 + $0x3c8] sm:$0xff]  ;;  %v5914_v40 = vld [vmem:[%s16219_s11 + $0x3d0] sm:$0xff] }
0x24e7   :  { %v5449_v41 = vadd.f32 1e-06, %v5445_v5  ;;  %12345 = vmatpush3.bf16.msra.mxu0 %v12342_v26  ;;  %v12362_v23 = vpack.c.bf16 %v5913_v30, %v5912_v54 }
0x24e8   :  { %v5448_v17 = vadd.f32 1e-06, %v5444_v10  ;;  %v5733_v4 = vpop.xlane.xlu1 %5732  ;;  %v5915_v10 = vld [vmem:[%s16219_s11 + $0x3d8] sm:$0xff] }
0x24e9   :  { %13071 = vrsqrt.f32 %v5449_v41  ;;  %v5730_v22 = vpop.xlane.xlu0 %5729  ;;  %v5735_v50 = vmul.f32 0.03125, %v5733_v4  ;;  %12363 = vmatprep.subr.bf16.mxu0 %v12362_v23 }
0x24ea   :  { %13073 = vrsqrt.f32 %v5448_v17  ;;  %v5734_v37 = vmul.f32 0.03125, %v5730_v22  ;;  %v12366_v22 = vpack.c.bf16 %v5915_v10, %v5914_v40 }
0x24eb   :  { %v5737_v42 = vadd.f32 1e-06, %v5735_v50 }
0x24ec   :  { %v5736_v32 = vadd.f32 1e-06, %v5734_v37 }
0x24ed   :  { %13075 = vrsqrt.f32 %v5737_v42 }
0x24ee   :  { %13077 = vrsqrt.f32 %v5736_v32 }
0x24ef   :  { %v13068_v49 = vpop.eup %13067 }
0x24f0   :  { %v13070_v52 = vpop.eup %13069  ;;  %v5455_v51 = vmul.f32 %v13068_v49, %v15118_v48 }
0x24f1   :  { %v5454_v34 = vmul.f32 %v13070_v52, %v15121_v58  ;;  %v945_v52 = vld [vmem:[%s16219_s11 + $0x6f8] sm:$0xff] }
0x24f2   :  { %v5463_v7 = vmul.f32 %v5461_v61, %v5455_v51  ;;  %v947_v51 = vld [vmem:[%s16219_s11 + $0x708] sm:$0xff]  ;;  %v15300_v31 = vpack.c.bf16 %v945_v52, %v944_v29 }
0x24f3   :  { %v13072_v35 = vpop.eup %13071  ;;  %v5462_v57 = vmul.f32 %v5461_v61, %v5454_v34  ;;  %v949_v34 = vld [vmem:[%s16219_s11 + $0x718] sm:$0xff] }
0x24f4   :  { %v13074_v9 = vpop.eup %13073  ;;  %v5457_v59 = vmul.f32 %v13072_v35, %v15133_v2  ;;  %v946_v35 = vld [vmem:[%s16219_s11 + $0x700] sm:$0xff] }
0x24f5   :  { %11087 = vmatprep.mubr.msk.f32.mxu1 %vm319_vm5, %v5462_v57  ;;  %v5456_v43 = vmul.f32 %v13074_v9, %v15142_v8  ;;  %v948_v57 = vld [vmem:[%s16219_s11 + $0x710] sm:$0xff]  ;;  %v950_v9 = vld [vmem:[%s16219_s11 + $0x720] sm:$0xff]  ;;  %v15304_v47 = vpack.c.bf16 %v947_v51, %v946_v35 }
0x24f6   :  { %11088 = vmatmul.mubr.msk.f32.vlgmr.msra.gmra.mrb[68].mxu1 %vm319_vm5, %v5463_v7  ;;  %v5465_v3 = vmul.f32 %v5461_v61, %v5457_v59 }
0x24f7   :  { %v13076_v56 = vpop.eup %13075  ;;  %12349 = vmatpush3.bf16.msra.mxu1 %v12346_v36  ;;  %v5464_v63 = vmul.f32 %v5461_v61, %v5456_v43 }
0x24f8   :  { %v13078_v13 = vpop.eup %13077  ;;  %v5741_v27 = vmul.f32 %v13076_v56, %v15130_v60  ;;  %12351 = vmatprep.subr.bf16.mxu1 %v12350_v62 }
0x24f9   :  { %11090 = vmatprep.mubr.msk.f32.mxu1 %vm319_vm5, %v5464_v63  ;;  %v5740_v11 = vmul.f32 %v13078_v13, %v15139_v53 }
0x24fa   :  { %11091 = vmatmul.mubr.msk.f32.gmra.mrb[70].mxu1 %vm319_vm5, %v5465_v3  ;;  %v5747_v36 = vmul.f32 %v5745_v15, %v5741_v27 }
0x24fb   :  { %12353 = vmatpush3.bf16.msra.mxu1 %v12350_v62  ;;  %v5746_v46 = vmul.f32 %v5745_v15, %v5740_v11 }
0x24fc   :  { %12355 = vmatprep.subr.bf16.mxu1 %v12354_v25 }
0x24fd   :  { %11123 = vmatprep.mubr.msk.f32.mxu1 %vm319_vm5, %v5746_v46 }
0x24fe   :  { %11124 = vmatmul.mubr.msk.f32.vlgmr.msra.gmra.mrb[72].mxu1 %vm319_vm5, %v5747_v36 }
0x24ff   :  { %12357 = vmatpush3.bf16.msra.mxu1 %v12354_v25  ;;  %11134 = vmatprep.mubr.msk.f32.mxu1 %vm319_vm5, %v5746_v46 }
0x2500   :  { %12359 = vmatprep.subr.bf16.mxu1 %v12358_v6 }
0x2503   :  { %12361 = vmatpush3.bf16.msra.mxu1 %v12358_v6 }
0x2506   :  { %11135 = vmatmul.mubr.msk.f32.vlgmr.msra.gmra.mrb[74].mxu1 %vm319_vm5, %v5747_v36 }
0x25c9   :  { %v11089_v5 = vpop.f32.mrb[68].mxu1 }
0x25ca   :  { %v5548_v41 = vpop.f32.mrb[69].mxu1  ;;  %v5568_v4 = vmax.f32 %v11089_v5, 0.0 }
0x25cb   :  { %v5567_v17 = vmax.f32 %v5548_v41, 0.0 }
0x25cd   :  { %v11092_v50 = vpop.f32.mrb[70].mxu1  ;;  %11109 = vmatprep.mubr.msk.f32.mxu0 %vm527_vm7, %v5567_v17 }
0x25ce   :  { %v5558_v37 = vpop.f32.mrb[71].mxu1  ;;  %11110 = vmatmul.mubr.msk.f32.vlgmr.msra.gmra.mrb[88].mxu0 %vm527_vm7, %v5568_v4  ;;  %v5570_v32 = vmax.f32 %v11092_v50, 0.0 }
0x25cf   :  { %v5569_v42 = vmax.f32 %v5558_v37, 0.0  ;;  %12365 = vmatpush3.bf16.msra.mxu0 %v12362_v23 }
0x25d0   :  { %12367 = vmatprep.subr.bf16.mxu0 %v12366_v22 }
0x25d1   :  { %11112 = vmatprep.mubr.msk.f32.mxu0 %vm527_vm7, %v5569_v42  ;;  %v11125_v49 = vpop.f32.mrb[72].mxu1 }
0x25d2   :  { %11113 = vmatmul.mubr.msk.f32.gmra.mrb[90].mxu0 %vm527_vm7, %v5570_v32  ;;  %v5824_v61 = vpop.f32.mrb[73].mxu1 }
0x25d3   :  { %12369 = vmatpush3.bf16.msra.mxu0 %v12366_v22  ;;  %11145 = vmatprep.mubr.msk.f32.mxu0 %vm319_vm5, %v5746_v46  ;;  %v15310_v46 = vpack.c.bf16 %v951_v28, %v950_v9 }
0x25d4   :  { %11164 = vmatprep.mubr.msk.f32.mxu1 %vm319_vm5, %v5824_v61  ;;  %12395 = vmatprep.subr.bf16.mxu0 %v15300_v31 }
0x25d6   :  { %11146 = vmatmul.mubr.msk.f32.vlgmr.msra.gmra.mrb[92].mxu0 %vm319_vm5, %v5747_v36  ;;  %v15308_v36 = vpack.c.bf16 %v949_v34, %v948_v57 }
0x25d7   :  { %12397 = vmatpush3.bf16.msra.mxu0 %v15300_v31 }
0x25d8   :  { %12399 = vmatprep.subr.bf16.mxu0 %v15304_v47 }
0x25d9   :  { %v11136_v7 = vpop.f32.mrb[74].mxu1 }
0x25da   :  { %v5996_v62 = vmul.f32 %v11136_v7, %v945_v52  ;;  %v5998_v59 = vmul.f32 %v11136_v7, %v947_v51  ;;  %v6000_v43 = vmul.f32 %v11136_v7, %v949_v34  ;;  %v6002_v44 = vmul.f32 %v11136_v7, %v951_v28  ;;  %v5903_v0 = vpop.f32.mrb[75].mxu1 }
0x25db   :  { %v5995_v15 = vmul.f32 %v5903_v0, %v944_v29  ;;  %v5997_v56 = vmul.f32 %v5903_v0, %v946_v35  ;;  %v5999_v63 = vmul.f32 %v5903_v0, %v948_v57  ;;  %v6001_v13 = vmul.f32 %v5903_v0, %v950_v9  ;;  %12401 = vmatpush3.bf16.msra.mxu0 %v15304_v47 }
0x25dc   :  { %12403 = vmatprep.subr.bf16.mxu0 %v15308_v36 }
0x25dd   :  { %v12370_v27 = vpack.c.bf16 %v5996_v62, %v5995_v15  ;;  %v12376_v3 = vpack.c.bf16 %v5998_v59, %v5997_v56  ;;  %v12382_v25 = vpack.c.bf16 %v6000_v43, %v5999_v63  ;;  %v12388_v11 = vpack.c.bf16 %v6002_v44, %v6001_v13 }
0x25df   :  { %12372 = vmatprep.subr.msk.bf16.mxu1 %vm13778_vm11, %v12370_v27  ;;  %12405 = vmatpush3.bf16.msra.mxu0 %v15308_v36 }
0x25e0   :  { %12375 = vmatpush3.bf16.xpose.msk.msra.mxu1 %vm13778_vm11, %v12370_v27  ;;  %12407 = vmatprep.subr.bf16.mxu0 %v15310_v46 }
0x25e1   :  { %12378 = vmatprep.subr.msk.bf16.mxu1 %vm13778_vm11, %v12376_v3 }
0x25e3   :  { %12409 = vmatpush3.bf16.msra.mxu0 %v15310_v46 }
0x25e8   :  { %12381 = vmatpush3.bf16.xpose.msk.msra.mxu1 %vm13778_vm11, %v12376_v3 }
0x25e9   :  { %12384 = vmatprep.subr.msk.bf16.mxu1 %vm13778_vm11, %v12382_v25 }
0x25f0   :  { %12387 = vmatpush3.bf16.xpose.msk.msra.mxu1 %vm13778_vm11, %v12382_v25 }
0x25f1   :  { %12390 = vmatprep.subr.msk.bf16.mxu1 %vm13778_vm11, %v12388_v11 }
0x25f8   :  { %12393 = vmatpush3.bf16.xpose.msk.msra.mxu1 %vm13778_vm11, %v12388_v11 }
0x25ff   :  { %11165 = vmatmul.mubr.msk.f32.vlgmr.msra.gmra.mrb[76].mxu1 %vm319_vm5, %v11125_v49  ;;  %v15319_v49 = vld [vmem:[%s16213_s5 + $0x8] sm:$0xff] }
0x26a1   :  { %v11111_v6 = vpop.f32.mrb[88].mxu0 }
0x26a2   :  { %v5657_v39 = vpop.f32.mrb[89].mxu0  ;;  %v15322_v61 = vadd.f32 %v11111_v6, %v15118_v48  ;;  %v5991_v6 = vld [vmem:[%s16219_s11 + $0x3e0] sm:$0xff] }
0x26a5   :  { %v11114_v12 = vpop.f32.mrb[90].mxu0 }
0x26a6   :  { %v5667_v26 = vpop.f32.mrb[91].mxu0  ;;  %v15337_v48 = vadd.f32 %v11114_v12, %v15133_v2 }
0x26a8   :  { %v5683_v59 = vmul.f32 %v15337_v48, %v15337_v48 }
0x26a9   :  { %v11147_v54 = vpop.f32.mrb[92].mxu0 }
0x26aa   :  { %v6004_v30 = vmul.f32 %v11147_v54, %v945_v52  ;;  %v6006_v23 = vmul.f32 %v11147_v54, %v947_v51  ;;  %v6008_v5 = vmul.f32 %v11147_v54, %v949_v34  ;;  %v6010_v40 = vmul.f32 %v11147_v54, %v951_v28  ;;  %v5982_v10 = vpop.f32.mrb[93].mxu0  ;;  %v15327_v52 = vld [vmem:[%s16213_s5] sm:$0xff]  ;;  %v5994_v54 = vld [vmem:[%s16219_s11 + $0x3f8] sm:$0xff] }
0x26ab   :  { %v6003_v41 = vmul.f32 %v5982_v10, %v944_v29  ;;  %v6005_v17 = vmul.f32 %v5982_v10, %v946_v35  ;;  %v6007_v4 = vmul.f32 %v5982_v10, %v948_v57  ;;  %v6009_v22 = vmul.f32 %v5982_v10, %v950_v9 }
0x26ac   :  { %v15330_v51 = vadd.f32 %v5657_v39, %v15121_v58  ;;  %v5681_v57 = vmul.f32 %v15322_v61, %v15322_v61  ;;  %v15343_v58 = vadd.f32 %v5667_v26, %v15142_v8  ;;  %v5693_v0 = vsel %vm668_vm9, %v5683_v59, 0.0  ;;  %v5992_v39 = vld [vmem:[%s16219_s11 + $0x3e8] sm:$0xff]  ;;  %v5993_v26 = vld [vmem:[%s16219_s11 + $0x3f0] sm:$0xff] }
0x26ad   :  { %v12410_v50 = vpack.c.bf16 %v6004_v30, %v6003_v41  ;;  %v12414_v37 = vpack.c.bf16 %v6006_v23, %v6005_v17  ;;  %v12418_v42 = vpack.c.bf16 %v6008_v5, %v6007_v4  ;;  %v12422_v32 = vpack.c.bf16 %v6010_v40, %v6009_v22  ;;  %v6480_v23 = vld [vmem:[%s16219_s11 + $0x420] sm:$0xff]  ;;  %v6481_v5 = vld [vmem:[%s16219_s11 + $0x428] sm:$0xff] }
0x26ae   :  { %v5680_v7 = vmul.f32 %v15330_v51, %v15330_v51  ;;  %v5687_v43 = vsel %vm319_vm5, %v5681_v57, 0.0  ;;  %v5682_v2 = vmul.f32 %v15343_v58, %v15343_v58  ;;  %v12426_v12 = vpack.c.bf16 %v5992_v39, %v5991_v6 }
0x26af   :  { %12411 = vmatprep.subr.bf16.mxu0 %v12410_v50  ;;  %v12430_v30 = vpack.c.bf16 %v5994_v54, %v5993_v26  ;;  %v12442_v40 = vpack.c.bf16 %v6481_v5, %v6480_v23 }
0x26b0   :  { %v5684_v44 = vsel %vm319_vm5, %v5680_v7, 0.0  ;;  %v5690_v8 = vsel %vm319_vm5, %v5682_v2, 0.0  ;;  %12427 = vmatprep.subr.bf16.mxu1 %v12426_v12 }
0x26b1   :  { %12429 = vmatpush3.bf16.msra.mxu1 %v12426_v12 }
0x26b2   :  { %12431 = vmatprep.subr.bf16.mxu1 %v12430_v30 }
0x26b5   :  { %12433 = vmatpush3.bf16.msra.mxu1 %v12430_v30 }
0x26b6   :  { %12443 = vmatprep.subr.bf16.mxu1 %v12442_v40 }
0x26d2   :  { %v11166_v34 = vpop.f32.mrb[76].mxu1 }
0x26d3   :  { %v6113_v28 = vadd.f32 %v11166_v34, %v15319_v49  ;;  %v6107_v29 = vpop.f32.mrb[77].mxu1 }
0x26d4   :  { %v6108_v35 = vadd.f32 %v6107_v29, %v15327_v52 }
0x26d5   :  { %v6119_v9 = vsel %vm527_vm7, %v6113_v28, -inf }
0x26d6   :  { %6120 = vmax.xlane.f32.xlu1 %v6119_v9  ;;  %v6116_v62 = vsel %vm527_vm7, %v6108_v35, -inf }
0x26d7   :  { %6117 = vmax.xlane.f32.xlu0 %v6116_v62 }
0x26da   :  { %5688 = vadd.xlane.f32.xlu1 %v5687_v43 }
0x26db   :  { %5685 = vadd.xlane.f32.xlu0 %v5684_v44  ;;  %v5715_v44 = vrot.slane %v15206_v16, %v13427_v45 }
0x26de   :  { %5694 = vadd.xlane.f32.xlu1 %v5693_v0  ;;  %v6482_v0 = vld [vmem:[%s16219_s11 + $0x430] sm:$0xff] }
0x26df   :  { %5691 = vadd.xlane.f32.xlu0 %v5690_v8  ;;  %v6483_v8 = vld [vmem:[%s16219_s11 + $0x438] sm:$0xff] }
0x2763   :  { %v6121_v15 = vpop.xlane.xlu1 %6120 }
0x2764   :  { %v6123_v56 = vsub.f32 %v6113_v28, %v6121_v15  ;;  %v6118_v63 = vpop.xlane.xlu0 %6117 }
0x2765   :  { %v6122_v13 = vsub.f32 %v6108_v35, %v6118_v63 }
0x2766   :  { %v6126_v27 = vmul.f32 1.442695, %v6123_v56 }
0x2767   :  { %v6124_v3 = vmul.f32 1.442695, %v6122_v13  ;;  %v5689_v17 = vpop.xlane.xlu1 %5688 }
0x2768   :  { %v5686_v10 = vpop.xlane.xlu0 %5685 }
0x2769   :  { %13079 = vpow2.f32 %v6124_v3  ;;  %v5696_v41 = vmul.f32 0.03125, %v5686_v10 }
0x276a   :  { %13081 = vpow2.f32 %v6126_v27  ;;  %v12446_v27 = vpack.c.bf16 %v6483_v8, %v6482_v0  ;;  %v15461_v8 = vld [vmem:[%s16219_s11 + $0x6c0] sm:$0xff] }
0x276b   :  { %v5700_v4 = vadd.f32 1e-06, %v5696_v41  ;;  %v5695_v34 = vpop.xlane.xlu1 %5694 }
0x276c   :  { %v5692_v22 = vpop.xlane.xlu0 %5691  ;;  %v5699_v57 = vmul.f32 0.03125, %v5695_v34 }
0x276d   :  { %13083 = vrsqrt.f32 %v5700_v4  ;;  %v5698_v28 = vmul.f32 0.03125, %v5692_v22 }
0x276e   :  { %v5703_v7 = vadd.f32 1e-06, %v5699_v57 }
0x276f   :  { %v5702_v9 = vadd.f32 1e-06, %v5698_v28 }
0x2773   :  { %v13080_v25 = vpop.eup %13079 }
0x2774   :  { %v13082_v11 = vpop.eup %13081  ;;  %11183 = vmatprep.mubr.msk.f32.mxu0 %vm527_vm7, %v13080_v25 }
0x2775   :  { %11184 = vmatmul.mubr.msk.f32.vlgmr.msra.gmra.mrb[94].mxu0 %vm527_vm7, %v13082_v11 }
0x2776   :  { %12413 = vmatpush3.bf16.msra.mxu0 %v12410_v50  ;;  %11202 = vmatprep.mubr.msk.f32.mxu0 %vm527_vm7, %v13080_v25 }
0x2777   :  { %12415 = vmatprep.subr.bf16.mxu0 %v12414_v37  ;;  %v13084_v62 = vpop.eup %13083 }
0x2778   :  { %v5708_v2 = vmul.f32 %v13084_v62, %v15330_v51 }
0x277a   :  { %12417 = vmatpush3.bf16.msra.mxu0 %v12414_v37  ;;  %v15386_v51 = vmul.f32 %v5715_v44, %v5708_v2 }
0x277b   :  { %12419 = vmatprep.subr.bf16.mxu0 %v12418_v42 }
0x277e   :  { %12421 = vmatpush3.bf16.msra.mxu0 %v12418_v42  ;;  %v5697_v42 = vmul.f32 0.03125, %v5689_v17 }
0x277f   :  { %12423 = vmatprep.subr.bf16.mxu0 %v12422_v32 }
0x2780   :  { %v5701_v35 = vadd.f32 1e-06, %v5697_v42 }
0x2782   :  { %12425 = vmatpush3.bf16.msra.mxu0 %v12422_v32 }
0x2785   :  { %11203 = vmatmul.mubr.msk.f32.vlgmr.msra.gmra.mrb[96].mxu0 %vm527_vm7, %v13082_v11 }
0x2848   :  { %v11185_v50 = vpop.f32.mrb[94].mxu0 }
0x2849   :  { %v6200_v37 = vpop.f32.mrb[95].mxu0  ;;  %v6285_v32 = vmax.f32 %v11185_v50, 1e-20  ;;  %v15427_v50 = vld [vmem:[%s16219_s11 + $0x680] sm:$0xff] }
0x284a   :  { %v6284_v29 = vmax.f32 %v6200_v37, 1e-20 }
0x284b   :  { %13085 = vrcp.f32 %v6285_v32 }
0x284c   :  { %13087 = vrcp.f32 %v6284_v29 }
0x284d   :  { %13089 = vrsqrt.f32 %v5701_v35  ;;  %v15435_v35 = vld [vmem:[%s16219_s11 + $0x6d8] sm:$0xff] }
0x284e   :  { %13091 = vrsqrt.f32 %v5702_v9 }
0x284f   :  { %13093 = vrsqrt.f32 %v5703_v7  ;;  %v15441_v7 = vld [vmem:[%s16219_s11 + $0x698] sm:$0xff] }
0x2855   :  { %v13086_v59 = vpop.eup %13085 }
0x2856   :  { %v13088_v15 = vpop.eup %13087 }
0x2857   :  { %v13090_v3 = vpop.eup %13089 }
0x2858   :  { %v11204_v43 = vpop.f32.mrb[96].mxu0  ;;  %v13092_v25 = vpop.eup %13091  ;;  %v5709_v45 = vmul.f32 %v13090_v3, %v15322_v61  ;;  %v15479_v3 = vld [vmem:[%s16219_s11 + $0x6c8] sm:$0xff] }
0x2859   :  { %v6289_v56 = vmul.f32 %v13086_v59, %v11204_v43  ;;  %v6275_v63 = vpop.f32.mrb[97].mxu0  ;;  %v13094_v11 = vpop.eup %13093  ;;  %v5710_v6 = vmul.f32 %v13092_v25, %v15343_v58  ;;  %v15447_v59 = vld [vmem:[%s16219_s11 + $0x6d0] sm:$0xff] }
0x285a   :  { %v6288_v13 = vmul.f32 %v13088_v15, %v6275_v63  ;;  %v15393_v39 = vmul.f32 %v5715_v44, %v5709_v45  ;;  %v5711_v12 = vmul.f32 %v13094_v11, %v15337_v48 }
0x285b   :  { %v15396_v26 = vmul.f32 %v5715_v44, %v5710_v6 }
0x285c   :  { %11213 = vmatprep.mubr.msk.f32.mxu1 %vm319_vm5, %v6288_v13  ;;  %v15402_v54 = vmul.f32 %v5715_v44, %v5711_v12  ;;  %v15453_v44 = vld [vmem:[%s16219_s11 + $0x690] sm:$0xff]  ;;  %v15473_v13 = vld [vmem:[%s16219_s11 + $0x6a0] sm:$0xff] }
0x285d   :  { %11214 = vmatmul.mubr.msk.f32.vlgmr.msra.gmra.mrb[78].mxu1 %vm319_vm5, %v6289_v56  ;;  %v15467_v56 = vld [vmem:[%s16219_s11 + $0x6b8] sm:$0xff] }
0x285e   :  { %12445 = vmatpush3.bf16.msra.mxu1 %v12442_v40  ;;  %11235 = vmatprep.mubr.msk.f32.mxu1 %vm319_vm5, %v15386_v51 }
0x285f   :  { %12447 = vmatprep.subr.bf16.mxu1 %v12446_v27 }
0x2862   :  { %12449 = vmatpush3.bf16.msra.mxu1 %v12446_v27 }
0x2865   :  { %11236 = vmatmul.mubr.msk.f32.vlgmr.msra.gmra.mrb[80].mxu1 %vm319_vm5, %v15393_v39 }
0x2866   :  { %11238 = vmatprep.mubr.msk.f32.mxu1 %vm319_vm5, %v15396_v26 }
0x2869   :  { %11239 = vmatmul.mubr.msk.f32.gmra.mrb[82].mxu1 %vm319_vm5, %v15402_v54 }
0x2930   :  { %v11215_v61 = vpop.f32.mrb[78].mxu1 }
0x2931   :  { %v15407_v58 = vadd.f32 %v11215_v61, %v15130_v60  ;;  %v6362_v30 = vpop.f32.mrb[79].mxu1  ;;  %v15421_v60 = vld [vmem:[%s16219_s11 + $0x688] sm:$0xff] }
0x2932   :  { %v15410_v48 = vadd.f32 %v6362_v30, %v15139_v53  ;;  %v15489_v61 = vld [vmem:[%s16219_s11 + $0x6a8] sm:$0xff] }
0x2933   :  { %v6374_v23 = vmul.f32 %v15407_v58, %v15407_v58 }
0x2934   :  { %v6373_v5 = vmul.f32 %v15410_v48, %v15410_v48 }
0x2935   :  { %v6378_v40 = vsel %vm319_vm5, %v6374_v23, 0.0  ;;  %v15495_v23 = vld [vmem:[%s16219_s11 + $0x6b0] sm:$0xff] }
0x2936   :  { %6379 = vadd.xlane.f32.xlu1 %v6378_v40  ;;  %v6375_v10 = vsel %vm319_vm5, %v6373_v5, 0.0  ;;  %v15501_v40 = vld [vmem:[%s16219_s11 + $0x6e0] sm:$0xff] }
0x2937   :  { %6376 = vadd.xlane.f32.xlu0 %v6375_v10 }
0x2938   :  { %v11237_v41 = vpop.f32.mrb[80].mxu1 }
0x2939   :  { %v6679_v17 = vrot.slane %v11237_v41, 4  ;;  %v6691_v53 = vmul.f32 %v15421_v60, %v11237_v41  ;;  %v6562_v4 = vpop.f32.mrb[81].mxu1  ;;  %v6698_v15 = vmul.f32 %v15461_v8, %v11237_v41  ;;  %v15507_v41 = vld [vmem:[%s16219_s11 + $0x6e8] sm:$0xff] }
0x293a   :  { %v6678_v22 = vrot.slane %v6562_v4, 4  ;;  %v6690_v37 = vmul.f32 %v15427_v50, %v6562_v4  ;;  %v6697_v63 = vmul.f32 %v15467_v56, %v6562_v4 }
0x293c   :  { %v12458_v42 = vpack.c.bf16 %v6691_v53, %v6690_v37  ;;  %v11240_v32 = vpop.f32.mrb[82].mxu1  ;;  %v6680_v34 = vsel %vm1259_vm10, %v6678_v22, %v6679_v17 }
0x293d   :  { %v6683_v28 = vrot.slane %v11240_v32, 4  ;;  %v6689_v29 = vsel %vm1259_vm10, %v11240_v32, %v6678_v22  ;;  %v6701_v57 = vmul.f32 %v15435_v35, %v6680_v34  ;;  %v6572_v9 = vpop.f32.mrb[83].mxu1  ;;  %v6694_v27 = vmul.f32 %v15473_v13, %v6680_v34  ;;  %v6396_v32 = vld [vmem:[%s16219_s11 + $0x408] sm:$0xff] }
0x293e   :  { %v6693_v62 = vmul.f32 %v15441_v7, %v6689_v29  ;;  %v6700_v43 = vmul.f32 %v15447_v59, %v6689_v29  ;;  %v6681_v2 = vrot.slane %v6572_v9, 4  ;;  %v6692_v0 = vmul.f32 %v15453_v44, %v6572_v9  ;;  %12460 = vmatprep.subr.msk.bf16.mxu1 %vm13778_vm11, %v12458_v42  ;;  %v6398_v29 = vld [vmem:[%s16219_s11 + $0x418] sm:$0xff] }
0x293f   :  { %v6699_v25 = vmul.f32 %v15479_v3, %v6572_v9  ;;  %12463 = vmatpush3.bf16.xpose.msk.msra.mxu1 %vm13778_vm11, %v12458_v42  ;;  %v6395_v42 = vld [vmem:[%s16219_s11 + $0x400] sm:$0xff] }
0x2940   :  { %v12488_v45 = vpack.c.bf16 %v6701_v57, %v6700_v43  ;;  %v6682_v11 = vsel %vm1259_vm10, %v6679_v17, %v6681_v2  ;;  %v6684_v6 = vsel %vm1259_vm10, %v6681_v2, %v6683_v28  ;;  %v12464_v12 = vpack.c.bf16 %v6693_v62, %v6692_v0  ;;  %v6397_v28 = vld [vmem:[%s16219_s11 + $0x410] sm:$0xff]  ;;  %v6581_v9 = vld [vmem:[%s16219_s11 + $0x440] sm:$0xff]  ;;  %v6582_v62 = vld [vmem:[%s16219_s11 + $0x448] sm:$0xff] }
0x2941   :  { %v6695_v30 = vmul.f32 %v15489_v61, %v6682_v11  ;;  %v6696_v5 = vmul.f32 %v15495_v23, %v6684_v6  ;;  %v6702_v10 = vmul.f32 %v15501_v40, %v6682_v11  ;;  %v6703_v17 = vmul.f32 %v15507_v41, %v6684_v6 }
0x2942   :  { %v12482_v53 = vpack.c.bf16 %v6699_v25, %v6698_v15  ;;  %12466 = vmatprep.subr.msk.bf16.mxu1 %vm13778_vm11, %v12464_v12  ;;  %v12434_v34 = vpack.c.bf16 %v6396_v32, %v6395_v42  ;;  %v12438_v57 = vpack.c.bf16 %v6398_v29, %v6397_v28  ;;  %v12450_v43 = vpack.c.bf16 %v6582_v62, %v6581_v9 }
0x2943   :  { %v12470_v4 = vpack.c.bf16 %v6695_v30, %v6694_v27  ;;  %v12476_v22 = vpack.c.bf16 %v6697_v63, %v6696_v5  ;;  %v12494_v37 = vpack.c.bf16 %v6703_v17, %v6702_v10  ;;  %v6392_v6 = vrot.slane %v15206_v16, %v13631_v18  ;;  %v6583_v5 = vld [vmem:[%s16219_s11 + $0x450] sm:$0xff]  ;;  %v6584_v10 = vld [vmem:[%s16219_s11 + $0x458] sm:$0xff] }
0x2944   :  { %12435 = vmatprep.subr.bf16.mxu0 %v12434_v34 }
0x2945   :  { %12437 = vmatpush3.bf16.msra.mxu0 %v12434_v34 }
0x2946   :  { %12439 = vmatprep.subr.bf16.mxu0 %v12438_v57 }
0x2947   :  { %12469 = vmatpush3.bf16.xpose.msk.msra.mxu1 %vm13778_vm11, %v12464_v12 }
0x2948   :  { %12472 = vmatprep.subr.msk.bf16.mxu1 %vm13778_vm11, %v12470_v4 }
0x2949   :  { %12441 = vmatpush3.bf16.msra.mxu0 %v12438_v57 }
0x294a   :  { %12451 = vmatprep.subr.bf16.mxu0 %v12450_v43 }
0x294f   :  { %12475 = vmatpush3.bf16.xpose.msk.msra.mxu1 %vm13778_vm11, %v12470_v4  ;;  %v12454_v4 = vpack.c.bf16 %v6584_v10, %v6583_v5 }
0x2950   :  { %12478 = vmatprep.subr.msk.bf16.mxu1 %vm13778_vm11, %v12476_v22 }
0x2957   :  { %12481 = vmatpush3.bf16.xpose.msk.msra.mxu1 %vm13778_vm11, %v12476_v22 }
0x2958   :  { %12484 = vmatprep.subr.msk.bf16.mxu1 %vm13778_vm11, %v12482_v53 }
0x295f   :  { %12487 = vmatpush3.bf16.xpose.msk.msra.mxu1 %vm13778_vm11, %v12482_v53 }
0x2960   :  { %12490 = vmatprep.subr.msk.bf16.mxu1 %vm13778_vm11, %v12488_v45 }
0x2967   :  { %12493 = vmatpush3.bf16.xpose.msk.msra.mxu1 %vm13778_vm11, %v12488_v45 }
0x2968   :  { %12496 = vmatprep.subr.msk.bf16.mxu1 %vm13778_vm11, %v12494_v37 }
0x296f   :  { %12499 = vmatpush3.bf16.xpose.msk.msra.mxu1 %vm13778_vm11, %v12494_v37 }
0x29c3   :  { %v6380_v2 = vpop.xlane.xlu1 %6379 }
0x29c4   :  { %v6382_v0 = vmul.f32 0.03125, %v6380_v2  ;;  %v6377_v15 = vpop.xlane.xlu0 %6376 }
0x29c5   :  { %v6381_v63 = vmul.f32 0.03125, %v6377_v15 }
0x29c6   :  { %v6384_v27 = vadd.f32 1e-06, %v6382_v0 }
0x29c7   :  { %v6383_v25 = vadd.f32 1e-06, %v6381_v63 }
0x29c8   :  { %13095 = vrsqrt.f32 %v6384_v27 }
0x29c9   :  { %13097 = vrsqrt.f32 %v6383_v25 }
0x29d2   :  { %v13096_v11 = vpop.eup %13095 }
0x29d3   :  { %v13098_v12 = vpop.eup %13097  ;;  %v6388_v45 = vmul.f32 %v13096_v11, %v15407_v58 }
0x29d4   :  { %v6387_v30 = vmul.f32 %v13098_v12, %v15410_v48 }
0x29d5   :  { %v6394_v53 = vmul.f32 %v6392_v6, %v6388_v45 }
0x29d6   :  { %v6393_v17 = vmul.f32 %v6392_v6, %v6387_v30 }
0x29d8   :  { %11224 = vmatprep.mubr.msk.f32.mxu0 %vm319_vm5, %v6393_v17 }
0x29d9   :  { %11225 = vmatmul.mubr.msk.f32.vlgmr.msra.gmra.mrb[98].mxu0 %vm319_vm5, %v6394_v53 }
0x29da   :  { %12453 = vmatpush3.bf16.msra.mxu0 %v12450_v43  ;;  %11249 = vmatprep.mubr.msk.f32.mxu0 %vm319_vm5, %v15386_v51 }
0x29db   :  { %12455 = vmatprep.subr.bf16.mxu0 %v12454_v4 }
0x29de   :  { %12457 = vmatpush3.bf16.msra.mxu0 %v12454_v4 }
0x29df   :  { %12501 = vmatprep.subr.bf16.mxu0 %v13926_v1 }
0x29e1   :  { %11250 = vmatmul.mubr.msk.f32.vlgmr.msra.gmra.mrb[100].mxu0 %vm319_vm5, %v15393_v39 }
0x29e2   :  { %11252 = vmatprep.mubr.msk.f32.mxu0 %vm319_vm5, %v15396_v26  ;;  %12503 = vmatpush3.bf16.msra.mxu0 %v13926_v1 }
0x29e3   :  { %12505 = vmatprep.subr.bf16.mxu0 %v13930_v21 }
0x29e5   :  { %11253 = vmatmul.mubr.msk.f32.gmra.mrb[102].mxu0 %vm319_vm5, %v15402_v54 }
0x29e6   :  { %12507 = vmatpush3.bf16.msra.mxu0 %v13930_v21 }
0x29e7   :  { %12509 = vmatprep.subr.bf16.mxu0 %v13937_v20 }
0x29ea   :  { %12511 = vmatpush3.bf16.msra.mxu0 %v13937_v20 }
0x29eb   :  { %12513 = vmatprep.subr.bf16.mxu0 %v13960_v55 }
0x29ee   :  { %12515 = vmatpush3.bf16.msra.mxu0 %v13960_v55 }
0x29ef   :  { %12517 = vmatprep.subr.bf16.mxu0 %v13966_v14 }
0x29f2   :  { %12519 = vmatpush3.bf16.msra.mxu0 %v13966_v14 }
0x29f3   :  { %12521 = vmatprep.subr.bf16.mxu0 %v13970_v19 }
0x29f6   :  { %12523 = vmatpush3.bf16.msra.mxu0 %v13970_v19 }
0x29f7   :  { %12525 = vmatprep.subr.bf16.mxu0 %v16248_v38 }
0x29fa   :  { %12527 = vmatpush3.bf16.msra.mxu0 %v16248_v38 }
0x2aac   :  { %v11226_v18 = vpop.f32.mrb[98].mxu0 }
0x2aad   :  { %v6471_v22 = vpop.f32.mrb[99].mxu0 }
0x2aae   :  { %11283 = vmatprep.mubr.msk.f32.mxu1 %vm319_vm5, %v6471_v22 }
0x2aaf   :  { %11284 = vmatmul.mubr.msk.f32.vlgmr.msra.gmra.mrb[84].mxu1 %vm319_vm5, %v11226_v18 }
0x2ab4   :  { %v11251_v37 = vpop.f32.mrb[100].mxu0 }
0x2ab5   :  { %v6709_v42 = vrot.slane %v11251_v37, 4  ;;  %v6721_v32 = vmul.f32 %v15421_v60, %v11251_v37  ;;  %v6651_v34 = vpop.f32.mrb[101].mxu0  ;;  %v6728_v6 = vmul.f32 %v15461_v8, %v11251_v37 }
0x2ab6   :  { %v6708_v28 = vrot.slane %v6651_v34, 4  ;;  %v6720_v29 = vmul.f32 %v15427_v50, %v6651_v34  ;;  %v6727_v12 = vmul.f32 %v15467_v56, %v6651_v34 }
0x2ab8   :  { %v11254_v57 = vpop.f32.mrb[102].mxu0  ;;  %v12528_v9 = vpack.c.bf16 %v6721_v32, %v6720_v29  ;;  %v6710_v62 = vsel %vm1259_vm10, %v6708_v28, %v6709_v42 }
0x2ab9   :  { %v6713_v43 = vrot.slane %v11254_v57, 4  ;;  %v6719_v2 = vsel %vm1259_vm10, %v11254_v57, %v6708_v28  ;;  %v6661_v0 = vpop.f32.mrb[103].mxu0  ;;  %v6731_v15 = vmul.f32 %v15435_v35, %v6710_v62  ;;  %v6724_v30 = vmul.f32 %v15473_v13, %v6710_v62  ;;  %v15609_v57 = vld [vmem:[%s16214_s6 + $0x8] sm:$0xff] }
0x2aba   :  { %v6723_v63 = vmul.f32 %v15441_v7, %v6719_v2  ;;  %v6730_v27 = vmul.f32 %v15447_v59, %v6719_v2  ;;  %v6711_v25 = vrot.slane %v6661_v0, 4  ;;  %v6722_v11 = vmul.f32 %v15453_v44, %v6661_v0  ;;  %12529 = vmatprep.subr.bf16.mxu0 %v12528_v9  ;;  %16249 = vst [vmem:[#allocation13_spill] sm:$0xff] %v15609_v57 }
0x2abb   :  { %v6729_v45 = vmul.f32 %v15479_v3, %v6661_v0 }
0x2abc   :  { %v12532_v5 = vpack.c.bf16 %v6723_v63, %v6722_v11  ;;  %v6712_v10 = vsel %vm1259_vm10, %v6709_v42, %v6711_v25  ;;  %v6714_v17 = vsel %vm1259_vm10, %v6711_v25, %v6713_v43  ;;  %v12548_v53 = vpack.c.bf16 %v6731_v15, %v6730_v27  ;;  %v15614_v42 = vld [vmem:[%s16214_s6] sm:$0xff] }
0x2abd   :  { %v6725_v4 = vmul.f32 %v15489_v61, %v6712_v10  ;;  %v6726_v18 = vmul.f32 %v15495_v23, %v6714_v17  ;;  %v12544_v22 = vpack.c.bf16 %v6729_v45, %v6728_v6  ;;  %v6732_v32 = vmul.f32 %v15501_v40, %v6712_v10  ;;  %16250 = vst [vmem:[#allocation14_spill] sm:$0xff] %v15614_v42 }
0x2abe   :  { %v6733_v37 = vmul.f32 %v15507_v41, %v6714_v17 }
0x2abf   :  { %v12536_v34 = vpack.c.bf16 %v6725_v4, %v6724_v30  ;;  %v12540_v28 = vpack.c.bf16 %v6727_v12, %v6726_v18  ;;  %v6672_v4 = vld [vmem:[%s16219_s11 + $0x470] sm:$0xff] }
0x2ac0   :  { %v12552_v29 = vpack.c.bf16 %v6733_v37, %v6732_v32 }
0x2b82   :  { %v11285_v62 = vpop.f32.mrb[84].mxu1 }
0x2b83   :  { %v6854_v43 = vadd.f32 %v11285_v62, %v15609_v57  ;;  %v6848_v2 = vpop.f32.mrb[85].mxu1 }
0x2b84   :  { %v6849_v0 = vadd.f32 %v6848_v2, %v15614_v42 }
0x2b85   :  { %v6860_v15 = vsel %vm1455_vm12, %v6854_v43, -inf }
0x2b86   :  { %6861 = vmax.xlane.f32.xlu1 %v6860_v15  ;;  %v6857_v63 = vsel %vm1455_vm12, %v6849_v0, -inf }
0x2b87   :  { %6858 = vmax.xlane.f32.xlu0 %v6857_v63 }
0x2c13   :  { %v6862_v27 = vpop.xlane.xlu1 %6861 }
0x2c14   :  { %v6864_v25 = vsub.f32 %v6854_v43, %v6862_v27  ;;  %v6859_v11 = vpop.xlane.xlu0 %6858 }
0x2c15   :  { %v6863_v6 = vsub.f32 %v6849_v0, %v6859_v11 }
0x2c16   :  { %v6867_v12 = vmul.f32 1.442695, %v6864_v25 }
0x2c17   :  { %v6865_v45 = vmul.f32 1.442695, %v6863_v6 }
0x2c19   :  { %13099 = vpow2.f32 %v6865_v45 }
0x2c1a   :  { %13101 = vpow2.f32 %v6867_v12 }
0x2c23   :  { %v13100_v30 = vpop.eup %13099 }
0x2c24   :  { %v13102_v10 = vpop.eup %13101  ;;  %11314 = vmatprep.mubr.msk.f32.mxu0 %vm1455_vm12, %v13100_v30 }
0x2c25   :  { %11315 = vmatmul.mubr.msk.f32.vlgmr.msra.gmra.mrb[104].mxu0 %vm1455_vm12, %v13102_v10 }
0x2c26   :  { %12531 = vmatpush3.bf16.msra.mxu0 %v12528_v9  ;;  %11345 = vmatprep.mubr.msk.f32.mxu0 %vm1455_vm12, %v13100_v30  ;;  %v6670_v9 = vld [vmem:[%s16219_s11 + $0x460] sm:$0xff] }
0x2c27   :  { %12533 = vmatprep.subr.bf16.mxu0 %v12532_v5 }
0x2c2a   :  { %12535 = vmatpush3.bf16.msra.mxu0 %v12532_v5  ;;  %v6671_v5 = vld [vmem:[%s16219_s11 + $0x468] sm:$0xff] }
0x2c2b   :  { %12537 = vmatprep.subr.bf16.mxu0 %v12536_v34  ;;  %v12556_v17 = vpack.c.bf16 %v6671_v5, %v6670_v9  ;;  %v7139_v9 = vld [vmem:[%s16220_s12 + $0x98] sm:$0xff] }
0x2c2d   :  { %12557 = vmatprep.subr.bf16.mxu1 %v12556_v17 }
0x2c2e   :  { %12539 = vmatpush3.bf16.msra.mxu0 %v12536_v34  ;;  %12559 = vmatpush3.bf16.msra.mxu1 %v12556_v17  ;;  %v7223_v17 = vld [vmem:[%s16219_s11 + $0x480] sm:$0xff] }
0x2c2f   :  { %12541 = vmatprep.subr.bf16.mxu0 %v12540_v28 }
0x2c32   :  { %12543 = vmatpush3.bf16.msra.mxu0 %v12540_v28 }
0x2c33   :  { %12545 = vmatprep.subr.bf16.mxu0 %v12544_v22 }
0x2c36   :  { %12547 = vmatpush3.bf16.msra.mxu0 %v12544_v22 }
0x2c37   :  { %12549 = vmatprep.subr.bf16.mxu0 %v12548_v53 }
0x2c3a   :  { %12551 = vmatpush3.bf16.msra.mxu0 %v12548_v53  ;;  %v6673_v53 = vld [vmem:[%s16219_s11 + $0x478] sm:$0xff] }
0x2c3b   :  { %12553 = vmatprep.subr.bf16.mxu0 %v12552_v29  ;;  %v12560_v18 = vpack.c.bf16 %v6673_v53, %v6672_v4  ;;  %v7224_v4 = vld [vmem:[%s16219_s11 + $0x488] sm:$0xff]  ;;  %v7225_v53 = vld [vmem:[%s16219_s11 + $0x490] sm:$0xff] }
0x2c3d   :  { %12561 = vmatprep.subr.bf16.mxu1 %v12560_v18 }
0x2c3e   :  { %12555 = vmatpush3.bf16.msra.mxu0 %v12552_v29  ;;  %12563 = vmatpush3.bf16.msra.mxu1 %v12560_v18  ;;  %v12572_v18 = vpack.c.bf16 %v7224_v4, %v7223_v17 }
0x2c40   :  { %12573 = vmatprep.subr.bf16.mxu1 %v12572_v18 }
0x2c41   :  { %11346 = vmatmul.mubr.msk.f32.vlgmr.msra.gmra.mrb[106].mxu0 %vm1455_vm12, %v13102_v10  ;;  %v7138_v10 = vld [vmem:[%s16220_s12 + $0x90] sm:$0xff] }
0x2c42   :  { %v12568_v5 = vpack.c.bf16 %v7139_v9, %v7138_v10  ;;  %v7229_v10 = vld [vmem:[%s16219_s11 + $0x4b0] sm:$0xff]  ;;  %v7230_v9 = vld [vmem:[%s16219_s11 + $0x4b8] sm:$0xff] }
0x2cf8   :  { %v11316_v22 = vpop.f32.mrb[104].mxu0 }
0x2cf9   :  { %v6941_v32 = vpop.f32.mrb[105].mxu0  ;;  %v7026_v37 = vmax.f32 %v11316_v22, 1e-20  ;;  %v7226_v22 = vld [vmem:[%s16219_s11 + $0x498] sm:$0xff] }
0x2cfa   :  { %v7025_v34 = vmax.f32 %v6941_v32, 1e-20  ;;  %v12576_v32 = vpack.c.bf16 %v7226_v22, %v7225_v53 }
0x2cfb   :  { %13103 = vrcp.f32 %v7026_v37  ;;  %v7227_v37 = vld [vmem:[%s16219_s11 + $0x4a0] sm:$0xff] }
0x2cfc   :  { %13105 = vrcp.f32 %v7025_v34  ;;  %v7228_v34 = vld [vmem:[%s16219_s11 + $0x4a8] sm:$0xff] }
0x2d05   :  { %v13104_v28 = vpop.eup %13103 }
0x2d06   :  { %v13106_v62 = vpop.eup %13105 }
0x2d14   :  { %v11347_v29 = vpop.f32.mrb[106].mxu0 }
0x2d15   :  { %v7030_v43 = vmul.f32 %v13104_v28, %v11347_v29  ;;  %v7016_v2 = vpop.f32.mrb[107].mxu0  ;;  %v12580_v28 = vpack.c.bf16 %v7228_v34, %v7227_v37 }
0x2d16   :  { %v7029_v0 = vmul.f32 %v13106_v62, %v7016_v2 }
0x2d18   :  { %11356 = vmatprep.mubr.msk.f32.mxu1 %vm319_vm5, %v7029_v0 }
0x2d19   :  { %11357 = vmatmul.mubr.msk.f32.vlgmr.msra.gmra.mrb[86].mxu1 %vm319_vm5, %v7030_v43 }
0x2d1a   :  { %12575 = vmatpush3.bf16.msra.mxu1 %v12572_v18 }
0x2d1b   :  { %12577 = vmatprep.subr.bf16.mxu1 %v12576_v32 }
0x2d1e   :  { %12579 = vmatpush3.bf16.msra.mxu1 %v12576_v32 }
0x2d1f   :  { %12581 = vmatprep.subr.bf16.mxu1 %v12580_v28 }
0x2d22   :  { %12583 = vmatpush3.bf16.msra.mxu1 %v12580_v28 }
0x2dec   :  { %v11358_v15 = vpop.f32.mrb[86].mxu1 }
0x2ded   :  { %v15639_v63 = vadd.f32 %v11358_v15, %v15407_v58  ;;  %v7103_v27 = vpop.f32.mrb[87].mxu1  ;;  %v7136_v58 = vld [vmem:[%s16220_s12 + $0x80] sm:$0xff] }
0x2dee   :  { %v15642_v25 = vadd.f32 %v7103_v27, %v15410_v48  ;;  %v7137_v48 = vld [vmem:[%s16220_s12 + $0x88] sm:$0xff] }
0x2def   :  { %v7115_v11 = vmul.f32 %v15639_v63, %v15639_v63  ;;  %v12564_v30 = vpack.c.bf16 %v7137_v48, %v7136_v58 }
0x2df0   :  { %v7114_v6 = vmul.f32 %v15642_v25, %v15642_v25 }
0x2df1   :  { %v7119_v12 = vsel %vm319_vm5, %v7115_v11, 0.0  ;;  %12565 = vmatprep.subr.bf16.mxu0 %v12564_v30  ;;  %v16251_v11 = vld [vmem:[#allocation5_spill] sm:$0xff] }
0x2df2   :  { %7120 = vadd.xlane.f32.xlu1 %v7119_v12  ;;  %v7116_v45 = vsel %vm319_vm5, %v7114_v6, 0.0  ;;  %12567 = vmatpush3.bf16.msra.mxu0 %v12564_v30  ;;  %v7133_v6 = vrot.slane %v15206_v16, %v16251_v11  ;;  %v12584_v16 = vpack.c.bf16 %v7230_v9, %v7229_v10  ;;  %v7339_v11 = vld [vmem:[%s16219_s11 + $0x4d8] sm:$0xff] }
0x2df3   :  { %7117 = vadd.xlane.f32.xlu0 %v7116_v45  ;;  %12569 = vmatprep.subr.bf16.mxu0 %v12568_v5 }
0x2df4   :  { %12585 = vmatprep.subr.bf16.mxu1 %v12584_v16 }
0x2df5   :  { %12587 = vmatpush3.bf16.msra.mxu1 %v12584_v16 }
0x2df6   :  { %12571 = vmatpush3.bf16.msra.mxu0 %v12568_v5 }
0x2e7f   :  { %v7121_v29 = vpop.xlane.xlu1 %7120 }
0x2e80   :  { %v7123_v62 = vmul.f32 0.03125, %v7121_v29  ;;  %v7118_v43 = vpop.xlane.xlu0 %7117 }
0x2e81   :  { %v7122_v2 = vmul.f32 0.03125, %v7118_v43 }
0x2e82   :  { %v7125_v0 = vadd.f32 1e-06, %v7123_v62 }
0x2e83   :  { %v7124_v15 = vadd.f32 1e-06, %v7122_v2  ;;  %v7500_v2 = vld [vmem:[%s16219_s11 + $0x500] sm:$0xff] }
0x2e84   :  { %13107 = vrsqrt.f32 %v7125_v0  ;;  %v7501_v0 = vld [vmem:[%s16219_s11 + $0x508] sm:$0xff] }
0x2e85   :  { %13109 = vrsqrt.f32 %v7124_v15  ;;  %v12604_v15 = vpack.c.bf16 %v7501_v0, %v7500_v2 }
0x2e87   :  { %12605 = vmatprep.subr.bf16.mxu1 %v12604_v15 }
0x2e8e   :  { %v13108_v27 = vpop.eup %13107 }
0x2e8f   :  { %v13110_v12 = vpop.eup %13109  ;;  %v7129_v45 = vmul.f32 %v13108_v27, %v15639_v63  ;;  %v7338_v27 = vld [vmem:[%s16219_s11 + $0x4d0] sm:$0xff] }
0x2e90   :  { %v7128_v58 = vmul.f32 %v13110_v12, %v15642_v25  ;;  %v12592_v12 = vpack.c.bf16 %v7339_v11, %v7338_v27 }
0x2e91   :  { %v7135_v30 = vmul.f32 %v7133_v6, %v7129_v45  ;;  %v7503_v45 = vld [vmem:[%s16219_s11 + $0x518] sm:$0xff] }
0x2e92   :  { %v7134_v48 = vmul.f32 %v7133_v6, %v7128_v58  ;;  %v7502_v6 = vld [vmem:[%s16219_s11 + $0x510] sm:$0xff] }
0x2e93   :  { %v12608_v58 = vpack.c.bf16 %v7503_v45, %v7502_v6 }
0x2e94   :  { %11367 = vmatprep.mubr.msk.f32.mxu0 %vm319_vm5, %v7134_v48  ;;  %v7421_v48 = vld [vmem:[%s16219_s11 + $0x4e0] sm:$0xff] }
0x2e95   :  { %11368 = vmatmul.mubr.msk.f32.vlgmr.msra.gmra.mrb[108].mxu0 %vm319_vm5, %v7135_v30  ;;  %v7422_v30 = vld [vmem:[%s16219_s11 + $0x4e8] sm:$0xff] }
0x2e96   :  { %v12596_v10 = vpack.c.bf16 %v7422_v30, %v7421_v48 }
0x2f68   :  { %v11369_v5 = vpop.f32.mrb[108].mxu0 }
0x2f69   :  { %v7212_v17 = vpop.f32.mrb[109].mxu0  ;;  %v7222_v53 = vmax.f32 %v11369_v5, 0.0 }
0x2f6a   :  { %v7221_v4 = vmax.f32 %v7212_v17, 0.0 }
0x2f6c   :  { %11386 = vmatprep.mubr.msk.f32.mxu1 %vm527_vm7, %v7221_v4 }
0x2f6d   :  { %11387 = vmatmul.mubr.msk.f32.vlgmr.msra.gmra.mrb[88].mxu1 %vm527_vm7, %v7222_v53 }
0x2f6e   :  { %12607 = vmatpush3.bf16.msra.mxu1 %v12604_v15 }
0x2f6f   :  { %12609 = vmatprep.subr.bf16.mxu1 %v12608_v58 }
0x2f72   :  { %12611 = vmatpush3.bf16.msra.mxu1 %v12608_v58 }
0x2f73   :  { %12637 = vmatprep.subr.bf16.mxu1 %v15300_v31 }
0x3040   :  { %v11388_v18 = vpop.f32.mrb[88].mxu1 }
0x3041   :  { %v15695_v22 = vadd.f32 %v11388_v18, %v15639_v63  ;;  %v7303_v32 = vpop.f32.mrb[89].mxu1  ;;  %v7336_v63 = vld [vmem:[%s16219_s11 + $0x4c0] sm:$0xff] }
0x3042   :  { %v15698_v37 = vadd.f32 %v7303_v32, %v15642_v25  ;;  %v7337_v25 = vld [vmem:[%s16219_s11 + $0x4c8] sm:$0xff]  ;;  %v15740_v32 = vld [vmem:[%s16218_s10 + $0x20] sm:$0xff] }
0x3043   :  { %v7315_v34 = vmul.f32 %v15695_v22, %v15695_v22  ;;  %v12588_v43 = vpack.c.bf16 %v7337_v25, %v7336_v63  ;;  %v7423_v25 = vld [vmem:[%s16219_s11 + $0x4f0] sm:$0xff] }
0x3044   :  { %v7314_v28 = vmul.f32 %v15698_v37, %v15698_v37 }
0x3045   :  { %v7319_v29 = vsel %vm319_vm5, %v7315_v34, 0.0  ;;  %12589 = vmatprep.subr.bf16.mxu0 %v12588_v43  ;;  %v16252_v34 = vld [vmem:[#allocation6_spill] sm:$0xff] }
0x3046   :  { %7320 = vadd.xlane.f32.xlu1 %v7319_v29  ;;  %v7316_v62 = vsel %vm319_vm5, %v7314_v28, 0.0  ;;  %12591 = vmatpush3.bf16.msra.mxu0 %v12588_v43  ;;  %v7333_v28 = vrot.slane %v15740_v32, %v16252_v34  ;;  %v7424_v43 = vld [vmem:[%s16219_s11 + $0x4f8] sm:$0xff] }
0x3047   :  { %7317 = vadd.xlane.f32.xlu0 %v7316_v62  ;;  %12593 = vmatprep.subr.bf16.mxu0 %v12592_v12  ;;  %v12600_v15 = vpack.c.bf16 %v7424_v43, %v7423_v25 }
0x304a   :  { %12595 = vmatpush3.bf16.msra.mxu0 %v12592_v12 }
0x304b   :  { %12597 = vmatprep.subr.bf16.mxu0 %v12596_v10 }
0x30d3   :  { %v7321_v9 = vpop.xlane.xlu1 %7320 }
0x30d4   :  { %v7323_v16 = vmul.f32 0.03125, %v7321_v9  ;;  %v7318_v5 = vpop.xlane.xlu0 %7317 }
0x30d5   :  { %v7322_v17 = vmul.f32 0.03125, %v7318_v5 }
0x30d6   :  { %v7325_v4 = vadd.f32 1e-06, %v7323_v16  ;;  %v13207_v16 = vld [vmem:[%s16219_s11 + $0x700] sm:$0xff] }
0x30d7   :  { %v7324_v53 = vadd.f32 1e-06, %v7322_v17  ;;  %v13208_v17 = vld [vmem:[%s16219_s11 + $0x710] sm:$0xff] }
0x30d8   :  { %13111 = vrsqrt.f32 %v7325_v4 }
0x30d9   :  { %13113 = vrsqrt.f32 %v7324_v53  ;;  %v13209_v53 = vld [vmem:[%s16219_s11 + $0x720] sm:$0xff] }
0x30e2   :  { %v13112_v18 = vpop.eup %13111 }
0x30e3   :  { %v13114_v29 = vpop.eup %13113  ;;  %v7329_v62 = vmul.f32 %v13112_v18, %v15695_v22 }
0x30e4   :  { %v7328_v63 = vmul.f32 %v13114_v29, %v15698_v37 }
0x30e5   :  { %v7335_v0 = vmul.f32 %v7333_v28, %v7329_v62 }
0x30e6   :  { %v7334_v2 = vmul.f32 %v7333_v28, %v7328_v63 }
0x30e8   :  { %11397 = vmatprep.mubr.msk.f32.mxu0 %vm319_vm5, %v7334_v2  ;;  %11419 = vmatprep.mubr.msk.f32.mxu1 %vm319_vm5, %v7334_v2 }
0x30e9   :  { %11398 = vmatmul.mubr.msk.f32.vlgmr.msra.gmra.mrb[110].mxu0 %vm319_vm5, %v7335_v0  ;;  %11420 = vmatmul.mubr.msk.f32.vlgmr.msra.gmra.mrb[90].mxu1 %vm319_vm5, %v7335_v0 }
0x30ea   :  { %12599 = vmatpush3.bf16.msra.mxu0 %v12596_v10  ;;  %11408 = vmatprep.mubr.msk.f32.mxu0 %vm319_vm5, %v7334_v2  ;;  %v13206_v10 = vld [vmem:[%s16219_s11 + $0x6f0] sm:$0xff] }
0x30eb   :  { %12601 = vmatprep.subr.bf16.mxu0 %v12600_v15  ;;  %12639 = vmatpush3.bf16.msra.mxu1 %v15300_v31  ;;  %v13202_v31 = vld [vmem:[%s16219_s11 + $0x6f8] sm:$0xff] }
0x30ec   :  { %12641 = vmatprep.subr.bf16.mxu1 %v15304_v47 }
0x30ee   :  { %12603 = vmatpush3.bf16.msra.mxu0 %v12600_v15 }
0x30ef   :  { %12643 = vmatpush3.bf16.msra.mxu1 %v15304_v47  ;;  %v13203_v47 = vld [vmem:[%s16219_s11 + $0x708] sm:$0xff] }
0x30f0   :  { %12645 = vmatprep.subr.bf16.mxu1 %v15308_v36 }
0x30f1   :  { %11409 = vmatmul.mubr.msk.f32.vlgmr.msra.gmra.mrb[112].mxu0 %vm319_vm5, %v7335_v0 }
0x30f3   :  { %12647 = vmatpush3.bf16.msra.mxu1 %v15308_v36  ;;  %v13204_v36 = vld [vmem:[%s16219_s11 + $0x718] sm:$0xff] }
0x30f4   :  { %12649 = vmatprep.subr.bf16.mxu1 %v15310_v46 }
0x30f7   :  { %12651 = vmatpush3.bf16.msra.mxu1 %v15310_v46  ;;  %v13205_v46 = vld [vmem:[%s16219_s11 + $0x728] sm:$0xff] }
0x31bc   :  { %v11399_v27 = vpop.f32.mrb[110].mxu0  ;;  %v11421_v11 = vpop.f32.mrb[90].mxu1 }
0x31bd   :  { %v7592_v6 = vmul.f32 %v13202_v31, %v11421_v11  ;;  %v7594_v12 = vmul.f32 %v13203_v47, %v11421_v11  ;;  %v7596_v45 = vmul.f32 %v13204_v36, %v11421_v11  ;;  %v7598_v58 = vmul.f32 %v13205_v46, %v11421_v11  ;;  %v7412_v48 = vpop.f32.mrb[111].mxu0  ;;  %v7570_v30 = vpop.f32.mrb[91].mxu1 }
0x31be   :  { %v7591_v9 = vmul.f32 %v13206_v10, %v7570_v30  ;;  %v7593_v5 = vmul.f32 %v13207_v16, %v7570_v30  ;;  %v7595_v4 = vmul.f32 %v13208_v17, %v7570_v30  ;;  %v7597_v18 = vmul.f32 %v13209_v53, %v7570_v30  ;;  %11438 = vmatprep.mubr.msk.f32.mxu0 %vm319_vm5, %v7412_v48  ;;  %v7581_v48 = vld [vmem:[%s16219_s11 + $0x530] sm:$0xff] }
0x31c0   :  { %v12652_v34 = vpack.c.bf16 %v7592_v6, %v7591_v9  ;;  %v12656_v28 = vpack.c.bf16 %v7594_v12, %v7593_v5  ;;  %v12660_v29 = vpack.c.bf16 %v7596_v45, %v7595_v4  ;;  %v12664_v62 = vpack.c.bf16 %v7598_v58, %v7597_v18  ;;  %v8069_v5 = vld [vmem:[%s16219_s11 + $0x568] sm:$0xff] }
0x31c2   :  { %12653 = vmatprep.subr.bf16.mxu1 %v12652_v34 }
0x31c4   :  { %v11410_v63 = vpop.f32.mrb[112].mxu0 }
0x31c5   :  { %v7584_v25 = vmul.f32 %v13202_v31, %v11410_v63  ;;  %v7586_v43 = vmul.f32 %v13203_v47, %v11410_v63  ;;  %v7588_v2 = vmul.f32 %v13204_v36, %v11410_v63  ;;  %v7590_v0 = vmul.f32 %v13205_v46, %v11410_v63  ;;  %v7491_v15 = vpop.f32.mrb[113].mxu0  ;;  %v8071_v63 = vld [vmem:[%s16219_s11 + $0x578] sm:$0xff] }
0x31c6   :  { %v7583_v11 = vmul.f32 %v13206_v10, %v7491_v15  ;;  %v7585_v24 = vmul.f32 %v13207_v16, %v7491_v15  ;;  %v7587_v42 = vmul.f32 %v13208_v17, %v7491_v15  ;;  %v7589_v57 = vmul.f32 %v13209_v53, %v7491_v15  ;;  %v7582_v10 = vld [vmem:[%s16219_s11 + $0x538] sm:$0xff]  ;;  %v8068_v16 = vld [vmem:[%s16219_s11 + $0x560] sm:$0xff] }
0x31c7   :  { %v12672_v9 = vpack.c.bf16 %v7582_v10, %v7581_v48  ;;  %v12684_v17 = vpack.c.bf16 %v8069_v5, %v8068_v16 }
0x31c8   :  { %v12612_v38 = vpack.c.bf16 %v7584_v25, %v7583_v11  ;;  %v12618_v19 = vpack.c.bf16 %v7586_v43, %v7585_v24  ;;  %v12624_v30 = vpack.c.bf16 %v7588_v2, %v7587_v42  ;;  %v12630_v14 = vpack.c.bf16 %v7590_v0, %v7589_v57 }
0x31ca   :  { %12614 = vmatprep.subr.msk.bf16.mxu0 %vm13778_vm11, %v12612_v38 }
0x31cb   :  { %12617 = vmatpush3.bf16.xpose.msk.msra.mxu0 %vm13778_vm11, %v12612_v38 }
0x31cc   :  { %12620 = vmatprep.subr.msk.bf16.mxu0 %vm13778_vm11, %v12618_v19 }
0x31d3   :  { %12623 = vmatpush3.bf16.xpose.msk.msra.mxu0 %vm13778_vm11, %v12618_v19 }
0x31d4   :  { %12626 = vmatprep.subr.msk.bf16.mxu0 %vm13778_vm11, %v12624_v30 }
0x31db   :  { %12629 = vmatpush3.bf16.xpose.msk.msra.mxu0 %vm13778_vm11, %v12624_v30 }
0x31dc   :  { %12632 = vmatprep.subr.msk.bf16.mxu0 %vm13778_vm11, %v12630_v14 }
0x31e3   :  { %12635 = vmatpush3.bf16.xpose.msk.msra.mxu0 %vm13778_vm11, %v12630_v14 }
0x31ea   :  { %11439 = vmatmul.mubr.msk.f32.vlgmr.msra.gmra.mrb[114].mxu0 %vm319_vm5, %v11399_v27 }
0x32bd   :  { %v11440_v24 = vpop.f32.mrb[114].mxu0 }
0x32be   :  { %v7701_v38 = vadd.f32 %v11440_v24, %v15319_v49  ;;  %v7695_v57 = vpop.f32.mrb[115].mxu0  ;;  %v7579_v49 = vld [vmem:[%s16219_s11 + $0x520] sm:$0xff] }
0x32bf   :  { %v7696_v19 = vadd.f32 %v7695_v57, %v15327_v52  ;;  %v7580_v52 = vld [vmem:[%s16219_s11 + $0x528] sm:$0xff] }
0x32c0   :  { %v7707_v42 = vsel %vm527_vm7, %v7701_v38, -inf  ;;  %v12668_v58 = vpack.c.bf16 %v7580_v52, %v7579_v49 }
0x32c1   :  { %7708 = vmax.xlane.f32.xlu1 %v7707_v42  ;;  %v7704_v31 = vsel %vm527_vm7, %v7696_v19, -inf }
0x32c2   :  { %7705 = vmax.xlane.f32.xlu0 %v7704_v31  ;;  %12669 = vmatprep.subr.bf16.mxu0 %v12668_v58 }
0x32c3   :  { %12671 = vmatpush3.bf16.msra.mxu0 %v12668_v58 }
0x32c4   :  { %12673 = vmatprep.subr.bf16.mxu0 %v12672_v9 }
0x32c7   :  { %12675 = vmatpush3.bf16.msra.mxu0 %v12672_v9 }
0x32c8   :  { %12685 = vmatprep.subr.bf16.mxu0 %v12684_v17 }
0x334e   :  { %v7709_v6 = vpop.xlane.xlu1 %7708 }
0x334f   :  { %v7711_v47 = vsub.f32 %v7701_v38, %v7709_v6  ;;  %v7706_v12 = vpop.xlane.xlu0 %7705 }
0x3350   :  { %v7710_v36 = vsub.f32 %v7696_v19, %v7706_v12 }
0x3351   :  { %v7714_v45 = vmul.f32 1.442695, %v7711_v47 }
0x3352   :  { %v7712_v14 = vmul.f32 1.442695, %v7710_v36 }
0x3354   :  { %13115 = vpow2.f32 %v7712_v14 }
0x3355   :  { %13117 = vpow2.f32 %v7714_v45 }
0x335e   :  { %v13116_v27 = vpop.eup %13115 }
0x335f   :  { %v13118_v46 = vpop.eup %13117  ;;  %11457 = vmatprep.mubr.msk.f32.mxu1 %vm527_vm7, %v13116_v27 }
0x3360   :  { %11458 = vmatmul.mubr.msk.f32.vlgmr.msra.gmra.mrb[92].mxu1 %vm527_vm7, %v13118_v46 }
0x3361   :  { %12655 = vmatpush3.bf16.msra.mxu1 %v12652_v34  ;;  %11476 = vmatprep.mubr.msk.f32.mxu1 %vm527_vm7, %v13116_v27 }
0x3362   :  { %12657 = vmatprep.subr.bf16.mxu1 %v12656_v28 }
0x3365   :  { %12659 = vmatpush3.bf16.msra.mxu1 %v12656_v28 }
0x3366   :  { %12661 = vmatprep.subr.bf16.mxu1 %v12660_v29 }
0x3369   :  { %12663 = vmatpush3.bf16.msra.mxu1 %v12660_v29 }
0x336a   :  { %12665 = vmatprep.subr.bf16.mxu1 %v12664_v62 }
0x336d   :  { %12667 = vmatpush3.bf16.msra.mxu1 %v12664_v62  ;;  %v8070_v62 = vld [vmem:[%s16219_s11 + $0x570] sm:$0xff] }
0x336e   :  { %v12688_v15 = vpack.c.bf16 %v8071_v63, %v8070_v62  ;;  %v8157_v62 = vld [vmem:[%s16219_s11 + $0x580] sm:$0xff]  ;;  %v8158_v63 = vld [vmem:[%s16219_s11 + $0x588] sm:$0xff] }
0x3370   :  { %11477 = vmatmul.mubr.msk.f32.vlgmr.msra.gmra.mrb[94].mxu1 %vm527_vm7, %v13118_v46 }
0x3433   :  { %v11459_v4 = vpop.f32.mrb[92].mxu1 }
0x3434   :  { %v7788_v53 = vpop.f32.mrb[93].mxu1  ;;  %v7873_v18 = vmax.f32 %v11459_v4, 1e-20 }
0x3435   :  { %v7872_v34 = vmax.f32 %v7788_v53, 1e-20 }
0x3436   :  { %13119 = vrcp.f32 %v7873_v18 }
0x3437   :  { %13121 = vrcp.f32 %v7872_v34 }
0x3440   :  { %v13120_v28 = vpop.eup %13119 }
0x3441   :  { %v13122_v25 = vpop.eup %13121 }
0x3443   :  { %v11478_v29 = vpop.f32.mrb[94].mxu1 }
0x3444   :  { %v7877_v43 = vmul.f32 %v13120_v28, %v11478_v29  ;;  %v7863_v2 = vpop.f32.mrb[95].mxu1  ;;  %v7986_v28 = vld [vmem:[%s16219_s11 + $0x558] sm:$0xff] }
0x3445   :  { %v7876_v0 = vmul.f32 %v13122_v25, %v7863_v2  ;;  %v12692_v25 = vpack.c.bf16 %v8158_v63, %v8157_v62  ;;  %v13220_v62 = vld [vmem:[%s16219_s11 + $0x6a8] sm:$0xff] }
0x3447   :  { %11487 = vmatprep.mubr.msk.f32.mxu0 %vm319_vm5, %v7876_v0 }
0x3448   :  { %11488 = vmatmul.mubr.msk.f32.vlgmr.msra.gmra.mrb[116].mxu0 %vm319_vm5, %v7877_v43 }
0x3449   :  { %12687 = vmatpush3.bf16.msra.mxu0 %v12684_v17  ;;  %11509 = vmatprep.mubr.msk.f32.mxu0 %vm319_vm5, %v15386_v51 }
0x344a   :  { %12689 = vmatprep.subr.bf16.mxu0 %v12688_v15 }
0x344d   :  { %12691 = vmatpush3.bf16.msra.mxu0 %v12688_v15 }
0x3450   :  { %11510 = vmatmul.mubr.msk.f32.vlgmr.msra.gmra.mrb[118].mxu0 %vm319_vm5, %v15393_v39 }
0x3451   :  { %11512 = vmatprep.mubr.msk.f32.mxu0 %vm319_vm5, %v15396_v26 }
0x3454   :  { %11513 = vmatmul.mubr.msk.f32.gmra.mrb[120].mxu0 %vm319_vm5, %v15402_v54 }
0x351b   :  { %v11489_v11 = vpop.f32.mrb[116].mxu0 }
0x351c   :  { %v15850_v30 = vadd.f32 %v11489_v11, %v15695_v22  ;;  %v7950_v24 = vpop.f32.mrb[117].mxu0 }
0x351d   :  { %v15853_v38 = vadd.f32 %v7950_v24, %v15698_v37 }
0x351e   :  { %v7962_v57 = vmul.f32 %v15850_v30, %v15850_v30 }
0x351f   :  { %v7961_v19 = vmul.f32 %v15853_v38, %v15853_v38 }
0x3520   :  { %v7966_v42 = vsel %vm319_vm5, %v7962_v57, 0.0 }
0x3521   :  { %7967 = vadd.xlane.f32.xlu1 %v7966_v42  ;;  %v7963_v31 = vsel %vm319_vm5, %v7961_v19, 0.0  ;;  %v16253_v19 = vld [vmem:[#allocation7_spill] sm:$0xff] }
0x3522   :  { %7964 = vadd.xlane.f32.xlu0 %v7963_v31  ;;  %v7980_v42 = vrot.slane %v15740_v32, %v16253_v19 }
0x3523   :  { %v11511_v6 = vpop.f32.mrb[118].mxu0 }
0x3524   :  { %v8255_v47 = vrot.slane %v11511_v6, 4  ;;  %v8267_v22 = vmul.f32 %v15421_v60, %v11511_v6  ;;  %v8138_v12 = vpop.f32.mrb[119].mxu0 }
0x3525   :  { %v8254_v36 = vrot.slane %v8138_v12, 4  ;;  %v8266_v37 = vmul.f32 %v15427_v50, %v8138_v12  ;;  %v8274_v50 = vmul.f32 %v15461_v8, %v11511_v6  ;;  %v8273_v16 = vmul.f32 %v15467_v56, %v8138_v12  ;;  %v8160_v12 = vld [vmem:[%s16219_s11 + $0x598] sm:$0xff] }
0x3527   :  { %v12700_v45 = vpack.c.bf16 %v8267_v22, %v8266_v37  ;;  %v11514_v14 = vpop.f32.mrb[120].mxu0  ;;  %v8256_v27 = vsel %vm1259_vm10, %v8254_v36, %v8255_v47  ;;  %v8159_v22 = vld [vmem:[%s16219_s11 + $0x590] sm:$0xff] }
0x3528   :  { %v8259_v46 = vrot.slane %v11514_v14, 4  ;;  %v8265_v49 = vsel %vm1259_vm10, %v11514_v14, %v8254_v36  ;;  %v8277_v52 = vmul.f32 %v15435_v35, %v8256_v27  ;;  %v8148_v58 = vpop.f32.mrb[121].mxu0  ;;  %v8270_v5 = vmul.f32 %v15473_v13, %v8256_v27 }
0x3529   :  { %v8269_v48 = vmul.f32 %v15441_v7, %v8265_v49  ;;  %v8276_v10 = vmul.f32 %v15447_v59, %v8265_v49  ;;  %v8257_v9 = vrot.slane %v8148_v58, 4  ;;  %v8268_v60 = vmul.f32 %v15453_v44, %v8148_v58  ;;  %12702 = vmatprep.subr.msk.bf16.mxu0 %vm13778_vm11, %v12700_v45  ;;  %v13211_v49 = vld [vmem:[%s16219_s11 + $0x680] sm:$0xff] }
0x352a   :  { %v8275_v17 = vmul.f32 %v15479_v3, %v8148_v58  ;;  %12705 = vmatpush3.bf16.xpose.msk.msra.mxu0 %vm13778_vm11, %v12700_v45  ;;  %v12696_v45 = vpack.c.bf16 %v8160_v12, %v8159_v22  ;;  %v16258_v12 = vld [vmem:[#allocation14_spill] sm:$0xff] }
0x352b   :  { %v12730_v35 = vpack.c.bf16 %v8277_v52, %v8276_v10  ;;  %v8258_v7 = vsel %vm1259_vm10, %v8255_v47, %v8257_v9  ;;  %v8260_v59 = vsel %vm1259_vm10, %v8257_v9, %v8259_v46  ;;  %v12706_v44 = vpack.c.bf16 %v8269_v48, %v8268_v60 }
0x352c   :  { %v8271_v4 = vmul.f32 %v15489_v61, %v8258_v7  ;;  %v8272_v53 = vmul.f32 %v15495_v23, %v8260_v59  ;;  %v8278_v8 = vmul.f32 %v15501_v40, %v8258_v7  ;;  %v8279_v56 = vmul.f32 %v15507_v41, %v8260_v59  ;;  %v7983_v61 = vld [vmem:[%s16219_s11 + $0x540] sm:$0xff]  ;;  %v7984_v23 = vld [vmem:[%s16219_s11 + $0x548] sm:$0xff]  ;;  %v7985_v41 = vld [vmem:[%s16219_s11 + $0x550] sm:$0xff] }
0x352d   :  { %v12724_v13 = vpack.c.bf16 %v8275_v17, %v8274_v50  ;;  %12708 = vmatprep.subr.msk.bf16.mxu0 %vm13778_vm11, %v12706_v44  ;;  %v12676_v40 = vpack.c.bf16 %v7984_v23, %v7983_v61  ;;  %v12680_v29 = vpack.c.bf16 %v7986_v28, %v7985_v41  ;;  %v13213_v17 = vld [vmem:[%s16219_s11 + $0x698] sm:$0xff]  ;;  %v13214_v7 = vld [vmem:[%s16219_s11 + $0x6d0] sm:$0xff]  ;;  %v13219_v61 = vld [vmem:[%s16219_s11 + $0x6a0] sm:$0xff] }
0x352e   :  { %v12712_v3 = vpack.c.bf16 %v8271_v4, %v8270_v5  ;;  %v12718_v18 = vpack.c.bf16 %v8273_v16, %v8272_v53  ;;  %v12736_v34 = vpack.c.bf16 %v8279_v56, %v8278_v8  ;;  %v13212_v16 = vld [vmem:[%s16219_s11 + $0x6d8] sm:$0xff]  ;;  %v13215_v4 = vld [vmem:[%s16219_s11 + $0x690] sm:$0xff]  ;;  %v13216_v8 = vld [vmem:[%s16219_s11 + $0x6c0] sm:$0xff] }
0x352f   :  { %12677 = vmatprep.subr.bf16.mxu1 %v12676_v40 }
0x3530   :  { %12679 = vmatpush3.bf16.msra.mxu1 %v12676_v40 }
0x3531   :  { %12681 = vmatprep.subr.bf16.mxu1 %v12680_v29 }
0x3532   :  { %12711 = vmatpush3.bf16.xpose.msk.msra.mxu0 %vm13778_vm11, %v12706_v44 }
0x3533   :  { %12714 = vmatprep.subr.msk.bf16.mxu0 %vm13778_vm11, %v12712_v3 }
0x3534   :  { %12683 = vmatpush3.bf16.msra.mxu1 %v12680_v29 }
0x3535   :  { %12693 = vmatprep.subr.bf16.mxu1 %v12692_v25 }
0x353a   :  { %12717 = vmatpush3.bf16.xpose.msk.msra.mxu0 %vm13778_vm11, %v12712_v3 }
0x353b   :  { %12720 = vmatprep.subr.msk.bf16.mxu0 %vm13778_vm11, %v12718_v18 }
0x3542   :  { %12723 = vmatpush3.bf16.xpose.msk.msra.mxu0 %vm13778_vm11, %v12718_v18  ;;  %v13218_v18 = vld [vmem:[%s16219_s11 + $0x6c8] sm:$0xff] }
0x3543   :  { %12726 = vmatprep.subr.msk.bf16.mxu0 %vm13778_vm11, %v12724_v13 }
0x354a   :  { %12729 = vmatpush3.bf16.xpose.msk.msra.mxu0 %vm13778_vm11, %v12724_v13  ;;  %v13217_v13 = vld [vmem:[%s16219_s11 + $0x6b8] sm:$0xff] }
0x354b   :  { %12732 = vmatprep.subr.msk.bf16.mxu0 %vm13778_vm11, %v12730_v35 }
0x3552   :  { %12735 = vmatpush3.bf16.xpose.msk.msra.mxu0 %vm13778_vm11, %v12730_v35 }
0x3553   :  { %12738 = vmatprep.subr.msk.bf16.mxu0 %vm13778_vm11, %v12736_v34 }
0x355a   :  { %12741 = vmatpush3.bf16.xpose.msk.msra.mxu0 %vm13778_vm11, %v12736_v34 }
0x35ae   :  { %v7968_v43 = vpop.xlane.xlu1 %7967 }
0x35af   :  { %v7970_v2 = vmul.f32 0.03125, %v7968_v43  ;;  %v7965_v0 = vpop.xlane.xlu0 %7964 }
0x35b0   :  { %v7969_v15 = vmul.f32 0.03125, %v7965_v0  ;;  %v13222_v0 = vld [vmem:[%s16219_s11 + $0x6e0] sm:$0xff] }
0x35b1   :  { %v7972_v11 = vadd.f32 1e-06, %v7970_v2 }
0x35b2   :  { %v7971_v24 = vadd.f32 1e-06, %v7969_v15 }
0x35b3   :  { %13123 = vrsqrt.f32 %v7972_v11  ;;  %v13223_v11 = vld [vmem:[%s16219_s11 + $0x6e8] sm:$0xff] }
0x35b4   :  { %13125 = vrsqrt.f32 %v7971_v24 }
0x35bd   :  { %v13124_v57 = vpop.eup %13123 }
0x35be   :  { %v13126_v31 = vpop.eup %13125  ;;  %v7976_v6 = vmul.f32 %v13124_v57, %v15850_v30 }
0x35bf   :  { %v7975_v47 = vmul.f32 %v13126_v31, %v15853_v38 }
0x35c0   :  { %v7982_v37 = vmul.f32 %v7980_v42, %v7976_v6  ;;  %v16257_v6 = vld [vmem:[#allocation13_spill] sm:$0xff] }
0x35c1   :  { %v7981_v36 = vmul.f32 %v7980_v42, %v7975_v47 }
0x35c3   :  { %11498 = vmatprep.mubr.msk.f32.mxu1 %vm319_vm5, %v7981_v36 }
0x35c4   :  { %11499 = vmatmul.mubr.msk.f32.vlgmr.msra.gmra.mrb[96].mxu1 %vm319_vm5, %v7982_v37 }
0x35c5   :  { %12695 = vmatpush3.bf16.msra.mxu1 %v12692_v25  ;;  %11523 = vmatprep.mubr.msk.f32.mxu1 %vm319_vm5, %v15386_v51  ;;  %v16254_v51 = vld [vmem:[#allocation9_spill] sm:$0xff]  ;;  %v13221_v25 = vld [vmem:[%s16219_s11 + $0x6b0] sm:$0xff] }
0x35c6   :  { %12697 = vmatprep.subr.bf16.mxu1 %v12696_v45 }
0x35c9   :  { %12699 = vmatpush3.bf16.msra.mxu1 %v12696_v45 }
0x35ca   :  { %12743 = vmatprep.subr.bf16.mxu1 %v13926_v1 }
0x35cc   :  { %11524 = vmatmul.mubr.msk.f32.vlgmr.msra.gmra.mrb[98].mxu1 %vm319_vm5, %v15393_v39  ;;  %v16256_v39 = vld [vmem:[#allocation11_spill] sm:$0xff] }
0x35cd   :  { %11526 = vmatprep.mubr.msk.f32.mxu1 %vm319_vm5, %v15396_v26  ;;  %12745 = vmatpush3.bf16.msra.mxu1 %v13926_v1  ;;  %v16255_v1 = vld [vmem:[#allocation10_spill] sm:$0xff] }
0x35ce   :  { %12747 = vmatprep.subr.bf16.mxu1 %v13930_v21 }
0x35d0   :  { %11527 = vmatmul.mubr.msk.f32.gmra.mrb[100].mxu1 %vm319_vm5, %v15402_v54  ;;  %v13210_v54 = vld [vmem:[%s16219_s11 + $0x688] sm:$0xff] }
0x35d1   :  { %12749 = vmatpush3.bf16.msra.mxu1 %v13930_v21 }
0x35d2   :  { %12751 = vmatprep.subr.bf16.mxu1 %v13937_v20 }
0x35d5   :  { %12753 = vmatpush3.bf16.msra.mxu1 %v13937_v20 }
0x35d6   :  { %12755 = vmatprep.subr.bf16.mxu1 %v13960_v55 }
0x35d9   :  { %12757 = vmatpush3.bf16.msra.mxu1 %v13960_v55 }
0x35da   :  { %12759 = vmatprep.subr.bf16.mxu1 %v16254_v51 }
0x35dd   :  { %12761 = vmatpush3.bf16.msra.mxu1 %v16254_v51 }
0x35de   :  { %12763 = vmatprep.subr.bf16.mxu1 %v16255_v1 }
0x35e1   :  { %12765 = vmatpush3.bf16.msra.mxu1 %v16255_v1 }
0x35e2   :  { %12767 = vmatprep.subr.bf16.mxu1 %v16256_v39 }
0x35e5   :  { %12769 = vmatpush3.bf16.msra.mxu1 %v16256_v39 }
0x3697   :  { %v11500_v21 = vpop.f32.mrb[96].mxu1 }
0x3698   :  { %v8059_v26 = vpop.f32.mrb[97].mxu1 }
0x3699   :  { %11557 = vmatprep.mubr.msk.f32.mxu0 %vm319_vm5, %v8059_v26 }
0x369a   :  { %11558 = vmatmul.mubr.msk.f32.vlgmr.msra.gmra.mrb[122].mxu0 %vm319_vm5, %v11500_v21 }
0x369f   :  { %v11525_v20 = vpop.f32.mrb[98].mxu1 }
0x36a0   :  { %v8285_v55 = vrot.slane %v11525_v20, 4  ;;  %v8297_v14 = vmul.f32 %v13210_v54, %v11525_v20  ;;  %v8227_v27 = vpop.f32.mrb[99].mxu1  ;;  %v8304_v56 = vmul.f32 %v13216_v8, %v11525_v20 }
0x36a1   :  { %v8284_v46 = vrot.slane %v8227_v27, 4  ;;  %v8296_v52 = vmul.f32 %v13211_v49, %v8227_v27  ;;  %v8303_v3 = vmul.f32 %v13217_v13, %v8227_v27  ;;  %v8247_v27 = vld [vmem:[%s16219_s11 + $0x5a8] sm:$0xff]  ;;  %v8248_v49 = vld [vmem:[%s16219_s11 + $0x5b0] sm:$0xff] }
0x36a3   :  { %v11528_v58 = vpop.f32.mrb[100].mxu1  ;;  %v12770_v48 = vpack.c.bf16 %v8297_v14, %v8296_v52  ;;  %v8286_v10 = vsel %vm1259_vm10, %v8284_v46, %v8285_v55  ;;  %v8246_v14 = vld [vmem:[%s16219_s11 + $0x5a0] sm:$0xff]  ;;  %v8249_v52 = vld [vmem:[%s16219_s11 + $0x5b8] sm:$0xff] }
0x36a4   :  { %v8289_v9 = vrot.slane %v11528_v58, 4  ;;  %v8295_v60 = vsel %vm1259_vm10, %v11528_v58, %v8284_v46  ;;  %v8237_v50 = vpop.f32.mrb[101].mxu1  ;;  %v8307_v5 = vmul.f32 %v13212_v16, %v8286_v10  ;;  %v8300_v23 = vmul.f32 %v13219_v61, %v8286_v10  ;;  %v8715_v61 = vld [vmem:[%s16220_s12 + $0xb8] sm:$0xff] }
0x36a5   :  { %v8299_v35 = vmul.f32 %v13213_v17, %v8295_v60  ;;  %v8306_v59 = vmul.f32 %v13214_v7, %v8295_v60  ;;  %v8287_v44 = vrot.slane %v8237_v50, 4  ;;  %v8298_v53 = vmul.f32 %v13215_v4, %v8237_v50  ;;  %12771 = vmatprep.subr.bf16.mxu1 %v12770_v48 }
0x36a6   :  { %v8305_v34 = vmul.f32 %v13218_v18, %v8237_v50  ;;  %v12798_v46 = vpack.c.bf16 %v8247_v27, %v8246_v14  ;;  %v12802_v58 = vpack.c.bf16 %v8249_v52, %v8248_v49  ;;  %v8916_v14 = vld [vmem:[%s16219_s11 + $0x610] sm:$0xff]  ;;  %v8918_v52 = vld [vmem:[%s16219_s11 + $0x620] sm:$0xff] }
0x36a7   :  { %v12774_v40 = vpack.c.bf16 %v8299_v35, %v8298_v53  ;;  %v8288_v41 = vsel %vm1259_vm10, %v8285_v55, %v8287_v44  ;;  %v8290_v28 = vsel %vm1259_vm10, %v8287_v44, %v8289_v9  ;;  %v12790_v29 = vpack.c.bf16 %v8307_v5, %v8306_v59 }
0x36a8   :  { %v8301_v63 = vmul.f32 %v13220_v62, %v8288_v41  ;;  %v8302_v43 = vmul.f32 %v13221_v25, %v8290_v28  ;;  %v12786_v2 = vpack.c.bf16 %v8305_v34, %v8304_v56  ;;  %v8308_v15 = vmul.f32 %v13222_v0, %v8288_v41  ;;  %12799 = vmatprep.subr.bf16.mxu0 %v12798_v46  ;;  %v8714_v34 = vld [vmem:[%s16220_s12 + $0xb0] sm:$0xff]  ;;  %v8800_v41 = vld [vmem:[%s16219_s11 + $0x5c8] sm:$0xff]  ;;  %v8802_v62 = vld [vmem:[%s16219_s11 + $0x5d8] sm:$0xff] }
0x36a9   :  { %v8309_v24 = vmul.f32 %v13223_v11, %v8290_v28  ;;  %12801 = vmatpush3.bf16.msra.mxu0 %v12798_v46  ;;  %v8801_v28 = vld [vmem:[%s16219_s11 + $0x5d0] sm:$0xff]  ;;  %v8803_v25 = vld [vmem:[%s16219_s11 + $0x5e0] sm:$0xff]  ;;  %v8917_v46 = vld [vmem:[%s16219_s11 + $0x618] sm:$0xff] }
0x36aa   :  { %v12778_v57 = vpack.c.bf16 %v8301_v63, %v8300_v23  ;;  %v12782_v19 = vpack.c.bf16 %v8303_v3, %v8302_v43  ;;  %12803 = vmatprep.subr.bf16.mxu0 %v12802_v58  ;;  %v12810_v23 = vpack.c.bf16 %v8715_v61, %v8714_v34  ;;  %v12818_v63 = vpack.c.bf16 %v8802_v62, %v8801_v28  ;;  %v8804_v43 = vld [vmem:[%s16219_s11 + $0x5e8] sm:$0xff]  ;;  %v8929_v61 = vld [vmem:[%s16219_s11 + $0x678] sm:$0xff] }
0x36ab   :  { %v12794_v42 = vpack.c.bf16 %v8309_v24, %v8308_v15  ;;  %v12836_v49 = vpack.c.bf16 %v8917_v46, %v8916_v14  ;;  %v8927_v34 = vld [vmem:[%s16219_s11 + $0x668] sm:$0xff]  ;;  %v9104_v46 = vld [vmem:[%s16216_s8] sm:$0xff] }
0x36ad   :  { %12805 = vmatpush3.bf16.msra.mxu0 %v12802_v58  ;;  %v8919_v58 = vld [vmem:[%s16219_s11 + $0x628] sm:$0xff] }
0x376d   :  { %v11559_v31 = vpop.f32.mrb[122].mxu0 }
0x376e   :  { %v8430_v47 = vadd.f32 %v11559_v31, %v16257_v6  ;;  %v8424_v22 = vpop.f32.mrb[123].mxu0  ;;  %v16259_v31 = vld [vmem:[#allocation8_spill] sm:$0xff] }
0x376f   :  { %v8425_v36 = vadd.f32 %v8424_v22, %v16258_v12  ;;  %v8709_v6 = vrot.slane %v15740_v32, %v16259_v31 }
0x3770   :  { %v8436_v37 = vsel %vm1455_vm12, %v8430_v47, -inf }
0x3771   :  { %8437 = vmax.xlane.f32.xlu1 %v8436_v37  ;;  %v8433_v45 = vsel %vm1455_vm12, %v8425_v36, -inf }
0x3772   :  { %8434 = vmax.xlane.f32.xlu0 %v8433_v45  ;;  %v8805_v45 = vld [vmem:[%s16219_s11 + $0x5f0] sm:$0xff] }
0x37fe   :  { %v8438_v51 = vpop.xlane.xlu1 %8437 }
0x37ff   :  { %v8440_v1 = vsub.f32 %v8430_v47, %v8438_v51  ;;  %v8435_v39 = vpop.xlane.xlu0 %8434  ;;  %v8806_v51 = vld [vmem:[%s16219_s11 + $0x5f8] sm:$0xff] }
0x3800   :  { %v8439_v21 = vsub.f32 %v8425_v36, %v8435_v39 }
0x3801   :  { %v8443_v26 = vmul.f32 1.442695, %v8440_v1  ;;  %v12826_v1 = vpack.c.bf16 %v8806_v51, %v8805_v45 }
0x3802   :  { %v8441_v20 = vmul.f32 1.442695, %v8439_v21 }
0x3804   :  { %13127 = vpow2.f32 %v8441_v20 }
0x3805   :  { %13129 = vpow2.f32 %v8443_v26 }
0x380e   :  { %v13128_v55 = vpop.eup %13127 }
0x380f   :  { %v13130_v54 = vpop.eup %13129  ;;  %11588 = vmatprep.mubr.msk.f32.mxu1 %vm1455_vm12, %v13128_v55 }
0x3810   :  { %11589 = vmatmul.mubr.msk.f32.vlgmr.msra.gmra.mrb[102].mxu1 %vm1455_vm12, %v13130_v54 }
0x3811   :  { %12773 = vmatpush3.bf16.msra.mxu1 %v12770_v48  ;;  %11619 = vmatprep.mubr.msk.f32.mxu1 %vm1455_vm12, %v13128_v55  ;;  %v8914_v55 = vld [vmem:[%s16219_s11 + $0x600] sm:$0xff] }
0x3812   :  { %12775 = vmatprep.subr.bf16.mxu1 %v12774_v40 }
0x3815   :  { %12777 = vmatpush3.bf16.msra.mxu1 %v12774_v40  ;;  %v8799_v40 = vld [vmem:[%s16219_s11 + $0x5c0] sm:$0xff] }
0x3816   :  { %12779 = vmatprep.subr.bf16.mxu1 %v12778_v57 }
0x3819   :  { %12781 = vmatpush3.bf16.msra.mxu1 %v12778_v57 }
0x381a   :  { %12783 = vmatprep.subr.bf16.mxu1 %v12782_v19 }
0x381d   :  { %12785 = vmatpush3.bf16.msra.mxu1 %v12782_v19 }
0x381e   :  { %12787 = vmatprep.subr.bf16.mxu1 %v12786_v2 }
0x3821   :  { %12789 = vmatpush3.bf16.msra.mxu1 %v12786_v2  ;;  %v12822_v2 = vpack.c.bf16 %v8804_v43, %v8803_v25  ;;  %v16260_v25 = vld [vmem:[#allocation12_spill] sm:$0xff] }
0x3822   :  { %12791 = vmatprep.subr.bf16.mxu1 %v12790_v29  ;;  %v8909_v43 = vrot.slane %v15740_v32, %v16260_v25 }
0x3825   :  { %12793 = vmatpush3.bf16.msra.mxu1 %v12790_v29  ;;  %v12814_v29 = vpack.c.bf16 %v8800_v41, %v8799_v40 }
0x3826   :  { %12795 = vmatprep.subr.bf16.mxu1 %v12794_v42 }
0x3827   :  { %12815 = vmatprep.subr.bf16.mxu0 %v12814_v29 }
0x3829   :  { %12797 = vmatpush3.bf16.msra.mxu1 %v12794_v42 }
0x382c   :  { %11620 = vmatmul.mubr.msk.f32.vlgmr.msra.gmra.mrb[104].mxu1 %vm1455_vm12, %v13130_v54  ;;  %v8915_v54 = vld [vmem:[%s16219_s11 + $0x608] sm:$0xff] }
0x382d   :  { %v12830_v27 = vpack.c.bf16 %v8915_v54, %v8914_v55 }
0x38e3   :  { %v11590_v48 = vpop.f32.mrb[102].mxu1 }
0x38e4   :  { %v8517_v10 = vpop.f32.mrb[103].mxu1  ;;  %v8602_v9 = vmax.f32 %v11590_v48, 1e-20  ;;  %v12842_v48 = vpack.c.bf16 %v8919_v58, %v8918_v52  ;;  %v9118_v52 = vsel %vm9108_vm1, %v9104_v46, 0.0 }
0x38e5   :  { %v8601_v60 = vmax.f32 %v8517_v10, 1e-20  ;;  %v8920_v10 = vld [vmem:[%s16219_s11 + $0x630] sm:$0xff] }
0x38e6   :  { %13131 = vrcp.f32 %v8602_v9  ;;  %v8921_v9 = vld [vmem:[%s16219_s11 + $0x638] sm:$0xff] }
0x38e7   :  { %13133 = vrcp.f32 %v8601_v60  ;;  %v12848_v60 = vpack.c.bf16 %v8921_v9, %v8920_v10 }
0x38f0   :  { %v13132_v50 = vpop.eup %13131 }
0x38f1   :  { %v13134_v5 = vpop.eup %13133 }
0x38ff   :  { %v11621_v16 = vpop.f32.mrb[104].mxu1 }
0x3900   :  { %v8606_v17 = vmul.f32 %v13132_v50, %v11621_v16  ;;  %v8592_v35 = vpop.f32.mrb[105].mxu1  ;;  %v8922_v50 = vld [vmem:[%s16219_s11 + $0x640] sm:$0xff]  ;;  %v8923_v16 = vld [vmem:[%s16219_s11 + $0x648] sm:$0xff] }
0x3901   :  { %v8605_v7 = vmul.f32 %v13134_v5, %v8592_v35  ;;  %v12854_v5 = vpack.c.bf16 %v8923_v16, %v8922_v50  ;;  %v8925_v35 = vld [vmem:[%s16219_s11 + $0x658] sm:$0xff] }
0x3903   :  { %11630 = vmatprep.mubr.msk.f32.mxu0 %vm319_vm5, %v8605_v7 }
0x3904   :  { %11631 = vmatmul.mubr.msk.f32.vlgmr.msra.gmra.mrb[124].mxu0 %vm319_vm5, %v8606_v17  ;;  %v8924_v17 = vld [vmem:[%s16219_s11 + $0x650] sm:$0xff] }
0x3905   :  { %12817 = vmatpush3.bf16.msra.mxu0 %v12814_v29  ;;  %v12860_v7 = vpack.c.bf16 %v8925_v35, %v8924_v17 }
0x3906   :  { %12819 = vmatprep.subr.bf16.mxu0 %v12818_v63 }
0x3909   :  { %12821 = vmatpush3.bf16.msra.mxu0 %v12818_v63 }
0x390a   :  { %12823 = vmatprep.subr.bf16.mxu0 %v12822_v2 }
0x390d   :  { %12825 = vmatpush3.bf16.msra.mxu0 %v12822_v2 }
0x390e   :  { %12827 = vmatprep.subr.bf16.mxu0 %v12826_v1 }
0x3911   :  { %12829 = vmatpush3.bf16.msra.mxu0 %v12826_v1 }
0x39d7   :  { %v11632_v59 = vpop.f32.mrb[124].mxu0 }
0x39d8   :  { %v16030_v44 = vadd.f32 %v11632_v59, %v15850_v30  ;;  %v8679_v4 = vpop.f32.mrb[125].mxu0  ;;  %v8712_v30 = vld [vmem:[%s16220_s12 + $0xa0] sm:$0xff] }
0x39d9   :  { %v16033_v53 = vadd.f32 %v8679_v4, %v15853_v38  ;;  %v8713_v38 = vld [vmem:[%s16220_s12 + $0xa8] sm:$0xff] }
0x39da   :  { %v8691_v8 = vmul.f32 %v16030_v44, %v16030_v44  ;;  %v12806_v18 = vpack.c.bf16 %v8713_v38, %v8712_v30 }
0x39db   :  { %v8690_v56 = vmul.f32 %v16033_v53, %v16033_v53 }
0x39dc   :  { %v8695_v13 = vsel %vm319_vm5, %v8691_v8, 0.0  ;;  %12807 = vmatprep.subr.bf16.mxu1 %v12806_v18 }
0x39dd   :  { %8696 = vadd.xlane.f32.xlu1 %v8695_v13  ;;  %v8692_v3 = vsel %vm319_vm5, %v8690_v56, 0.0  ;;  %12809 = vmatpush3.bf16.msra.mxu1 %v12806_v18  ;;  %v8926_v18 = vld [vmem:[%s16219_s11 + $0x660] sm:$0xff] }
0x39de   :  { %8693 = vadd.xlane.f32.xlu0 %v8692_v3  ;;  %12811 = vmatprep.subr.bf16.mxu1 %v12810_v23 }
0x39e1   :  { %12813 = vmatpush3.bf16.msra.mxu1 %v12810_v23 }
0x39e2   :  { %12832 = vmatprep.subr.msk.bf16.mxu1 %vm13778_vm11, %v12830_v27 }
0x3a6a   :  { %v8697_v0 = vpop.xlane.xlu1 %8696 }
0x3a6b   :  { %v8699_v15 = vmul.f32 0.03125, %v8697_v0  ;;  %v8694_v11 = vpop.xlane.xlu0 %8693 }
0x3a6c   :  { %v8698_v24 = vmul.f32 0.03125, %v8694_v11 }
0x3a6d   :  { %v8701_v57 = vadd.f32 1e-06, %v8699_v15 }
0x3a6e   :  { %v8700_v19 = vadd.f32 1e-06, %v8698_v24 }
0x3a6f   :  { %13135 = vrsqrt.f32 %v8701_v57 }
0x3a70   :  { %13137 = vrsqrt.f32 %v8700_v19 }
0x3a79   :  { %v13136_v42 = vpop.eup %13135 }
0x3a7a   :  { %v13138_v47 = vpop.eup %13137  ;;  %v8705_v22 = vmul.f32 %v13136_v42, %v16030_v44  ;;  %v16261_v42 = vlaneseq }
0x3a7b   :  { %v8704_v12 = vmul.f32 %v13138_v47, %v16033_v53 }
0x3a7c   :  { %v8711_v37 = vmul.f32 %v8709_v6, %v8705_v22  ;;  %v9062_v31 = vand.u32 127, %v16261_v42 }
0x3a7d   :  { %v8710_v36 = vmul.f32 %v8709_v6, %v8704_v12  ;;  %v9087_v12 = vld [vmem:[%s16215_s7 + $0x8] sm:$0xff] }
0x3a7e   :  { %vm9063_vm14 = vcmp.lt.s32.totalorder %v9062_v31, 64 }
0x3a7f   :  { %11641 = vmatprep.mubr.msk.f32.mxu1 %vm319_vm5, %v8710_v36  ;;  %v9086_v36 = vld [vmem:[%s16215_s7] sm:$0xff] }
0x3a80   :  { %11642 = vmatmul.mubr.msk.f32.vlgmr.msra.gmra.mrb[106].mxu1 %vm319_vm5, %v8711_v37 }
0x3a81   :  { %12835 = vmatpush3.bf16.xpose.msk.msra.mxu1 %vm13778_vm11, %v12830_v27 }
0x3a82   :  { %12838 = vmatprep.subr.msk.bf16.mxu1 %vm13778_vm11, %v12836_v49 }
0x3a89   :  { %12841 = vmatpush3.bf16.xpose.msk.msra.mxu1 %vm13778_vm11, %v12836_v49  ;;  %v9105_v49 = vld [vmem:[%s16216_s8 + $0x8] sm:$0xff]  ;;  %s13252_s8 = smov [#allocation2]  }
0x3a8a   :  { %12844 = vmatprep.subr.msk.bf16.mxu1 %vm13778_vm11, %v12842_v48  ;;  %v9119_v58 = vsel %vm9108_vm1, %v9105_v49, 0.0  ;;  %s9140_s28 = sshll.u32 %s13252_s8, 4  ;;  %s9141_s28 = int_to_ptr.vmem [resolvable:$true] %s9140_s28 }
0x3a8b   :  { %s13224_s29 = scalar_lea.vmem %s9141_s28, 16  ;;  %s13228_s0 = scalar_lea.vmem %s9141_s28, 32 }
0x3a8c   :  { %p13225_p0 = scmp.ne.s32.totalorder %s9141_s28, %s13224_s29  ;;  %p13229_p1 = scmp.lt.s32.totalorder %s9141_s28, %s9141_s28 }
0x3a8d   :  { %p13230_p2 = scmp.lt.s32.totalorder %s13228_s0, %s13224_s29 }
0x3a8f   :  { %p13231_p3 = por %p13230_p2, %p13229_p1 }
0x3a91   :  { %12847 = vmatpush3.bf16.xpose.msk.msra.mxu1 %vm13778_vm11, %v12842_v48  ;;  %v9120_v48 = vadd.f32 %v9119_v58, %v9118_v52  ;;  %p13232_p4 = pnand %p13231_p3, %p13225_p0 }
0x3a92   :  { %12850 = vmatprep.subr.msk.bf16.mxu1 %vm13778_vm11, %v12848_v60 }
0x3a93   :  { %v9121_v10 = vrot.slane %v9120_v48, 4 }
0x3a95   :  { %v9122_v9 = vadd.f32 %v9121_v10, %v9120_v48 }
0x3a97   :  { %v9123_v16 = vrot.slane %v9122_v9, 2 }
0x3a99   :  { %12853 = vmatpush3.bf16.xpose.msk.msra.mxu1 %vm13778_vm11, %v12848_v60 }
0x3a9a   :  { %12856 = vmatprep.subr.msk.bf16.mxu1 %vm13778_vm11, %v12854_v5 }
0x3aa1   :  { %12859 = vmatpush3.bf16.xpose.msk.msra.mxu1 %vm13778_vm11, %v12854_v5  ;;  %v9124_v5 = vadd.f32 %v9123_v16, %v9122_v9 }
0x3aa2   :  { %12862 = vmatprep.subr.msk.bf16.mxu1 %vm13778_vm11, %v12860_v7 }
0x3aa3   :  { %v9125_v35 = vrot.slane %v9124_v5, 1 }
0x3aa9   :  { %12865 = vmatpush3.bf16.xpose.msk.msra.mxu1 %vm13778_vm11, %v12860_v7 }
0x3b53   :  { %v11643_v39 = vpop.f32.mrb[106].mxu1 }
0x3b54   :  { %v8788_v21 = vpop.f32.mrb[107].mxu1  ;;  %v8798_v20 = vmax.f32 %v11643_v39, 0.0 }
0x3b55   :  { %v8797_v26 = vmax.f32 %v8788_v21, 0.0 }
0x3b57   :  { %11660 = vmatprep.mubr.msk.f32.mxu0 %vm527_vm7, %v8797_v26 }
0x3b58   :  { %11661 = vmatmul.mubr.msk.f32.vlgmr.msra.gmra.mrb[126].mxu0 %vm527_vm7, %v8798_v20 }
0x3c2b   :  { %v11662_v59 = vpop.f32.mrb[126].mxu0 }
0x3c2c   :  { %v8889_v4 = vadd.f32 %v11662_v59, %v16030_v44  ;;  %v8879_v8 = vpop.f32.mrb[127].mxu0  ;;  %v12866_v44 = vpack.c.bf16 %v8927_v34, %v8926_v18 }
0x3c2d   :  { %v8888_v56 = vadd.f32 %v8879_v8, %v16033_v53  ;;  %v8928_v53 = vld [vmem:[%s16219_s11 + $0x670] sm:$0xff] }
0x3c2e   :  { %v8891_v13 = vmul.f32 %v8889_v4, %v8889_v4  ;;  %12868 = vmatprep.subr.msk.bf16.mxu1 %vm13778_vm11, %v12866_v44  ;;  %v12872_v23 = vpack.c.bf16 %v8929_v61, %v8928_v53 }
0x3c2f   :  { %v8890_v3 = vmul.f32 %v8888_v56, %v8888_v56  ;;  %12871 = vmatpush3.bf16.xpose.msk.msra.mxu1 %vm13778_vm11, %v12866_v44 }
0x3c30   :  { %v8895_v30 = vsel %vm319_vm5, %v8891_v13, 0.0  ;;  %12874 = vmatprep.subr.msk.bf16.mxu1 %vm13778_vm11, %v12872_v23  ;;  %v9126_v13 = vadd.f32 %v9125_v35, %v9124_v5 }
0x3c31   :  { %8896 = vadd.xlane.f32.xlu1 %v8895_v30  ;;  %v8892_v38 = vsel %vm319_vm5, %v8890_v3, 0.0 }
0x3c32   :  { %8893 = vadd.xlane.f32.xlu0 %v8892_v38  ;;  %v9127_v53 = vmax.f32 %v9126_v13, 1.0 }
0x3c37   :  { %12877 = vmatpush3.bf16.xpose.msk.msra.mxu1 %vm13778_vm11, %v12872_v23 }
0x3cbe   :  { %v8897_v40 = vpop.xlane.xlu1 %8896 }
0x3cbf   :  { %v8899_v41 = vmul.f32 0.03125, %v8897_v40  ;;  %v8894_v28 = vpop.xlane.xlu0 %8893 }
0x3cc0   :  { %v8898_v29 = vmul.f32 0.03125, %v8894_v28 }
0x3cc1   :  { %v8901_v62 = vadd.f32 1e-06, %v8899_v41 }
0x3cc2   :  { %v8900_v63 = vadd.f32 1e-06, %v8898_v29 }
0x3cc3   :  { %13139 = vrsqrt.f32 %v8901_v62 }
0x3cc4   :  { %13141 = vrsqrt.f32 %v8900_v63 }
0x3ccd   :  { %v13140_v2 = vpop.eup %13139 }
0x3cce   :  { %v13142_v0 = vpop.eup %13141  ;;  %v8905_v15 = vmul.f32 %v13140_v2, %v8889_v4 }
0x3ccf   :  { %v8904_v11 = vmul.f32 %v13142_v0, %v8888_v56 }
0x3cd0   :  { %v8911_v24 = vmul.f32 %v8909_v43, %v8905_v15 }
0x3cd1   :  { %v8910_v57 = vmul.f32 %v8909_v43, %v8904_v11 }
0x3cd2   :  { %v8913_v33 = vmul.f32 0.17677669, %v8911_v24 }
0x3cd3   :  { %v8912_v19 = vmul.f32 0.17677669, %v8910_v57 }
0x3cd5   :  { %11695 = vmatprep.mubr.msk.f32.mxu1 %vm319_vm5, %v8912_v19 }
0x3cd6   :  { %11696 = vmatmul.mubr.msk.f32.vlgmr.msra.gmra.mrb[108].mxu1 %vm319_vm5, %v8913_v33 }
0x3da9   :  { %v11697_v6 = vpop.f32.mrb[108].mxu1 }
0x3daa   :  { %9060 = vst [vmem:[%s16221_s13 + $0x8] sm:$0xff] %v11697_v6  ;;  %v9050_v32 = vpop.f32.mrb[109].mxu1  ;;  %v9065_v47 = vsel %vm9063_vm14, %v11697_v6, -1e+09 }
0x3dab   :  { %9059 = vst [vmem:[%s16221_s13] sm:$0xff] %v9050_v32  ;;  %9068 = vmax.xlane.f32.xlu1 %v9065_v47  ;;  %v9064_v22 = vsel %vm9063_vm14, %v9050_v32, -1e+09 }
0x3dac   :  { %9066 = vmax.xlane.f32.xlu0 %v9064_v22 }
0x3dbc   :  { %9092 = vperm.xlu1 %12884, %v9087_v12  }
0x3dc2   :  { %9089 = vperm.xlu0 %12883, %v9086_v36  }
0x3e38   :  { %v9069_v37 = vpop.xlane.xlu1 %9068 }
0x3e39   :  { %v9071_v45 = vsub.f32 %v9065_v47, %v9069_v37  ;;  %v9067_v51 = vpop.xlane.xlu0 %9066 }
0x3e3a   :  { %v9070_v1 = vsub.f32 %v9064_v22, %v9067_v51 }
0x3e3b   :  { %v9074_v39 = vmul.f32 1.442695, %v9071_v45 }
0x3e3c   :  { %v9072_v21 = vmul.f32 1.442695, %v9070_v1  ;;  %v9093_v20 = vpop.permute.xlu1 %9092 }
0x3e3d   :  { %13143 = vpow2.f32 %v9074_v39  ;;  %vm9095_vm0 = vcmp.eq.s32.totalorder %v9062_v31, %v9093_v20 }
0x3e3e   :  { %13145 = vpow2.f32 %v9072_v21  ;;  %v9097_v27 = vsel %vm9095_vm0, %v11697_v6, 0.0 }
0x3e41   :  { %v9090_v26 = vpop.permute.xlu0 %9089 }
0x3e42   :  { %vm9094_vm15 = vcmp.eq.s32.totalorder %v9062_v31, %v9090_v26 }
0x3e43   :  { %v9096_v14 = vsel %vm9094_vm15, %v9050_v32, 0.0 }
0x3e47   :  { %v13144_v55 = vpop.eup %13143 }
0x3e48   :  { %v13146_v54 = vpop.eup %13145  ;;  %9078 = vadd.xlane.f32.xlu0 %v13144_v55 }
0x3e49   :  { %9076 = vadd.xlane.f32.xlu1 %v13146_v54 }
0x3e4c   :  { %9098 = vadd.xlane.f32.xlu0 %v9096_v14 }
0x3e4d   :  { %9100 = vadd.xlane.f32.xlu1 %v9097_v27 }
0x3ed5   :  { %v9079_v60 = vpop.xlane.xlu0 %9078 }
0x3ed6   :  { %13147 = vlog2.f32 %v9079_v60  ;;  %v9077_v50 = vpop.xlane.xlu1 %9076 }
0x3ed7   :  { %13149 = vlog2.f32 %v9077_v50 }
0x3ed8   :  { %13151 = vrcp.f32 %v9127_v53 }
0x3ed9   :  { %v9099_v30 = vpop.xlane.xlu0 %9098 }
0x3eda   :  { %v9101_v3 = vpop.xlane.xlu1 %9100 }
0x3ee0   :  { %v13148_v17 = vpop.eup %13147 }
0x3ee1   :  { %v13150_v7 = vpop.eup %13149  ;;  %v9083_v59 = vmul.f32 0.6931472, %v13148_v17 }
0x3ee2   :  { %v9081_v4 = vmul.f32 0.6931472, %v13150_v7  ;;  %v13152_v25 = vpop.eup %13151 }
0x3ee3   :  { %v9085_v8 = vadd.f32 %v9083_v59, %v9069_v37 }
0x3ee4   :  { %v9084_v56 = vadd.f32 %v9081_v4, %v9067_v51 }
0x3ee5   :  { %v9103_v38 = vsub.f32 %v9085_v8, %v9101_v3 }
0x3ee6   :  { %v9102_v18 = vsub.f32 %v9084_v56, %v9099_v30 }
0x3ee7   :  { %v9107_v34 = vmul.f32 %v9105_v49, %v9103_v38 }
0x3ee8   :  { %v9106_v44 = vmul.f32 %v9104_v46, %v9102_v18 }
0x3ee9   :  { %v9110_v61 = vsel %vm9108_vm1, %v9107_v34, 0.0 }
0x3eea   :  { %v9109_v23 = vsel %vm9108_vm1, %v9106_v44, 0.0 }
0x3eeb   :  { %v9111_v40 = vadd.f32 %v9110_v61, %v9109_v23 }
0x3eed   :  { %v9112_v41 = vrot.slane %v9111_v40, 4 }
0x3eef   :  { %v9113_v28 = vadd.f32 %v9112_v41, %v9111_v40 }
0x3ef1   :  { %v9114_v29 = vrot.slane %v9113_v28, 2 }
0x3ef3   :  { %v9115_v62 = vadd.f32 %v9114_v29, %v9113_v28 }
0x3ef5   :  { %v9116_v63 = vrot.slane %v9115_v62, 1 }
0x3ef7   :  { %v9117_v43 = vadd.f32 %v9116_v63, %v9115_v62 }
0x3ef9   :  { %v9129_v2 = vmul.f32 %v13152_v25, %v9117_v43 }
0x3efb   :  { %9131 = vst.msk [vmem:[#allocation2] sm:$0x1] %vm9130_vm2, %v9129_v2 }
0x3efc   :  { %13235 = shalt.err (!%p13232_p4)
}
0x3efd   :  { %s13236_s1 = scalar_lea.hbm %s16222_s14, 16 }
0x3efe   :  { %p13237_p5 = scmp.ne.s32.totalorder %s16222_s14, %s13236_s1  ;;  %p13240_p6 = scmp.lt.u32.totalorder %s13236_s1, %s16222_s14 }
0x3f00   :  { %p13242_p7 = pnand %p13240_p6, %p13237_p5 }
0x3f02   :  { %13245 = shalt.err (!%p13242_p7)
}
0x3f03   :  { %9143 = dma.vmem_to_hbm [thread:$0]  %s9141_s28, 16, %s16222_s14, [#allocation3]  }
0x3f04   :  { %13246 = dma.done.wait [#allocation3], 16  }
0x3f05   :  { %13247 = vsyncadd [#allocation3], 4294967280 }
0x3f06   :  { %9149 = vsyncpa [#allocation3], 1 }

</bundles_post_ra>
